<compile_context>
chip_gen: v6e
topology: v6e:2x2x1
jax: 0.10.0
libtpu: 0.0.40
codegen_flags: <defaults>
</compile_context>

<pallas_src>
import functools

import jax
import jax.numpy as jnp
from jax import lax
from jax.experimental import pallas as pl
from jax.experimental.pallas import tpu as pltpu

KSPARSE = 200          # fixed k of the k-sparse autoencoder (torch.topk(..., 200, dim=1))
KH = KW = 3            # conv / deconv kernel size
STRIDE = 2
OUTPUT_PADDING = 1

try:
    _DEVICE_KIND = jax.devices()[0].device_kind.lower()
except Exception:  # pragma: no cover - device query should not break tracing
    _DEVICE_KIND = ""
_IS_MEGACORE = "v7" in _DEVICE_KIND      # 2 TensorCores per chip -> keep >=2 parallel tiles


# ----------------------------------------------------------------------------
# Pallas kernels
# ----------------------------------------------------------------------------
def _encoder_kernel(p_ref, w_ref, b_ref, z_ref, pmax_ref, *, batch):
    """z = patches @ W + b (f32 MXU accumulate) and fused per-(batch, filter) max."""
    z = (jnp.dot(p_ref[...], w_ref[...], preferred_element_type=jnp.float32)
         + b_ref[...])
    z_ref[...] = z
    # Rows are ordered (batch, oh, ow): reduce the spatial axis for the top-k input.
    pmax_ref[...] = jnp.max(z.reshape(batch, -1, z.shape[-1]), axis=1)


def _decoder_kernel(z_ref, mask_ref, w_ref, col_ref):
    """col = (z * mask) @ W_dec — mask applied in-kernel, lane-dense output, no bias."""
    zm = z_ref[...] * mask_ref[...]
    col_ref[...] = jnp.dot(zm, w_ref[...], preferred_element_type=jnp.float32)


# ----------------------------------------------------------------------------
# Grid shaping (generation-aware, per performance review)
# ----------------------------------------------------------------------------
def _encoder_tile_n(F):
    # v7x: two "parallel" filter tiles so both TensorCores work.
    # v5e/v6e: one lane-dense block (single TC; avoids per-step overhead).
    if _IS_MEGACORE and F % 256 == 0:
        return F // 2
    return F


def _decoder_tile_m(M):
    if _IS_MEGACORE and M % 16 == 0 and M >= 16:
        return M // 2
    return M


# ----------------------------------------------------------------------------
# Wrappers
# ----------------------------------------------------------------------------
def _im2col(x, kh, kw, stride):
    """x: [B, C, H, W] -> patches [B*OH*OW, C*kh*kw] (torch weight ordering)."""
    B, C, H, W = x.shape
    OH = (H - kh) // stride + 1
    OW = (W - kw) // stride + 1
    cols = []
    for i in range(kh):
        for j in range(kw):
            cols.append(x[:, :, i:i + stride * OH:stride, j:j + stride * OW:stride])
    col = jnp.stack(cols, axis=2)                          # [B, C, kh*kw, OH, OW]
    col = col.reshape(B, C * kh * kw, OH, OW)
    col = col.transpose(0, 2, 3, 1).reshape(B * OH * OW, C * kh * kw)
    return col, OH, OW


def encode_premask(prep, x):
    """Conv2d(C, 32C, 3, stride=2) of (x - dec_b), the subtraction folded into the
    bias.  Returns z2d [B*OH*OW, F] (pre-mask) and the fused per-(batch, filter)
    spatial max [B, F]."""
    B = x.shape[0]
    CK, F = prep["enc_w"].shape
    patches, OH, OW = _im2col(x, KH, KW, STRIDE)           # [M, C*9] f32
    M = patches.shape[0]
    tn = _encoder_tile_n(F)
    z2d, pmax = pl.pallas_call(
        functools.partial(_encoder_kernel, batch=B),
        out_shape=(jax.ShapeDtypeStruct((M, F), jnp.float32),
                   jax.ShapeDtypeStruct((B, F), jnp.float32)),
        grid=(F // tn,),
        in_specs=[
            pl.BlockSpec((M, CK), lambda j: (0, 0)),
            pl.BlockSpec((CK, tn), lambda j: (0, j)),
            pl.BlockSpec((1, tn), lambda j: (0, j)),
        ],
        out_specs=(
            pl.BlockSpec((M, tn), lambda j: (0, j)),
            pl.BlockSpec((B, tn), lambda j: (0, j)),
        ),
        compiler_params=pltpu.CompilerParams(dimension_semantics=("parallel",)),
    )(patches, prep["enc_w"], prep["enc_b"])
    return z2d, pmax, OH, OW


def decode_masked(prep, z2d, mask, B, OH, OW):
    """ConvTranspose2d(F, C, 3, stride=2, output_padding=1) of the masked z.

    Dense single-K-block matmul (mask applied in-kernel) followed by a cheap
    stride-2 col2im shift-and-add + bias in XLA.
    """
    F, NCP = prep["dec_w_mat"].shape
    C = prep["dec_b"].shape[0]
    NC = KH * KW * C
    M = z2d.shape[0]
    tm = _decoder_tile_m(M)
    col = pl.pallas_call(
        _decoder_kernel,
        out_shape=jax.ShapeDtypeStruct((M, NCP), jnp.float32),
        grid=(M // tm,),
        in_specs=[
            pl.BlockSpec((tm, F), lambda i: (i, 0)),
            pl.BlockSpec((1, F), lambda i: (0, 0)),
            pl.BlockSpec((F, NCP), lambda i: (0, 0)),
        ],
        out_specs=pl.BlockSpec((tm, NCP), lambda i: (i, 0)),
        compiler_params=pltpu.CompilerParams(dimension_semantics=("parallel",)),
    )(z2d, mask.reshape(1, F), prep["dec_w_mat"])

    # col2im: stride-2 scatter-add of per-pixel (3,3,C) output patches + dec_b.
    # ~160 KB XLA epilogue; kept out of Mosaic (6-D reshape / interior-pad risk).
    col = col[:, :NC].reshape(B, OH, OW, KH, KW, C)
    DOH = (OH - 1) * STRIDE + KH + OUTPUT_PADDING
    DOW = (OW - 1) * STRIDE + KW + OUTPUT_PADDING
    dil_h = (OH - 1) * STRIDE + 1
    dil_w = (OW - 1) * STRIDE + 1
    xhat = jnp.zeros((B, DOH, DOW, C), jnp.float32)
    for ky in range(KH):
        for kx in range(KW):
            xhat = xhat + lax.pad(
                col[:, :, :, ky, kx, :], jnp.float32(0),
                ((0, 0, 0),
                 (ky, DOH - dil_h - ky, STRIDE - 1),
                 (kx, DOW - dil_w - kx, STRIDE - 1),
                 (0, 0, 0)))
    xhat = xhat + prep["dec_b"][None, None, None, :]
    return xhat.transpose(0, 3, 1, 2)                      # [B, C, DOH, DOW]


# ----------------------------------------------------------------------------
# Parameters
# ----------------------------------------------------------------------------
def init_params(key, input_channels=64):
    """Deterministic synthetic parameters with the module's shapes."""
    C = input_channels
    F = 32 * C
    k1, k2, k3, k4 = jax.random.split(key, 4)
    scale = 0.05
    return {
        "proj_w": scale * jax.random.normal(k1, (F, C, 3, 3), jnp.float32),  # Conv2d weight
        "proj_b": scale * jax.random.normal(k2, (F,), jnp.float32),          # Conv2d bias
        "dec_w": scale * jax.random.normal(k3, (F, C, 3, 3), jnp.float32),   # ConvTranspose2d weight [in, out, kh, kw]
        "dec_b": scale * jax.random.normal(k4, (C,), jnp.float32),           # ConvTranspose2d bias
    }


def prepare_params(params):
    """One-time weight re-layout, hoisted out of the forward pass (review item 1)."""
    proj_w = params["proj_w"]                              # [F, C, 3, 3]
    F, C = proj_w.shape[0], proj_w.shape[1]
    enc_w = proj_w.reshape(F, C * KH * KW).T               # [C*9, F], (c, ky, kx) K-order
    # Fold the (x - dec_b) subtraction into the encoder bias: with VALID padding
    # every window sees the whole constant image, so conv(dec_b const) is a
    # per-filter constant.
    enc_b = params["proj_b"] - jnp.einsum("fckl,c->f", proj_w, params["dec_b"])
    NC = KH * KW * C
    NCP = ((NC + 127) // 128) * 128                        # lane-dense decoder matmul width
    dec_w_mat = params["dec_w"].transpose(0, 2, 3, 1).reshape(F, NC)   # [F, (ky,kx,c)]
    dec_w_mat = jnp.pad(dec_w_mat, ((0, 0), (0, NCP - NC)))
    return {
        "enc_w": enc_w,
        "enc_b": enc_b.reshape(1, F),
        "dec_w_mat": dec_w_mat,
        "dec_b": params["dec_b"],
    }


# ----------------------------------------------------------------------------
# Forward
# ----------------------------------------------------------------------------
def sparse_autoencoder9_forward(prep, x):
    B = x.shape[0]
    F = prep["enc_w"].shape[1]

    # ------------------------------ encode ------------------------------
    z2d, pmax, OH, OW = encode_premask(prep, x)            # [M, F], [B, F] f32

    # k-sparse mask.  NOTE: PyTorch's `x_mask[:, ind, ...] = 1.0` with ind of
    # shape [B, k] unions the selected filters across the batch; reproduced here.
    # TODO(synk): torch.topk has no clean Pallas equivalent; lax.top_k runs in
    # the XLA wrapper on the kernel-fused per-filter max.
    k = min(KSPARSE, F)
    _, ind = lax.top_k(pmax, k)                            # [B, k]
    mask = jnp.zeros((F,), jnp.float32).at[ind.reshape(-1)].set(1.0)
    z = (z2d * mask[None, :]).reshape(B, OH, OW, F).transpose(0, 3, 1, 2)

    # ------------------------------ decode ------------------------------
    xhat = decode_masked(prep, z2d, mask, B, OH, OW)
    return z, xhat


if __name__ == "__main__":
    key = jax.random.PRNGKey(0)
    pkey, xkey = jax.random.split(key)
    C = 64  # module default input_channels (needs 32*C >= topk k=200)
    raw = init_params(pkey, input_channels=C)
    prep = prepare_params(raw)
    x = jax.random.normal(xkey, (2, C, 9, 9), jnp.float32)

    fwd = jax.jit(sparse_autoencoder9_forward)
    z, xhat = fwd(prep, x)
    jax.block_until_ready((z, xhat))

    F = 32 * C
    # Shape checks consistent with the PyTorch module's semantics.
    assert z.shape == (2, F, 4, 4), z.shape
    assert xhat.shape == (2, C, 10, 10), xhat.shape

    # Structural check on the k-sparse union mask (k <= |union| <= B*k).
    active = int(jnp.sum(jnp.any(z != 0, axis=(0, 2, 3))))
    assert KSPARSE <= active <= 2 * KSPARSE, active

    # Numerics (all-f32 path): pre-mask encoder output and fused per-filter max
    # vs an f32 XLA conv, and decoder output vs an f32 XLA transposed conv
    # applied to the kernel's own z (avoids top-k tie sensitivity).
    x_sub = x - raw["dec_b"][None, :, None, None]
    z_pre_ref = lax.conv_general_dilated(
        x_sub, raw["proj_w"], (2, 2), "VALID",
        dimension_numbers=("NCHW", "OIHW", "NCHW"),
        precision=lax.Precision.HIGHEST) + raw["proj_b"][None, :, None, None]
    z2d_k, pmax_k, OH, OW = encode_premask(prep, x)
    z_pre_k = z2d_k.reshape(2, OH, OW, F).transpose(0, 3, 1, 2)
    assert float(jnp.max(jnp.abs(z_pre_k - z_pre_ref))) < 0.1
    pmax_ref = jnp.max(z_pre_ref.reshape(2, F, -1), axis=2)
    assert float(jnp.max(jnp.abs(pmax_k - pmax_ref))) < 0.1

    w_t = jnp.flip(raw["dec_w"], axis=(2, 3)).transpose(1, 0, 2, 3)      # [C, F, 3, 3]
    xhat_ref = lax.conv_general_dilated(
        z, w_t, (1, 1), ((2, 3), (2, 3)), lhs_dilation=(2, 2),
        dimension_numbers=("NCHW", "OIHW", "NCHW"),
        precision=lax.Precision.HIGHEST) + raw["dec_b"][None, :, None, None]
    assert float(jnp.max(jnp.abs(xhat - xhat_ref))) < 0.1

    print("KERNEL_OK")
</pallas_src>

<mosaic_0001>
module attributes {stable_mosaic.version = 11 : i64} {
  func.func @_encoder_kernel(%arg0: i32, %arg1: memref<32x576xf32, #tpu.memory_space<vmem>>, %arg2: memref<576x2048xf32, #tpu.memory_space<vmem>>, %arg3: memref<1x2048xf32, #tpu.memory_space<vmem>>, %arg4: memref<32x2048xf32, #tpu.memory_space<vmem>>, %arg5: memref<2x2048xf32, #tpu.memory_space<vmem>>) attributes {dimension_semantics = [#tpu.dimension_semantics<parallel>], iteration_bounds = array<i64: 1>, scalar_prefetch = 0 : i64, scratch_operands = 0 : i64, tpu.core_type = #tpu.core_type<tc>, window_params = [{pipeline_mode = #tpu.pipeline_mode<synchronous>, transform_indices = @transform_0, window_bounds = array<i64: 32, 576>}, {transform_indices = @transform_1, window_bounds = array<i64: 576, 2048>}, {transform_indices = @transform_2, window_bounds = array<i64: 1, 2048>}, {transform_indices = @transform_3, window_bounds = array<i64: 32, 2048>}, {transform_indices = @transform_4, window_bounds = array<i64: 2, 2048>}]} {
    %c0 = arith.constant 0 : index
    %c0_0 = arith.constant 0 : index
    %0 = vector.load %arg1[%c0, %c0_0] : memref<32x576xf32, #tpu.memory_space<vmem>>, vector<32x576xf32>
    %c0_1 = arith.constant 0 : index
    %c0_2 = arith.constant 0 : index
    %1 = vector.load %arg2[%c0_1, %c0_2] : memref<576x2048xf32, #tpu.memory_space<vmem>>, vector<576x2048xf32>
    %cst = arith.constant dense<0.000000e+00> : vector<32x2048xf32>
    %2 = tpu.matmul %0, %1, %cst {dimension_numbers = #tpu.dot_dimension_numbers<[1], [0], [0], [1], [0, 0, 1, 1], [], []>} : vector<32x576xf32>, vector<576x2048xf32>, vector<32x2048xf32> -> vector<32x2048xf32>
    %c0_3 = arith.constant 0 : index
    %c0_4 = arith.constant 0 : index
    %3 = vector.load %arg3[%c0_3, %c0_4] : memref<1x2048xf32, #tpu.memory_space<vmem>>, vector<1x2048xf32>
    %4 = vector.broadcast %3 : vector<1x2048xf32> to vector<32x2048xf32>
    %5 = arith.addf %2, %4 : vector<32x2048xf32>
    %c0_5 = arith.constant 0 : index
    %c0_6 = arith.constant 0 : index
    %6 = vector.load %arg4[%c0_5, %c0_6] : memref<32x2048xf32, #tpu.memory_space<vmem>>, vector<32x2048xf32>
    tpu.vector_store %arg4[%c0_5, %c0_6], %5 {strides = array<i32>} : memref<32x2048xf32, #tpu.memory_space<vmem>>, vector<32x2048xf32>,
    %7 = vector.shape_cast %5 : vector<32x2048xf32> to vector<2x16x2048xf32>
    %cst_7 = arith.constant dense<0xFF800000> : vector<2x2048xf32>
    %8 = vector.multi_reduction <maximumf>, %7, %cst_7 [1] : vector<2x16x2048xf32> to vector<2x2048xf32>
    %c0_8 = arith.constant 0 : index
    %c0_9 = arith.constant 0 : index
    %9 = vector.load %arg5[%c0_8, %c0_9] : memref<2x2048xf32, #tpu.memory_space<vmem>>, vector<2x2048xf32>
    tpu.vector_store %arg5[%c0_8, %c0_9], %8 {strides = array<i32>} : memref<2x2048xf32, #tpu.memory_space<vmem>>, vector<2x2048xf32>,
    return
  }
  func.func @transform_0(%arg0: i32) -> (i32, i32) {
    %c0_i32 = arith.constant 0 : i32
    %c0_i32_0 = arith.constant 0 : i32
    %c0_i32_1 = arith.constant 0 : i32
    return %c0_i32, %c0_i32_0 : i32, i32
  }
  func.func @transform_1(%arg0: i32) -> (i32, i32) {
    %c0_i32 = arith.constant 0 : i32
    %c0_i32_0 = arith.constant 0 : i32
    return %c0_i32, %arg0 : i32, i32
  }
  func.func @transform_2(%arg0: i32) -> (i32, i32) {
    %c0_i32 = arith.constant 0 : i32
    %c0_i32_0 = arith.constant 0 : i32
    return %c0_i32, %arg0 : i32, i32
  }
  func.func @transform_3(%arg0: i32) -> (i32, i32) {
    %c0_i32 = arith.constant 0 : i32
    %c0_i32_0 = arith.constant 0 : i32
    return %c0_i32, %arg0 : i32, i32
  }
  func.func @transform_4(%arg0: i32) -> (i32, i32) {
    %c0_i32 = arith.constant 0 : i32
    %c0_i32_0 = arith.constant 0 : i32
    return %c0_i32, %arg0 : i32, i32
  }
}

module attributes {stable_mosaic.version = 11 : i64} {
  func.func @_decoder_kernel(%arg0: i32, %arg1: memref<32x2048xf32, #tpu.memory_space<vmem>>, %arg2: memref<1x2048xf32, #tpu.memory_space<vmem>>, %arg3: memref<2048x640xf32, #tpu.memory_space<vmem>>, %arg4: memref<32x640xf32, #tpu.memory_space<vmem>>) attributes {dimension_semantics = [#tpu.dimension_semantics<parallel>], iteration_bounds = array<i64: 1>, scalar_prefetch = 0 : i64, scratch_operands = 0 : i64, tpu.core_type = #tpu.core_type<tc>, window_params = [{transform_indices = @transform_0, window_bounds = array<i64: 32, 2048>}, {pipeline_mode = #tpu.pipeline_mode<synchronous>, transform_indices = @transform_1, window_bounds = array<i64: 1, 2048>}, {pipeline_mode = #tpu.pipeline_mode<synchronous>, transform_indices = @transform_2, window_bounds = array<i64: 2048, 640>}, {transform_indices = @transform_3, window_bounds = array<i64: 32, 640>}]} {
    %c0 = arith.constant 0 : index
    %c0_0 = arith.constant 0 : index
    %0 = vector.load %arg1[%c0, %c0_0] : memref<32x2048xf32, #tpu.memory_space<vmem>>, vector<32x2048xf32>
    %c0_1 = arith.constant 0 : index
    %c0_2 = arith.constant 0 : index
    %1 = vector.load %arg2[%c0_1, %c0_2] : memref<1x2048xf32, #tpu.memory_space<vmem>>, vector<1x2048xf32>
    %2 = vector.broadcast %1 : vector<1x2048xf32> to vector<32x2048xf32>
    %3 = arith.mulf %0, %2 : vector<32x2048xf32>
    %c0_3 = arith.constant 0 : index
    %c0_4 = arith.constant 0 : index
    %4 = vector.load %arg3[%c0_3, %c0_4] : memref<2048x640xf32, #tpu.memory_space<vmem>>, vector<2048x640xf32>
    %cst = arith.constant dense<0.000000e+00> : vector<32x640xf32>
    %5 = tpu.matmul %3, %4, %cst {dimension_numbers = #tpu.dot_dimension_numbers<[1], [0], [0], [1], [0, 0, 1, 1], [], []>} : vector<32x2048xf32>, vector<2048x640xf32>, vector<32x640xf32> -> vector<32x640xf32>
    %c0_5 = arith.constant 0 : index
    %c0_6 = arith.constant 0 : index
    %6 = vector.load %arg4[%c0_5, %c0_6] : memref<32x640xf32, #tpu.memory_space<vmem>>, vector<32x640xf32>
    tpu.vector_store %arg4[%c0_5, %c0_6], %5 {strides = array<i32>} : memref<32x640xf32, #tpu.memory_space<vmem>>, vector<32x640xf32>,
    return
  }
  func.func @transform_0(%arg0: i32) -> (i32, i32) {
    %c0_i32 = arith.constant 0 : i32
    %c0_i32_0 = arith.constant 0 : i32
    return %arg0, %c0_i32 : i32, i32
  }
  func.func @transform_1(%arg0: i32) -> (i32, i32) {
    %c0_i32 = arith.constant 0 : i32
    %c0_i32_0 = arith.constant 0 : i32
    %c0_i32_1 = arith.constant 0 : i32
    return %c0_i32, %c0_i32_0 : i32, i32
  }
  func.func @transform_2(%arg0: i32) -> (i32, i32) {
    %c0_i32 = arith.constant 0 : i32
    %c0_i32_0 = arith.constant 0 : i32
    %c0_i32_1 = arith.constant 0 : i32
    return %c0_i32, %c0_i32_0 : i32, i32
  }
  func.func @transform_3(%arg0: i32) -> (i32, i32) {
    %c0_i32 = arith.constant 0 : i32
    %c0_i32_0 = arith.constant 0 : i32
    return %arg0, %c0_i32 : i32, i32
  }
}

</mosaic_0001>

<bundles_post_ra>
// kernel: sparse_autoencoder9_forward.2
= control target key start
LH: loop header
LB: loop body
LE: loop exit
PB: predicated region body
PF: predicated region fallthrough
CT: control target
= control target key end

     0   :  { %10 = vsyncpa [#allocation3], 0  ;;  %s5322_s0 = inlined_call_operand.vmem [shape: f32[32,576], index: 0, kind: input, shape index: {}]   ;;  %s5323_s1 = inlined_call_operand.hbm [shape: f32[576,2048], index: 1, kind: input, shape index: {}]   ;;  %s5324_s2 = inlined_call_operand.hbm [shape: f32[1,2048], index: 2, kind: input, shape index: {}]   ;;  %s5325_s3 = inlined_call_operand.vmem [shape: f32[32,2048], index: 3, kind: output, shape index: {0}]   ;;  %s5326_s4 = inlined_call_operand.vmem [shape: f32[2,2048], index: 4, kind: output, shape index: {1}]  }
   0x1   :  { %11 = vsyncpa [#allocation5], 0  ;;  %s4099_s15 = smov [#allocation2]  }
   0x2   :  { %s19_s16 = sshll.u32 %s4099_s15, 4  ;;  %s20_s16 = int_to_ptr.vmem [resolvable:$true] %s19_s16 }
   0x3   :  { %s4063_s17 = scalar_lea.vmem %s20_s16, 147456  ;;  %p4068_p1 = scmp.lt.s32.totalorder %s20_s16, %s20_s16 }
   0x4   :  { %p4064_p0 = scmp.ne.s32.totalorder %s20_s16, %s4063_s17  ;;  %p4069_p2 = scmp.lt.s32.totalorder %s4063_s17, %s4063_s17 }
   0x6   :  { %p4070_p3 = por %p4069_p2, %p4068_p1 }
   0x8   :  { %p4071_p4 = pnand %p4070_p3, %p4064_p0 }
   0xa   :  { %4074 = shalt.err (!%p4071_p4)
}
   0xb   :  { %s4100_s18 = smov 2048   ;;  %s4101_s19 = smov 128  }
   0xc   :  { %25 = dma.hbm_to_vmem [thread:$0]  %s5323_s1, 147456, %s20_s16, [#allocation3], %s4100_s18, %s4100_s18, %s4101_s19  }
   0xd   :  { %s4102_s22 = smov [#allocation4]  }
   0xe   :  { %s32_s23 = sshll.u32 %s4102_s22, 4  ;;  %s33_s23 = int_to_ptr.vmem [resolvable:$true] %s32_s23 }
   0xf   :  { %s4083_s24 = scalar_lea.vmem %s33_s23, 256  ;;  %p4088_p6 = scmp.lt.s32.totalorder %s33_s23, %s33_s23 }
  0x10   :  { %p4084_p5 = scmp.ne.s32.totalorder %s33_s23, %s4083_s24  ;;  %p4089_p7 = scmp.lt.s32.totalorder %s4083_s24, %s4083_s24 }
  0x12   :  { %p4090_p8 = por %p4089_p7, %p4088_p6 }
  0x14   :  { %p4091_p9 = pnand %p4090_p8, %p4084_p5 }
  0x16   :  { %4094 = shalt.err (!%p4091_p9)
}
  0x17   :  { %35 = dma.hbm_to_vmem [thread:$0]  %s5324_s2, 256, %s33_s23, [#allocation5]  }
  0x18   :  { %4095 = dma.done.wait [#allocation3], 147456  }
  0x19   :  { %4096 = vsyncadd [#allocation3], 4294819840 }
  0x1a   :  { %4097 = dma.done.wait [#allocation5], 256  }
  0x1b   :  { %4098 = vsyncadd [#allocation5], 4294967040  ;;  %v303_v0 = vld [vmem:[#allocation2 + $0x788] sm:$0xff]  ;;  %v302_v2 = vld [vmem:[#allocation2 + $0x780] sm:$0xff]  ;;  %vm1298_vm0 = vcmask 523264   ;;  %vm3908_vm1 = vcmask 1041409  }
  0x1c   :  { %v815_v1 = vld [vmem:[#allocation2 + $0x1788] sm:$0xff]  ;;  %1311 = vmatprep.subr.mxu0 %v303_v0  ;;  %v814_v3 = vld [vmem:[#allocation2 + $0x1780] sm:$0xff]  ;;  %vm3910_vm2 = vcmask 1043459   ;;  %vm3912_vm3 = vcmask 1045509   ;;  %vm3914_vm4 = vcmask 1047559  }
  0x1d   :  { %1400 = vmatprep.subr.mxu1 %v815_v1  ;;  %v287_v4 = vld [vmem:[#allocation2 + $0x708] sm:$0xff]  ;;  %1312 = vmatpush1.msra.mxu0 %v302_v2  ;;  %v286_v6 = vld [vmem:[#allocation2 + $0x700] sm:$0xff] }
  0x1e   :  { %v799_v5 = vld [vmem:[#allocation2 + $0x1708] sm:$0xff]  ;;  %1401 = vmatpush1.msra.mxu1 %v814_v3  ;;  %v798_v7 = vld [vmem:[#allocation2 + $0x1700] sm:$0xff]  ;;  %1313 = vmatprep.subr.mxu0 %v287_v4 }
  0x1f   :  { %v271_v8 = vld [vmem:[#allocation2 + $0x688] sm:$0xff]  ;;  %1402 = vmatprep.subr.mxu1 %v799_v5  ;;  %v270_v10 = vld [vmem:[#allocation2 + $0x680] sm:$0xff]  ;;  %1314 = vmatpush1.msra.mxu0 %v286_v6 }
  0x20   :  { %v783_v9 = vld [vmem:[#allocation2 + $0x1688] sm:$0xff]  ;;  %v782_v11 = vld [vmem:[#allocation2 + $0x1680] sm:$0xff]  ;;  %1403 = vmatpush1.msra.mxu1 %v798_v7  ;;  %1315 = vmatprep.subr.mxu0 %v271_v8 }
  0x21   :  { %v255_v12 = vld [vmem:[#allocation2 + $0x608] sm:$0xff]  ;;  %1404 = vmatprep.subr.mxu1 %v783_v9  ;;  %v254_v14 = vld [vmem:[#allocation2 + $0x600] sm:$0xff]  ;;  %1316 = vmatpush1.msra.mxu0 %v270_v10 }
  0x22   :  { %v767_v13 = vld [vmem:[#allocation2 + $0x1608] sm:$0xff]  ;;  %v766_v15 = vld [vmem:[#allocation2 + $0x1600] sm:$0xff]  ;;  %1405 = vmatpush1.msra.mxu1 %v782_v11  ;;  %1317 = vmatprep.subr.mxu0 %v255_v12 }
  0x23   :  { %v239_v16 = vld [vmem:[#allocation2 + $0x588] sm:$0xff]  ;;  %1406 = vmatprep.subr.mxu1 %v767_v13  ;;  %v238_v18 = vld [vmem:[#allocation2 + $0x580] sm:$0xff]  ;;  %1318 = vmatpush1.msra.mxu0 %v254_v14 }
  0x24   :  { %v751_v17 = vld [vmem:[#allocation2 + $0x1588] sm:$0xff]  ;;  %v750_v19 = vld [vmem:[#allocation2 + $0x1580] sm:$0xff]  ;;  %1407 = vmatpush1.msra.mxu1 %v766_v15  ;;  %1319 = vmatprep.subr.mxu0 %v239_v16 }
  0x25   :  { %v223_v20 = vld [vmem:[#allocation2 + $0x508] sm:$0xff]  ;;  %1408 = vmatprep.subr.mxu1 %v751_v17  ;;  %v222_v22 = vld [vmem:[#allocation2 + $0x500] sm:$0xff]  ;;  %1320 = vmatpush1.msra.mxu0 %v238_v18 }
  0x26   :  { %v735_v21 = vld [vmem:[#allocation2 + $0x1508] sm:$0xff]  ;;  %v734_v23 = vld [vmem:[#allocation2 + $0x1500] sm:$0xff]  ;;  %1409 = vmatpush1.msra.mxu1 %v750_v19  ;;  %1321 = vmatprep.subr.mxu0 %v223_v20 }
  0x27   :  { %v207_v24 = vld [vmem:[#allocation2 + $0x488] sm:$0xff]  ;;  %1410 = vmatprep.subr.mxu1 %v735_v21  ;;  %v206_v26 = vld [vmem:[#allocation2 + $0x480] sm:$0xff]  ;;  %1322 = vmatpush1.msra.mxu0 %v222_v22 }
  0x28   :  { %v719_v25 = vld [vmem:[#allocation2 + $0x1488] sm:$0xff]  ;;  %v718_v27 = vld [vmem:[#allocation2 + $0x1480] sm:$0xff]  ;;  %1411 = vmatpush1.msra.mxu1 %v734_v23  ;;  %1323 = vmatprep.subr.mxu0 %v207_v24 }
  0x29   :  { %v191_v28 = vld [vmem:[#allocation2 + $0x408] sm:$0xff]  ;;  %1412 = vmatprep.subr.mxu1 %v719_v25  ;;  %v190_v30 = vld [vmem:[#allocation2 + $0x400] sm:$0xff]  ;;  %1324 = vmatpush1.msra.mxu0 %v206_v26 }
  0x2a   :  { %v703_v29 = vld [vmem:[#allocation2 + $0x1408] sm:$0xff]  ;;  %v702_v31 = vld [vmem:[#allocation2 + $0x1400] sm:$0xff]  ;;  %1413 = vmatpush1.msra.mxu1 %v718_v27  ;;  %1325 = vmatprep.subr.mxu0 %v191_v28 }
  0x2b   :  { %v175_v32 = vld [vmem:[#allocation2 + $0x388] sm:$0xff]  ;;  %1414 = vmatprep.subr.mxu1 %v703_v29  ;;  %v174_v34 = vld [vmem:[#allocation2 + $0x380] sm:$0xff]  ;;  %1326 = vmatpush1.msra.mxu0 %v190_v30 }
  0x2c   :  { %v687_v33 = vld [vmem:[#allocation2 + $0x1388] sm:$0xff]  ;;  %v686_v35 = vld [vmem:[#allocation2 + $0x1380] sm:$0xff]  ;;  %1415 = vmatpush1.msra.mxu1 %v702_v31  ;;  %1327 = vmatprep.subr.mxu0 %v175_v32 }
  0x2d   :  { %v159_v36 = vld [vmem:[#allocation2 + $0x308] sm:$0xff]  ;;  %1416 = vmatprep.subr.mxu1 %v687_v33  ;;  %v158_v38 = vld [vmem:[#allocation2 + $0x300] sm:$0xff]  ;;  %1328 = vmatpush1.msra.mxu0 %v174_v34 }
  0x2e   :  { %v671_v37 = vld [vmem:[#allocation2 + $0x1308] sm:$0xff]  ;;  %v670_v39 = vld [vmem:[#allocation2 + $0x1300] sm:$0xff]  ;;  %1417 = vmatpush1.msra.mxu1 %v686_v35  ;;  %1329 = vmatprep.subr.mxu0 %v159_v36 }
  0x2f   :  { %v143_v40 = vld [vmem:[#allocation2 + $0x288] sm:$0xff]  ;;  %1418 = vmatprep.subr.mxu1 %v671_v37  ;;  %v142_v42 = vld [vmem:[#allocation2 + $0x280] sm:$0xff]  ;;  %1330 = vmatpush1.msra.mxu0 %v158_v38 }
  0x30   :  { %v655_v41 = vld [vmem:[#allocation2 + $0x1288] sm:$0xff]  ;;  %v654_v43 = vld [vmem:[#allocation2 + $0x1280] sm:$0xff]  ;;  %1419 = vmatpush1.msra.mxu1 %v670_v39  ;;  %1331 = vmatprep.subr.mxu0 %v143_v40 }
  0x31   :  { %v127_v44 = vld [vmem:[#allocation2 + $0x208] sm:$0xff]  ;;  %1420 = vmatprep.subr.mxu1 %v655_v41  ;;  %v126_v46 = vld [vmem:[#allocation2 + $0x200] sm:$0xff]  ;;  %1332 = vmatpush1.msra.mxu0 %v142_v42 }
  0x32   :  { %v639_v45 = vld [vmem:[#allocation2 + $0x1208] sm:$0xff]  ;;  %v638_v47 = vld [vmem:[#allocation2 + $0x1200] sm:$0xff]  ;;  %1421 = vmatpush1.msra.mxu1 %v654_v43  ;;  %1333 = vmatprep.subr.mxu0 %v127_v44 }
  0x33   :  { %v111_v48 = vld [vmem:[#allocation2 + $0x188] sm:$0xff]  ;;  %1422 = vmatprep.subr.mxu1 %v639_v45  ;;  %v110_v50 = vld [vmem:[#allocation2 + $0x180] sm:$0xff]  ;;  %1334 = vmatpush1.msra.mxu0 %v126_v46 }
  0x34   :  { %v623_v49 = vld [vmem:[#allocation2 + $0x1188] sm:$0xff]  ;;  %v622_v51 = vld [vmem:[#allocation2 + $0x1180] sm:$0xff]  ;;  %1423 = vmatpush1.msra.mxu1 %v638_v47  ;;  %1335 = vmatprep.subr.mxu0 %v111_v48 }
  0x35   :  { %v95_v52 = vld [vmem:[#allocation2 + $0x108] sm:$0xff]  ;;  %1424 = vmatprep.subr.mxu1 %v623_v49  ;;  %v94_v54 = vld [vmem:[#allocation2 + $0x100] sm:$0xff]  ;;  %1336 = vmatpush1.msra.mxu0 %v110_v50 }
  0x36   :  { %v607_v53 = vld [vmem:[#allocation2 + $0x1108] sm:$0xff]  ;;  %v606_v55 = vld [vmem:[#allocation2 + $0x1100] sm:$0xff]  ;;  %1425 = vmatpush1.msra.mxu1 %v622_v51  ;;  %1337 = vmatprep.subr.mxu0 %v95_v52 }
  0x37   :  { %v79_v56 = vld [vmem:[#allocation2 + $0x88] sm:$0xff]  ;;  %1426 = vmatprep.subr.mxu1 %v607_v53  ;;  %v78_v58 = vld [vmem:[#allocation2 + $0x80] sm:$0xff]  ;;  %1338 = vmatpush1.msra.mxu0 %v94_v54 }
  0x38   :  { %v591_v57 = vld [vmem:[#allocation2 + $0x1088] sm:$0xff]  ;;  %v590_v59 = vld [vmem:[#allocation2 + $0x1080] sm:$0xff]  ;;  %1427 = vmatpush1.msra.mxu1 %v606_v55  ;;  %1339 = vmatprep.subr.mxu0 %v79_v56 }
  0x39   :  { %v63_v60 = vld [vmem:[#allocation2 + $0x8] sm:$0xff]  ;;  %1428 = vmatprep.subr.mxu1 %v591_v57  ;;  %v62_v62 = vld [vmem:[#allocation2] sm:$0xff]  ;;  %1340 = vmatpush1.msra.mxu0 %v78_v58 }
  0x3a   :  { %v575_v61 = vld [vmem:[#allocation2 + $0x1008] sm:$0xff]  ;;  %v574_v63 = vld [vmem:[#allocation2 + $0x1000] sm:$0xff]  ;;  %1429 = vmatpush1.msra.mxu1 %v590_v59  ;;  %1341 = vmatprep.subr.mxu0 %v63_v60 }
  0x3b   :  { %v559_v0 = vld [vmem:[#allocation2 + $0xf88] sm:$0xff]  ;;  %1430 = vmatprep.subr.mxu1 %v575_v61  ;;  %v558_v2 = vld [vmem:[#allocation2 + $0xf80] sm:$0xff]  ;;  %1342 = vmatpush1.msra.mxu0 %v62_v62 }
  0x3c   :  { %v1071_v1 = vld [vmem:[#allocation2 + $0x1f88] sm:$0xff]  ;;  %v1070_v3 = vld [vmem:[#allocation2 + $0x1f80] sm:$0xff]  ;;  %1431 = vmatpush1.msra.mxu1 %v574_v63  ;;  %1343 = vmatprep.subr.mxu0 %v559_v0 }
  0x3d   :  { %v543_v4 = vld [vmem:[#allocation2 + $0xf08] sm:$0xff]  ;;  %1432 = vmatprep.subr.mxu1 %v1071_v1  ;;  %v542_v6 = vld [vmem:[#allocation2 + $0xf00] sm:$0xff]  ;;  %1344 = vmatpush2.msra.mxu0 %v558_v2  ;;  %v4144_v1 = vld [vmem:[%s5322_s0 + $0x18] sm:$0xff] }
  0x3e   :  { %v1055_v5 = vld [vmem:[#allocation2 + $0x1f08] sm:$0xff]  ;;  %v1054_v7 = vld [vmem:[#allocation2 + $0x1f00] sm:$0xff]  ;;  %1433 = vmatpush2.msra.mxu1 %v1070_v3  ;;  %1345 = vmatprep.subr.mxu0 %v543_v4  ;;  %v4154_v3 = vld [vmem:[%s5322_s0 + $0x10] sm:$0xff] }
  0x3f   :  { %v527_v8 = vld [vmem:[#allocation2 + $0xe88] sm:$0xff]  ;;  %1434 = vmatprep.subr.mxu1 %v1055_v5  ;;  %v526_v10 = vld [vmem:[#allocation2 + $0xe80] sm:$0xff]  ;;  %1346 = vmatpush2.msra.mxu0 %v542_v6  ;;  %v305_v5 = vld [vmem:[#allocation2 + $0x798] sm:$0xff] }
  0x40   :  { %v1039_v9 = vld [vmem:[#allocation2 + $0x1e88] sm:$0xff]  ;;  %v1038_v11 = vld [vmem:[#allocation2 + $0x1e80] sm:$0xff]  ;;  %1435 = vmatpush2.msra.mxu1 %v1054_v7  ;;  %1347 = vmatprep.subr.mxu0 %v527_v8  ;;  %v304_v7 = vld [vmem:[#allocation2 + $0x790] sm:$0xff] }
  0x41   :  { %v511_v12 = vld [vmem:[#allocation2 + $0xe08] sm:$0xff]  ;;  %1436 = vmatprep.subr.mxu1 %v1039_v9  ;;  %v510_v14 = vld [vmem:[#allocation2 + $0xe00] sm:$0xff]  ;;  %1348 = vmatpush2.msra.mxu0 %v526_v10  ;;  %v289_v9 = vld [vmem:[#allocation2 + $0x718] sm:$0xff] }
  0x42   :  { %v1023_v13 = vld [vmem:[#allocation2 + $0x1e08] sm:$0xff]  ;;  %v1022_v15 = vld [vmem:[#allocation2 + $0x1e00] sm:$0xff]  ;;  %1437 = vmatpush2.msra.mxu1 %v1038_v11  ;;  %1349 = vmatprep.subr.mxu0 %v511_v12  ;;  %v4163_v10 = vld [vmem:[%s5322_s0 + $0x30] sm:$0xff] }
  0x43   :  { %v495_v16 = vld [vmem:[#allocation2 + $0xd88] sm:$0xff]  ;;  %1438 = vmatprep.subr.mxu1 %v1023_v13  ;;  %v494_v18 = vld [vmem:[#allocation2 + $0xd80] sm:$0xff]  ;;  %1350 = vmatpush2.msra.mxu0 %v510_v14  ;;  %v288_v12 = vld [vmem:[#allocation2 + $0x710] sm:$0xff] }
  0x44   :  { %v1007_v17 = vld [vmem:[#allocation2 + $0x1d88] sm:$0xff]  ;;  %v1006_v19 = vld [vmem:[#allocation2 + $0x1d80] sm:$0xff]  ;;  %1439 = vmatpush2.msra.mxu1 %v1022_v15  ;;  %1351 = vmatprep.subr.mxu0 %v495_v16  ;;  %v273_v15 = vld [vmem:[#allocation2 + $0x698] sm:$0xff] }
  0x45   :  { %v479_v20 = vld [vmem:[#allocation2 + $0xd08] sm:$0xff]  ;;  %1440 = vmatprep.subr.mxu1 %v1007_v17  ;;  %v478_v22 = vld [vmem:[#allocation2 + $0xd00] sm:$0xff]  ;;  %1352 = vmatpush2.msra.mxu0 %v494_v18  ;;  %v272_v18 = vld [vmem:[#allocation2 + $0x690] sm:$0xff] }
  0x46   :  { %v991_v21 = vld [vmem:[#allocation2 + $0x1d08] sm:$0xff]  ;;  %v990_v23 = vld [vmem:[#allocation2 + $0x1d00] sm:$0xff]  ;;  %1441 = vmatpush2.msra.mxu1 %v1006_v19  ;;  %1353 = vmatprep.subr.mxu0 %v479_v20  ;;  %v4180_v20 = vld [vmem:[%s5322_s0 + $0x38] sm:$0xff] }
  0x47   :  { %v463_v24 = vld [vmem:[#allocation2 + $0xc88] sm:$0xff]  ;;  %1442 = vmatprep.subr.mxu1 %v991_v21  ;;  %v462_v26 = vld [vmem:[#allocation2 + $0xc80] sm:$0xff]  ;;  %1354 = vmatpush2.msra.mxu0 %v478_v22  ;;  %v257_v21 = vld [vmem:[#allocation2 + $0x618] sm:$0xff] }
  0x48   :  { %v975_v25 = vld [vmem:[#allocation2 + $0x1c88] sm:$0xff]  ;;  %v974_v27 = vld [vmem:[#allocation2 + $0x1c80] sm:$0xff]  ;;  %1443 = vmatpush2.msra.mxu1 %v990_v23  ;;  %1355 = vmatprep.subr.mxu0 %v463_v24  ;;  %v4186_v22 = vld [vmem:[%s5322_s0 + $0x58] sm:$0xff] }
  0x49   :  { %v447_v28 = vld [vmem:[#allocation2 + $0xc08] sm:$0xff]  ;;  %1444 = vmatprep.subr.mxu1 %v975_v25  ;;  %v446_v30 = vld [vmem:[#allocation2 + $0xc00] sm:$0xff]  ;;  %1356 = vmatpush2.msra.mxu0 %v462_v26  ;;  %v256_v24 = vld [vmem:[#allocation2 + $0x610] sm:$0xff] }
  0x4a   :  { %v959_v29 = vld [vmem:[#allocation2 + $0x1c08] sm:$0xff]  ;;  %v958_v31 = vld [vmem:[#allocation2 + $0x1c00] sm:$0xff]  ;;  %1445 = vmatpush2.msra.mxu1 %v974_v27  ;;  %1357 = vmatprep.subr.mxu0 %v447_v28  ;;  %v4191_v25 = vld [vmem:[%s5322_s0 + $0x50] sm:$0xff] }
  0x4b   :  { %v431_v32 = vld [vmem:[#allocation2 + $0xb88] sm:$0xff]  ;;  %1446 = vmatprep.subr.mxu1 %v959_v29  ;;  %v430_v34 = vld [vmem:[#allocation2 + $0xb80] sm:$0xff]  ;;  %1358 = vmatpush2.msra.mxu0 %v446_v30  ;;  %v241_v27 = vld [vmem:[#allocation2 + $0x598] sm:$0xff] }
  0x4c   :  { %v943_v33 = vld [vmem:[#allocation2 + $0x1b88] sm:$0xff]  ;;  %v942_v35 = vld [vmem:[#allocation2 + $0x1b80] sm:$0xff]  ;;  %1447 = vmatpush2.msra.mxu1 %v958_v31  ;;  %1359 = vmatprep.subr.mxu0 %v431_v32  ;;  %v240_v30 = vld [vmem:[#allocation2 + $0x590] sm:$0xff] }
  0x4d   :  { %v415_v36 = vld [vmem:[#allocation2 + $0xb08] sm:$0xff]  ;;  %1448 = vmatprep.subr.mxu1 %v943_v33  ;;  %v414_v38 = vld [vmem:[#allocation2 + $0xb00] sm:$0xff]  ;;  %1360 = vmatpush2.msra.mxu0 %v430_v34  ;;  %v225_v33 = vld [vmem:[#allocation2 + $0x518] sm:$0xff] }
  0x4e   :  { %v927_v37 = vld [vmem:[#allocation2 + $0x1b08] sm:$0xff]  ;;  %v926_v39 = vld [vmem:[#allocation2 + $0x1b00] sm:$0xff]  ;;  %1449 = vmatpush2.msra.mxu1 %v942_v35  ;;  %1361 = vmatprep.subr.mxu0 %v415_v36  ;;  %v224_v36 = vld [vmem:[#allocation2 + $0x510] sm:$0xff] }
  0x4f   :  { %v399_v40 = vld [vmem:[#allocation2 + $0xa88] sm:$0xff]  ;;  %1450 = vmatprep.subr.mxu1 %v927_v37  ;;  %v398_v42 = vld [vmem:[#allocation2 + $0xa80] sm:$0xff]  ;;  %1362 = vmatpush2.msra.mxu0 %v414_v38  ;;  %v4215_v37 = vld [vmem:[%s5322_s0 + $0x78] sm:$0xff] }
  0x50   :  { %v911_v41 = vld [vmem:[#allocation2 + $0x1a88] sm:$0xff]  ;;  %v910_v43 = vld [vmem:[#allocation2 + $0x1a80] sm:$0xff]  ;;  %1451 = vmatpush2.msra.mxu1 %v926_v39  ;;  %1363 = vmatprep.subr.mxu0 %v399_v40  ;;  %v209_v39 = vld [vmem:[#allocation2 + $0x498] sm:$0xff] }
  0x51   :  { %v383_v44 = vld [vmem:[#allocation2 + $0xa08] sm:$0xff]  ;;  %1452 = vmatprep.subr.mxu1 %v911_v41  ;;  %v382_v46 = vld [vmem:[#allocation2 + $0xa00] sm:$0xff]  ;;  %1364 = vmatpush2.msra.mxu0 %v398_v42  ;;  %v4222_v40 = vld [vmem:[%s5322_s0 + $0x90] sm:$0xff] }
  0x52   :  { %v895_v45 = vld [vmem:[#allocation2 + $0x1a08] sm:$0xff]  ;;  %v894_v47 = vld [vmem:[#allocation2 + $0x1a00] sm:$0xff]  ;;  %1453 = vmatpush2.msra.mxu1 %v910_v43  ;;  %1365 = vmatprep.subr.mxu0 %v383_v44  ;;  %v208_v42 = vld [vmem:[#allocation2 + $0x490] sm:$0xff] }
  0x53   :  { %v367_v48 = vld [vmem:[#allocation2 + $0x988] sm:$0xff]  ;;  %1454 = vmatprep.subr.mxu1 %v895_v45  ;;  %v366_v50 = vld [vmem:[#allocation2 + $0x980] sm:$0xff]  ;;  %1366 = vmatpush2.msra.mxu0 %v382_v46  ;;  %v193_v45 = vld [vmem:[#allocation2 + $0x418] sm:$0xff] }
  0x54   :  { %v879_v49 = vld [vmem:[#allocation2 + $0x1988] sm:$0xff]  ;;  %v878_v51 = vld [vmem:[#allocation2 + $0x1980] sm:$0xff]  ;;  %1455 = vmatpush2.msra.mxu1 %v894_v47  ;;  %1367 = vmatprep.subr.mxu0 %v367_v48  ;;  %v192_v47 = vld [vmem:[#allocation2 + $0x410] sm:$0xff] }
  0x55   :  { %v351_v52 = vld [vmem:[#allocation2 + $0x908] sm:$0xff]  ;;  %1456 = vmatprep.subr.mxu1 %v879_v49  ;;  %v350_v54 = vld [vmem:[#allocation2 + $0x900] sm:$0xff]  ;;  %1368 = vmatpush2.msra.mxu0 %v366_v50  ;;  %v177_v49 = vld [vmem:[#allocation2 + $0x398] sm:$0xff] }
  0x56   :  { %v863_v53 = vld [vmem:[#allocation2 + $0x1908] sm:$0xff]  ;;  %v862_v55 = vld [vmem:[#allocation2 + $0x1900] sm:$0xff]  ;;  %1457 = vmatpush2.msra.mxu1 %v878_v51  ;;  %1369 = vmatprep.subr.mxu0 %v351_v52  ;;  %v817_v50 = vld [vmem:[#allocation2 + $0x1798] sm:$0xff]  ;;  %v4103_v51 = vmov 0.0  }
  0x57   :  { %v335_v56 = vld [vmem:[#allocation2 + $0x888] sm:$0xff]  ;;  %1458 = vmatprep.subr.mxu1 %v863_v53  ;;  %v334_v58 = vld [vmem:[#allocation2 + $0x880] sm:$0xff]  ;;  %1370 = vmatpush2.msra.mxu0 %v350_v54  ;;  %v176_v52 = vld [vmem:[#allocation2 + $0x390] sm:$0xff] }
  0x58   :  { %v847_v57 = vld [vmem:[#allocation2 + $0x1888] sm:$0xff]  ;;  %v846_v59 = vld [vmem:[#allocation2 + $0x1880] sm:$0xff]  ;;  %1459 = vmatpush2.msra.mxu1 %v862_v55  ;;  %1371 = vmatprep.subr.mxu0 %v335_v56  ;;  %v816_v53 = vld [vmem:[#allocation2 + $0x1790] sm:$0xff] }
  0x59   :  { %v319_v60 = vld [vmem:[#allocation2 + $0x808] sm:$0xff]  ;;  %1460 = vmatprep.subr.mxu1 %v847_v57  ;;  %v318_v62 = vld [vmem:[#allocation2 + $0x800] sm:$0xff]  ;;  %1372 = vmatpush2.msra.mxu0 %v334_v58  ;;  %v161_v54 = vld [vmem:[#allocation2 + $0x318] sm:$0xff] }
  0x5a   :  { %v831_v61 = vld [vmem:[#allocation2 + $0x1808] sm:$0xff]  ;;  %1461 = vmatpush2.msra.mxu1 %v846_v59  ;;  %v830_v0 = vld [vmem:[#allocation2 + $0x1800] sm:$0xff]  ;;  %1373 = vmatprep.subr.mxu0 %v319_v60  ;;  %v801_v55 = vld [vmem:[#allocation2 + $0x1718] sm:$0xff] }
  0x5b   :  { %v4139_v63 = vld [vmem:[%s5322_s0 + $0x8] sm:$0xff]  ;;  %1462 = vmatprep.subr.mxu1 %v831_v61  ;;  %v4149_v2 = vld [vmem:[%s5322_s0] sm:$0xff]  ;;  %1374 = vmatpush2.msra.mxu0 %v318_v62  ;;  %v160_v56 = vld [vmem:[#allocation2 + $0x310] sm:$0xff] }
  0x5c   :  { %1375 = vmatprep.mubr.f32.mxu0 %v4139_v63  ;;  %v1199_v4 = vld [vmem:[#allocation2 + $0x2388] sm:$0xff]  ;;  %1463 = vmatpush2.msra.mxu1 %v830_v0  ;;  %v1198_v6 = vld [vmem:[#allocation2 + $0x2380] sm:$0xff]  ;;  %v800_v57 = vld [vmem:[#allocation2 + $0x1710] sm:$0xff] }
  0x5d   :  { %1464 = vmatprep.mubr.f32.mxu1 %v4144_v1  ;;  %1376 = vmatmul.mubr.f32.vlgmr.msra.gmra.mxu0 %v4149_v2  ;;  %v1183_v8 = vld [vmem:[#allocation2 + $0x2308] sm:$0xff]  ;;  %v1182_v11 = vld [vmem:[#allocation2 + $0x2300] sm:$0xff]  ;;  %v145_v58 = vld [vmem:[#allocation2 + $0x298] sm:$0xff] }
  0x5e   :  { %1465 = vmatmul.mubr.f32.vlgmr.msra.gmra.mxu1 %v4154_v3  ;;  %1505 = vmatprep.subr.mxu0 %v1199_v4  ;;  %v4168_v13 = vld [vmem:[%s5322_s0 + $0x28] sm:$0xff]  ;;  %v4174_v16 = vld [vmem:[%s5322_s0 + $0x40] sm:$0xff]  ;;  %v785_v60 = vld [vmem:[#allocation2 + $0x1698] sm:$0xff] }
  0x5f   :  { %1578 = vmatprep.subr.mxu1 %v305_v5  ;;  %1506 = vmatpush1.msra.mxu0 %v1198_v6  ;;  %v1167_v14 = vld [vmem:[#allocation2 + $0x2288] sm:$0xff]  ;;  %v1166_v17 = vld [vmem:[#allocation2 + $0x2280] sm:$0xff]  ;;  %v144_v61 = vld [vmem:[#allocation2 + $0x290] sm:$0xff] }
  0x60   :  { %1579 = vmatpush1.msra.mxu1 %v304_v7  ;;  %1507 = vmatprep.subr.mxu0 %v1183_v8  ;;  %v1151_v19 = vld [vmem:[#allocation2 + $0x2208] sm:$0xff]  ;;  %v1150_v23 = vld [vmem:[#allocation2 + $0x2200] sm:$0xff]  ;;  %v784_v62 = vld [vmem:[#allocation2 + $0x1690] sm:$0xff] }
  0x61   :  { %1580 = vmatprep.subr.mxu1 %v289_v9  ;;  %1381 = vmatprep.mubr.f32.mxu0 %v4163_v10  ;;  %v1135_v26 = vld [vmem:[#allocation2 + $0x2188] sm:$0xff]  ;;  %v1134_v29 = vld [vmem:[#allocation2 + $0x2180] sm:$0xff]  ;;  %v129_v0 = vld [vmem:[#allocation2 + $0x218] sm:$0xff] }
  0x62   :  { %1508 = vmatpush1.msra.mxu0 %v1182_v11  ;;  %1581 = vmatpush1.msra.mxu1 %v288_v12  ;;  %v4198_v28 = vld [vmem:[%s5322_s0 + $0x68] sm:$0xff]  ;;  %v4204_v32 = vld [vmem:[%s5322_s0 + $0x60] sm:$0xff]  ;;  %v769_v4 = vld [vmem:[#allocation2 + $0x1618] sm:$0xff] }
  0x63   :  { %1382 = vmatmul.mubr.f32.gmra.mxu0 %v4168_v13  ;;  %1509 = vmatprep.subr.mxu0 %v1167_v14  ;;  %v1119_v31 = vld [vmem:[#allocation2 + $0x2108] sm:$0xff]  ;;  %v4210_v34 = vld [vmem:[%s5322_s0 + $0x80] sm:$0xff]  ;;  %v128_v5 = vld [vmem:[#allocation2 + $0x210] sm:$0xff] }
  0x64   :  { %1582 = vmatprep.subr.mxu1 %v273_v15  ;;  %1470 = vmatprep.mubr.f32.mxu1 %v4174_v16  ;;  %v1118_v35 = vld [vmem:[#allocation2 + $0x2100] sm:$0xff]  ;;  %v1103_v38 = vld [vmem:[#allocation2 + $0x2088] sm:$0xff]  ;;  %v768_v6 = vld [vmem:[#allocation2 + $0x1610] sm:$0xff] }
  0x65   :  { %1510 = vmatpush1.msra.mxu0 %v1166_v17  ;;  %1583 = vmatpush1.msra.mxu1 %v272_v18  ;;  %v1102_v41 = vld [vmem:[#allocation2 + $0x2080] sm:$0xff]  ;;  %v1087_v43 = vld [vmem:[#allocation2 + $0x2008] sm:$0xff]  ;;  %v113_v7 = vld [vmem:[#allocation2 + $0x198] sm:$0xff] }
  0x66   :  { %1511 = vmatprep.subr.mxu0 %v1151_v19  ;;  %1471 = vmatmul.mubr.f32.gmra.mxu1 %v4180_v20  ;;  %v4228_v44 = vld [vmem:[%s5322_s0 + $0x88] sm:$0xff]  ;;  %v1086_v46 = vld [vmem:[#allocation2 + $0x2000] sm:$0xff]  ;;  %v4251_v8 = vld [vmem:[%s5322_s0 + $0x70] sm:$0xff] }
  0x67   :  { %1584 = vmatprep.subr.mxu1 %v257_v21  ;;  %1387 = vmatprep.mubr.f32.mxu0 %v4186_v22  ;;  %v4234_v48 = vld [vmem:[%s5322_s0 + $0x20] sm:$0xff]  ;;  %v4243_v59 = vld [vmem:[%s5322_s0 + $0x48] sm:$0xff]  ;;  %v753_v9 = vld [vmem:[#allocation2 + $0x1598] sm:$0xff] }
  0x68   :  { %1512 = vmatpush1.msra.mxu0 %v1150_v23  ;;  %1585 = vmatpush1.msra.mxu1 %v256_v24  ;;  %v112_v11 = vld [vmem:[#allocation2 + $0x190] sm:$0xff]  ;;  %v97_v14 = vld [vmem:[#allocation2 + $0x118] sm:$0xff] }
  0x69   :  { %1388 = vmatmul.mubr.f32.gmra.mxu0 %v4191_v25  ;;  %1513 = vmatprep.subr.mxu0 %v1135_v26  ;;  %v752_v12 = vld [vmem:[#allocation2 + $0x1590] sm:$0xff]  ;;  %v737_v15 = vld [vmem:[#allocation2 + $0x1518] sm:$0xff] }
  0x6a   :  { %1586 = vmatprep.subr.mxu1 %v241_v27  ;;  %1476 = vmatprep.mubr.f32.mxu1 %v4198_v28  ;;  %v96_v17 = vld [vmem:[#allocation2 + $0x110] sm:$0xff]  ;;  %v81_v19 = vld [vmem:[#allocation2 + $0x98] sm:$0xff] }
  0x6b   :  { %1514 = vmatpush1.msra.mxu0 %v1134_v29  ;;  %1587 = vmatpush1.msra.mxu1 %v240_v30  ;;  %v736_v18 = vld [vmem:[#allocation2 + $0x1510] sm:$0xff]  ;;  %v4259_v21 = vld [vmem:[%s5322_s0 + $0x98] sm:$0xff] }
  0x6c   :  { %1515 = vmatprep.subr.mxu0 %v1119_v31  ;;  %1477 = vmatmul.mubr.f32.gmra.mxu1 %v4204_v32  ;;  %v721_v23 = vld [vmem:[#allocation2 + $0x1498] sm:$0xff]  ;;  %v80_v24 = vld [vmem:[#allocation2 + $0x90] sm:$0xff] }
  0x6d   :  { %1588 = vmatprep.subr.mxu1 %v225_v33  ;;  %1393 = vmatprep.mubr.f32.mxu0 %v4210_v34  ;;  %v720_v26 = vld [vmem:[#allocation2 + $0x1490] sm:$0xff]  ;;  %v65_v27 = vld [vmem:[#allocation2 + $0x18] sm:$0xff] }
  0x6e   :  { %1516 = vmatpush1.msra.mxu0 %v1118_v35  ;;  %1589 = vmatpush1.msra.mxu1 %v224_v36  ;;  %v705_v29 = vld [vmem:[#allocation2 + $0x1418] sm:$0xff]  ;;  %v64_v30 = vld [vmem:[#allocation2 + $0x10] sm:$0xff] }
  0x6f   :  { %1394 = vmatmul.mubr.f32.gmra.mxu0 %v4215_v37  ;;  %1517 = vmatprep.subr.mxu0 %v1103_v38  ;;  %v704_v31 = vld [vmem:[#allocation2 + $0x1410] sm:$0xff]  ;;  %v561_v33 = vld [vmem:[#allocation2 + $0xf98] sm:$0xff] }
  0x70   :  { %1590 = vmatprep.subr.mxu1 %v209_v39  ;;  %1482 = vmatprep.mubr.f32.mxu1 %v4222_v40  ;;  %v689_v35 = vld [vmem:[#allocation2 + $0x1398] sm:$0xff]  ;;  %v560_v36 = vld [vmem:[#allocation2 + $0xf90] sm:$0xff] }
  0x71   :  { %1518 = vmatpush1.msra.mxu0 %v1102_v41  ;;  %1591 = vmatpush1.msra.mxu1 %v208_v42  ;;  %v688_v38 = vld [vmem:[#allocation2 + $0x1390] sm:$0xff]  ;;  %v545_v39 = vld [vmem:[#allocation2 + $0xf18] sm:$0xff] }
  0x72   :  { %1519 = vmatprep.subr.mxu0 %v1087_v43  ;;  %1483 = vmatmul.mubr.f32.gmra.mxu1 %v4228_v44  ;;  %v673_v41 = vld [vmem:[#allocation2 + $0x1318] sm:$0xff]  ;;  %v544_v42 = vld [vmem:[#allocation2 + $0xf10] sm:$0xff] }
  0x73   :  { %1592 = vmatprep.subr.mxu1 %v193_v45  ;;  %1520 = vmatpush1.msra.mxu0 %v1086_v46  ;;  %v672_v43 = vld [vmem:[#allocation2 + $0x1310] sm:$0xff]  ;;  %v529_v45 = vld [vmem:[#allocation2 + $0xe98] sm:$0xff] }
  0x74   :  { %1553 = vmatprep.mubr.f32.mxu0 %v4103_v51  ;;  %1593 = vmatpush1.msra.mxu1 %v192_v47  ;;  %v657_v46 = vld [vmem:[#allocation2 + $0x1298] sm:$0xff]  ;;  %v528_v47 = vld [vmem:[#allocation2 + $0xe90] sm:$0xff] }
  0x75   :  { %3955 = vmatmul.mubr.msk.f32.vlgmr.msra.gmra.mxu0 %vm1298_vm0, %v4234_v48  ;;  %1594 = vmatprep.subr.mxu1 %v177_v49  ;;  %v656_v49 = vld [vmem:[#allocation2 + $0x1290] sm:$0xff] }
  0x76   :  { %1667 = vmatprep.subr.mxu0 %v817_v50  ;;  %1595 = vmatpush1.msra.mxu1 %v176_v52  ;;  %v513_v50 = vld [vmem:[#allocation2 + $0xe18] sm:$0xff] }
  0x77   :  { %1668 = vmatpush1.msra.mxu0 %v816_v53  ;;  %1596 = vmatprep.subr.mxu1 %v161_v54  ;;  %v641_v52 = vld [vmem:[#allocation2 + $0x1218] sm:$0xff]  ;;  %v512_v53 = vld [vmem:[#allocation2 + $0xe10] sm:$0xff] }
  0x78   :  { %1669 = vmatprep.subr.mxu0 %v801_v55  ;;  %1559 = vmatprep.mubr.f32.mxu0 %v4103_v51  ;;  %v640_v54 = vld [vmem:[#allocation2 + $0x1210] sm:$0xff]  ;;  %v497_v55 = vld [vmem:[#allocation2 + $0xd98] sm:$0xff] }
  0x79   :  { %1597 = vmatpush1.msra.mxu1 %v160_v56  ;;  %1670 = vmatpush1.msra.mxu0 %v800_v57  ;;  %v625_v56 = vld [vmem:[#allocation2 + $0x1198] sm:$0xff]  ;;  %v496_v57 = vld [vmem:[#allocation2 + $0xd90] sm:$0xff] }
  0x7a   :  { %1598 = vmatprep.subr.mxu1 %v145_v58  ;;  %3956 = vmatmul.mubr.msk.f32.gmra.mxu0 %vm1298_vm0, %v4243_v59  ;;  %v624_v58 = vld [vmem:[#allocation2 + $0x1190] sm:$0xff] }
  0x7b   :  { %1671 = vmatprep.subr.mxu0 %v785_v60  ;;  %1599 = vmatpush1.msra.mxu1 %v144_v61  ;;  %v481_v60 = vld [vmem:[#allocation2 + $0xd18] sm:$0xff] }
  0x7c   :  { %1672 = vmatpush1.msra.mxu0 %v784_v62  ;;  %1600 = vmatprep.subr.mxu1 %v129_v0  ;;  %v609_v61 = vld [vmem:[#allocation2 + $0x1118] sm:$0xff]  ;;  %v480_v62 = vld [vmem:[#allocation2 + $0xd10] sm:$0xff] }
  0x7d   :  { %1673 = vmatprep.subr.mxu0 %v769_v4  ;;  %1565 = vmatprep.mubr.f32.mxu0 %v4103_v51  ;;  %v608_v0 = vld [vmem:[#allocation2 + $0x1110] sm:$0xff]  ;;  %v465_v4 = vld [vmem:[#allocation2 + $0xc98] sm:$0xff] }
  0x7e   :  { %1601 = vmatpush1.msra.mxu1 %v128_v5  ;;  %1674 = vmatpush1.msra.mxu0 %v768_v6  ;;  %v593_v5 = vld [vmem:[#allocation2 + $0x1098] sm:$0xff]  ;;  %v464_v6 = vld [vmem:[#allocation2 + $0xc90] sm:$0xff] }
  0x7f   :  { %1602 = vmatprep.subr.mxu1 %v113_v7  ;;  %3957 = vmatmul.mubr.msk.f32.gmra.mxu0 %vm1298_vm0, %v4251_v8  ;;  %v592_v7 = vld [vmem:[#allocation2 + $0x1090] sm:$0xff] }
  0x80   :  { %1675 = vmatprep.subr.mxu0 %v753_v9  ;;  %1603 = vmatpush1.msra.mxu1 %v112_v11  ;;  %v449_v9 = vld [vmem:[#allocation2 + $0xc18] sm:$0xff] }
  0x81   :  { %1676 = vmatpush1.msra.mxu0 %v752_v12  ;;  %1604 = vmatprep.subr.mxu1 %v97_v14  ;;  %v577_v11 = vld [vmem:[#allocation2 + $0x1018] sm:$0xff]  ;;  %v448_v12 = vld [vmem:[#allocation2 + $0xc10] sm:$0xff] }
  0x82   :  { %1677 = vmatprep.subr.mxu0 %v737_v15  ;;  %1571 = vmatprep.mubr.f32.mxu0 %v4103_v51  ;;  %v576_v14 = vld [vmem:[#allocation2 + $0x1010] sm:$0xff]  ;;  %v433_v15 = vld [vmem:[#allocation2 + $0xb98] sm:$0xff] }
  0x83   :  { %1605 = vmatpush1.msra.mxu1 %v96_v17  ;;  %1678 = vmatpush1.msra.mxu0 %v736_v18  ;;  %v1073_v17 = vld [vmem:[#allocation2 + $0x1f98] sm:$0xff]  ;;  %v432_v18 = vld [vmem:[#allocation2 + $0xb90] sm:$0xff] }
  0x84   :  { %1606 = vmatprep.subr.mxu1 %v81_v19  ;;  %3958 = vmatmul.mubr.msk.f32.gmra.mxu0 %vm1298_vm0, %v4259_v21  ;;  %v1072_v19 = vld [vmem:[#allocation2 + $0x1f90] sm:$0xff] }
  0x85   :  { %1679 = vmatprep.subr.mxu0 %v721_v23  ;;  %1607 = vmatpush1.msra.mxu1 %v80_v24  ;;  %v417_v23 = vld [vmem:[#allocation2 + $0xb18] sm:$0xff] }
  0x86   :  { %1680 = vmatpush1.msra.mxu0 %v720_v26  ;;  %1608 = vmatprep.subr.mxu1 %v65_v27  ;;  %v1057_v24 = vld [vmem:[#allocation2 + $0x1f18] sm:$0xff]  ;;  %v416_v26 = vld [vmem:[#allocation2 + $0xb10] sm:$0xff] }
  0x87   :  { %1681 = vmatprep.subr.mxu0 %v705_v29  ;;  %1609 = vmatpush1.msra.mxu1 %v64_v30  ;;  %v1056_v27 = vld [vmem:[#allocation2 + $0x1f10] sm:$0xff]  ;;  %v401_v29 = vld [vmem:[#allocation2 + $0xa98] sm:$0xff] }
  0x88   :  { %1682 = vmatpush1.msra.mxu0 %v704_v31  ;;  %1610 = vmatprep.subr.mxu1 %v561_v33  ;;  %v1041_v30 = vld [vmem:[#allocation2 + $0x1e98] sm:$0xff]  ;;  %v400_v31 = vld [vmem:[#allocation2 + $0xa90] sm:$0xff] }
  0x89   :  { %1683 = vmatprep.subr.mxu0 %v689_v35  ;;  %1611 = vmatpush2.msra.mxu1 %v560_v36  ;;  %v1040_v33 = vld [vmem:[#allocation2 + $0x1e90] sm:$0xff]  ;;  %v385_v35 = vld [vmem:[#allocation2 + $0xa18] sm:$0xff] }
  0x8a   :  { %1684 = vmatpush1.msra.mxu0 %v688_v38  ;;  %1612 = vmatprep.subr.mxu1 %v545_v39  ;;  %v1025_v36 = vld [vmem:[#allocation2 + $0x1e18] sm:$0xff]  ;;  %v384_v38 = vld [vmem:[#allocation2 + $0xa10] sm:$0xff] }
  0x8b   :  { %1685 = vmatprep.subr.mxu0 %v673_v41  ;;  %1613 = vmatpush2.msra.mxu1 %v544_v42  ;;  %v1024_v39 = vld [vmem:[#allocation2 + $0x1e10] sm:$0xff]  ;;  %v369_v41 = vld [vmem:[#allocation2 + $0x998] sm:$0xff] }
  0x8c   :  { %1686 = vmatpush1.msra.mxu0 %v672_v43  ;;  %1614 = vmatprep.subr.mxu1 %v529_v45  ;;  %v1009_v42 = vld [vmem:[#allocation2 + $0x1d98] sm:$0xff]  ;;  %v368_v43 = vld [vmem:[#allocation2 + $0x990] sm:$0xff] }
  0x8d   :  { %1687 = vmatprep.subr.mxu0 %v657_v46  ;;  %1615 = vmatpush2.msra.mxu1 %v528_v47  ;;  %v1008_v45 = vld [vmem:[#allocation2 + $0x1d90] sm:$0xff]  ;;  %v353_v46 = vld [vmem:[#allocation2 + $0x918] sm:$0xff] }
  0x8e   :  { %1688 = vmatpush1.msra.mxu0 %v656_v49  ;;  %1616 = vmatprep.subr.mxu1 %v513_v50  ;;  %v993_v47 = vld [vmem:[#allocation2 + $0x1d18] sm:$0xff]  ;;  %v352_v49 = vld [vmem:[#allocation2 + $0x910] sm:$0xff] }
  0x8f   :  { %1689 = vmatprep.subr.mxu0 %v641_v52  ;;  %1617 = vmatpush2.msra.mxu1 %v512_v53  ;;  %v992_v50 = vld [vmem:[#allocation2 + $0x1d10] sm:$0xff]  ;;  %v337_v52 = vld [vmem:[#allocation2 + $0x898] sm:$0xff] }
  0x90   :  { %1690 = vmatpush1.msra.mxu0 %v640_v54  ;;  %1618 = vmatprep.subr.mxu1 %v497_v55  ;;  %v977_v53 = vld [vmem:[#allocation2 + $0x1c98] sm:$0xff]  ;;  %v336_v54 = vld [vmem:[#allocation2 + $0x890] sm:$0xff] }
  0x91   :  { %1691 = vmatprep.subr.mxu0 %v625_v56  ;;  %1619 = vmatpush2.msra.mxu1 %v496_v57  ;;  %v976_v55 = vld [vmem:[#allocation2 + $0x1c90] sm:$0xff]  ;;  %v321_v56 = vld [vmem:[#allocation2 + $0x818] sm:$0xff] }
  0x92   :  { %1692 = vmatpush1.msra.mxu0 %v624_v58  ;;  %1620 = vmatprep.subr.mxu1 %v481_v60  ;;  %v961_v57 = vld [vmem:[#allocation2 + $0x1c18] sm:$0xff]  ;;  %v320_v58 = vld [vmem:[#allocation2 + $0x810] sm:$0xff] }
  0x93   :  { %1693 = vmatprep.subr.mxu0 %v609_v61  ;;  %1621 = vmatpush2.msra.mxu1 %v480_v62  ;;  %v960_v60 = vld [vmem:[#allocation2 + $0x1c10] sm:$0xff]  ;;  %v945_v61 = vld [vmem:[#allocation2 + $0x1b98] sm:$0xff] }
  0x94   :  { %1694 = vmatpush1.msra.mxu0 %v608_v0  ;;  %1622 = vmatprep.subr.mxu1 %v465_v4  ;;  %v1201_v62 = vld [vmem:[#allocation2 + $0x2398] sm:$0xff]  ;;  %v944_v0 = vld [vmem:[#allocation2 + $0x1b90] sm:$0xff] }
  0x95   :  { %1695 = vmatprep.subr.mxu0 %v593_v5  ;;  %1623 = vmatpush2.msra.mxu1 %v464_v6  ;;  %v1200_v4 = vld [vmem:[#allocation2 + $0x2390] sm:$0xff]  ;;  %v929_v5 = vld [vmem:[#allocation2 + $0x1b18] sm:$0xff] }
  0x96   :  { %1696 = vmatpush1.msra.mxu0 %v592_v7  ;;  %1624 = vmatprep.subr.mxu1 %v449_v9  ;;  %v1185_v6 = vld [vmem:[#allocation2 + $0x2318] sm:$0xff]  ;;  %v928_v7 = vld [vmem:[#allocation2 + $0x1b10] sm:$0xff] }
  0x97   :  { %1697 = vmatprep.subr.mxu0 %v577_v11  ;;  %1625 = vmatpush2.msra.mxu1 %v448_v12  ;;  %v1184_v9 = vld [vmem:[#allocation2 + $0x2310] sm:$0xff]  ;;  %v913_v11 = vld [vmem:[#allocation2 + $0x1a98] sm:$0xff] }
  0x98   :  { %1698 = vmatpush1.msra.mxu0 %v576_v14  ;;  %1626 = vmatprep.subr.mxu1 %v433_v15  ;;  %v1169_v12 = vld [vmem:[#allocation2 + $0x2298] sm:$0xff]  ;;  %v1168_v14 = vld [vmem:[#allocation2 + $0x2290] sm:$0xff] }
  0x99   :  { %1699 = vmatprep.subr.mxu0 %v1073_v17  ;;  %1627 = vmatpush2.msra.mxu1 %v432_v18  ;;  %v1153_v15 = vld [vmem:[#allocation2 + $0x2218] sm:$0xff]  ;;  %v896_v17 = vld [vmem:[#allocation2 + $0x1a10] sm:$0xff] }
  0x9a   :  { %1700 = vmatpush2.msra.mxu0 %v1072_v19  ;;  %1628 = vmatprep.subr.mxu1 %v417_v23  ;;  %v1152_v18 = vld [vmem:[#allocation2 + $0x2210] sm:$0xff]  ;;  %v881_v19 = vld [vmem:[#allocation2 + $0x1998] sm:$0xff] }
  0x9b   :  { %1701 = vmatprep.subr.mxu0 %v1057_v24  ;;  %1629 = vmatpush2.msra.mxu1 %v416_v26  ;;  %v1137_v23 = vld [vmem:[#allocation2 + $0x2198] sm:$0xff]  ;;  %v1136_v24 = vld [vmem:[#allocation2 + $0x2190] sm:$0xff] }
  0x9c   :  { %1702 = vmatpush2.msra.mxu0 %v1056_v27  ;;  %1630 = vmatprep.subr.mxu1 %v401_v29  ;;  %v865_v26 = vld [vmem:[#allocation2 + $0x1918] sm:$0xff]  ;;  %v1120_v29 = vld [vmem:[#allocation2 + $0x2110] sm:$0xff] }
  0x9d   :  { %1703 = vmatprep.subr.mxu0 %v1041_v30  ;;  %1631 = vmatpush2.msra.mxu1 %v400_v31  ;;  %v1121_v27 = vld [vmem:[#allocation2 + $0x2118] sm:$0xff] }
  0x9e   :  { %1704 = vmatpush2.msra.mxu0 %v1040_v33  ;;  %1632 = vmatprep.subr.mxu1 %v385_v35  ;;  %v849_v30 = vld [vmem:[#allocation2 + $0x1898] sm:$0xff]  ;;  %v1104_v33 = vld [vmem:[#allocation2 + $0x2090] sm:$0xff] }
  0x9f   :  { %1705 = vmatprep.subr.mxu0 %v1025_v36  ;;  %1633 = vmatpush2.msra.mxu1 %v384_v38  ;;  %v1105_v31 = vld [vmem:[#allocation2 + $0x2098] sm:$0xff]  ;;  %v1088_v38 = vld [vmem:[#allocation2 + $0x2010] sm:$0xff] }
  0xa0   :  { %1706 = vmatpush2.msra.mxu0 %v1024_v39  ;;  %1634 = vmatprep.subr.mxu1 %v369_v41  ;;  %v833_v35 = vld [vmem:[#allocation2 + $0x1818] sm:$0xff]  ;;  %v819_v39 = vld [vmem:[#allocation2 + $0x17a8] sm:$0xff]  ;;  %v306_v41 = vld [vmem:[#allocation2 + $0x7a0] sm:$0xff] }
  0xa1   :  { %1707 = vmatprep.subr.mxu0 %v1009_v42  ;;  %1635 = vmatpush2.msra.mxu1 %v368_v43  ;;  %v1089_v36 = vld [vmem:[#allocation2 + $0x2018] sm:$0xff]  ;;  %v818_v42 = vld [vmem:[#allocation2 + $0x17a0] sm:$0xff]  ;;  %v803_v43 = vld [vmem:[#allocation2 + $0x1728] sm:$0xff] }
  0xa2   :  { %1708 = vmatpush2.msra.mxu0 %v1008_v45  ;;  %1636 = vmatprep.subr.mxu1 %v353_v46  ;;  %v290_v45 = vld [vmem:[#allocation2 + $0x720] sm:$0xff]  ;;  %v275_v46 = vld [vmem:[#allocation2 + $0x6a8] sm:$0xff] }
  0xa3   :  { %1709 = vmatprep.subr.mxu0 %v993_v47  ;;  %1637 = vmatpush2.msra.mxu1 %v352_v49  ;;  %v787_v47 = vld [vmem:[#allocation2 + $0x16a8] sm:$0xff]  ;;  %v274_v49 = vld [vmem:[#allocation2 + $0x6a0] sm:$0xff] }
  0xa4   :  { %1710 = vmatpush2.msra.mxu0 %v992_v50  ;;  %1638 = vmatprep.subr.mxu1 %v337_v52  ;;  %v771_v50 = vld [vmem:[#allocation2 + $0x1628] sm:$0xff]  ;;  %v258_v52 = vld [vmem:[#allocation2 + $0x620] sm:$0xff] }
  0xa5   :  { %1711 = vmatprep.subr.mxu0 %v977_v53  ;;  %1639 = vmatpush2.msra.mxu1 %v336_v54  ;;  %v770_v53 = vld [vmem:[#allocation2 + $0x1620] sm:$0xff]  ;;  %v755_v54 = vld [vmem:[#allocation2 + $0x15a8] sm:$0xff] }
  0xa6   :  { %1712 = vmatpush2.msra.mxu0 %v976_v55  ;;  %1640 = vmatprep.subr.mxu1 %v321_v56  ;;  %v754_v55 = vld [vmem:[#allocation2 + $0x15a0] sm:$0xff]  ;;  %v227_v56 = vld [vmem:[#allocation2 + $0x528] sm:$0xff] }
  0xa7   :  { %1713 = vmatprep.subr.mxu0 %v961_v57  ;;  %1641 = vmatpush2.msra.mxu1 %v320_v58  ;;  %v739_v57 = vld [vmem:[#allocation2 + $0x1528] sm:$0xff]  ;;  %v226_v58 = vld [vmem:[#allocation2 + $0x520] sm:$0xff] }
  0xa8   :  { %1642 = vmatprep.mubr.f32.mxu1 %v4139_v63  ;;  %1714 = vmatpush2.msra.mxu0 %v960_v60  ;;  %v912_v63 = vld [vmem:[#allocation2 + $0x1a90] sm:$0xff]  ;;  %v723_v60 = vld [vmem:[#allocation2 + $0x14a8] sm:$0xff] }
  0xa9   :  { %1643 = vmatmul.mubr.f32.vlgmr.msra.gmra.mxu1 %v4149_v2  ;;  %1715 = vmatprep.subr.mxu0 %v945_v61  ;;  %v897_v2 = vld [vmem:[#allocation2 + $0x1a18] sm:$0xff]  ;;  %v722_v61 = vld [vmem:[#allocation2 + $0x14a0] sm:$0xff] }
  0xaa   :  { %1772 = vmatprep.subr.mxu1 %v1201_v62  ;;  %1716 = vmatpush2.msra.mxu0 %v944_v0  ;;  %v195_v62 = vld [vmem:[#allocation2 + $0x428] sm:$0xff] }
  0xab   :  { %1773 = vmatpush1.msra.mxu1 %v1200_v4  ;;  %1717 = vmatprep.subr.mxu0 %v929_v5  ;;  %v707_v0 = vld [vmem:[#allocation2 + $0x1428] sm:$0xff]  ;;  %v194_v4 = vld [vmem:[#allocation2 + $0x420] sm:$0xff] }
  0xac   :  { %1774 = vmatprep.subr.mxu1 %v1185_v6  ;;  %1648 = vmatprep.mubr.f32.mxu1 %v4163_v10  ;;  %v880_v10 = vld [vmem:[#allocation2 + $0x1990] sm:$0xff]  ;;  %v179_v5 = vld [vmem:[#allocation2 + $0x3a8] sm:$0xff] }
  0xad   :  { %1718 = vmatpush2.msra.mxu0 %v928_v7  ;;  %1775 = vmatpush1.msra.mxu1 %v1184_v9  ;;  %v691_v6 = vld [vmem:[#allocation2 + $0x13a8] sm:$0xff] }
  0xae   :  { %1719 = vmatprep.subr.mxu0 %v913_v11  ;;  %1649 = vmatmul.mubr.f32.gmra.mxu1 %v4168_v13  ;;  %v864_v13 = vld [vmem:[#allocation2 + $0x1910] sm:$0xff]  ;;  %v163_v7 = vld [vmem:[#allocation2 + $0x328] sm:$0xff]  ;;  %v162_v11 = vld [vmem:[#allocation2 + $0x320] sm:$0xff] }
  0xaf   :  { %1776 = vmatprep.subr.mxu1 %v1169_v12  ;;  %1720 = vmatpush2.msra.mxu0 %v912_v63  ;;  %v675_v9 = vld [vmem:[#allocation2 + $0x1328] sm:$0xff]  ;;  %v674_v12 = vld [vmem:[#allocation2 + $0x1320] sm:$0xff] }
  0xb0   :  { %1777 = vmatpush1.msra.mxu1 %v1168_v14  ;;  %1721 = vmatprep.subr.mxu0 %v897_v2  ;;  %v147_v63 = vld [vmem:[#allocation2 + $0x2a8] sm:$0xff]  ;;  %v146_v2 = vld [vmem:[#allocation2 + $0x2a0] sm:$0xff] }
  0xb1   :  { %1778 = vmatprep.subr.mxu1 %v1153_v15  ;;  %1654 = vmatprep.mubr.f32.mxu1 %v4186_v22  ;;  %v848_v22 = vld [vmem:[#allocation2 + $0x1890] sm:$0xff]  ;;  %v659_v14 = vld [vmem:[#allocation2 + $0x12a8] sm:$0xff]  ;;  %v658_v15 = vld [vmem:[#allocation2 + $0x12a0] sm:$0xff] }
  0xb2   :  { %1722 = vmatpush2.msra.mxu0 %v896_v17  ;;  %1779 = vmatpush1.msra.mxu1 %v1152_v18  ;;  %v643_v17 = vld [vmem:[#allocation2 + $0x1228] sm:$0xff]  ;;  %v130_v18 = vld [vmem:[#allocation2 + $0x220] sm:$0xff] }
  0xb3   :  { %1723 = vmatprep.subr.mxu0 %v881_v19  ;;  %1655 = vmatmul.mubr.f32.gmra.mxu1 %v4191_v25  ;;  %v832_v25 = vld [vmem:[#allocation2 + $0x1810] sm:$0xff]  ;;  %v642_v19 = vld [vmem:[#allocation2 + $0x1220] sm:$0xff] }
  0xb4   :  { %1780 = vmatprep.subr.mxu1 %v1137_v23  ;;  %1724 = vmatpush2.msra.mxu0 %v880_v10  ;;  %v115_v23 = vld [vmem:[#allocation2 + $0x1a8] sm:$0xff] }
  0xb5   :  { %1781 = vmatpush1.msra.mxu1 %v1136_v24  ;;  %1725 = vmatprep.subr.mxu0 %v865_v26  ;;  %v627_v10 = vld [vmem:[#allocation2 + $0x11a8] sm:$0xff]  ;;  %v114_v24 = vld [vmem:[#allocation2 + $0x1a0] sm:$0xff] }
  0xb6   :  { %1782 = vmatprep.subr.mxu1 %v1121_v27  ;;  %1660 = vmatprep.mubr.f32.mxu1 %v4210_v34  ;;  %v307_v34 = vld [vmem:[#allocation2 + $0x7a8] sm:$0xff]  ;;  %v626_v26 = vld [vmem:[#allocation2 + $0x11a0] sm:$0xff] }
  0xb7   :  { %1726 = vmatpush2.msra.mxu0 %v864_v13  ;;  %1783 = vmatpush1.msra.mxu1 %v1120_v29  ;;  %v99_v27 = vld [vmem:[#allocation2 + $0x128] sm:$0xff]  ;;  %v98_v29 = vld [vmem:[#allocation2 + $0x120] sm:$0xff] }
  0xb8   :  { %1727 = vmatprep.subr.mxu0 %v849_v30  ;;  %1661 = vmatmul.mubr.f32.gmra.mxu1 %v4215_v37  ;;  %v291_v37 = vld [vmem:[#allocation2 + $0x728] sm:$0xff]  ;;  %v610_v30 = vld [vmem:[#allocation2 + $0x1120] sm:$0xff] }
  0xb9   :  { %1784 = vmatprep.subr.mxu1 %v1105_v31  ;;  %1728 = vmatpush2.msra.mxu0 %v848_v22  ;;  %v611_v13 = vld [vmem:[#allocation2 + $0x1128] sm:$0xff] }
  0xba   :  { %1785 = vmatpush1.msra.mxu1 %v1104_v33  ;;  %1729 = vmatprep.subr.mxu0 %v833_v35  ;;  %v83_v31 = vld [vmem:[#allocation2 + $0xa8] sm:$0xff]  ;;  %v82_v33 = vld [vmem:[#allocation2 + $0xa0] sm:$0xff] }
  0xbb   :  { %1786 = vmatprep.subr.mxu1 %v1089_v36  ;;  %1730 = vmatpush2.msra.mxu0 %v832_v25  ;;  %v595_v22 = vld [vmem:[#allocation2 + $0x10a8] sm:$0xff]  ;;  %v594_v35 = vld [vmem:[#allocation2 + $0x10a0] sm:$0xff] }
  0xbc   :  { %1731 = vmatprep.mubr.f32.mxu0 %v4144_v1  ;;  %1787 = vmatpush1.msra.mxu1 %v1088_v38  ;;  %v802_v1 = vld [vmem:[#allocation2 + $0x1720] sm:$0xff]  ;;  %v67_v36 = vld [vmem:[#allocation2 + $0x28] sm:$0xff] }
  0xbd   :  { %1820 = vmatprep.mubr.f32.mxu1 %v4103_v51  ;;  %1732 = vmatmul.mubr.f32.vlgmr.msra.gmra.mxu0 %v4154_v3  ;;  %v786_v3 = vld [vmem:[#allocation2 + $0x16a0] sm:$0xff]  ;;  %v579_v25 = vld [vmem:[#allocation2 + $0x1028] sm:$0xff] }
  0xbe   :  { %3959 = vmatmul.mubr.msk.f32.vlgmr.msra.gmra.mxu1 %vm1298_vm0, %v4234_v48  ;;  %1845 = vmatprep.subr.mxu0 %v307_v34  ;;  %v259_v48 = vld [vmem:[#allocation2 + $0x628] sm:$0xff]  ;;  %v66_v38 = vld [vmem:[#allocation2 + $0x20] sm:$0xff] }
  0xbf   :  { %1934 = vmatprep.subr.mxu1 %v819_v39  ;;  %1846 = vmatpush1.msra.mxu0 %v306_v41  ;;  %v578_v34 = vld [vmem:[#allocation2 + $0x1020] sm:$0xff]  ;;  %v563_v39 = vld [vmem:[#allocation2 + $0xfa8] sm:$0xff] }
  0xc0   :  { %1935 = vmatpush1.msra.mxu1 %v818_v42  ;;  %1847 = vmatprep.subr.mxu0 %v291_v37  ;;  %v1075_v41 = vld [vmem:[#allocation2 + $0x1fa8] sm:$0xff]  ;;  %v562_v42 = vld [vmem:[#allocation2 + $0xfa0] sm:$0xff] }
  0xc1   :  { %1936 = vmatprep.subr.mxu1 %v803_v43  ;;  %1737 = vmatprep.mubr.f32.mxu0 %v4174_v16  ;;  %v243_v16 = vld [vmem:[#allocation2 + $0x5a8] sm:$0xff]  ;;  %v1074_v37 = vld [vmem:[#allocation2 + $0x1fa0] sm:$0xff] }
  0xc2   :  { %1848 = vmatpush1.msra.mxu0 %v290_v45  ;;  %1937 = vmatpush1.msra.mxu1 %v802_v1  ;;  %v547_v43 = vld [vmem:[#allocation2 + $0xf28] sm:$0xff]  ;;  %v546_v1 = vld [vmem:[#allocation2 + $0xf20] sm:$0xff] }
  0xc3   :  { %1738 = vmatmul.mubr.f32.gmra.mxu0 %v4180_v20  ;;  %1849 = vmatprep.subr.mxu0 %v275_v46  ;;  %v242_v20 = vld [vmem:[#allocation2 + $0x5a0] sm:$0xff]  ;;  %v1059_v45 = vld [vmem:[#allocation2 + $0x1f28] sm:$0xff] }
  0xc4   :  { %1938 = vmatprep.subr.mxu1 %v787_v47  ;;  %1826 = vmatprep.mubr.f32.mxu1 %v4103_v51  ;;  %v1058_v46 = vld [vmem:[#allocation2 + $0x1f20] sm:$0xff]  ;;  %v531_v47 = vld [vmem:[#allocation2 + $0xea8] sm:$0xff] }
  0xc5   :  { %1850 = vmatpush1.msra.mxu0 %v274_v49  ;;  %1939 = vmatpush1.msra.mxu1 %v786_v3  ;;  %v1043_v49 = vld [vmem:[#allocation2 + $0x1ea8] sm:$0xff]  ;;  %v530_v3 = vld [vmem:[#allocation2 + $0xea0] sm:$0xff] }
  0xc6   :  { %1851 = vmatprep.subr.mxu0 %v259_v48  ;;  %3960 = vmatmul.mubr.msk.f32.gmra.mxu1 %vm1298_vm0, %v4243_v59  ;;  %v738_v59 = vld [vmem:[#allocation2 + $0x1520] sm:$0xff] }
  0xc7   :  { %1940 = vmatprep.subr.mxu1 %v771_v50  ;;  %1743 = vmatprep.mubr.f32.mxu0 %v4198_v28  ;;  %v211_v28 = vld [vmem:[#allocation2 + $0x4a8] sm:$0xff]  ;;  %v1042_v48 = vld [vmem:[#allocation2 + $0x1ea0] sm:$0xff] }
  0xc8   :  { %1852 = vmatpush1.msra.mxu0 %v258_v52  ;;  %1941 = vmatpush1.msra.mxu1 %v770_v53  ;;  %v515_v50 = vld [vmem:[#allocation2 + $0xe28] sm:$0xff]  ;;  %v514_v53 = vld [vmem:[#allocation2 + $0xe20] sm:$0xff] }
  0xc9   :  { %1744 = vmatmul.mubr.f32.gmra.mxu0 %v4204_v32  ;;  %1853 = vmatprep.subr.mxu0 %v243_v16  ;;  %v210_v32 = vld [vmem:[#allocation2 + $0x4a0] sm:$0xff]  ;;  %v1027_v52 = vld [vmem:[#allocation2 + $0x1e28] sm:$0xff] }
  0xca   :  { %1942 = vmatprep.subr.mxu1 %v755_v54  ;;  %1832 = vmatprep.mubr.f32.mxu1 %v4103_v51  ;;  %v1026_v16 = vld [vmem:[#allocation2 + $0x1e20] sm:$0xff]  ;;  %v499_v54 = vld [vmem:[#allocation2 + $0xda8] sm:$0xff] }
  0xcb   :  { %1854 = vmatpush1.msra.mxu0 %v242_v20  ;;  %1943 = vmatpush1.msra.mxu1 %v754_v55  ;;  %v1011_v20 = vld [vmem:[#allocation2 + $0x1da8] sm:$0xff]  ;;  %v498_v55 = vld [vmem:[#allocation2 + $0xda0] sm:$0xff] }
  0xcc   :  { %1855 = vmatprep.subr.mxu0 %v227_v56  ;;  %3961 = vmatmul.mubr.msk.f32.gmra.mxu1 %vm1298_vm0, %v4251_v8  ;;  %v706_v8 = vld [vmem:[#allocation2 + $0x1420] sm:$0xff] }
  0xcd   :  { %1944 = vmatprep.subr.mxu1 %v739_v57  ;;  %1749 = vmatprep.mubr.f32.mxu0 %v4222_v40  ;;  %v178_v40 = vld [vmem:[#allocation2 + $0x3a0] sm:$0xff]  ;;  %v483_v57 = vld [vmem:[#allocation2 + $0xd28] sm:$0xff] }
  0xce   :  { %1856 = vmatpush1.msra.mxu0 %v226_v58  ;;  %1945 = vmatpush1.msra.mxu1 %v738_v59  ;;  %v1010_v56 = vld [vmem:[#allocation2 + $0x1da0] sm:$0xff]  ;;  %v995_v58 = vld [vmem:[#allocation2 + $0x1d28] sm:$0xff] }
  0xcf   :  { %1750 = vmatmul.mubr.f32.gmra.mxu0 %v4228_v44  ;;  %1857 = vmatprep.subr.mxu0 %v211_v28  ;;  %v690_v44 = vld [vmem:[#allocation2 + $0x13a0] sm:$0xff] }
  0xd0   :  { %1946 = vmatprep.subr.mxu1 %v723_v60  ;;  %1838 = vmatprep.mubr.f32.mxu1 %v4103_v51  ;;  %v482_v59 = vld [vmem:[#allocation2 + $0xd20] sm:$0xff]  ;;  %v467_v60 = vld [vmem:[#allocation2 + $0xca8] sm:$0xff] }
  0xd1   :  { %1858 = vmatpush1.msra.mxu0 %v210_v32  ;;  %1947 = vmatpush1.msra.mxu1 %v722_v61  ;;  %v994_v28 = vld [vmem:[#allocation2 + $0x1d20] sm:$0xff]  ;;  %v979_v32 = vld [vmem:[#allocation2 + $0x1ca8] sm:$0xff] }
  0xd2   :  { %1859 = vmatprep.subr.mxu0 %v195_v62  ;;  %3962 = vmatmul.mubr.msk.f32.gmra.mxu1 %vm1298_vm0, %v4259_v21  ;;  %v131_v21 = vld [vmem:[#allocation2 + $0x228] sm:$0xff]  ;;  %v466_v61 = vld [vmem:[#allocation2 + $0xca0] sm:$0xff] }
  0xd3   :  { %1948 = vmatprep.subr.mxu1 %v707_v0  ;;  %1860 = vmatpush1.msra.mxu0 %v194_v4  ;;  %v978_v62 = vld [vmem:[#allocation2 + $0x1ca0] sm:$0xff]  ;;  %v451_v0 = vld [vmem:[#allocation2 + $0xc28] sm:$0xff] }
  0xd4   :  { %1949 = vmatpush1.msra.mxu1 %v706_v8  ;;  %1861 = vmatprep.subr.mxu0 %v179_v5  ;;  %v963_v4 = vld [vmem:[#allocation2 + $0x1c28] sm:$0xff]  ;;  %v450_v8 = vld [vmem:[#allocation2 + $0xc20] sm:$0xff] }
  0xd5   :  { %1950 = vmatprep.subr.mxu1 %v691_v6  ;;  %1862 = vmatpush1.msra.mxu0 %v178_v40  ;;  %v962_v5 = vld [vmem:[#allocation2 + $0x1c20] sm:$0xff]  ;;  %v435_v6 = vld [vmem:[#allocation2 + $0xba8] sm:$0xff] }
  0xd6   :  { %1951 = vmatpush1.msra.mxu1 %v690_v44  ;;  %1863 = vmatprep.subr.mxu0 %v163_v7  ;;  %v947_v40 = vld [vmem:[#allocation2 + $0x1ba8] sm:$0xff]  ;;  %v434_v44 = vld [vmem:[#allocation2 + $0xba0] sm:$0xff] }
  0xd7   :  { %1952 = vmatprep.subr.mxu1 %v675_v9  ;;  %1864 = vmatpush1.msra.mxu0 %v162_v11  ;;  %v946_v7 = vld [vmem:[#allocation2 + $0x1ba0] sm:$0xff]  ;;  %v419_v9 = vld [vmem:[#allocation2 + $0xb28] sm:$0xff] }
  0xd8   :  { %1953 = vmatpush1.msra.mxu1 %v674_v12  ;;  %1865 = vmatprep.subr.mxu0 %v147_v63  ;;  %v931_v11 = vld [vmem:[#allocation2 + $0x1b28] sm:$0xff]  ;;  %v418_v12 = vld [vmem:[#allocation2 + $0xb20] sm:$0xff] }
  0xd9   :  { %1954 = vmatprep.subr.mxu1 %v659_v14  ;;  %1866 = vmatpush1.msra.mxu0 %v146_v2  ;;  %v930_v63 = vld [vmem:[#allocation2 + $0x1b20] sm:$0xff]  ;;  %v403_v14 = vld [vmem:[#allocation2 + $0xaa8] sm:$0xff] }
  0xda   :  { %1955 = vmatpush1.msra.mxu1 %v658_v15  ;;  %1867 = vmatprep.subr.mxu0 %v131_v21  ;;  %v915_v2 = vld [vmem:[#allocation2 + $0x1aa8] sm:$0xff]  ;;  %v402_v15 = vld [vmem:[#allocation2 + $0xaa0] sm:$0xff] }
  0xdb   :  { %1956 = vmatprep.subr.mxu1 %v643_v17  ;;  %1868 = vmatpush1.msra.mxu0 %v130_v18  ;;  %v914_v21 = vld [vmem:[#allocation2 + $0x1aa0] sm:$0xff]  ;;  %v387_v17 = vld [vmem:[#allocation2 + $0xa28] sm:$0xff] }
  0xdc   :  { %1957 = vmatpush1.msra.mxu1 %v642_v19  ;;  %1869 = vmatprep.subr.mxu0 %v115_v23  ;;  %v899_v18 = vld [vmem:[#allocation2 + $0x1a28] sm:$0xff]  ;;  %v386_v19 = vld [vmem:[#allocation2 + $0xa20] sm:$0xff] }
  0xdd   :  { %1958 = vmatprep.subr.mxu1 %v627_v10  ;;  %1870 = vmatpush1.msra.mxu0 %v114_v24  ;;  %v898_v23 = vld [vmem:[#allocation2 + $0x1a20] sm:$0xff]  ;;  %v371_v10 = vld [vmem:[#allocation2 + $0x9a8] sm:$0xff] }
  0xde   :  { %1959 = vmatpush1.msra.mxu1 %v626_v26  ;;  %1871 = vmatprep.subr.mxu0 %v99_v27  ;;  %v883_v24 = vld [vmem:[#allocation2 + $0x19a8] sm:$0xff]  ;;  %v370_v26 = vld [vmem:[#allocation2 + $0x9a0] sm:$0xff] }
  0xdf   :  { %1960 = vmatprep.subr.mxu1 %v611_v13  ;;  %1872 = vmatpush1.msra.mxu0 %v98_v29  ;;  %v882_v27 = vld [vmem:[#allocation2 + $0x19a0] sm:$0xff]  ;;  %v355_v13 = vld [vmem:[#allocation2 + $0x928] sm:$0xff] }
  0xe0   :  { %1961 = vmatpush1.msra.mxu1 %v610_v30  ;;  %1873 = vmatprep.subr.mxu0 %v83_v31  ;;  %v867_v29 = vld [vmem:[#allocation2 + $0x1928] sm:$0xff]  ;;  %v354_v30 = vld [vmem:[#allocation2 + $0x920] sm:$0xff] }
  0xe1   :  { %1962 = vmatprep.subr.mxu1 %v595_v22  ;;  %1874 = vmatpush1.msra.mxu0 %v82_v33  ;;  %v866_v31 = vld [vmem:[#allocation2 + $0x1920] sm:$0xff]  ;;  %v339_v22 = vld [vmem:[#allocation2 + $0x8a8] sm:$0xff] }
  0xe2   :  { %1963 = vmatpush1.msra.mxu1 %v594_v35  ;;  %1875 = vmatprep.subr.mxu0 %v67_v36  ;;  %v851_v33 = vld [vmem:[#allocation2 + $0x18a8] sm:$0xff]  ;;  %v338_v35 = vld [vmem:[#allocation2 + $0x8a0] sm:$0xff] }
  0xe3   :  { %1964 = vmatprep.subr.mxu1 %v579_v25  ;;  %1876 = vmatpush1.msra.mxu0 %v66_v38  ;;  %v850_v36 = vld [vmem:[#allocation2 + $0x18a0] sm:$0xff]  ;;  %v323_v25 = vld [vmem:[#allocation2 + $0x828] sm:$0xff] }
  0xe4   :  { %1965 = vmatpush1.msra.mxu1 %v578_v34  ;;  %1877 = vmatprep.subr.mxu0 %v563_v39  ;;  %v835_v38 = vld [vmem:[#allocation2 + $0x1828] sm:$0xff]  ;;  %v322_v34 = vld [vmem:[#allocation2 + $0x820] sm:$0xff] }
  0xe5   :  { %1966 = vmatprep.subr.mxu1 %v1075_v41  ;;  %1878 = vmatpush2.msra.mxu0 %v562_v42  ;;  %v834_v39 = vld [vmem:[#allocation2 + $0x1820] sm:$0xff]  ;;  %v4295_v41 = vld [vmem:[%s5322_s0 + $0x8] sm:$0xff] }
  0xe6   :  { %1967 = vmatpush2.msra.mxu1 %v1074_v37  ;;  %1879 = vmatprep.subr.mxu0 %v547_v43  ;;  %v1203_v42 = vld [vmem:[#allocation2 + $0x23a8] sm:$0xff]  ;;  %v309_v37 = vld [vmem:[#allocation2 + $0x7b8] sm:$0xff] }
  0xe7   :  { %1968 = vmatprep.subr.mxu1 %v1059_v45  ;;  %1880 = vmatpush2.msra.mxu0 %v546_v1  ;;  %v4301_v43 = vld [vmem:[%s5322_s0 + $0x18] sm:$0xff]  ;;  %v1202_v45 = vld [vmem:[#allocation2 + $0x23a0] sm:$0xff]  ;;  %v308_v1 = vld [vmem:[#allocation2 + $0x7b0] sm:$0xff] }
  0xe8   :  { %1969 = vmatpush2.msra.mxu1 %v1058_v46  ;;  %1881 = vmatprep.subr.mxu0 %v531_v47  ;;  %v4307_v46 = vld [vmem:[%s5322_s0] sm:$0xff]  ;;  %v4313_v47 = vld [vmem:[%s5322_s0 + $0x10] sm:$0xff] }
  0xe9   :  { %1970 = vmatprep.subr.mxu1 %v1043_v49  ;;  %1882 = vmatpush2.msra.mxu0 %v530_v3  ;;  %v1187_v49 = vld [vmem:[#allocation2 + $0x2328] sm:$0xff]  ;;  %v293_v3 = vld [vmem:[#allocation2 + $0x738] sm:$0xff] }
  0xea   :  { %1971 = vmatpush2.msra.mxu1 %v1042_v48  ;;  %1883 = vmatprep.subr.mxu0 %v515_v50  ;;  %v1186_v48 = vld [vmem:[#allocation2 + $0x2320] sm:$0xff]  ;;  %v292_v50 = vld [vmem:[#allocation2 + $0x730] sm:$0xff] }
  0xeb   :  { %1972 = vmatprep.subr.mxu1 %v1027_v52  ;;  %1884 = vmatpush2.msra.mxu0 %v514_v53  ;;  %v1171_v52 = vld [vmem:[#allocation2 + $0x22a8] sm:$0xff]  ;;  %v277_v53 = vld [vmem:[#allocation2 + $0x6b8] sm:$0xff] }
  0xec   :  { %1973 = vmatpush2.msra.mxu1 %v1026_v16  ;;  %1885 = vmatprep.subr.mxu0 %v499_v54  ;;  %v4319_v16 = vld [vmem:[%s5322_s0 + $0x30] sm:$0xff]  ;;  %v1170_v54 = vld [vmem:[#allocation2 + $0x22a0] sm:$0xff] }
  0xed   :  { %1974 = vmatprep.subr.mxu1 %v1011_v20  ;;  %1886 = vmatpush2.msra.mxu0 %v498_v55  ;;  %v4325_v20 = vld [vmem:[%s5322_s0 + $0x28] sm:$0xff]  ;;  %v276_v55 = vld [vmem:[#allocation2 + $0x6b0] sm:$0xff] }
  0xee   :  { %1975 = vmatpush2.msra.mxu1 %v1010_v56  ;;  %1887 = vmatprep.subr.mxu0 %v483_v57  ;;  %v1155_v56 = vld [vmem:[#allocation2 + $0x2228] sm:$0xff]  ;;  %v261_v57 = vld [vmem:[#allocation2 + $0x638] sm:$0xff] }
  0xef   :  { %1976 = vmatprep.subr.mxu1 %v995_v58  ;;  %1888 = vmatpush2.msra.mxu0 %v482_v59  ;;  %v4331_v58 = vld [vmem:[%s5322_s0 + $0x40] sm:$0xff] }
  0xf0   :  { %1977 = vmatpush2.msra.mxu1 %v994_v28  ;;  %1889 = vmatprep.subr.mxu0 %v467_v60  ;;  %v1154_v59 = vld [vmem:[#allocation2 + $0x2220] sm:$0xff]  ;;  %v260_v28 = vld [vmem:[#allocation2 + $0x630] sm:$0xff]  ;;  %v4337_v60 = vld [vmem:[%s5322_s0 + $0x38] sm:$0xff] }
  0xf1   :  { %1978 = vmatprep.subr.mxu1 %v979_v32  ;;  %1890 = vmatpush2.msra.mxu0 %v466_v61  ;;  %v1139_v32 = vld [vmem:[#allocation2 + $0x21a8] sm:$0xff]  ;;  %v245_v61 = vld [vmem:[#allocation2 + $0x5b8] sm:$0xff] }
  0xf2   :  { %1979 = vmatpush2.msra.mxu1 %v978_v62  ;;  %1891 = vmatprep.subr.mxu0 %v451_v0  ;;  %v4343_v62 = vld [vmem:[%s5322_s0 + $0x58] sm:$0xff]  ;;  %v1138_v0 = vld [vmem:[#allocation2 + $0x21a0] sm:$0xff] }
  0xf3   :  { %1980 = vmatprep.subr.mxu1 %v963_v4  ;;  %1892 = vmatpush2.msra.mxu0 %v450_v8  ;;  %v4349_v4 = vld [vmem:[%s5322_s0 + $0x50] sm:$0xff] }
  0xf4   :  { %1981 = vmatpush2.msra.mxu1 %v962_v5  ;;  %1893 = vmatprep.subr.mxu0 %v435_v6  ;;  %v244_v8 = vld [vmem:[#allocation2 + $0x5b0] sm:$0xff]  ;;  %v1123_v5 = vld [vmem:[#allocation2 + $0x2128] sm:$0xff]  ;;  %v229_v6 = vld [vmem:[#allocation2 + $0x538] sm:$0xff] }
  0xf5   :  { %1982 = vmatprep.subr.mxu1 %v947_v40  ;;  %1894 = vmatpush2.msra.mxu0 %v434_v44  ;;  %v4355_v40 = vld [vmem:[%s5322_s0 + $0x68] sm:$0xff]  ;;  %v1122_v44 = vld [vmem:[#allocation2 + $0x2120] sm:$0xff] }
  0xf6   :  { %1983 = vmatpush2.msra.mxu1 %v946_v7  ;;  %1895 = vmatprep.subr.mxu0 %v419_v9  ;;  %v228_v7 = vld [vmem:[#allocation2 + $0x530] sm:$0xff]  ;;  %v4361_v9 = vld [vmem:[%s5322_s0 + $0x60] sm:$0xff] }
  0xf7   :  { %1984 = vmatprep.subr.mxu1 %v931_v11  ;;  %1896 = vmatpush2.msra.mxu0 %v418_v12  ;;  %v1107_v11 = vld [vmem:[#allocation2 + $0x20a8] sm:$0xff]  ;;  %v213_v12 = vld [vmem:[#allocation2 + $0x4b8] sm:$0xff] }
  0xf8   :  { %1985 = vmatpush2.msra.mxu1 %v930_v63  ;;  %1897 = vmatprep.subr.mxu0 %v403_v14  ;;  %v4367_v63 = vld [vmem:[%s5322_s0 + $0x80] sm:$0xff] }
  0xf9   :  { %1986 = vmatprep.subr.mxu1 %v915_v2  ;;  %1898 = vmatpush2.msra.mxu0 %v402_v15  ;;  %v1106_v14 = vld [vmem:[#allocation2 + $0x20a0] sm:$0xff]  ;;  %v4373_v2 = vld [vmem:[%s5322_s0 + $0x78] sm:$0xff]  ;;  %v212_v15 = vld [vmem:[#allocation2 + $0x4b0] sm:$0xff] }
  0xfa   :  { %1987 = vmatpush2.msra.mxu1 %v914_v21  ;;  %1899 = vmatprep.subr.mxu0 %v387_v17  ;;  %v1091_v21 = vld [vmem:[#allocation2 + $0x2028] sm:$0xff]  ;;  %v197_v17 = vld [vmem:[#allocation2 + $0x438] sm:$0xff] }
  0xfb   :  { %1988 = vmatprep.subr.mxu1 %v899_v18  ;;  %1900 = vmatpush2.msra.mxu0 %v386_v19  ;;  %v4379_v18 = vld [vmem:[%s5322_s0 + $0x90] sm:$0xff]  ;;  %v1090_v19 = vld [vmem:[#allocation2 + $0x2020] sm:$0xff] }
  0xfc   :  { %1989 = vmatpush2.msra.mxu1 %v898_v23  ;;  %1901 = vmatprep.subr.mxu0 %v371_v10  ;;  %v196_v23 = vld [vmem:[#allocation2 + $0x430] sm:$0xff]  ;;  %v4385_v10 = vld [vmem:[%s5322_s0 + $0x88] sm:$0xff] }
  0xfd   :  { %1990 = vmatprep.subr.mxu1 %v883_v24  ;;  %1902 = vmatpush2.msra.mxu0 %v370_v26  ;;  %v181_v24 = vld [vmem:[#allocation2 + $0x3b8] sm:$0xff] }
  0xfe   :  { %1991 = vmatpush2.msra.mxu1 %v882_v27  ;;  %1903 = vmatprep.subr.mxu0 %v355_v13  ;;  %v821_v26 = vld [vmem:[#allocation2 + $0x17b8] sm:$0xff]  ;;  %v180_v27 = vld [vmem:[#allocation2 + $0x3b0] sm:$0xff] }
  0xff   :  { %1992 = vmatprep.subr.mxu1 %v867_v29  ;;  %1904 = vmatpush2.msra.mxu0 %v354_v30  ;;  %v820_v13 = vld [vmem:[#allocation2 + $0x17b0] sm:$0xff]  ;;  %v4392_v29 = vld [vmem:[%s5322_s0 + $0x20] sm:$0xff]  ;;  %v165_v30 = vld [vmem:[#allocation2 + $0x338] sm:$0xff] }
 0x100   :  { %1993 = vmatpush2.msra.mxu1 %v866_v31  ;;  %1905 = vmatprep.subr.mxu0 %v339_v22  ;;  %v805_v31 = vld [vmem:[#allocation2 + $0x1738] sm:$0xff]  ;;  %v164_v22 = vld [vmem:[#allocation2 + $0x330] sm:$0xff] }
 0x101   :  { %1994 = vmatprep.subr.mxu1 %v851_v33  ;;  %1906 = vmatpush2.msra.mxu0 %v338_v35  ;;  %v804_v35 = vld [vmem:[#allocation2 + $0x1730] sm:$0xff] }
 0x102   :  { %1995 = vmatpush2.msra.mxu1 %v850_v36  ;;  %1907 = vmatprep.subr.mxu0 %v323_v25  ;;  %v149_v36 = vld [vmem:[#allocation2 + $0x2b8] sm:$0xff] }
 0x103   :  { %1996 = vmatprep.subr.mxu1 %v835_v38  ;;  %1908 = vmatpush2.msra.mxu0 %v322_v34  ;;  %v789_v25 = vld [vmem:[#allocation2 + $0x16b8] sm:$0xff]  ;;  %v1218_v38 = vlaneseq }
 0x104   :  { %1909 = vmatprep.mubr.f32.mxu0 %v4295_v41  ;;  %1997 = vmatpush2.msra.mxu1 %v834_v39  ;;  %v148_v39 = vld [vmem:[#allocation2 + $0x2b0] sm:$0xff] }
 0x105   :  { %1998 = vmatprep.mubr.f32.mxu1 %v4301_v43  ;;  %1910 = vmatmul.mubr.f32.vlgmr.msra.gmra.mxu0 %v4307_v46 }
 0x106   :  { %1999 = vmatmul.mubr.f32.vlgmr.msra.gmra.mxu1 %v4313_v47  ;;  %2039 = vmatprep.subr.mxu0 %v1203_v42  ;;  %v788_v42 = vld [vmem:[#allocation2 + $0x16b0] sm:$0xff] }
 0x107   :  { %2112 = vmatprep.subr.mxu1 %v309_v37  ;;  %2040 = vmatpush1.msra.mxu0 %v1202_v45  ;;  %v133_v37 = vld [vmem:[#allocation2 + $0x238] sm:$0xff] }
 0x108   :  { %2113 = vmatpush1.msra.mxu1 %v308_v1  ;;  %2041 = vmatprep.subr.mxu0 %v1187_v49  ;;  %v773_v45 = vld [vmem:[#allocation2 + $0x1638] sm:$0xff]  ;;  %v4404_v1 = vld [vmem:[%s5322_s0 + $0x48] sm:$0xff]  ;;  %v132_v49 = vld [vmem:[#allocation2 + $0x230] sm:$0xff] }
 0x109   :  { %2114 = vmatprep.subr.mxu1 %v293_v3  ;;  %1915 = vmatprep.mubr.f32.mxu0 %v4319_v16 }
 0x10a   :  { %2042 = vmatpush1.msra.mxu0 %v1186_v48  ;;  %2115 = vmatpush1.msra.mxu1 %v292_v50  ;;  %v772_v48 = vld [vmem:[#allocation2 + $0x1630] sm:$0xff]  ;;  %v117_v50 = vld [vmem:[#allocation2 + $0x1b8] sm:$0xff] }
 0x10b   :  { %1916 = vmatmul.mubr.f32.gmra.mxu0 %v4325_v20  ;;  %2043 = vmatprep.subr.mxu0 %v1171_v52  ;;  %v4410_v52 = vshrl.u32 %v1218_v38, 7  ;;  %v549_v38 = vld [vmem:[#allocation2 + $0xf38] sm:$0xff] }
 0x10c   :  { %2116 = vmatprep.subr.mxu1 %v277_v53  ;;  %2004 = vmatprep.mubr.f32.mxu1 %v4331_v58  ;;  %v757_v53 = vld [vmem:[#allocation2 + $0x15b8] sm:$0xff] }
 0x10d   :  { %2044 = vmatpush1.msra.mxu0 %v1170_v54  ;;  %2117 = vmatpush1.msra.mxu1 %v276_v55  ;;  %v116_v55 = vld [vmem:[#allocation2 + $0x1b0] sm:$0xff] }
 0x10e   :  { %2045 = vmatprep.subr.mxu0 %v1155_v56  ;;  %2005 = vmatmul.mubr.f32.gmra.mxu1 %v4337_v60  ;;  %v756_v56 = vld [vmem:[#allocation2 + $0x15b0] sm:$0xff] }
 0x10f   :  { %2118 = vmatprep.subr.mxu1 %v261_v57  ;;  %1921 = vmatprep.mubr.f32.mxu0 %v4343_v62  ;;  %v101_v57 = vld [vmem:[#allocation2 + $0x138] sm:$0xff] }
 0x110   :  { %2046 = vmatpush1.msra.mxu0 %v1154_v59  ;;  %2119 = vmatpush1.msra.mxu1 %v260_v28  ;;  %v741_v59 = vld [vmem:[#allocation2 + $0x1538] sm:$0xff] }
 0x111   :  { %1922 = vmatmul.mubr.f32.gmra.mxu0 %v4349_v4  ;;  %2047 = vmatprep.subr.mxu0 %v1139_v32  ;;  %v4420_v32 = vld [vmem:[%s5322_s0 + $0x70] sm:$0xff] }
 0x112   :  { %2120 = vmatprep.subr.mxu1 %v245_v61  ;;  %2010 = vmatprep.mubr.f32.mxu1 %v4355_v40  ;;  %v100_v61 = vld [vmem:[#allocation2 + $0x130] sm:$0xff] }
 0x113   :  { %2048 = vmatpush1.msra.mxu0 %v1138_v0  ;;  %2121 = vmatpush1.msra.mxu1 %v244_v8  ;;  %v1220_v0 = vsub.s32 0, %v4410_v52  ;;  %v740_v8 = vld [vmem:[#allocation2 + $0x1530] sm:$0xff] }
 0x114   :  { %2049 = vmatprep.subr.mxu0 %v1123_v5  ;;  %2011 = vmatmul.mubr.f32.gmra.mxu1 %v4361_v9  ;;  %v85_v5 = vld [vmem:[#allocation2 + $0xb8] sm:$0xff] }
 0x115   :  { %2122 = vmatprep.subr.mxu1 %v229_v6  ;;  %1927 = vmatprep.mubr.f32.mxu0 %v4367_v63  ;;  %v4425_v6 = vld [vmem:[#allocation4] sm:$0xff] }
 0x116   :  { %2050 = vmatpush1.msra.mxu0 %v1122_v44  ;;  %2123 = vmatpush1.msra.mxu1 %v228_v7  ;;  %v725_v7 = vld [vmem:[#allocation2 + $0x14b8] sm:$0xff] }
 0x117   :  { %1928 = vmatmul.mubr.f32.gmra.mxu0 %v4373_v2  ;;  %2051 = vmatprep.subr.mxu0 %v1107_v11  ;;  %v1224_v11 = vsub.s32 1, %v4410_v52 }
 0x118   :  { %2124 = vmatprep.subr.mxu1 %v213_v12  ;;  %2016 = vmatprep.mubr.f32.mxu1 %v4379_v18  ;;  %v84_v12 = vld [vmem:[#allocation2 + $0xb0] sm:$0xff] }
 0x119   :  { %2052 = vmatpush1.msra.mxu0 %v1106_v14  ;;  %2125 = vmatpush1.msra.mxu1 %v212_v15  ;;  %v724_v14 = vld [vmem:[#allocation2 + $0x14b0] sm:$0xff] }
 0x11a   :  { %2053 = vmatprep.subr.mxu0 %v1091_v21  ;;  %2017 = vmatmul.mubr.f32.gmra.mxu1 %v4385_v10 }
 0x11b   :  { %2126 = vmatprep.subr.mxu1 %v197_v17  ;;  %2054 = vmatpush1.msra.mxu0 %v1090_v19  ;;  %v69_v17 = vld [vmem:[#allocation2 + $0x38] sm:$0xff] }
 0x11c   :  { %2087 = vmatprep.mubr.f32.mxu0 %v4103_v51  ;;  %2127 = vmatpush1.msra.mxu1 %v196_v23  ;;  %v709_v19 = vld [vmem:[#allocation2 + $0x1438] sm:$0xff]  ;;  %v4436_v23 = vrot.slane %v4425_v6, %v1220_v0 }
 0x11d   :  { %3963 = vmatmul.mubr.msk.f32.vlgmr.msra.gmra.mxu0 %vm1298_vm0, %v4392_v29  ;;  %2128 = vmatprep.subr.mxu1 %v181_v24  ;;  %v4396_v33 = vpop.f32.mrf.mxu0  ;;  %v4441_v24 = vld [vmem:[%s5322_s0 + $0x98] sm:$0xff] }
 0x11e   :  { %2201 = vmatprep.subr.mxu0 %v821_v26  ;;  %2129 = vmatpush1.msra.mxu1 %v180_v27  ;;  %v4415_v28 = vpop.f32.mrf.mxu1  ;;  %v68_v26 = vld [vmem:[#allocation2 + $0x30] sm:$0xff] }
 0x11f   :  { %2202 = vmatpush1.msra.mxu0 %v820_v13  ;;  %2130 = vmatprep.subr.mxu1 %v165_v30  ;;  %v4398_v34 = vpop.f32.mrf.mxu0  ;;  %v708_v27 = vld [vmem:[#allocation2 + $0x1430] sm:$0xff]  ;;  %v565_v13 = vld [vmem:[#allocation2 + $0xfb8] sm:$0xff] }
 0x120   :  { %2203 = vmatprep.subr.mxu0 %v805_v31  ;;  %2093 = vmatprep.mubr.f32.mxu0 %v4103_v51  ;;  %v1468_v15 = vpop.f32.mrf.mxu1  ;;  %v693_v30 = vld [vmem:[#allocation2 + $0x13b8] sm:$0xff]  ;;  %v4448_v31 = vrot.slane %v4425_v6, %v1224_v11 }
 0x121   :  { %2131 = vmatpush1.msra.mxu1 %v164_v22  ;;  %2204 = vmatpush1.msra.mxu0 %v804_v35  ;;  %v564_v22 = vld [vmem:[#allocation2 + $0xfb0] sm:$0xff] }
 0x122   :  { %2132 = vmatprep.subr.mxu1 %v149_v36  ;;  %3964 = vmatmul.mubr.msk.f32.gmra.mxu0 %vm1298_vm0, %v4404_v1  ;;  %v692_v35 = vld [vmem:[#allocation2 + $0x13b0] sm:$0xff] }
 0x123   :  { %2205 = vmatprep.subr.mxu0 %v789_v25  ;;  %v4408_v3 = vpop.f32.mrf.mxu0  ;;  %2133 = vmatpush1.msra.mxu1 %v148_v39  ;;  %v677_v39 = vld [vmem:[#allocation2 + $0x1338] sm:$0xff] }
 0x124   :  { %2206 = vmatpush1.msra.mxu0 %v788_v42  ;;  %2134 = vmatprep.subr.mxu1 %v133_v37  ;;  %v1378_v42 = vadd.f32 %v4396_v33, %v4436_v23  ;;  %v548_v37 = vld [vmem:[#allocation2 + $0xf30] sm:$0xff]  ;;  %v517_v33 = vld [vmem:[#allocation2 + $0xe38] sm:$0xff] }
 0x125   :  { %2207 = vmatprep.subr.mxu0 %v773_v45  ;;  %v4412_v54 = vpop.f32.mrf.mxu0  ;;  %2099 = vmatprep.mubr.f32.mxu0 %v4103_v51  ;;  %v676_v45 = vld [vmem:[#allocation2 + $0x1330] sm:$0xff] }
 0x126   :  { %2135 = vmatpush1.msra.mxu1 %v132_v49  ;;  %2208 = vmatpush1.msra.mxu0 %v772_v48  ;;  %v1472_v36 = vpop.f32.mrf.mxu1  ;;  %v533_v48 = vld [vmem:[#allocation2 + $0xeb8] sm:$0xff] }
 0x127   :  { %2136 = vmatprep.subr.mxu1 %v117_v50  ;;  %3965 = vmatmul.mubr.msk.f32.gmra.mxu0 %vm1298_vm0, %v4420_v32  ;;  %v661_v50 = vld [vmem:[#allocation2 + $0x12b8] sm:$0xff] }
 0x128   :  { %2209 = vmatprep.subr.mxu0 %v757_v53  ;;  %2137 = vmatpush1.msra.mxu1 %v116_v55  ;;  %v1380_v53 = vadd.f32 %v4398_v34, %v4448_v31  ;;  %v532_v55 = vld [vmem:[#allocation2 + $0xeb0] sm:$0xff]  ;;  %v629_v34 = vld [vmem:[#allocation2 + $0x11b8] sm:$0xff] }
 0x129   :  { %2210 = vmatpush1.msra.mxu0 %v756_v56  ;;  %v4427_v44 = vpop.f32.mrf.mxu0  ;;  %2138 = vmatprep.subr.mxu1 %v101_v57  ;;  %v660_v56 = vld [vmem:[#allocation2 + $0x12b0] sm:$0xff]  ;;  %v1474_v57 = vpop.f32.mrf.mxu1 }
 0x12a   :  { %2211 = vmatprep.subr.mxu0 %v741_v59  ;;  %2105 = vmatprep.mubr.f32.mxu0 %v4103_v51  ;;  %v645_v59 = vld [vmem:[#allocation2 + $0x1238] sm:$0xff] }
 0x12b   :  { %2139 = vmatpush1.msra.mxu1 %v100_v61  ;;  %v4431_v21 = vpop.f32.mrf.mxu0  ;;  %2212 = vmatpush1.msra.mxu0 %v740_v8  ;;  %v1467_v61 = vadd.f32 %v4415_v28, %v1378_v42  ;;  %v516_v8 = vld [vmem:[#allocation2 + $0xe30] sm:$0xff]  ;;  %v597_v42 = vld [vmem:[#allocation2 + $0x10b8] sm:$0xff] }
 0x12c   :  { %2140 = vmatprep.subr.mxu1 %v85_v5  ;;  %3966 = vmatmul.mubr.msk.f32.gmra.mxu0 %vm1298_vm0, %v4441_v24  ;;  %v644_v5 = vld [vmem:[#allocation2 + $0x1230] sm:$0xff] }
 0x12d   :  { %2213 = vmatprep.subr.mxu0 %v725_v7  ;;  %2141 = vmatpush1.msra.mxu1 %v84_v12  ;;  %v501_v12 = vld [vmem:[#allocation2 + $0xdb8] sm:$0xff] }
 0x12e   :  { %2214 = vmatpush1.msra.mxu0 %v724_v14  ;;  %2142 = vmatprep.subr.mxu1 %v69_v17  ;;  %v1469_v14 = vadd.f32 %v1468_v15, %v1380_v53  ;;  %v1384_v17 = vadd.f32 %v4408_v3, %v4436_v23  ;;  %v484_v3 = vld [vmem:[#allocation2 + $0xd30] sm:$0xff] }
 0x12f   :  { %2215 = vmatprep.subr.mxu0 %v709_v19  ;;  %v4450_v25 = vpop.f32.mrf.mxu0  ;;  %2143 = vmatpush1.msra.mxu1 %v68_v26  ;;  %v500_v26 = vld [vmem:[#allocation2 + $0xdb0] sm:$0xff] }
 0x130   :  { %2216 = vmatpush1.msra.mxu0 %v708_v27  ;;  %2144 = vmatprep.subr.mxu1 %v565_v13  ;;  %v628_v27 = vld [vmem:[#allocation2 + $0x11b0] sm:$0xff]  ;;  %v1478_v13 = vpop.f32.mrf.mxu1 }
 0x131   :  { %2217 = vmatprep.subr.mxu0 %v693_v30  ;;  %v4454_v49 = vpop.f32.mrf.mxu0  ;;  %2145 = vmatpush2.msra.mxu1 %v564_v22  ;;  %v485_v30 = vld [vmem:[#allocation2 + $0xd38] sm:$0xff] }
 0x132   :  { %2218 = vmatpush1.msra.mxu0 %v692_v35  ;;  %2146 = vmatprep.subr.mxu1 %v549_v38  ;;  %v613_v22 = vld [vmem:[#allocation2 + $0x1138] sm:$0xff]  ;;  %v1386_v35 = vadd.f32 %v4412_v54, %v4448_v31  ;;  %v612_v38 = vld [vmem:[#allocation2 + $0x1130] sm:$0xff] }
 0x133   :  { %2219 = vmatprep.subr.mxu0 %v677_v39  ;;  %2147 = vmatpush2.msra.mxu1 %v548_v37  ;;  %v469_v39 = vld [vmem:[#allocation2 + $0xcb8] sm:$0xff]  ;;  %v1473_v37 = vadd.f32 %v1472_v36, %v1384_v17  ;;  %v468_v54 = vld [vmem:[#allocation2 + $0xcb0] sm:$0xff] }
 0x134   :  { %2220 = vmatpush1.msra.mxu0 %v676_v45  ;;  %2148 = vmatprep.subr.mxu1 %v533_v48  ;;  %v596_v45 = vld [vmem:[#allocation2 + $0x10b0] sm:$0xff]  ;;  %v1390_v48 = vadd.f32 %v4427_v44, %v4436_v23  ;;  %v1077_v44 = vld [vmem:[#allocation2 + $0x1fb8] sm:$0xff] }
 0x135   :  { %2221 = vmatprep.subr.mxu0 %v661_v50  ;;  %v1555_v7 = vpop.f32.mrf.mxu0  ;;  %2149 = vmatpush2.msra.mxu1 %v532_v55  ;;  %v1480_v50 = vpop.f32.mrf.mxu1  ;;  %v453_v55 = vld [vmem:[#allocation2 + $0xc38] sm:$0xff]  ;;  %v452_v36 = vld [vmem:[#allocation2 + $0xc30] sm:$0xff] }
 0x136   :  { %2222 = vmatpush1.msra.mxu0 %v660_v56  ;;  %v1556_v19 = vadd.f32 %v1555_v7, %v1467_v61  ;;  %2150 = vmatprep.subr.mxu1 %v517_v33  ;;  %v581_v56 = vld [vmem:[#allocation2 + $0x1038] sm:$0xff]  ;;  %v1475_v33 = vadd.f32 %v1474_v57, %v1386_v35  ;;  %v580_v61 = vld [vmem:[#allocation2 + $0x1030] sm:$0xff]  ;;  %v1479_v17 = vadd.f32 %v1478_v13, %v1390_v48 }
 0x137   :  { %2223 = vmatprep.subr.mxu0 %v645_v59  ;;  %v1557_v28 = vpop.f32.mrf.mxu0  ;;  %2151 = vmatpush2.msra.mxu1 %v516_v8  ;;  %v1392_v8 = vadd.f32 %v4431_v21, %v4448_v31  ;;  %v437_v7 = vld [vmem:[#allocation2 + $0xbb8] sm:$0xff]  ;;  %v436_v57 = vld [vmem:[#allocation2 + $0xbb0] sm:$0xff] }
 0x138   :  { %2224 = vmatpush1.msra.mxu0 %v644_v5  ;;  %3447 = vst [vmem:[%s5325_s3] sm:$0xff] %v1556_v19  ;;  %v1558_v15 = vadd.f32 %v1557_v28, %v1469_v14  ;;  %2152 = vmatprep.subr.mxu1 %v501_v12  ;;  %v1076_v14 = vld [vmem:[#allocation2 + $0x1fb0] sm:$0xff]  ;;  %v421_v21 = vld [vmem:[#allocation2 + $0xb38] sm:$0xff]  ;;  %v1396_v28 = vadd.f32 %v4450_v25, %v4436_v23 }
 0x139   :  { %2225 = vmatprep.subr.mxu0 %v629_v34  ;;  %2153 = vmatpush2.msra.mxu1 %v500_v26  ;;  %v1484_v26 = vpop.f32.mrf.mxu1  ;;  %v420_v35 = vld [vmem:[#allocation2 + $0xb30] sm:$0xff]  ;;  %v1481_v13 = vadd.f32 %v1480_v50, %v1392_v8  ;;  %v1398_v23 = vadd.f32 %v4454_v49, %v4448_v31  ;;  %v1013_v8 = vld [vmem:[#allocation2 + $0x1db8] sm:$0xff] }
 0x13a   :  { %2226 = vmatpush1.msra.mxu0 %v628_v27  ;;  %3448 = vst [vmem:[%s5325_s3 + $0x8] sm:$0xff] %v1558_v15  ;;  %2154 = vmatprep.subr.mxu1 %v485_v30  ;;  %v1561_v53 = vpop.f32.mrf.mxu0  ;;  %v1061_v27 = vld [vmem:[#allocation2 + $0x1f38] sm:$0xff]  ;;  %v388_v49 = vld [vmem:[#allocation2 + $0xa30] sm:$0xff] }
 0x13b   :  { %2227 = vmatprep.subr.mxu0 %v613_v22  ;;  %2155 = vmatpush2.msra.mxu1 %v484_v3  ;;  %v1562_v59 = vadd.f32 %v1561_v53, %v1473_v37  ;;  %v1060_v3 = vld [vmem:[#allocation2 + $0x1f30] sm:$0xff]  ;;  %v1486_v48 = vpop.f32.mrf.mxu1  ;;  %v389_v53 = vld [vmem:[#allocation2 + $0xa38] sm:$0xff] }
 0x13c   :  { %2228 = vmatpush1.msra.mxu0 %v612_v38  ;;  %2156 = vmatprep.subr.mxu1 %v469_v39  ;;  %v1563_v5 = vpop.f32.mrf.mxu0  ;;  %v405_v39 = vld [vmem:[#allocation2 + $0xab8] sm:$0xff] }
 0x13d   :  { %2229 = vmatprep.subr.mxu0 %v597_v42  ;;  %2157 = vmatpush2.msra.mxu1 %v468_v54  ;;  %3463 = vst [vmem:[%s5325_s3 + $0x80] sm:$0xff] %v1562_v59  ;;  %v3511_v12 = vmax.f32 %v1556_v19, %v1562_v59  ;;  %v1564_v34 = vadd.f32 %v1563_v5, %v1475_v33  ;;  %v1045_v42 = vld [vmem:[#allocation2 + $0x1eb8] sm:$0xff]  ;;  %v1028_v59 = vld [vmem:[#allocation2 + $0x1e30] sm:$0xff] }
 0x13e   :  { %2230 = vmatpush1.msra.mxu0 %v596_v45  ;;  %2158 = vmatprep.subr.mxu1 %v453_v55  ;;  %v1044_v45 = vld [vmem:[#allocation2 + $0x1eb0] sm:$0xff]  ;;  %v1029_v55 = vld [vmem:[#allocation2 + $0x1e38] sm:$0xff]  ;;  %v1487_v5 = vadd.f32 %v1486_v48, %v1398_v23 }
 0x13f   :  { %2231 = vmatprep.subr.mxu0 %v581_v56  ;;  %2159 = vmatpush2.msra.mxu1 %v452_v36  ;;  %v3512_v30 = vrot.slane %v3511_v12, 4  ;;  %3464 = vst [vmem:[%s5325_s3 + $0x88] sm:$0xff] %v1564_v34  ;;  %v3518_v19 = vmax.f32 %v1558_v15, %v1564_v34  ;;  %v1567_v22 = vpop.f32.mrf.mxu0  ;;  %v404_v15 = vld [vmem:[#allocation2 + $0xab0] sm:$0xff]  ;;  %v1485_v56 = vadd.f32 %v1484_v26, %v1396_v28  ;;  %v997_v26 = vld [vmem:[#allocation2 + $0x1d38] sm:$0xff] }
 0x140   :  { %2232 = vmatpush1.msra.mxu0 %v580_v61  ;;  %2160 = vmatprep.subr.mxu1 %v437_v7  ;;  %v1568_v38 = vadd.f32 %v1567_v22, %v1479_v17  ;;  %v373_v61 = vld [vmem:[#allocation2 + $0x9b8] sm:$0xff]  ;;  %v372_v34 = vld [vmem:[#allocation2 + $0x9b0] sm:$0xff] }
 0x141   :  { %2233 = vmatprep.subr.mxu0 %v1077_v44  ;;  %2161 = vmatpush2.msra.mxu1 %v436_v57  ;;  %v3513_v25 = vmax.f32 %v3511_v12, %v3512_v30  ;;  %v3519_v37 = vrot.slane %v3518_v19, 4  ;;  %v1569_v54 = vpop.f32.mrf.mxu0  ;;  %v1012_v57 = vld [vmem:[#allocation2 + $0x1db0] sm:$0xff]  ;;  %v357_v17 = vld [vmem:[#allocation2 + $0x938] sm:$0xff] }
 0x142   :  { %2234 = vmatpush2.msra.mxu0 %v1076_v14  ;;  %2162 = vmatprep.subr.mxu1 %v421_v21  ;;  %3479 = vst [vmem:[%s5325_s3 + $0x100] sm:$0xff] %v1568_v38  ;;  %v1570_v50 = vadd.f32 %v1569_v54, %v1481_v13  ;;  %v996_v22 = vld [vmem:[#allocation2 + $0x1d30] sm:$0xff] }
 0x143   :  { %2235 = vmatprep.subr.mxu0 %v1061_v27  ;;  %2163 = vmatpush2.msra.mxu1 %v420_v35  ;;  %v3514_v33 = vrot.slane %v3513_v25, 2  ;;  %v3520_v31 = vmax.f32 %v3518_v19, %v3519_v37  ;;  %v356_v19 = vld [vmem:[#allocation2 + $0x930] sm:$0xff]  ;;  %v341_v35 = vld [vmem:[#allocation2 + $0x8b8] sm:$0xff] }
 0x144   :  { %2236 = vmatpush2.msra.mxu0 %v1060_v3  ;;  %2164 = vmatprep.subr.mxu1 %v405_v39  ;;  %3480 = vst [vmem:[%s5325_s3 + $0x108] sm:$0xff] %v1570_v50  ;;  %v1573_v36 = vpop.f32.mrf.mxu0  ;;  %v981_v3 = vld [vmem:[#allocation2 + $0x1cb8] sm:$0xff]  ;;  %v340_v23 = vld [vmem:[#allocation2 + $0x8b0] sm:$0xff] }
 0x145   :  { %2237 = vmatprep.subr.mxu0 %v1045_v42  ;;  %2165 = vmatpush2.msra.mxu1 %v404_v15  ;;  %v3515_v7 = vmax.f32 %v3513_v25, %v3514_v33  ;;  %v3521_v44 = vrot.slane %v3520_v31, 2  ;;  %v1574_v12 = vadd.f32 %v1573_v36, %v1485_v56  ;;  %v325_v25 = vld [vmem:[#allocation2 + $0x838] sm:$0xff]  ;;  %v1204_v36 = vld [vmem:[#allocation2 + $0x23b0] sm:$0xff] }
 0x146   :  { %2238 = vmatpush2.msra.mxu0 %v1044_v45  ;;  %2166 = vmatprep.subr.mxu1 %v389_v53  ;;  %v1575_v14 = vpop.f32.mrf.mxu0  ;;  %v965_v37 = vld [vmem:[#allocation2 + $0x1c38] sm:$0xff]  ;;  %v324_v53 = vld [vmem:[#allocation2 + $0x830] sm:$0xff] }
 0x147   :  { %2239 = vmatprep.subr.mxu0 %v1029_v55  ;;  %2167 = vmatpush2.msra.mxu1 %v388_v49  ;;  %v3516_v21 = vrot.slane %v3515_v7, 1  ;;  %v3522_v27 = vmax.f32 %v3520_v31, %v3521_v44  ;;  %3495 = vst [vmem:[%s5325_s3 + $0x180] sm:$0xff] %v1574_v12  ;;  %v3623_v28 = vmax.f32 %v1568_v38, %v1574_v12  ;;  %v980_v38 = vld [vmem:[#allocation2 + $0x1cb0] sm:$0xff]  ;;  %v949_v31 = vld [vmem:[#allocation2 + $0x1bb8] sm:$0xff] }
 0x148   :  { %2240 = vmatpush2.msra.mxu0 %v1028_v59  ;;  %v1576_v30 = vadd.f32 %v1575_v14, %v1487_v5  ;;  %2168 = vmatprep.subr.mxu1 %v373_v61  ;;  %v1205_v49 = vld [vmem:[#allocation2 + $0x23b8] sm:$0xff]  ;;  %v948_v59 = vld [vmem:[#allocation2 + $0x1bb0] sm:$0xff] }
 0x149   :  { %2241 = vmatprep.subr.mxu0 %v1013_v8  ;;  %2169 = vmatpush2.msra.mxu1 %v372_v34  ;;  %v3523_v13 = vrot.slane %v3522_v27, 1  ;;  %v3624_v39 = vrot.slane %v3623_v28, 4  ;;  %v4495_v54 = vmax.f32 %v3515_v7, %v3516_v21  ;;  %v933_v5 = vld [vmem:[#allocation2 + $0x1b38] sm:$0xff]  ;;  %v932_v44 = vld [vmem:[#allocation2 + $0x1b30] sm:$0xff] }
 0x14a   :  { %2242 = vmatpush2.msra.mxu0 %v1012_v57  ;;  %3496 = vst [vmem:[%s5325_s3 + $0x188] sm:$0xff] %v1576_v30  ;;  %v3630_v42 = vmax.f32 %v1570_v50, %v1576_v30  ;;  %2170 = vmatprep.subr.mxu1 %v357_v17  ;;  %v964_v50 = vld [vmem:[#allocation2 + $0x1c30] sm:$0xff]  ;;  %v1189_v7 = vld [vmem:[#allocation2 + $0x2338] sm:$0xff] }
 0x14b   :  { %2243 = vmatprep.subr.mxu0 %v997_v26  ;;  %2171 = vmatpush2.msra.mxu1 %v356_v19  ;;  %v4497_v15 = vmax.f32 %v3522_v27, %v3523_v13  ;;  %v3625_v45 = vmax.f32 %v3623_v28, %v3624_v39  ;;  %v1188_v57 = vld [vmem:[#allocation2 + $0x2330] sm:$0xff]  ;;  %v917_v14 = vld [vmem:[#allocation2 + $0x1ab8] sm:$0xff] }
 0x14c   :  { %2244 = vmatpush2.msra.mxu0 %v996_v22  ;;  %v3631_v48 = vrot.slane %v3630_v42, 4  ;;  %2172 = vmatprep.subr.mxu1 %v341_v35  ;;  %v916_v26 = vld [vmem:[#allocation2 + $0x1ab0] sm:$0xff]  ;;  %v901_v21 = vld [vmem:[#allocation2 + $0x1a38] sm:$0xff] }
 0x14d   :  { %2245 = vmatprep.subr.mxu0 %v981_v3  ;;  %2173 = vmatpush2.msra.mxu1 %v340_v23  ;;  %v3767_v55 = vcombine.low %v4495_v54, %v4497_v15  ;;  %v3626_v56 = vrot.slane %v3625_v45, 2  ;;  %v1157_v27 = vld [vmem:[#allocation2 + $0x2238] sm:$0xff]  ;;  %v900_v19 = vld [vmem:[#allocation2 + $0x1a30] sm:$0xff]  ;;  %v1207_v54 = vld [vmem:[#allocation2 + $0x23c8] sm:$0xff] }
 0x14e   :  { %2246 = vmatpush2.msra.mxu0 %v980_v38  ;;  %v3632_v33 = vmax.f32 %v3630_v42, %v3631_v48  ;;  %2174 = vmatprep.subr.mxu1 %v325_v25  ;;  %v1156_v22 = vld [vmem:[#allocation2 + $0x2230] sm:$0xff]  ;;  %v885_v35 = vld [vmem:[#allocation2 + $0x19b8] sm:$0xff] }
 0x14f   :  { %2247 = vmatprep.subr.mxu0 %v965_v37  ;;  %2175 = vmatpush2.msra.mxu1 %v324_v53  ;;  %v3627_v61 = vmax.f32 %v3625_v45, %v3626_v56  ;;  %v1141_v3 = vld [vmem:[#allocation2 + $0x21b8] sm:$0xff]  ;;  %v884_v13 = vld [vmem:[#allocation2 + $0x19b0] sm:$0xff]  ;;  %v823_v56 = vld [vmem:[#allocation2 + $0x17c8] sm:$0xff] }
 0x150   :  { %2176 = vmatprep.mubr.f32.mxu1 %v4295_v41  ;;  %v3633_v8 = vrot.slane %v3632_v33, 2  ;;  %2248 = vmatpush2.msra.mxu0 %v964_v50  ;;  %v1173_v41 = vld [vmem:[#allocation2 + $0x22b8] sm:$0xff]  ;;  %v1140_v39 = vld [vmem:[#allocation2 + $0x21b0] sm:$0xff] }
 0x151   :  { %2177 = vmatmul.mubr.f32.vlgmr.msra.gmra.mxu1 %v4307_v46  ;;  %2249 = vmatprep.subr.mxu0 %v949_v31  ;;  %v3628_v12 = vrot.slane %v3627_v61, 1  ;;  %v1172_v46 = vld [vmem:[#allocation2 + $0x22b0] sm:$0xff]  ;;  %v1125_v42 = vld [vmem:[#allocation2 + $0x2138] sm:$0xff]  ;;  %v822_v31 = vld [vmem:[#allocation2 + $0x17c0] sm:$0xff] }
 0x152   :  { %2306 = vmatprep.subr.mxu1 %v1205_v49  ;;  %v3634_v34 = vmax.f32 %v3632_v33, %v3633_v8  ;;  %2250 = vmatpush2.msra.mxu0 %v948_v59  ;;  %v868_v23 = vld [vmem:[#allocation2 + $0x1930] sm:$0xff]  ;;  %v853_v25 = vld [vmem:[#allocation2 + $0x18b8] sm:$0xff]  ;;  %v310_v33 = vld [vmem:[#allocation2 + $0x7c0] sm:$0xff] }
 0x153   :  { %2307 = vmatpush1.msra.mxu1 %v1204_v36  ;;  %2251 = vmatprep.subr.mxu0 %v933_v5  ;;  %v4504_v28 = vmax.f32 %v3627_v61, %v3628_v12  ;;  %v1124_v38 = vld [vmem:[#allocation2 + $0x2130] sm:$0xff]  ;;  %v1109_v37 = vld [vmem:[#allocation2 + $0x20b8] sm:$0xff]  ;;  %v807_v49 = vld [vmem:[#allocation2 + $0x1748] sm:$0xff] }
 0x154   :  { %2308 = vmatprep.subr.mxu1 %v1189_v7  ;;  %v3635_v17 = vrot.slane %v3634_v34, 1  ;;  %2182 = vmatprep.mubr.f32.mxu1 %v4319_v16  ;;  %v1108_v45 = vld [vmem:[#allocation2 + $0x20b0] sm:$0xff]  ;;  %v837_v48 = vld [vmem:[#allocation2 + $0x1838] sm:$0xff]  ;;  %v294_v59 = vld [vmem:[#allocation2 + $0x740] sm:$0xff] }
 0x155   :  { %2252 = vmatpush2.msra.mxu0 %v932_v44  ;;  %2309 = vmatpush1.msra.mxu1 %v1188_v57  ;;  %v1093_v53 = vld [vmem:[#allocation2 + $0x2038] sm:$0xff]  ;;  %v1092_v50 = vld [vmem:[#allocation2 + $0x2030] sm:$0xff]  ;;  %v279_v36 = vld [vmem:[#allocation2 + $0x6c8] sm:$0xff] }
 0x156   :  { %2253 = vmatprep.subr.mxu0 %v917_v14  ;;  %v4506_v30 = vmax.f32 %v3634_v34, %v3635_v17  ;;  %2183 = vmatmul.mubr.f32.gmra.mxu1 %v4325_v20  ;;  %v869_v20 = vld [vmem:[#allocation2 + $0x1938] sm:$0xff]  ;;  %v791_v61 = vld [vmem:[#allocation2 + $0x16c8] sm:$0xff]  ;;  %v262_v12 = vld [vmem:[#allocation2 + $0x640] sm:$0xff] }
 0x157   :  { %2310 = vmatprep.subr.mxu1 %v1173_v41  ;;  %2254 = vmatpush2.msra.mxu0 %v916_v26  ;;  %v263_v5 = vld [vmem:[#allocation2 + $0x648] sm:$0xff]  ;;  %v774_v34 = vld [vmem:[#allocation2 + $0x1640] sm:$0xff]  ;;  %v313_v15 = vld [vmem:[#allocation2 + $0x7d8] sm:$0xff] }
 0x158   :  { %2311 = vmatpush1.msra.mxu1 %v1172_v46  ;;  %v3835_v16 = vcombine.low %v4504_v28, %v4506_v30  ;;  %2255 = vmatprep.subr.mxu0 %v901_v21  ;;  %v775_v44 = vld [vmem:[#allocation2 + $0x1648] sm:$0xff]  ;;  %v246_v14 = vld [vmem:[#allocation2 + $0x5c0] sm:$0xff] }
 0x159   :  { %2312 = vmatprep.subr.mxu1 %v1157_v27  ;;  %2188 = vmatprep.mubr.f32.mxu1 %v4343_v62  ;;  %v852_v62 = vld [vmem:[#allocation2 + $0x18b0] sm:$0xff]  ;;  %v758_v41 = vld [vmem:[#allocation2 + $0x15c0] sm:$0xff]  ;;  %v231_v17 = vld [vmem:[#allocation2 + $0x548] sm:$0xff] }
 0x15a   :  { %2256 = vmatpush2.msra.mxu0 %v900_v19  ;;  %2313 = vmatpush1.msra.mxu1 %v1156_v22  ;;  %v743_v46 = vld [vmem:[#allocation2 + $0x1548] sm:$0xff]  ;;  %v742_v21 = vld [vmem:[#allocation2 + $0x1540] sm:$0xff]  ;;  %v1228_v19 = vsub.s32 2, %v4410_v52 }
 0x15b   :  { %2257 = vmatprep.subr.mxu0 %v885_v35  ;;  %2189 = vmatmul.mubr.f32.gmra.mxu1 %v4349_v4  ;;  %v836_v4 = vld [vmem:[#allocation2 + $0x1830] sm:$0xff]  ;;  %v727_v27 = vld [vmem:[#allocation2 + $0x14c8] sm:$0xff]  ;;  %v214_v22 = vld [vmem:[#allocation2 + $0x4c0] sm:$0xff] }
 0x15c   :  { %2314 = vmatprep.subr.mxu1 %v1141_v3  ;;  %2258 = vmatpush2.msra.mxu0 %v884_v13  ;;  %v726_v3 = vld [vmem:[#allocation2 + $0x14c0] sm:$0xff]  ;;  %v199_v13 = vld [vmem:[#allocation2 + $0x448] sm:$0xff] }
 0x15d   :  { %2315 = vmatpush1.msra.mxu1 %v1140_v39  ;;  %2259 = vmatprep.subr.mxu0 %v869_v20  ;;  %v1232_v39 = vsub.s32 3, %v4410_v52  ;;  %v198_v20 = vld [vmem:[#allocation2 + $0x440] sm:$0xff] }
 0x15e   :  { %2316 = vmatprep.subr.mxu1 %v1125_v42  ;;  %2194 = vmatprep.mubr.f32.mxu1 %v4367_v63  ;;  %v311_v63 = vld [vmem:[#allocation2 + $0x7c8] sm:$0xff]  ;;  %v710_v42 = vld [vmem:[#allocation2 + $0x1440] sm:$0xff] }
 0x15f   :  { %2260 = vmatpush2.msra.mxu0 %v868_v23  ;;  %2317 = vmatpush1.msra.mxu1 %v1124_v38  ;;  %v695_v38 = vld [vmem:[#allocation2 + $0x13c8] sm:$0xff]  ;;  %v838_v28 = vld [vmem:[#allocation2 + $0x1840] sm:$0xff] }
 0x160   :  { %2261 = vmatprep.subr.mxu0 %v853_v25  ;;  %2195 = vmatmul.mubr.f32.gmra.mxu1 %v4373_v2  ;;  %v295_v2 = vld [vmem:[#allocation2 + $0x748] sm:$0xff]  ;;  %v182_v25 = vld [vmem:[#allocation2 + $0x3c0] sm:$0xff] }
 0x161   :  { %2318 = vmatprep.subr.mxu1 %v1109_v37  ;;  %2262 = vmatpush2.msra.mxu0 %v852_v62  ;;  %v694_v37 = vld [vmem:[#allocation2 + $0x13c0] sm:$0xff]  ;;  %v4559_v62 = vrot.slane %v4425_v6, %v1232_v39 }
 0x162   :  { %2319 = vmatpush1.msra.mxu1 %v1108_v45  ;;  %2263 = vmatprep.subr.mxu0 %v837_v48  ;;  %v167_v48 = vld [vmem:[#allocation2 + $0x348] sm:$0xff] }
 0x163   :  { %2320 = vmatprep.subr.mxu1 %v1093_v53  ;;  %2264 = vmatpush2.msra.mxu0 %v836_v4  ;;  %v679_v53 = vld [vmem:[#allocation2 + $0x1348] sm:$0xff]  ;;  %v166_v4 = vld [vmem:[#allocation2 + $0x340] sm:$0xff] }
 0x164   :  { %2265 = vmatprep.mubr.f32.mxu0 %v4301_v43  ;;  %2321 = vmatpush1.msra.mxu1 %v1092_v50  ;;  %v806_v43 = vld [vmem:[#allocation2 + $0x1740] sm:$0xff] }
 0x165   :  { %2354 = vmatprep.mubr.f32.mxu1 %v4103_v51  ;;  %2266 = vmatmul.mubr.f32.vlgmr.msra.gmra.mxu0 %v4313_v47  ;;  %v278_v47 = vld [vmem:[#allocation2 + $0x6c0] sm:$0xff] }
 0x166   :  { %3967 = vmatmul.mubr.msk.f32.vlgmr.msra.gmra.mxu1 %vm1298_vm0, %v4392_v29  ;;  %2379 = vmatprep.subr.mxu0 %v311_v63  ;;  %v790_v29 = vld [vmem:[#allocation2 + $0x16c0] sm:$0xff]  ;;  %v151_v63 = vld [vmem:[#allocation2 + $0x2c8] sm:$0xff] }
 0x167   :  { %2468 = vmatprep.subr.mxu1 %v823_v56  ;;  %2380 = vmatpush1.msra.mxu0 %v310_v33  ;;  %v678_v50 = vld [vmem:[#allocation2 + $0x1340] sm:$0xff]  ;;  %v663_v56 = vld [vmem:[#allocation2 + $0x12c8] sm:$0xff] }
 0x168   :  { %2469 = vmatpush1.msra.mxu1 %v822_v31  ;;  %2381 = vmatprep.subr.mxu0 %v295_v2  ;;  %v150_v31 = vld [vmem:[#allocation2 + $0x2c0] sm:$0xff] }
 0x169   :  { %2470 = vmatprep.subr.mxu1 %v807_v49  ;;  %v4520_v8 = vpop.f32.mrf.mxu1  ;;  %2271 = vmatprep.mubr.f32.mxu0 %v4331_v58  ;;  %v247_v58 = vld [vmem:[#allocation2 + $0x5c8] sm:$0xff]  ;;  %v662_v2 = vld [vmem:[#allocation2 + $0x12c0] sm:$0xff] }
 0x16a   :  { %2382 = vmatpush1.msra.mxu0 %v294_v59  ;;  %2471 = vmatpush1.msra.mxu1 %v806_v43  ;;  %v135_v43 = vld [vmem:[#allocation2 + $0x248] sm:$0xff] }
 0x16b   :  { %2272 = vmatmul.mubr.f32.gmra.mxu0 %v4337_v60  ;;  %v4524_v7 = vpop.f32.mrf.mxu1  ;;  %2383 = vmatprep.subr.mxu0 %v279_v36  ;;  %v759_v60 = vld [vmem:[#allocation2 + $0x15c8] sm:$0xff] }
 0x16c   :  { %2472 = vmatprep.subr.mxu1 %v791_v61  ;;  %2360 = vmatprep.mubr.f32.mxu1 %v4103_v51  ;;  %v1647_v49 = vadd.f32 %v4524_v7, %v4559_v62  ;;  %v647_v36 = vld [vmem:[#allocation2 + $0x1248] sm:$0xff] }
 0x16d   :  { %2384 = vmatpush1.msra.mxu0 %v278_v47  ;;  %2473 = vmatpush1.msra.mxu1 %v790_v29  ;;  %v134_v47 = vld [vmem:[#allocation2 + $0x240] sm:$0xff] }
 0x16e   :  { %2385 = vmatprep.subr.mxu0 %v263_v5  ;;  %3968 = vmatmul.mubr.msk.f32.gmra.mxu1 %vm1298_vm0, %v4404_v1  ;;  %v4529_v57 = vpop.f32.mrf.mxu1  ;;  %v230_v1 = vld [vmem:[#allocation2 + $0x540] sm:$0xff] }
 0x16f   :  { %2474 = vmatprep.subr.mxu1 %v775_v44  ;;  %2277 = vmatprep.mubr.f32.mxu0 %v4355_v40  ;;  %v646_v29 = vld [vmem:[#allocation2 + $0x1240] sm:$0xff] }
 0x170   :  { %2386 = vmatpush1.msra.mxu0 %v262_v12  ;;  %2475 = vmatpush1.msra.mxu1 %v774_v34  ;;  %v4533_v26 = vpop.f32.mrf.mxu1  ;;  %v119_v12 = vld [vmem:[#allocation2 + $0x1c8] sm:$0xff] }
 0x171   :  { %2278 = vmatmul.mubr.f32.gmra.mxu0 %v4361_v9  ;;  %2387 = vmatprep.subr.mxu0 %v247_v58  ;;  %v215_v9 = vld [vmem:[#allocation2 + $0x4c8] sm:$0xff]  ;;  %v118_v58 = vld [vmem:[#allocation2 + $0x1c0] sm:$0xff] }
 0x172   :  { %2476 = vmatprep.subr.mxu1 %v759_v60  ;;  %2366 = vmatprep.mubr.f32.mxu1 %v4103_v51  ;;  %v631_v34 = vld [vmem:[#allocation2 + $0x11c8] sm:$0xff]  ;;  %v630_v60 = vld [vmem:[#allocation2 + $0x11c0] sm:$0xff] }
 0x173   :  { %2388 = vmatpush1.msra.mxu0 %v246_v14  ;;  %2477 = vmatpush1.msra.mxu1 %v758_v41  ;;  %v4536_v40 = vpop.f32.mrf.mxu1 }
 0x174   :  { %2389 = vmatprep.subr.mxu0 %v231_v17  ;;  %3969 = vmatmul.mubr.msk.f32.gmra.mxu1 %vm1298_vm0, %v4420_v32  ;;  %v711_v32 = vld [vmem:[#allocation2 + $0x1448] sm:$0xff] }
 0x175   :  { %2478 = vmatprep.subr.mxu1 %v743_v46  ;;  %2283 = vmatprep.mubr.f32.mxu0 %v4379_v18  ;;  %v4542_v35 = vpop.f32.mrf.mxu1  ;;  %v4550_v18 = vrot.slane %v4425_v6, %v1228_v19  ;;  %v103_v17 = vld [vmem:[#allocation2 + $0x148] sm:$0xff] }
 0x176   :  { %2390 = vmatpush1.msra.mxu0 %v230_v1  ;;  %2479 = vmatpush1.msra.mxu1 %v742_v21  ;;  %v615_v46 = vld [vmem:[#allocation2 + $0x1148] sm:$0xff]  ;;  %v1653_v1 = vadd.f32 %v4533_v26, %v4559_v62 }
 0x177   :  { %2284 = vmatmul.mubr.f32.gmra.mxu0 %v4385_v10  ;;  %2391 = vmatprep.subr.mxu0 %v215_v9  ;;  %v183_v10 = vld [vmem:[#allocation2 + $0x3c8] sm:$0xff]  ;;  %v1651_v7 = vadd.f32 %v4529_v57, %v4550_v18  ;;  %v102_v57 = vld [vmem:[#allocation2 + $0x140] sm:$0xff] }
 0x178   :  { %2480 = vmatprep.subr.mxu1 %v727_v27  ;;  %2372 = vmatprep.mubr.f32.mxu1 %v4103_v51  ;;  %v4552_v23 = vpop.f32.mrf.mxu1  ;;  %v614_v9 = vld [vmem:[#allocation2 + $0x1140] sm:$0xff] }
 0x179   :  { %2392 = vmatpush1.msra.mxu0 %v214_v22  ;;  %2481 = vmatpush1.msra.mxu1 %v726_v3  ;;  %v87_v22 = vld [vmem:[#allocation2 + $0xc8] sm:$0xff] }
 0x17a   :  { %2393 = vmatprep.subr.mxu0 %v199_v13  ;;  %3970 = vmatmul.mubr.msk.f32.gmra.mxu1 %vm1298_vm0, %v4441_v24  ;;  %v4561_v45 = vpop.f32.mrf.mxu1  ;;  %v1645_v24 = vadd.f32 %v4520_v8, %v4550_v18  ;;  %v599_v3 = vld [vmem:[#allocation2 + $0x10c8] sm:$0xff] }
 0x17b   :  { %2482 = vmatprep.subr.mxu1 %v711_v32  ;;  %2394 = vmatpush1.msra.mxu0 %v198_v20  ;;  %v86_v32 = vld [vmem:[#allocation2 + $0xc0] sm:$0xff] }
 0x17c   :  { %2483 = vmatpush1.msra.mxu1 %v710_v42  ;;  %2395 = vmatprep.subr.mxu0 %v183_v10  ;;  %v598_v20 = vld [vmem:[#allocation2 + $0x10c0] sm:$0xff]  ;;  %v71_v42 = vld [vmem:[#allocation2 + $0x48] sm:$0xff] }
 0x17d   :  { %2484 = vmatprep.subr.mxu1 %v695_v38  ;;  %2396 = vmatpush1.msra.mxu0 %v182_v25  ;;  %v1733_v33 = vpop.f32.mrf.mxu0  ;;  %v583_v10 = vld [vmem:[#allocation2 + $0x1048] sm:$0xff]  ;;  %v1657_v38 = vadd.f32 %v4536_v40, %v4550_v18 }
 0x17e   :  { %2485 = vmatpush1.msra.mxu1 %v694_v37  ;;  %v1822_v6 = vpop.f32.mrf.mxu1  ;;  %2397 = vmatprep.subr.mxu0 %v167_v48  ;;  %v1734_v59 = vadd.f32 %v1733_v33, %v1645_v24  ;;  %v70_v37 = vld [vmem:[#allocation2 + $0x40] sm:$0xff]  ;;  %v567_v24 = vld [vmem:[#allocation2 + $0xfc8] sm:$0xff] }
 0x17f   :  { %2486 = vmatprep.subr.mxu1 %v679_v53  ;;  %2398 = vmatpush1.msra.mxu0 %v166_v4  ;;  %v1735_v61 = vpop.f32.mrf.mxu0  ;;  %v582_v48 = vld [vmem:[#allocation2 + $0x1040] sm:$0xff]  ;;  %v1659_v53 = vadd.f32 %v4542_v35, %v4559_v62  ;;  %v551_v35 = vld [vmem:[#allocation2 + $0xf48] sm:$0xff] }
 0x180   :  { %2487 = vmatpush1.msra.mxu1 %v678_v50  ;;  %v1824_v8 = vpop.f32.mrf.mxu1  ;;  %2399 = vmatprep.subr.mxu0 %v151_v63  ;;  %v1823_v5 = vadd.f32 %v1822_v6, %v1734_v59  ;;  %v1736_v44 = vadd.f32 %v1735_v61, %v1647_v49  ;;  %v1079_v63 = vld [vmem:[#allocation2 + $0x1fc8] sm:$0xff]  ;;  %v566_v6 = vld [vmem:[#allocation2 + $0xfc0] sm:$0xff] }
 0x181   :  { %2488 = vmatprep.subr.mxu1 %v663_v56  ;;  %2400 = vmatpush1.msra.mxu0 %v150_v31  ;;  %v1078_v31 = vld [vmem:[#allocation2 + $0x1fc0] sm:$0xff]  ;;  %v1063_v49 = vld [vmem:[#allocation2 + $0x1f48] sm:$0xff] }
 0x182   :  { %2489 = vmatpush1.msra.mxu1 %v662_v2  ;;  %2401 = vmatprep.subr.mxu0 %v135_v43  ;;  %3449 = vst [vmem:[%s5325_s3 + $0x10] sm:$0xff] %v1823_v5  ;;  %v1825_v14 = vadd.f32 %v1824_v8, %v1736_v44  ;;  %v1062_v61 = vld [vmem:[#allocation2 + $0x1f40] sm:$0xff] }
 0x183   :  { %2490 = vmatprep.subr.mxu1 %v647_v36  ;;  %v1739_v41 = vpop.f32.mrf.mxu0  ;;  %2402 = vmatpush1.msra.mxu0 %v134_v47  ;;  %v550_v36 = vld [vmem:[#allocation2 + $0xf40] sm:$0xff]  ;;  %v535_v47 = vld [vmem:[#allocation2 + $0xec8] sm:$0xff] }
 0x184   :  { %2491 = vmatpush1.msra.mxu1 %v646_v29  ;;  %v1740_v21 = vadd.f32 %v1739_v41, %v1651_v7  ;;  %2403 = vmatprep.subr.mxu0 %v119_v12  ;;  %3450 = vst [vmem:[%s5325_s3 + $0x18] sm:$0xff] %v1825_v14  ;;  %v1047_v29 = vld [vmem:[#allocation2 + $0x1ec8] sm:$0xff]  ;;  %v534_v7 = vld [vmem:[#allocation2 + $0xec0] sm:$0xff] }
 0x185   :  { %2492 = vmatprep.subr.mxu1 %v631_v34  ;;  %v1741_v27 = vpop.f32.mrf.mxu0  ;;  %2404 = vmatpush1.msra.mxu0 %v118_v58  ;;  %v1046_v58 = vld [vmem:[#allocation2 + $0x1ec0] sm:$0xff] }
 0x186   :  { %2493 = vmatpush1.msra.mxu1 %v630_v60  ;;  %v1742_v13 = vadd.f32 %v1741_v27, %v1653_v1  ;;  %2405 = vmatprep.subr.mxu0 %v103_v17  ;;  %v1828_v26 = vpop.f32.mrf.mxu1  ;;  %v1665_v60 = vadd.f32 %v4561_v45, %v4559_v62  ;;  %v519_v17 = vld [vmem:[#allocation2 + $0xe48] sm:$0xff] }
 0x187   :  { %2494 = vmatprep.subr.mxu1 %v615_v46  ;;  %2406 = vmatpush1.msra.mxu0 %v102_v57  ;;  %v1829_v25 = vadd.f32 %v1828_v26, %v1740_v21  ;;  %v1031_v46 = vld [vmem:[#allocation2 + $0x1e48] sm:$0xff]  ;;  %v518_v21 = vld [vmem:[#allocation2 + $0xe40] sm:$0xff] }
 0x188   :  { %2495 = vmatpush1.msra.mxu1 %v614_v9  ;;  %2407 = vmatprep.subr.mxu0 %v87_v22  ;;  %v1830_v50 = vpop.f32.mrf.mxu1  ;;  %v1030_v57 = vld [vmem:[#allocation2 + $0x1e40] sm:$0xff]  ;;  %v503_v62 = vld [vmem:[#allocation2 + $0xdc8] sm:$0xff] }
 0x189   :  { %2496 = vmatprep.subr.mxu1 %v599_v3  ;;  %v1745_v4 = vpop.f32.mrf.mxu0  ;;  %2408 = vmatpush1.msra.mxu0 %v86_v32  ;;  %3465 = vst [vmem:[%s5325_s3 + $0x90] sm:$0xff] %v1829_v25  ;;  %v3525_v56 = vmax.f32 %v1823_v5, %v1829_v25  ;;  %v1831_v33 = vadd.f32 %v1830_v50, %v1742_v13  ;;  %v1015_v45 = vld [vmem:[#allocation2 + $0x1dc8] sm:$0xff]  ;;  %v502_v3 = vld [vmem:[#allocation2 + $0xdc0] sm:$0xff] }
 0x18a   :  { %2497 = vmatpush1.msra.mxu1 %v598_v20  ;;  %v1746_v40 = vadd.f32 %v1745_v4, %v1657_v38  ;;  %2409 = vmatprep.subr.mxu0 %v71_v42  ;;  %v1663_v5 = vadd.f32 %v4552_v23, %v4550_v18  ;;  %v1014_v13 = vld [vmem:[#allocation2 + $0x1dc0] sm:$0xff]  ;;  %v487_v20 = vld [vmem:[#allocation2 + $0xd48] sm:$0xff] }
 0x18b   :  { %2498 = vmatprep.subr.mxu1 %v583_v10  ;;  %v1747_v2 = vpop.f32.mrf.mxu0  ;;  %2410 = vmatpush1.msra.mxu0 %v70_v37  ;;  %3466 = vst [vmem:[%s5325_s3 + $0x98] sm:$0xff] %v1831_v33  ;;  %v3532_v59 = vmax.f32 %v1825_v14, %v1831_v33  ;;  %v3526_v44 = vrot.slane %v3525_v56, 4  ;;  %v999_v26 = vld [vmem:[#allocation2 + $0x1d48] sm:$0xff]  ;;  %v486_v38 = vld [vmem:[#allocation2 + $0xd40] sm:$0xff] }
 0x18c   :  { %2499 = vmatpush1.msra.mxu1 %v582_v48  ;;  %v1748_v43 = vadd.f32 %v1747_v2, %v1659_v53  ;;  %2411 = vmatprep.subr.mxu0 %v567_v24  ;;  %v1834_v8 = vpop.f32.mrf.mxu1  ;;  %v998_v25 = vld [vmem:[#allocation2 + $0x1d40] sm:$0xff]  ;;  %v471_v48 = vld [vmem:[#allocation2 + $0xcc8] sm:$0xff] }
 0x18d   :  { %2500 = vmatprep.subr.mxu1 %v1079_v63  ;;  %2412 = vmatpush2.msra.mxu0 %v566_v6  ;;  %v3533_v12 = vrot.slane %v3532_v59, 4  ;;  %v1835_v34 = vadd.f32 %v1834_v8, %v1746_v40  ;;  %v3527_v27 = vmax.f32 %v3525_v56, %v3526_v44  ;;  %v983_v53 = vld [vmem:[#allocation2 + $0x1cc8] sm:$0xff]  ;;  %v470_v63 = vld [vmem:[#allocation2 + $0xcc0] sm:$0xff] }
 0x18e   :  { %2501 = vmatpush2.msra.mxu1 %v1078_v31  ;;  %2413 = vmatprep.subr.mxu0 %v551_v35  ;;  %v1836_v41 = vpop.f32.mrf.mxu1  ;;  %v982_v56 = vld [vmem:[#allocation2 + $0x1cc0] sm:$0xff]  ;;  %v455_v40 = vld [vmem:[#allocation2 + $0xc48] sm:$0xff] }
 0x18f   :  { %2502 = vmatprep.subr.mxu1 %v1063_v49  ;;  %v1751_v14 = vpop.f32.mrf.mxu0  ;;  %2414 = vmatpush2.msra.mxu0 %v550_v36  ;;  %v3534_v1 = vmax.f32 %v3532_v59, %v3533_v12  ;;  %3481 = vst [vmem:[%s5325_s3 + $0x110] sm:$0xff] %v1835_v34  ;;  %v1837_v23 = vadd.f32 %v1836_v41, %v1748_v43  ;;  %v3528_v4 = vrot.slane %v3527_v27, 2  ;;  %v967_v33 = vld [vmem:[#allocation2 + $0x1c48] sm:$0xff]  ;;  %v454_v35 = vld [vmem:[#allocation2 + $0xc40] sm:$0xff] }
 0x190   :  { %2503 = vmatpush2.msra.mxu1 %v1062_v61  ;;  %v1752_v18 = vadd.f32 %v1751_v14, %v1663_v5  ;;  %2415 = vmatprep.subr.mxu0 %v535_v47  ;;  %v966_v49 = vld [vmem:[#allocation2 + $0x1c40] sm:$0xff]  ;;  %v439_v59 = vld [vmem:[#allocation2 + $0xbc8] sm:$0xff]  ;;  %v4104_v14 = vmov 1983009808  }
 0x191   :  { %2504 = vmatprep.subr.mxu1 %v1047_v29  ;;  %v1753_v9 = vpop.f32.mrf.mxu0  ;;  %2416 = vmatpush2.msra.mxu0 %v534_v7  ;;  %3482 = vst [vmem:[%s5325_s3 + $0x118] sm:$0xff] %v1837_v23  ;;  %v3535_v42 = vrot.slane %v3534_v1, 2  ;;  %v951_v43 = vld [vmem:[#allocation2 + $0x1bc8] sm:$0xff]  ;;  %v3529_v36 = vmax.f32 %v3527_v27, %v3528_v4  ;;  %v438_v47 = vld [vmem:[#allocation2 + $0xbc0] sm:$0xff]  ;;  %v3770_v41 = vunpack.c.l.s4 %v4104_v14 }
 0x192   :  { %2505 = vmatpush2.msra.mxu1 %v1046_v58  ;;  %v1754_v22 = vadd.f32 %v1753_v9, %v1665_v60  ;;  %2417 = vmatprep.subr.mxu0 %v519_v17  ;;  %v1840_v32 = vpop.f32.mrf.mxu1  ;;  %v950_v29 = vld [vmem:[#allocation2 + $0x1bc0] sm:$0xff]  ;;  %v423_v5 = vld [vmem:[#allocation2 + $0xb48] sm:$0xff] }
 0x193   :  { %2506 = vmatprep.subr.mxu1 %v1031_v46  ;;  %2418 = vmatpush2.msra.mxu0 %v518_v21  ;;  %v1841_v10 = vadd.f32 %v1840_v32, %v1752_v18  ;;  %v3536_v6 = vmax.f32 %v3534_v1, %v3535_v42  ;;  %v935_v44 = vld [vmem:[#allocation2 + $0x1b48] sm:$0xff]  ;;  %v422_v58 = vld [vmem:[#allocation2 + $0xb40] sm:$0xff]  ;;  %v3530_v1 = vrot.slane %v3529_v36, 1  ;;  %v3771_v32 = vunpack.c.0.s8 %v3770_v41 }
 0x194   :  { %2507 = vmatpush2.msra.mxu1 %v1030_v57  ;;  %2419 = vmatprep.subr.mxu0 %v503_v62  ;;  %v1842_v37 = vpop.f32.mrf.mxu1  ;;  %v934_v60 = vld [vmem:[#allocation2 + $0x1b40] sm:$0xff]  ;;  %v407_v17 = vld [vmem:[#allocation2 + $0xac8] sm:$0xff] }
 0x195   :  { %2508 = vmatprep.subr.mxu1 %v1015_v45  ;;  %2420 = vmatpush2.msra.mxu0 %v502_v3  ;;  %3497 = vst [vmem:[%s5325_s3 + $0x190] sm:$0xff] %v1841_v10  ;;  %v3637_v50 = vmax.f32 %v1835_v34, %v1841_v10  ;;  %v1843_v24 = vadd.f32 %v1842_v37, %v1754_v22  ;;  %v3537_v12 = vrot.slane %v3536_v6, 1  ;;  %v919_v46 = vld [vmem:[#allocation2 + $0x1ac8] sm:$0xff]  ;;  %v406_v21 = vld [vmem:[#allocation2 + $0xac0] sm:$0xff] }
 0x196   :  { %2509 = vmatpush2.msra.mxu1 %v1014_v13  ;;  %2421 = vmatprep.subr.mxu0 %v487_v20  ;;  %v918_v57 = vld [vmem:[#allocation2 + $0x1ac0] sm:$0xff]  ;;  %v391_v9 = vld [vmem:[#allocation2 + $0xa48] sm:$0xff]  ;;  %v3531_v20 = vmax.f32 %v3529_v36, %v3530_v1 }
 0x197   :  { %2510 = vmatprep.subr.mxu1 %v999_v26  ;;  %2422 = vmatpush2.msra.mxu0 %v486_v38  ;;  %v3638_v31 = vrot.slane %v3637_v50, 4  ;;  %3498 = vst [vmem:[%s5325_s3 + $0x198] sm:$0xff] %v1843_v24  ;;  %v3644_v2 = vmax.f32 %v1837_v23, %v1843_v24  ;;  %v903_v62 = vld [vmem:[#allocation2 + $0x1a48] sm:$0xff]  ;;  %v3538_v45 = vmax.f32 %v3536_v6, %v3537_v12  ;;  %v390_v3 = vld [vmem:[#allocation2 + $0xa40] sm:$0xff] }
 0x198   :  { %2511 = vmatpush2.msra.mxu1 %v998_v25  ;;  %2423 = vmatprep.subr.mxu0 %v471_v48  ;;  %v902_v13 = vld [vmem:[#allocation2 + $0x1a40] sm:$0xff]  ;;  %v375_v26 = vld [vmem:[#allocation2 + $0x9c8] sm:$0xff] }
 0x199   :  { %2512 = vmatprep.subr.mxu1 %v983_v53  ;;  %2424 = vmatpush2.msra.mxu0 %v470_v63  ;;  %v3639_v61 = vmax.f32 %v3637_v50, %v3638_v31  ;;  %v3645_v8 = vrot.slane %v3644_v2, 4  ;;  %v887_v42 = vld [vmem:[#allocation2 + $0x19c8] sm:$0xff]  ;;  %v374_v38 = vld [vmem:[#allocation2 + $0x9c0] sm:$0xff]  ;;  %v3768_v37 = vcombine.low %v3531_v20, %v3538_v45 }
 0x19a   :  { %2513 = vmatpush2.msra.mxu1 %v982_v56  ;;  %2425 = vmatprep.subr.mxu0 %v455_v40  ;;  %v886_v25 = vld [vmem:[#allocation2 + $0x19c0] sm:$0xff]  ;;  %v359_v48 = vld [vmem:[#allocation2 + $0x948] sm:$0xff]  ;;  %v4604_v56 = vsub.s32 %v3771_v32, %v4410_v52  ;;  %v4668_v32 = vld [vmem:[%s5322_s0 + $0x38] sm:$0xff] }
 0x19b   :  { %2514 = vmatprep.subr.mxu1 %v967_v33  ;;  %2426 = vmatpush2.msra.mxu0 %v454_v35  ;;  %v3640_v34 = vrot.slane %v3639_v61, 2  ;;  %v3646_v7 = vmax.f32 %v3644_v2, %v3645_v8  ;;  %v871_v53 = vld [vmem:[#allocation2 + $0x1948] sm:$0xff]  ;;  %v358_v24 = vld [vmem:[#allocation2 + $0x940] sm:$0xff] }
 0x19c   :  { %2515 = vmatpush2.msra.mxu1 %v966_v49  ;;  %2427 = vmatprep.subr.mxu0 %v439_v59  ;;  %v870_v63 = vld [vmem:[#allocation2 + $0x1940] sm:$0xff]  ;;  %v343_v40 = vld [vmem:[#allocation2 + $0x8c8] sm:$0xff]  ;;  %v3843_v35 = vrot.slane %v3835_v16, %v4604_v56  ;;  %v3782_v49 = vrot.slane %v3768_v37, %v4604_v56  ;;  %v3775_v8 = vrot.slane %v3767_v55, %v4604_v56  ;;  %v4625_v55 = vld [vmem:[%s5322_s0 + $0x18] sm:$0xff] }
 0x19d   :  { %2516 = vmatprep.subr.mxu1 %v951_v43  ;;  %2428 = vmatpush2.msra.mxu0 %v438_v47  ;;  %v3641_v18 = vmax.f32 %v3639_v61, %v3640_v34  ;;  %v3647_v23 = vrot.slane %v3646_v7, 2  ;;  %v855_v33 = vld [vmem:[#allocation2 + $0x18c8] sm:$0xff]  ;;  %v342_v31 = vld [vmem:[#allocation2 + $0x8c0] sm:$0xff] }
 0x19e   :  { %2517 = vmatpush2.msra.mxu1 %v950_v29  ;;  %2429 = vmatprep.subr.mxu0 %v423_v5  ;;  %v854_v2 = vld [vmem:[#allocation2 + $0x18c0] sm:$0xff]  ;;  %v327_v59 = vld [vmem:[#allocation2 + $0x848] sm:$0xff]  ;;  %v3783_v16 = vcombine.low %v3775_v8, %v3782_v49  ;;  %v201_v49 = vld [vmem:[#allocation2 + $0x458] sm:$0xff] }
 0x19f   :  { %2518 = vmatprep.subr.mxu1 %v935_v44  ;;  %2430 = vmatpush2.msra.mxu0 %v422_v58  ;;  %v3642_v27 = vrot.slane %v3641_v18, 1  ;;  %v3648_v22 = vmax.f32 %v3646_v7, %v3647_v23  ;;  %v839_v43 = vld [vmem:[#allocation2 + $0x1848] sm:$0xff]  ;;  %v326_v61 = vld [vmem:[#allocation2 + $0x840] sm:$0xff]  ;;  %v312_v44 = vld [vmem:[#allocation2 + $0x7d0] sm:$0xff] }
 0x1a0   :  { %2519 = vmatpush2.msra.mxu1 %v934_v60  ;;  %2431 = vmatprep.subr.mxu0 %v407_v17  ;;  %v4619_v47 = vld [vmem:[%s5322_s0 + $0x8] sm:$0xff]  ;;  %v1206_v5 = vld [vmem:[#allocation2 + $0x23c0] sm:$0xff]  ;;  %v4638_v7 = vld [vmem:[%s5322_s0 + $0x10] sm:$0xff] }
 0x1a1   :  { %2520 = vmatprep.subr.mxu1 %v919_v46  ;;  %2432 = vmatpush2.msra.mxu0 %v406_v21  ;;  %v3649_v10 = vrot.slane %v3648_v22, 1  ;;  %v3643_v4 = vmax.f32 %v3641_v18, %v3642_v27  ;;  %v4632_v34 = vld [vmem:[%s5322_s0] sm:$0xff]  ;;  %v1191_v58 = vld [vmem:[#allocation2 + $0x2348] sm:$0xff]  ;;  %v297_v60 = vld [vmem:[#allocation2 + $0x758] sm:$0xff] }
 0x1a2   :  { %2521 = vmatpush2.msra.mxu1 %v918_v57  ;;  %2433 = vmatprep.subr.mxu0 %v391_v9  ;;  %v1190_v41 = vld [vmem:[#allocation2 + $0x2340] sm:$0xff]  ;;  %v296_v46 = vld [vmem:[#allocation2 + $0x750] sm:$0xff]  ;;  %v1175_v18 = vld [vmem:[#allocation2 + $0x22c8] sm:$0xff] }
 0x1a3   :  { %2522 = vmatprep.subr.mxu1 %v903_v62  ;;  %2434 = vmatpush2.msra.mxu0 %v390_v3  ;;  %v3650_v50 = vmax.f32 %v3648_v22, %v3649_v10  ;;  %v281_v23 = vld [vmem:[#allocation2 + $0x6d8] sm:$0xff]  ;;  %v4650_v21 = vld [vmem:[%s5322_s0 + $0x30] sm:$0xff]  ;;  %v1174_v57 = vld [vmem:[#allocation2 + $0x22c0] sm:$0xff] }
 0x1a4   :  { %2523 = vmatpush2.msra.mxu1 %v902_v13  ;;  %2435 = vmatprep.subr.mxu0 %v375_v26  ;;  %v4656_v9 = vld [vmem:[%s5322_s0 + $0x28] sm:$0xff]  ;;  %v280_v62 = vld [vmem:[#allocation2 + $0x6d0] sm:$0xff]  ;;  %v265_v27 = vld [vmem:[#allocation2 + $0x658] sm:$0xff] }
 0x1a5   :  { %2524 = vmatprep.subr.mxu1 %v887_v42  ;;  %2436 = vmatpush2.msra.mxu0 %v374_v38  ;;  %v3836_v6 = vcombine.low %v3643_v4, %v3650_v50  ;;  %v1159_v45 = vld [vmem:[#allocation2 + $0x2248] sm:$0xff]  ;;  %v4662_v22 = vld [vmem:[%s5322_s0 + $0x40] sm:$0xff]  ;;  %v264_v13 = vld [vmem:[#allocation2 + $0x650] sm:$0xff] }
 0x1a6   :  { %2525 = vmatpush2.msra.mxu1 %v886_v25  ;;  %2437 = vmatprep.subr.mxu0 %v359_v48  ;;  %v1158_v3 = vld [vmem:[#allocation2 + $0x2240] sm:$0xff]  ;;  %v1143_v20 = vld [vmem:[#allocation2 + $0x21c8] sm:$0xff]  ;;  %v249_v26 = vld [vmem:[#allocation2 + $0x5d8] sm:$0xff] }
 0x1a7   :  { %2526 = vmatprep.subr.mxu1 %v871_v53  ;;  %2438 = vmatpush2.msra.mxu0 %v358_v24  ;;  %v3850_v36 = vrot.slane %v3836_v6, %v4604_v56  ;;  %v4674_v42 = vld [vmem:[%s5322_s0 + $0x58] sm:$0xff]  ;;  %v1142_v10 = vld [vmem:[#allocation2 + $0x21c0] sm:$0xff]  ;;  %v4680_v38 = vld [vmem:[%s5322_s0 + $0x50] sm:$0xff] }
 0x1a8   :  { %2527 = vmatpush2.msra.mxu1 %v870_v63  ;;  %2439 = vmatprep.subr.mxu0 %v343_v40  ;;  %v248_v25 = vld [vmem:[#allocation2 + $0x5d0] sm:$0xff]  ;;  %v1127_v37 = vld [vmem:[#allocation2 + $0x2148] sm:$0xff]  ;;  %v233_v48 = vld [vmem:[#allocation2 + $0x558] sm:$0xff] }
 0x1a9   :  { %2528 = vmatprep.subr.mxu1 %v855_v33  ;;  %2440 = vmatpush2.msra.mxu0 %v342_v31  ;;  %v3851_v30 = vcombine.low %v3843_v35, %v3850_v36  ;;  %v4686_v53 = vld [vmem:[%s5322_s0 + $0x68] sm:$0xff]  ;;  %v1126_v4 = vld [vmem:[#allocation2 + $0x2140] sm:$0xff]  ;;  %v232_v50 = vld [vmem:[#allocation2 + $0x550] sm:$0xff] }
 0x1aa   :  { %2529 = vmatpush2.msra.mxu1 %v854_v2  ;;  %2441 = vmatprep.subr.mxu0 %v327_v59  ;;  %v4692_v24 = vld [vmem:[%s5322_s0 + $0x60] sm:$0xff]  ;;  %v1111_v63 = vld [vmem:[#allocation2 + $0x20c8] sm:$0xff]  ;;  %v217_v40 = vld [vmem:[#allocation2 + $0x4d8] sm:$0xff] }
 0x1ab   :  { %2530 = vmatprep.subr.mxu1 %v839_v43  ;;  %2442 = vmatpush2.msra.mxu0 %v326_v61  ;;  %v3907_v29 = vrot.slane %v3851_v30, 7  ;;  %v4698_v33 = vld [vmem:[%s5322_s0 + $0x80] sm:$0xff]  ;;  %v4704_v31 = vld [vmem:[%s5322_s0 + $0x78] sm:$0xff]  ;;  %v216_v2 = vld [vmem:[#allocation2 + $0x4d0] sm:$0xff] }
 0x1ac   :  { %2443 = vmatprep.mubr.f32.mxu0 %v4619_v47  ;;  %2531 = vmatpush2.msra.mxu1 %v838_v28  ;;  %v1110_v6 = vld [vmem:[#allocation2 + $0x20c0] sm:$0xff]  ;;  %v1095_v35 = vld [vmem:[#allocation2 + $0x2048] sm:$0xff]  ;;  %v4710_v59 = vld [vmem:[%s5322_s0 + $0x90] sm:$0xff] }
 0x1ad   :  { %2532 = vmatprep.mubr.f32.mxu1 %v4625_v55  ;;  %v3909_v12 = vsel %vm3908_vm1, %v3907_v29, %v3783_v16  ;;  %2444 = vmatmul.mubr.f32.vlgmr.msra.gmra.mxu0 %v4632_v34  ;;  %v1094_v43 = vld [vmem:[#allocation2 + $0x2040] sm:$0xff]  ;;  %v200_v36 = vld [vmem:[#allocation2 + $0x450] sm:$0xff]  ;;  %v4716_v61 = vld [vmem:[%s5322_s0 + $0x88] sm:$0xff] }
 0x1ae   :  { %2533 = vmatmul.mubr.f32.vlgmr.msra.gmra.mxu1 %v4638_v7  ;;  %v3911_v14 = vsel %vm3910_vm2, %v3907_v29, %v3909_v12  ;;  %2573 = vmatprep.subr.mxu0 %v1207_v54  ;;  %v185_v8 = vld [vmem:[#allocation2 + $0x3d8] sm:$0xff]  ;;  %v184_v30 = vld [vmem:[#allocation2 + $0x3d0] sm:$0xff] }
 0x1af   :  { %2646 = vmatprep.subr.mxu1 %v313_v15  ;;  %v3913_v17 = vsel %vm3912_vm3, %v3907_v29, %v3911_v14  ;;  %2574 = vmatpush1.msra.mxu0 %v1206_v5  ;;  %v825_v28 = vld [vmem:[#allocation2 + $0x17d8] sm:$0xff]  ;;  %v824_v16 = vld [vmem:[#allocation2 + $0x17d0] sm:$0xff] }
 0x1b0   :  { %2647 = vmatpush1.msra.mxu1 %v312_v44  ;;  %v3915_v1 = vsel %vm3914_vm4, %v3907_v29, %v3913_v17  ;;  %2575 = vmatprep.subr.mxu0 %v1191_v58  ;;  %v4723_v29 = vld [vmem:[%s5322_s0 + $0x20] sm:$0xff]  ;;  %v169_v54 = vld [vmem:[#allocation2 + $0x358] sm:$0xff]  ;;  %v168_v5 = vld [vmem:[#allocation2 + $0x350] sm:$0xff] }
 0x1b1   :  { %2648 = vmatprep.subr.mxu1 %v297_v60  ;;  %3941 = vst [vmem:[%s5326_s4] sm:$0xff] %v3915_v1  ;;  %2449 = vmatprep.mubr.f32.mxu0 %v4650_v21  ;;  %v809_v15 = vld [vmem:[#allocation2 + $0x1758] sm:$0xff]  ;;  %v808_v12 = vld [vmem:[#allocation2 + $0x1750] sm:$0xff] }
 0x1b2   :  { %2576 = vmatpush1.msra.mxu0 %v1190_v41  ;;  %2649 = vmatpush1.msra.mxu1 %v296_v46  ;;  %v153_v58 = vld [vmem:[#allocation2 + $0x2d8] sm:$0xff]  ;;  %v152_v41 = vld [vmem:[#allocation2 + $0x2d0] sm:$0xff] }
 0x1b3   :  { %2450 = vmatmul.mubr.f32.gmra.mxu0 %v4656_v9  ;;  %2577 = vmatprep.subr.mxu0 %v1175_v18  ;;  %v793_v60 = vld [vmem:[#allocation2 + $0x16d8] sm:$0xff]  ;;  %v792_v17 = vld [vmem:[#allocation2 + $0x16d0] sm:$0xff]  ;;  %v4735_v18 = vld [vmem:[%s5322_s0 + $0x48] sm:$0xff] }
 0x1b4   :  { %2650 = vmatprep.subr.mxu1 %v281_v23  ;;  %2538 = vmatprep.mubr.f32.mxu1 %v4662_v22  ;;  %v137_v46 = vld [vmem:[#allocation2 + $0x258] sm:$0xff]  ;;  %v136_v23 = vld [vmem:[#allocation2 + $0x250] sm:$0xff] }
 0x1b5   :  { %2578 = vmatpush1.msra.mxu0 %v1174_v57  ;;  %2651 = vmatpush1.msra.mxu1 %v280_v62  ;;  %v777_v1 = vld [vmem:[#allocation2 + $0x1658] sm:$0xff]  ;;  %v776_v62 = vld [vmem:[#allocation2 + $0x1650] sm:$0xff] }
 0x1b6   :  { %2579 = vmatprep.subr.mxu0 %v1159_v45  ;;  %2539 = vmatmul.mubr.f32.gmra.mxu1 %v4668_v32  ;;  %v121_v45 = vld [vmem:[#allocation2 + $0x1d8] sm:$0xff] }
 0x1b7   :  { %2652 = vmatprep.subr.mxu1 %v265_v27  ;;  %2455 = vmatprep.mubr.f32.mxu0 %v4674_v42  ;;  %v761_v27 = vld [vmem:[#allocation2 + $0x15d8] sm:$0xff] }
 0x1b8   :  { %2580 = vmatpush1.msra.mxu0 %v1158_v3  ;;  %2653 = vmatpush1.msra.mxu1 %v264_v13  ;;  %v120_v13 = vld [vmem:[#allocation2 + $0x1d0] sm:$0xff] }
 0x1b9   :  { %2456 = vmatmul.mubr.f32.gmra.mxu0 %v4680_v38  ;;  %2581 = vmatprep.subr.mxu0 %v1143_v20  ;;  %v760_v20 = vld [vmem:[#allocation2 + $0x15d0] sm:$0xff] }
 0x1ba   :  { %2654 = vmatprep.subr.mxu1 %v249_v26  ;;  %2544 = vmatprep.mubr.f32.mxu1 %v4686_v53  ;;  %v105_v26 = vld [vmem:[#allocation2 + $0x158] sm:$0xff] }
 0x1bb   :  { %2582 = vmatpush1.msra.mxu0 %v1142_v10  ;;  %2655 = vmatpush1.msra.mxu1 %v248_v25  ;;  %v745_v10 = vld [vmem:[#allocation2 + $0x1558] sm:$0xff] }
 0x1bc   :  { %2583 = vmatprep.subr.mxu0 %v1127_v37  ;;  %2545 = vmatmul.mubr.f32.gmra.mxu1 %v4692_v24  ;;  %v4749_v37 = vld [vmem:[%s5322_s0 + $0x70] sm:$0xff] }
 0x1bd   :  { %2656 = vmatprep.subr.mxu1 %v233_v48  ;;  %2461 = vmatprep.mubr.f32.mxu0 %v4698_v33  ;;  %v104_v48 = vld [vmem:[#allocation2 + $0x150] sm:$0xff] }
 0x1be   :  { %2584 = vmatpush1.msra.mxu0 %v1126_v4  ;;  %2657 = vmatpush1.msra.mxu1 %v232_v50  ;;  %v1236_v4 = vsub.s32 4, %v4410_v52  ;;  %v744_v50 = vld [vmem:[#allocation2 + $0x1550] sm:$0xff] }
 0x1bf   :  { %2462 = vmatmul.mubr.f32.gmra.mxu0 %v4704_v31  ;;  %2585 = vmatprep.subr.mxu0 %v1111_v63  ;;  %v89_v63 = vld [vmem:[#allocation2 + $0xd8] sm:$0xff] }
 0x1c0   :  { %2658 = vmatprep.subr.mxu1 %v217_v40  ;;  %2550 = vmatprep.mubr.f32.mxu1 %v4710_v59 }
 0x1c1   :  { %2586 = vmatpush1.msra.mxu0 %v1110_v6  ;;  %2659 = vmatpush1.msra.mxu1 %v216_v2  ;;  %v729_v6 = vld [vmem:[#allocation2 + $0x14d8] sm:$0xff]  ;;  %v1240_v2 = vsub.s32 5, %v4410_v52 }
 0x1c2   :  { %2587 = vmatprep.subr.mxu0 %v1095_v35  ;;  %2551 = vmatmul.mubr.f32.gmra.mxu1 %v4716_v61  ;;  %v88_v35 = vld [vmem:[#allocation2 + $0xd0] sm:$0xff] }
 0x1c3   :  { %2660 = vmatprep.subr.mxu1 %v201_v49  ;;  %2588 = vmatpush1.msra.mxu0 %v1094_v43  ;;  %v728_v49 = vld [vmem:[#allocation2 + $0x14d0] sm:$0xff] }
 0x1c4   :  { %2621 = vmatprep.mubr.f32.mxu0 %v4103_v51  ;;  %2661 = vmatpush1.msra.mxu1 %v200_v36 }
 0x1c5   :  { %3971 = vmatmul.mubr.msk.f32.vlgmr.msra.gmra.mxu0 %vm1298_vm0, %v4723_v29  ;;  %2662 = vmatprep.subr.mxu1 %v185_v8  ;;  %v4727_v44 = vpop.f32.mrf.mxu0  ;;  %v73_v8 = vld [vmem:[#allocation2 + $0x58] sm:$0xff] }
 0x1c6   :  { %2735 = vmatprep.subr.mxu0 %v825_v28  ;;  %2663 = vmatpush1.msra.mxu1 %v184_v30  ;;  %v4744_v25 = vpop.f32.mrf.mxu1  ;;  %v713_v28 = vld [vmem:[#allocation2 + $0x1458] sm:$0xff]  ;;  %v4760_v30 = vld [vmem:[#allocation4] sm:$0xff] }
 0x1c7   :  { %2736 = vmatpush1.msra.mxu0 %v824_v16  ;;  %2664 = vmatprep.subr.mxu1 %v169_v54  ;;  %v4729_v14 = vpop.f32.mrf.mxu0  ;;  %v4765_v16 = vrot.slane %v4760_v30, %v1236_v4  ;;  %v4770_v54 = vld [vmem:[%s5322_s0 + $0x98] sm:$0xff] }
 0x1c8   :  { %2737 = vmatprep.subr.mxu0 %v809_v15  ;;  %2627 = vmatprep.mubr.f32.mxu0 %v4103_v51  ;;  %v2002_v43 = vpop.f32.mrf.mxu1  ;;  %v72_v15 = vld [vmem:[#allocation2 + $0x50] sm:$0xff] }
 0x1c9   :  { %2665 = vmatpush1.msra.mxu1 %v168_v5  ;;  %2738 = vmatpush1.msra.mxu0 %v808_v12  ;;  %v712_v5 = vld [vmem:[#allocation2 + $0x1450] sm:$0xff]  ;;  %v569_v12 = vld [vmem:[#allocation2 + $0xfd8] sm:$0xff] }
 0x1ca   :  { %2666 = vmatprep.subr.mxu1 %v153_v58  ;;  %3972 = vmatmul.mubr.msk.f32.gmra.mxu0 %vm1298_vm0, %v4735_v18  ;;  %v697_v58 = vld [vmem:[#allocation2 + $0x13d8] sm:$0xff] }
 0x1cb   :  { %2739 = vmatprep.subr.mxu0 %v793_v60  ;;  %v4739_v57 = vpop.f32.mrf.mxu0  ;;  %2667 = vmatpush1.msra.mxu1 %v152_v41  ;;  %v4777_v60 = vrot.slane %v4760_v30, %v1240_v2  ;;  %v568_v41 = vld [vmem:[#allocation2 + $0xfd0] sm:$0xff] }
 0x1cc   :  { %2740 = vmatpush1.msra.mxu0 %v792_v17  ;;  %2668 = vmatprep.subr.mxu1 %v137_v46  ;;  %v696_v17 = vld [vmem:[#allocation2 + $0x13d0] sm:$0xff] }
 0x1cd   :  { %2741 = vmatprep.subr.mxu0 %v777_v1  ;;  %v4741_v3 = vpop.f32.mrf.mxu0  ;;  %2633 = vmatprep.mubr.f32.mxu0 %v4103_v51 }
 0x1ce   :  { %2669 = vmatpush1.msra.mxu1 %v136_v23  ;;  %2742 = vmatpush1.msra.mxu0 %v776_v62  ;;  %v2006_v46 = vpop.f32.mrf.mxu1  ;;  %v553_v23 = vld [vmem:[#allocation2 + $0xf58] sm:$0xff] }
 0x1cf   :  { %2670 = vmatprep.subr.mxu1 %v121_v45  ;;  %3973 = vmatmul.mubr.msk.f32.gmra.mxu0 %vm1298_vm0, %v4749_v37  ;;  %v681_v62 = vld [vmem:[#allocation2 + $0x1358] sm:$0xff]  ;;  %v1912_v45 = vadd.f32 %v4727_v44, %v4765_v16 }
 0x1d0   :  { %2743 = vmatprep.subr.mxu0 %v761_v27  ;;  %2671 = vmatpush1.msra.mxu1 %v120_v13  ;;  %v552_v27 = vld [vmem:[#allocation2 + $0xf50] sm:$0xff]  ;;  %v521_v44 = vld [vmem:[#allocation2 + $0xe58] sm:$0xff] }
 0x1d1   :  { %2744 = vmatpush1.msra.mxu0 %v760_v20  ;;  %v4754_v40 = vpop.f32.mrf.mxu0  ;;  %2672 = vmatprep.subr.mxu1 %v105_v26  ;;  %v680_v13 = vld [vmem:[#allocation2 + $0x1350] sm:$0xff]  ;;  %v537_v26 = vld [vmem:[#allocation2 + $0xed8] sm:$0xff] }
 0x1d2   :  { %2745 = vmatprep.subr.mxu0 %v745_v10  ;;  %2639 = vmatprep.mubr.f32.mxu0 %v4103_v51  ;;  %v665_v10 = vld [vmem:[#allocation2 + $0x12d8] sm:$0xff] }
 0x1d3   :  { %2673 = vmatpush1.msra.mxu1 %v104_v48  ;;  %v4758_v36 = vpop.f32.mrf.mxu0  ;;  %2746 = vmatpush1.msra.mxu0 %v744_v50  ;;  %v1914_v48 = vadd.f32 %v4729_v14, %v4777_v60  ;;  %v536_v50 = vld [vmem:[#allocation2 + $0xed0] sm:$0xff]  ;;  %v633_v14 = vld [vmem:[#allocation2 + $0x11d8] sm:$0xff] }
 0x1d4   :  { %2674 = vmatprep.subr.mxu1 %v89_v63  ;;  %3974 = vmatmul.mubr.msk.f32.gmra.mxu0 %vm1298_vm0, %v4770_v54  ;;  %v664_v63 = vld [vmem:[#allocation2 + $0x12d0] sm:$0xff] }
 0x1d5   :  { %2747 = vmatprep.subr.mxu0 %v729_v6  ;;  %2675 = vmatpush1.msra.mxu1 %v88_v35  ;;  %v2008_v6 = vpop.f32.mrf.mxu1  ;;  %v649_v35 = vld [vmem:[#allocation2 + $0x1258] sm:$0xff] }
 0x1d6   :  { %2748 = vmatpush1.msra.mxu0 %v728_v49  ;;  %2676 = vmatprep.subr.mxu1 %v73_v8  ;;  %v2001_v49 = vadd.f32 %v4744_v25, %v1912_v45  ;;  %v520_v8 = vld [vmem:[#allocation2 + $0xe50] sm:$0xff]  ;;  %v489_v45 = vld [vmem:[#allocation2 + $0xd58] sm:$0xff] }
 0x1d7   :  { %2749 = vmatprep.subr.mxu0 %v713_v28  ;;  %v4779_v1 = vpop.f32.mrf.mxu0  ;;  %2677 = vmatpush1.msra.mxu1 %v72_v15  ;;  %v648_v28 = vld [vmem:[#allocation2 + $0x1250] sm:$0xff] }
 0x1d8   :  { %2750 = vmatpush1.msra.mxu0 %v712_v5  ;;  %2678 = vmatprep.subr.mxu1 %v569_v12  ;;  %v505_v5 = vld [vmem:[#allocation2 + $0xdd8] sm:$0xff]  ;;  %v2003_v12 = vadd.f32 %v2002_v43, %v1914_v48 }
 0x1d9   :  { %2751 = vmatprep.subr.mxu0 %v697_v58  ;;  %v4783_v20 = vpop.f32.mrf.mxu0  ;;  %2679 = vmatpush2.msra.mxu1 %v568_v41  ;;  %v1918_v58 = vadd.f32 %v4739_v57, %v4765_v16  ;;  %v488_v57 = vld [vmem:[#allocation2 + $0xd50] sm:$0xff]  ;;  %v601_v48 = vld [vmem:[#allocation2 + $0x10d8] sm:$0xff] }
 0x1da   :  { %2752 = vmatpush1.msra.mxu0 %v696_v17  ;;  %2680 = vmatprep.subr.mxu1 %v553_v23  ;;  %v504_v17 = vld [vmem:[#allocation2 + $0xdd0] sm:$0xff] }
 0x1db   :  { %2753 = vmatprep.subr.mxu0 %v681_v62  ;;  %2681 = vmatpush2.msra.mxu1 %v552_v27  ;;  %v632_v23 = vld [vmem:[#allocation2 + $0x11d0] sm:$0xff]  ;;  %v2012_v62 = vpop.f32.mrf.mxu1  ;;  %v617_v27 = vld [vmem:[#allocation2 + $0x1158] sm:$0xff] }
 0x1dc   :  { %2754 = vmatpush1.msra.mxu0 %v680_v13  ;;  %2682 = vmatprep.subr.mxu1 %v537_v26  ;;  %v1920_v13 = vadd.f32 %v4741_v3, %v4777_v60  ;;  %v616_v26 = vld [vmem:[#allocation2 + $0x1150] sm:$0xff] }
 0x1dd   :  { %2755 = vmatprep.subr.mxu0 %v665_v10  ;;  %v2089_v15 = vpop.f32.mrf.mxu0  ;;  %2683 = vmatpush2.msra.mxu1 %v536_v50  ;;  %v473_v10 = vld [vmem:[#allocation2 + $0xcd8] sm:$0xff]  ;;  %v2007_v50 = vadd.f32 %v2006_v46, %v1918_v58  ;;  %v472_v3 = vld [vmem:[#allocation2 + $0xcd0] sm:$0xff] }
 0x1de   :  { %2756 = vmatpush1.msra.mxu0 %v664_v63  ;;  %v2090_v41 = vadd.f32 %v2089_v15, %v2001_v49  ;;  %2684 = vmatprep.subr.mxu1 %v521_v44  ;;  %v600_v63 = vld [vmem:[#allocation2 + $0x10d0] sm:$0xff]  ;;  %v1924_v44 = vadd.f32 %v4754_v40, %v4765_v16  ;;  %v2009_v15 = vadd.f32 %v2008_v6, %v1920_v13  ;;  %v1081_v40 = vld [vmem:[#allocation2 + $0x1fd8] sm:$0xff] }
 0x1df   :  { %2757 = vmatprep.subr.mxu0 %v649_v35  ;;  %v2091_v25 = vpop.f32.mrf.mxu0  ;;  %2685 = vmatpush2.msra.mxu1 %v520_v8  ;;  %v2014_v35 = vpop.f32.mrf.mxu1  ;;  %v457_v8 = vld [vmem:[#allocation2 + $0xc58] sm:$0xff]  ;;  %v456_v46 = vld [vmem:[#allocation2 + $0xc50] sm:$0xff] }
 0x1e0   :  { %2758 = vmatpush1.msra.mxu0 %v648_v28  ;;  %3451 = vst [vmem:[%s5325_s3 + $0x20] sm:$0xff] %v2090_v41  ;;  %v2092_v43 = vadd.f32 %v2091_v25, %v2003_v12  ;;  %2686 = vmatprep.subr.mxu1 %v505_v5  ;;  %v585_v28 = vld [vmem:[#allocation2 + $0x1058] sm:$0xff]  ;;  %v1926_v12 = vadd.f32 %v4758_v36, %v4777_v60  ;;  %v440_v6 = vld [vmem:[#allocation2 + $0xbd0] sm:$0xff] }
 0x1e1   :  { %2759 = vmatprep.subr.mxu0 %v633_v14  ;;  %2687 = vmatpush2.msra.mxu1 %v504_v17  ;;  %v584_v14 = vld [vmem:[#allocation2 + $0x1050] sm:$0xff]  ;;  %v441_v17 = vld [vmem:[#allocation2 + $0xbd8] sm:$0xff]  ;;  %v2018_v13 = vpop.f32.mrf.mxu1 }
 0x1e2   :  { %2760 = vmatpush1.msra.mxu0 %v632_v23  ;;  %3452 = vst [vmem:[%s5325_s3 + $0x28] sm:$0xff] %v2092_v43  ;;  %2688 = vmatprep.subr.mxu1 %v489_v45  ;;  %v2095_v49 = vpop.f32.mrf.mxu0  ;;  %v1080_v45 = vld [vmem:[#allocation2 + $0x1fd0] sm:$0xff]  ;;  %v425_v36 = vld [vmem:[#allocation2 + $0xb58] sm:$0xff] }
 0x1e3   :  { %2761 = vmatprep.subr.mxu0 %v617_v27  ;;  %2689 = vmatpush2.msra.mxu1 %v488_v57  ;;  %v2096_v5 = vadd.f32 %v2095_v49, %v2007_v50  ;;  %v2013_v27 = vadd.f32 %v2012_v62, %v1924_v44  ;;  %v1065_v57 = vld [vmem:[#allocation2 + $0x1f58] sm:$0xff]  ;;  %v424_v50 = vld [vmem:[#allocation2 + $0xb50] sm:$0xff]  ;;  %v2015_v62 = vadd.f32 %v2014_v35, %v1926_v12 }
 0x1e4   :  { %2762 = vmatpush1.msra.mxu0 %v616_v26  ;;  %2690 = vmatprep.subr.mxu1 %v473_v10  ;;  %v2097_v58 = vpop.f32.mrf.mxu0  ;;  %v1930_v26 = vadd.f32 %v4779_v1, %v4765_v16  ;;  %v409_v44 = vld [vmem:[#allocation2 + $0xad8] sm:$0xff]  ;;  %v1932_v16 = vadd.f32 %v4783_v20, %v4777_v60  ;;  %v392_v20 = vld [vmem:[#allocation2 + $0xa50] sm:$0xff] }
 0x1e5   :  { %2763 = vmatprep.subr.mxu0 %v601_v48  ;;  %2691 = vmatpush2.msra.mxu1 %v472_v3  ;;  %3467 = vst [vmem:[%s5325_s3 + $0xa0] sm:$0xff] %v2096_v5  ;;  %v3539_v23 = vmax.f32 %v2090_v41, %v2096_v5  ;;  %v2098_v25 = vadd.f32 %v2097_v58, %v2009_v15  ;;  %v1064_v3 = vld [vmem:[#allocation2 + $0x1f50] sm:$0xff]  ;;  %v1049_v49 = vld [vmem:[#allocation2 + $0x1ed8] sm:$0xff]  ;;  %v2020_v5 = vpop.f32.mrf.mxu1 }
 0x1e6   :  { %2764 = vmatpush1.msra.mxu0 %v600_v63  ;;  %2692 = vmatprep.subr.mxu1 %v457_v8  ;;  %v1048_v15 = vld [vmem:[#allocation2 + $0x1ed0] sm:$0xff]  ;;  %v2019_v12 = vadd.f32 %v2018_v13, %v1930_v26 }
 0x1e7   :  { %2765 = vmatprep.subr.mxu0 %v585_v28  ;;  %2693 = vmatpush2.msra.mxu1 %v456_v46  ;;  %v3540_v10 = vrot.slane %v3539_v23, 4  ;;  %3468 = vst [vmem:[%s5325_s3 + $0xa8] sm:$0xff] %v2098_v25  ;;  %v3546_v41 = vmax.f32 %v2092_v43, %v2098_v25  ;;  %v2101_v48 = vpop.f32.mrf.mxu0  ;;  %v408_v43 = vld [vmem:[#allocation2 + $0xad0] sm:$0xff]  ;;  %v393_v46 = vld [vmem:[#allocation2 + $0xa58] sm:$0xff] }
 0x1e8   :  { %2766 = vmatpush1.msra.mxu0 %v584_v14  ;;  %2694 = vmatprep.subr.mxu1 %v441_v17  ;;  %v2102_v63 = vadd.f32 %v2101_v48, %v2013_v27  ;;  %v1033_v14 = vld [vmem:[#allocation2 + $0x1e58] sm:$0xff]  ;;  %v1032_v17 = vld [vmem:[#allocation2 + $0x1e50] sm:$0xff] }
 0x1e9   :  { %2767 = vmatprep.subr.mxu0 %v1081_v40  ;;  %2695 = vmatpush2.msra.mxu1 %v440_v6  ;;  %v3541_v1 = vmax.f32 %v3539_v23, %v3540_v10  ;;  %v3547_v8 = vrot.slane %v3546_v41, 4  ;;  %v2103_v28 = vpop.f32.mrf.mxu0  ;;  %v377_v23 = vld [vmem:[#allocation2 + $0x9d8] sm:$0xff]  ;;  %v2021_v6 = vadd.f32 %v2020_v5, %v1932_v16  ;;  %v376_v13 = vld [vmem:[#allocation2 + $0x9d0] sm:$0xff] }
 0x1ea   :  { %2768 = vmatpush2.msra.mxu0 %v1080_v45  ;;  %2696 = vmatprep.subr.mxu1 %v425_v36  ;;  %3483 = vst [vmem:[%s5325_s3 + $0x120] sm:$0xff] %v2102_v63  ;;  %v2104_v35 = vadd.f32 %v2103_v28, %v2015_v62  ;;  %v1017_v25 = vld [vmem:[#allocation2 + $0x1dd8] sm:$0xff] }
 0x1eb   :  { %2769 = vmatprep.subr.mxu0 %v1065_v57  ;;  %2697 = vmatpush2.msra.mxu1 %v424_v50  ;;  %v3542_v58 = vrot.slane %v3541_v1, 2  ;;  %v3548_v60 = vmax.f32 %v3546_v41, %v3547_v8  ;;  %v1016_v57 = vld [vmem:[#allocation2 + $0x1dd0] sm:$0xff]  ;;  %v361_v10 = vld [vmem:[#allocation2 + $0x958] sm:$0xff] }
 0x1ec   :  { %2770 = vmatpush2.msra.mxu0 %v1064_v3  ;;  %2698 = vmatprep.subr.mxu1 %v409_v44  ;;  %3484 = vst [vmem:[%s5325_s3 + $0x128] sm:$0xff] %v2104_v35  ;;  %v2107_v40 = vpop.f32.mrf.mxu0  ;;  %v1001_v41 = vld [vmem:[#allocation2 + $0x1d58] sm:$0xff]  ;;  %v360_v44 = vld [vmem:[#allocation2 + $0x950] sm:$0xff] }
 0x1ed   :  { %2771 = vmatprep.subr.mxu0 %v1049_v49  ;;  %2699 = vmatpush2.msra.mxu1 %v408_v43  ;;  %v3543_v45 = vmax.f32 %v3541_v1, %v3542_v58  ;;  %v3549_v27 = vrot.slane %v3548_v60, 2  ;;  %v2108_v36 = vadd.f32 %v2107_v40, %v2019_v12  ;;  %v1000_v49 = vld [vmem:[#allocation2 + $0x1d50] sm:$0xff]  ;;  %v345_v16 = vld [vmem:[#allocation2 + $0x8d8] sm:$0xff] }
 0x1ee   :  { %2772 = vmatpush2.msra.mxu0 %v1048_v15  ;;  %2700 = vmatprep.subr.mxu1 %v393_v46  ;;  %v2109_v26 = vpop.f32.mrf.mxu0  ;;  %v985_v1 = vld [vmem:[#allocation2 + $0x1cd8] sm:$0xff]  ;;  %v344_v15 = vld [vmem:[#allocation2 + $0x8d0] sm:$0xff] }
 0x1ef   :  { %2773 = vmatprep.subr.mxu0 %v1033_v14  ;;  %2701 = vmatpush2.msra.mxu1 %v392_v20  ;;  %v3544_v48 = vrot.slane %v3543_v45, 1  ;;  %v3550_v50 = vmax.f32 %v3548_v60, %v3549_v27  ;;  %3499 = vst [vmem:[%s5325_s3 + $0x1a0] sm:$0xff] %v2108_v36  ;;  %v3651_v3 = vmax.f32 %v2102_v63, %v2108_v36  ;;  %v984_v63 = vld [vmem:[#allocation2 + $0x1cd0] sm:$0xff]  ;;  %v329_v5 = vld [vmem:[#allocation2 + $0x858] sm:$0xff] }
 0x1f0   :  { %2774 = vmatpush2.msra.mxu0 %v1032_v17  ;;  %v2110_v62 = vadd.f32 %v2109_v26, %v2021_v6  ;;  %2702 = vmatprep.subr.mxu1 %v377_v23  ;;  %v969_v46 = vld [vmem:[#allocation2 + $0x1c58] sm:$0xff]  ;;  %v328_v20 = vld [vmem:[#allocation2 + $0x850] sm:$0xff] }
 0x1f1   :  { %2775 = vmatprep.subr.mxu0 %v1017_v25  ;;  %2703 = vmatpush2.msra.mxu1 %v376_v13  ;;  %v3551_v8 = vrot.slane %v3550_v50, 1  ;;  %v3652_v28 = vrot.slane %v3651_v3, 4  ;;  %v4824_v14 = vmax.f32 %v3543_v45, %v3544_v48  ;;  %v953_v25 = vld [vmem:[#allocation2 + $0x1bd8] sm:$0xff]  ;;  %v952_v45 = vld [vmem:[#allocation2 + $0x1bd0] sm:$0xff] }
 0x1f2   :  { %2776 = vmatpush2.msra.mxu0 %v1016_v57  ;;  %3500 = vst [vmem:[%s5325_s3 + $0x1a8] sm:$0xff] %v2110_v62  ;;  %v3658_v43 = vmax.f32 %v2104_v35, %v2110_v62  ;;  %2704 = vmatprep.subr.mxu1 %v361_v10  ;;  %v968_v35 = vld [vmem:[#allocation2 + $0x1c50] sm:$0xff]  ;;  %v1209_v6 = vld [vmem:[#allocation2 + $0x23d8] sm:$0xff] }
 0x1f3   :  { %2777 = vmatprep.subr.mxu0 %v1001_v41  ;;  %2705 = vmatpush2.msra.mxu1 %v360_v44  ;;  %v4826_v12 = vmax.f32 %v3550_v50, %v3551_v8  ;;  %v3653_v58 = vmax.f32 %v3651_v3, %v3652_v28  ;;  %v1208_v27 = vld [vmem:[#allocation2 + $0x23d0] sm:$0xff]  ;;  %v937_v57 = vld [vmem:[#allocation2 + $0x1b58] sm:$0xff] }
 0x1f4   :  { %2778 = vmatpush2.msra.mxu0 %v1000_v49  ;;  %v3659_v60 = vrot.slane %v3658_v43, 4  ;;  %2706 = vmatprep.subr.mxu1 %v345_v16  ;;  %v1193_v26 = vld [vmem:[#allocation2 + $0x2358] sm:$0xff]  ;;  %v936_v10 = vld [vmem:[#allocation2 + $0x1b50] sm:$0xff] }
 0x1f5   :  { %2779 = vmatprep.subr.mxu0 %v985_v1  ;;  %2707 = vmatpush2.msra.mxu1 %v344_v15  ;;  %v3784_v17 = vcombine.low %v4824_v14, %v4826_v12  ;;  %v3654_v40 = vrot.slane %v3653_v58, 2  ;;  %v1192_v50 = vld [vmem:[#allocation2 + $0x2350] sm:$0xff]  ;;  %v921_v3 = vld [vmem:[#allocation2 + $0x1ad8] sm:$0xff]  ;;  %v1210_v12 = vld [vmem:[#allocation2 + $0x23e0] sm:$0xff] }
 0x1f6   :  { %2780 = vmatpush2.msra.mxu0 %v984_v63  ;;  %v3660_v23 = vmax.f32 %v3658_v43, %v3659_v60  ;;  %2708 = vmatprep.subr.mxu1 %v329_v5  ;;  %v920_v44 = vld [vmem:[#allocation2 + $0x1ad0] sm:$0xff]  ;;  %v905_v49 = vld [vmem:[#allocation2 + $0x1a58] sm:$0xff] }
 0x1f7   :  { %2781 = vmatprep.subr.mxu0 %v969_v46  ;;  %2709 = vmatpush2.msra.mxu1 %v328_v20  ;;  %v3655_v36 = vmax.f32 %v3653_v58, %v3654_v40  ;;  %v1161_v16 = vld [vmem:[#allocation2 + $0x2258] sm:$0xff]  ;;  %v904_v28 = vld [vmem:[#allocation2 + $0x1a50] sm:$0xff] }
 0x1f8   :  { %2710 = vmatprep.mubr.f32.mxu1 %v4619_v47  ;;  %v3661_v13 = vrot.slane %v3660_v23, 2  ;;  %2782 = vmatpush2.msra.mxu0 %v968_v35  ;;  %v1177_v47 = vld [vmem:[#allocation2 + $0x22d8] sm:$0xff]  ;;  %v1160_v43 = vld [vmem:[#allocation2 + $0x2250] sm:$0xff] }
 0x1f9   :  { %2711 = vmatmul.mubr.f32.vlgmr.msra.gmra.mxu1 %v4632_v34  ;;  %2783 = vmatprep.subr.mxu0 %v953_v25  ;;  %v3656_v41 = vrot.slane %v3655_v36, 1  ;;  %v1176_v34 = vld [vmem:[#allocation2 + $0x22d0] sm:$0xff]  ;;  %v889_v15 = vld [vmem:[#allocation2 + $0x19d8] sm:$0xff] }
 0x1fa   :  { %2840 = vmatprep.subr.mxu1 %v1209_v6  ;;  %v3662_v48 = vmax.f32 %v3660_v23, %v3661_v13  ;;  %2784 = vmatpush2.msra.mxu0 %v952_v45  ;;  %v1145_v63 = vld [vmem:[#allocation2 + $0x21d8] sm:$0xff]  ;;  %v888_v5 = vld [vmem:[#allocation2 + $0x19d0] sm:$0xff]  ;;  %v826_v13 = vld [vmem:[#allocation2 + $0x17e0] sm:$0xff] }
 0x1fb   :  { %2841 = vmatpush1.msra.mxu1 %v1208_v27  ;;  %2785 = vmatprep.subr.mxu0 %v937_v57  ;;  %v4833_v1 = vmax.f32 %v3655_v36, %v3656_v41  ;;  %v1144_v46 = vld [vmem:[#allocation2 + $0x21d0] sm:$0xff]  ;;  %v1129_v58 = vld [vmem:[#allocation2 + $0x2158] sm:$0xff]  ;;  %v827_v27 = vld [vmem:[#allocation2 + $0x17e8] sm:$0xff] }
 0x1fc   :  { %2842 = vmatprep.subr.mxu1 %v1193_v26  ;;  %v3663_v62 = vrot.slane %v3662_v48, 1  ;;  %2716 = vmatprep.mubr.f32.mxu1 %v4650_v21  ;;  %v872_v60 = vld [vmem:[#allocation2 + $0x1950] sm:$0xff]  ;;  %v857_v35 = vld [vmem:[#allocation2 + $0x18d8] sm:$0xff]  ;;  %v314_v36 = vld [vmem:[#allocation2 + $0x7e0] sm:$0xff] }
 0x1fd   :  { %2786 = vmatpush2.msra.mxu0 %v936_v10  ;;  %2843 = vmatpush1.msra.mxu1 %v1192_v50  ;;  %v1128_v20 = vld [vmem:[#allocation2 + $0x2150] sm:$0xff]  ;;  %v1113_v40 = vld [vmem:[#allocation2 + $0x20d8] sm:$0xff]  ;;  %v811_v57 = vld [vmem:[#allocation2 + $0x1768] sm:$0xff] }
 0x1fe   :  { %2787 = vmatprep.subr.mxu0 %v921_v3  ;;  %v4835_v8 = vmax.f32 %v3662_v48, %v3663_v62  ;;  %2717 = vmatmul.mubr.f32.gmra.mxu1 %v4656_v9  ;;  %v873_v9 = vld [vmem:[#allocation2 + $0x1958] sm:$0xff]  ;;  %v1112_v23 = vld [vmem:[#allocation2 + $0x20d0] sm:$0xff]  ;;  %v298_v26 = vld [vmem:[#allocation2 + $0x760] sm:$0xff] }
 0x1ff   :  { %2844 = vmatprep.subr.mxu1 %v1177_v47  ;;  %2788 = vmatpush2.msra.mxu0 %v920_v44  ;;  %v841_v25 = vld [vmem:[#allocation2 + $0x1858] sm:$0xff]  ;;  %v1096_v45 = vld [vmem:[#allocation2 + $0x2050] sm:$0xff]  ;;  %v283_v10 = vld [vmem:[#allocation2 + $0x6e8] sm:$0xff] }
 0x200   :  { %2845 = vmatpush1.msra.mxu1 %v1176_v34  ;;  %v3852_v21 = vcombine.low %v4833_v1, %v4835_v8  ;;  %2789 = vmatprep.subr.mxu0 %v905_v49  ;;  %v1097_v6 = vld [vmem:[#allocation2 + $0x2058] sm:$0xff]  ;;  %v795_v41 = vld [vmem:[#allocation2 + $0x16e8] sm:$0xff]  ;;  %v266_v62 = vld [vmem:[#allocation2 + $0x660] sm:$0xff] }
 0x201   :  { %2846 = vmatprep.subr.mxu1 %v1161_v16  ;;  %2722 = vmatprep.mubr.f32.mxu1 %v4674_v42  ;;  %v856_v42 = vld [vmem:[#allocation2 + $0x18d0] sm:$0xff]  ;;  %v267_v50 = vld [vmem:[#allocation2 + $0x668] sm:$0xff]  ;;  %v778_v44 = vld [vmem:[#allocation2 + $0x1660] sm:$0xff] }
 0x202   :  { %2790 = vmatpush2.msra.mxu0 %v904_v28  ;;  %2847 = vmatpush1.msra.mxu1 %v1160_v43  ;;  %v779_v47 = vld [vmem:[#allocation2 + $0x1668] sm:$0xff]  ;;  %v250_v49 = vld [vmem:[#allocation2 + $0x5e0] sm:$0xff]  ;;  %v4951_v14 = vld [vmem:[%s5322_s0 + $0x18] sm:$0xff] }
 0x203   :  { %2791 = vmatprep.subr.mxu0 %v889_v15  ;;  %2723 = vmatmul.mubr.f32.gmra.mxu1 %v4680_v38  ;;  %v840_v38 = vld [vmem:[#allocation2 + $0x1850] sm:$0xff]  ;;  %v762_v16 = vld [vmem:[#allocation2 + $0x15e0] sm:$0xff]  ;;  %v235_v28 = vld [vmem:[#allocation2 + $0x568] sm:$0xff] }
 0x204   :  { %2848 = vmatprep.subr.mxu1 %v1145_v63  ;;  %2792 = vmatpush2.msra.mxu0 %v888_v5  ;;  %v747_v15 = vld [vmem:[#allocation2 + $0x1568] sm:$0xff]  ;;  %v746_v63 = vld [vmem:[#allocation2 + $0x1560] sm:$0xff] }
 0x205   :  { %2849 = vmatpush1.msra.mxu1 %v1144_v46  ;;  %2793 = vmatprep.subr.mxu0 %v873_v9  ;;  %v731_v5 = vld [vmem:[#allocation2 + $0x14e8] sm:$0xff]  ;;  %v1244_v46 = vsub.s32 6, %v4410_v52  ;;  %v218_v9 = vld [vmem:[#allocation2 + $0x4e0] sm:$0xff] }
 0x206   :  { %2850 = vmatprep.subr.mxu1 %v1129_v58  ;;  %2728 = vmatprep.mubr.f32.mxu1 %v4698_v33  ;;  %v315_v33 = vld [vmem:[#allocation2 + $0x7e8] sm:$0xff]  ;;  %v842_v1 = vld [vmem:[#allocation2 + $0x1860] sm:$0xff] }
 0x207   :  { %2794 = vmatpush2.msra.mxu0 %v872_v60  ;;  %2851 = vmatpush1.msra.mxu1 %v1128_v20  ;;  %v730_v60 = vld [vmem:[#allocation2 + $0x14e0] sm:$0xff]  ;;  %v203_v20 = vld [vmem:[#allocation2 + $0x468] sm:$0xff] }
 0x208   :  { %2795 = vmatprep.subr.mxu0 %v857_v35  ;;  %2729 = vmatmul.mubr.f32.gmra.mxu1 %v4704_v31  ;;  %v299_v31 = vld [vmem:[#allocation2 + $0x768] sm:$0xff]  ;;  %v1248_v35 = vsub.s32 7, %v4410_v52 }
 0x209   :  { %2852 = vmatprep.subr.mxu1 %v1113_v40  ;;  %2796 = vmatpush2.msra.mxu0 %v856_v42  ;;  %v202_v40 = vld [vmem:[#allocation2 + $0x460] sm:$0xff] }
 0x20a   :  { %2853 = vmatpush1.msra.mxu1 %v1112_v23  ;;  %2797 = vmatprep.subr.mxu0 %v841_v25  ;;  %v714_v42 = vld [vmem:[#allocation2 + $0x1460] sm:$0xff]  ;;  %v699_v25 = vld [vmem:[#allocation2 + $0x13e8] sm:$0xff] }
 0x20b   :  { %2854 = vmatprep.subr.mxu1 %v1097_v6  ;;  %2798 = vmatpush2.msra.mxu0 %v840_v38  ;;  %v186_v6 = vld [vmem:[#allocation2 + $0x3e0] sm:$0xff] }
 0x20c   :  { %2799 = vmatprep.mubr.f32.mxu0 %v4625_v55  ;;  %2855 = vmatpush1.msra.mxu1 %v1096_v45  ;;  %v810_v55 = vld [vmem:[#allocation2 + $0x1760] sm:$0xff]  ;;  %v4888_v45 = vrot.slane %v4760_v30, %v1248_v35 }
 0x20d   :  { %2888 = vmatprep.mubr.f32.mxu1 %v4103_v51  ;;  %2800 = vmatmul.mubr.f32.vlgmr.msra.gmra.mxu0 %v4638_v7  ;;  %v282_v7 = vld [vmem:[#allocation2 + $0x6e0] sm:$0xff] }
 0x20e   :  { %3975 = vmatmul.mubr.msk.f32.vlgmr.msra.gmra.mxu1 %vm1298_vm0, %v4723_v29  ;;  %2913 = vmatprep.subr.mxu0 %v315_v33  ;;  %v794_v29 = vld [vmem:[#allocation2 + $0x16e0] sm:$0xff] }
 0x20f   :  { %3002 = vmatprep.subr.mxu1 %v827_v27  ;;  %2914 = vmatpush1.msra.mxu0 %v314_v36  ;;  %v698_v38 = vld [vmem:[#allocation2 + $0x13e0] sm:$0xff]  ;;  %v171_v27 = vld [vmem:[#allocation2 + $0x368] sm:$0xff] }
 0x210   :  { %3003 = vmatpush1.msra.mxu1 %v826_v13  ;;  %2915 = vmatprep.subr.mxu0 %v299_v31  ;;  %v683_v36 = vld [vmem:[#allocation2 + $0x1368] sm:$0xff]  ;;  %v170_v13 = vld [vmem:[#allocation2 + $0x360] sm:$0xff] }
 0x211   :  { %3004 = vmatprep.subr.mxu1 %v811_v57  ;;  %v4849_v48 = vpop.f32.mrf.mxu1  ;;  %2805 = vmatprep.mubr.f32.mxu0 %v4662_v22  ;;  %v251_v22 = vld [vmem:[#allocation2 + $0x5e8] sm:$0xff]  ;;  %v682_v31 = vld [vmem:[#allocation2 + $0x1360] sm:$0xff] }
 0x212   :  { %2916 = vmatpush1.msra.mxu0 %v298_v26  ;;  %3005 = vmatpush1.msra.mxu1 %v810_v55  ;;  %v155_v57 = vld [vmem:[#allocation2 + $0x2e8] sm:$0xff] }
 0x213   :  { %2806 = vmatmul.mubr.f32.gmra.mxu0 %v4668_v32  ;;  %v4853_v3 = vpop.f32.mrf.mxu1  ;;  %2917 = vmatprep.subr.mxu0 %v283_v10  ;;  %v763_v32 = vld [vmem:[#allocation2 + $0x15e8] sm:$0xff]  ;;  %v154_v10 = vld [vmem:[#allocation2 + $0x2e0] sm:$0xff] }
 0x214   :  { %3006 = vmatprep.subr.mxu1 %v795_v41  ;;  %2894 = vmatprep.mubr.f32.mxu1 %v4103_v51  ;;  %v667_v26 = vld [vmem:[#allocation2 + $0x12e8] sm:$0xff]  ;;  %v666_v41 = vld [vmem:[#allocation2 + $0x12e0] sm:$0xff] }
 0x215   :  { %2918 = vmatpush1.msra.mxu0 %v282_v7  ;;  %3007 = vmatpush1.msra.mxu1 %v794_v29  ;;  %v2181_v7 = vadd.f32 %v4853_v3, %v4888_v45 }
 0x216   :  { %2919 = vmatprep.subr.mxu0 %v267_v50  ;;  %3976 = vmatmul.mubr.msk.f32.gmra.mxu1 %vm1298_vm0, %v4735_v18  ;;  %v4858_v34 = vpop.f32.mrf.mxu1  ;;  %v234_v18 = vld [vmem:[#allocation2 + $0x560] sm:$0xff]  ;;  %v139_v50 = vld [vmem:[#allocation2 + $0x268] sm:$0xff] }
 0x217   :  { %3008 = vmatprep.subr.mxu1 %v779_v47  ;;  %2811 = vmatprep.mubr.f32.mxu0 %v4686_v53  ;;  %v651_v47 = vld [vmem:[#allocation2 + $0x1268] sm:$0xff] }
 0x218   :  { %2920 = vmatpush1.msra.mxu0 %v266_v62  ;;  %3009 = vmatpush1.msra.mxu1 %v778_v44  ;;  %v4862_v43 = vpop.f32.mrf.mxu1  ;;  %v138_v44 = vld [vmem:[#allocation2 + $0x260] sm:$0xff] }
 0x219   :  { %2812 = vmatmul.mubr.f32.gmra.mxu0 %v4692_v24  ;;  %2921 = vmatprep.subr.mxu0 %v251_v22  ;;  %v219_v24 = vld [vmem:[#allocation2 + $0x4e8] sm:$0xff]  ;;  %v650_v22 = vld [vmem:[#allocation2 + $0x1260] sm:$0xff] }
 0x21a   :  { %3010 = vmatprep.subr.mxu1 %v763_v32  ;;  %2900 = vmatprep.mubr.f32.mxu1 %v4103_v51 }
 0x21b   :  { %2922 = vmatpush1.msra.mxu0 %v250_v49  ;;  %3011 = vmatpush1.msra.mxu1 %v762_v16  ;;  %v4865_v53 = vpop.f32.mrf.mxu1  ;;  %v123_v16 = vld [vmem:[#allocation2 + $0x1e8] sm:$0xff] }
 0x21c   :  { %2923 = vmatprep.subr.mxu0 %v235_v28  ;;  %3977 = vmatmul.mubr.msk.f32.gmra.mxu1 %vm1298_vm0, %v4749_v37  ;;  %v715_v37 = vld [vmem:[#allocation2 + $0x1468] sm:$0xff] }
 0x21d   :  { %3012 = vmatprep.subr.mxu1 %v747_v15  ;;  %2817 = vmatprep.mubr.f32.mxu0 %v4710_v59  ;;  %v4871_v58 = vpop.f32.mrf.mxu1  ;;  %v4879_v59 = vrot.slane %v4760_v30, %v1244_v46  ;;  %v635_v28 = vld [vmem:[#allocation2 + $0x11e8] sm:$0xff]  ;;  %v122_v15 = vld [vmem:[#allocation2 + $0x1e0] sm:$0xff] }
 0x21e   :  { %2924 = vmatpush1.msra.mxu0 %v234_v18  ;;  %3013 = vmatpush1.msra.mxu1 %v746_v63  ;;  %v634_v18 = vld [vmem:[#allocation2 + $0x11e0] sm:$0xff] }
 0x21f   :  { %2818 = vmatmul.mubr.f32.gmra.mxu0 %v4716_v61  ;;  %2925 = vmatprep.subr.mxu0 %v219_v24  ;;  %v187_v61 = vld [vmem:[#allocation2 + $0x3e8] sm:$0xff]  ;;  %v2185_v3 = vadd.f32 %v4858_v34, %v4879_v59  ;;  %v106_v34 = vld [vmem:[#allocation2 + $0x160] sm:$0xff] }
 0x220   :  { %3014 = vmatprep.subr.mxu1 %v731_v5  ;;  %2906 = vmatprep.mubr.f32.mxu1 %v4103_v51  ;;  %v4881_v23 = vpop.f32.mrf.mxu1  ;;  %v107_v5 = vld [vmem:[#allocation2 + $0x168] sm:$0xff] }
 0x221   :  { %2926 = vmatpush1.msra.mxu0 %v218_v9  ;;  %3015 = vmatpush1.msra.mxu1 %v730_v60  ;;  %v619_v9 = vld [vmem:[#allocation2 + $0x1168] sm:$0xff]  ;;  %v2187_v60 = vadd.f32 %v4862_v43, %v4888_v45 }
 0x222   :  { %2927 = vmatprep.subr.mxu0 %v203_v20  ;;  %3978 = vmatmul.mubr.msk.f32.gmra.mxu1 %vm1298_vm0, %v4770_v54  ;;  %v4890_v33 = vpop.f32.mrf.mxu1  ;;  %v2179_v54 = vadd.f32 %v4849_v48, %v4879_v59 }
 0x223   :  { %3016 = vmatprep.subr.mxu1 %v715_v37  ;;  %2928 = vmatpush1.msra.mxu0 %v202_v40  ;;  %v618_v37 = vld [vmem:[#allocation2 + $0x1160] sm:$0xff] }
 0x224   :  { %3017 = vmatpush1.msra.mxu1 %v714_v42  ;;  %2929 = vmatprep.subr.mxu0 %v187_v61  ;;  %v91_v42 = vld [vmem:[#allocation2 + $0xe8] sm:$0xff] }
 0x225   :  { %3018 = vmatprep.subr.mxu1 %v699_v25  ;;  %2930 = vmatpush1.msra.mxu0 %v186_v6  ;;  %v2267_v55 = vpop.f32.mrf.mxu0  ;;  %v603_v61 = vld [vmem:[#allocation2 + $0x10e8] sm:$0xff]  ;;  %v90_v6 = vld [vmem:[#allocation2 + $0xe0] sm:$0xff] }
 0x226   :  { %3019 = vmatpush1.msra.mxu1 %v698_v38  ;;  %v2356_v30 = vpop.f32.mrf.mxu1  ;;  %2931 = vmatprep.subr.mxu0 %v171_v27  ;;  %v2268_v29 = vadd.f32 %v2267_v55, %v2179_v54  ;;  %v602_v38 = vld [vmem:[#allocation2 + $0x10e0] sm:$0xff]  ;;  %v75_v27 = vld [vmem:[#allocation2 + $0x68] sm:$0xff] }
 0x227   :  { %3020 = vmatprep.subr.mxu1 %v683_v36  ;;  %2932 = vmatpush1.msra.mxu0 %v170_v13  ;;  %v2269_v62 = vpop.f32.mrf.mxu0  ;;  %v587_v36 = vld [vmem:[#allocation2 + $0x1068] sm:$0xff]  ;;  %v2191_v13 = vadd.f32 %v4865_v53, %v4879_v59  ;;  %v74_v54 = vld [vmem:[#allocation2 + $0x60] sm:$0xff] }
 0x228   :  { %3021 = vmatpush1.msra.mxu1 %v682_v31  ;;  %v2358_v48 = vpop.f32.mrf.mxu1  ;;  %2933 = vmatprep.subr.mxu0 %v155_v57  ;;  %v2357_v32 = vadd.f32 %v2356_v30, %v2268_v29  ;;  %v2270_v49 = vadd.f32 %v2269_v62, %v2181_v7  ;;  %v586_v57 = vld [vmem:[#allocation2 + $0x1060] sm:$0xff] }
 0x229   :  { %3022 = vmatprep.subr.mxu1 %v667_v26  ;;  %2934 = vmatpush1.msra.mxu0 %v154_v10  ;;  %v2193_v26 = vadd.f32 %v4871_v58, %v4888_v45  ;;  %v571_v10 = vld [vmem:[#allocation2 + $0xfe8] sm:$0xff] }
 0x22a   :  { %3023 = vmatpush1.msra.mxu1 %v666_v41  ;;  %2935 = vmatprep.subr.mxu0 %v139_v50  ;;  %3453 = vst [vmem:[%s5325_s3 + $0x30] sm:$0xff] %v2357_v32  ;;  %v2359_v63 = vadd.f32 %v2358_v48, %v2270_v49  ;;  %v1083_v41 = vld [vmem:[#allocation2 + $0x1fe8] sm:$0xff]  ;;  %v570_v50 = vld [vmem:[#allocation2 + $0xfe0] sm:$0xff] }
 0x22b   :  { %3024 = vmatprep.subr.mxu1 %v651_v47  ;;  %v2273_v24 = vpop.f32.mrf.mxu0  ;;  %2936 = vmatpush1.msra.mxu0 %v138_v44  ;;  %v1082_v47 = vld [vmem:[#allocation2 + $0x1fe0] sm:$0xff]  ;;  %v555_v58 = vld [vmem:[#allocation2 + $0xf68] sm:$0xff] }
 0x22c   :  { %3025 = vmatpush1.msra.mxu1 %v650_v22  ;;  %v2274_v20 = vadd.f32 %v2273_v24, %v2185_v3  ;;  %2937 = vmatprep.subr.mxu0 %v123_v16  ;;  %3454 = vst [vmem:[%s5325_s3 + $0x38] sm:$0xff] %v2359_v63  ;;  %v1067_v48 = vld [vmem:[#allocation2 + $0x1f68] sm:$0xff]  ;;  %v1066_v49 = vld [vmem:[#allocation2 + $0x1f60] sm:$0xff] }
 0x22d   :  { %3026 = vmatprep.subr.mxu1 %v635_v28  ;;  %v2275_v40 = vpop.f32.mrf.mxu0  ;;  %2938 = vmatpush1.msra.mxu0 %v122_v15  ;;  %v539_v28 = vld [vmem:[#allocation2 + $0xee8] sm:$0xff]  ;;  %v2197_v15 = vadd.f32 %v4881_v23, %v4879_v59 }
 0x22e   :  { %3027 = vmatpush1.msra.mxu1 %v634_v18  ;;  %v2276_v25 = vadd.f32 %v2275_v40, %v2187_v60  ;;  %2939 = vmatprep.subr.mxu0 %v107_v5  ;;  %v2362_v43 = vpop.f32.mrf.mxu1  ;;  %v1051_v3 = vld [vmem:[#allocation2 + $0x1ee8] sm:$0xff]  ;;  %v2199_v60 = vadd.f32 %v4890_v33, %v4888_v45 }
 0x22f   :  { %3028 = vmatprep.subr.mxu1 %v619_v9  ;;  %2940 = vmatpush1.msra.mxu0 %v106_v34  ;;  %v2363_v31 = vadd.f32 %v2362_v43, %v2274_v20  ;;  %v538_v9 = vld [vmem:[#allocation2 + $0xee0] sm:$0xff]  ;;  %v1035_v40 = vld [vmem:[#allocation2 + $0x1e68] sm:$0xff] }
 0x230   :  { %3029 = vmatpush1.msra.mxu1 %v618_v37  ;;  %2941 = vmatprep.subr.mxu0 %v91_v42  ;;  %v2364_v30 = vpop.f32.mrf.mxu1  ;;  %v523_v37 = vld [vmem:[#allocation2 + $0xe68] sm:$0xff] }
 0x231   :  { %3030 = vmatprep.subr.mxu1 %v603_v61  ;;  %v2279_v55 = vpop.f32.mrf.mxu0  ;;  %2942 = vmatpush1.msra.mxu0 %v90_v6  ;;  %3469 = vst [vmem:[%s5325_s3 + $0xb0] sm:$0xff] %v2363_v31  ;;  %v3553_v7 = vmax.f32 %v2357_v32, %v2363_v31  ;;  %v2365_v29 = vadd.f32 %v2364_v30, %v2276_v25  ;;  %v554_v32 = vld [vmem:[#allocation2 + $0xf60] sm:$0xff]  ;;  %v507_v45 = vld [vmem:[#allocation2 + $0xde8] sm:$0xff] }
 0x232   :  { %3031 = vmatpush1.msra.mxu1 %v602_v38  ;;  %v2280_v53 = vadd.f32 %v2279_v55, %v2191_v13  ;;  %2943 = vmatprep.subr.mxu0 %v75_v27  ;;  %v522_v61 = vld [vmem:[#allocation2 + $0xe60] sm:$0xff]  ;;  %v1019_v33 = vld [vmem:[#allocation2 + $0x1de8] sm:$0xff] }
 0x233   :  { %3032 = vmatprep.subr.mxu1 %v587_v36  ;;  %v2281_v62 = vpop.f32.mrf.mxu0  ;;  %2944 = vmatpush1.msra.mxu0 %v74_v54  ;;  %3470 = vst [vmem:[%s5325_s3 + $0xb8] sm:$0xff] %v2365_v29  ;;  %v3560_v44 = vmax.f32 %v2359_v63, %v2365_v29  ;;  %v3554_v18 = vrot.slane %v3553_v7, 4  ;;  %v1050_v63 = vld [vmem:[#allocation2 + $0x1ee0] sm:$0xff]  ;;  %v491_v31 = vld [vmem:[#allocation2 + $0xd68] sm:$0xff] }
 0x234   :  { %3033 = vmatpush1.msra.mxu1 %v586_v57  ;;  %v2282_v22 = vadd.f32 %v2281_v62, %v2193_v26  ;;  %2945 = vmatprep.subr.mxu0 %v571_v10  ;;  %v2368_v16 = vpop.f32.mrf.mxu1  ;;  %v1034_v25 = vld [vmem:[#allocation2 + $0x1e60] sm:$0xff]  ;;  %v1003_v54 = vld [vmem:[#allocation2 + $0x1d68] sm:$0xff] }
 0x235   :  { %3034 = vmatprep.subr.mxu1 %v1083_v41  ;;  %2946 = vmatpush2.msra.mxu0 %v570_v50  ;;  %v3561_v24 = vrot.slane %v3560_v44, 4  ;;  %v2369_v5 = vadd.f32 %v2368_v16, %v2280_v53  ;;  %v3555_v38 = vmax.f32 %v3553_v7, %v3554_v18  ;;  %v506_v27 = vld [vmem:[#allocation2 + $0xde0] sm:$0xff]  ;;  %v475_v41 = vld [vmem:[#allocation2 + $0xce8] sm:$0xff] }
 0x236   :  { %3035 = vmatpush2.msra.mxu1 %v1082_v47  ;;  %2947 = vmatprep.subr.mxu0 %v555_v58  ;;  %v2370_v34 = vpop.f32.mrf.mxu1  ;;  %v1018_v36 = vld [vmem:[#allocation2 + $0x1de0] sm:$0xff]  ;;  %v987_v7 = vld [vmem:[#allocation2 + $0x1ce8] sm:$0xff] }
 0x237   :  { %3036 = vmatprep.subr.mxu1 %v1067_v48  ;;  %v2285_v20 = vpop.f32.mrf.mxu0  ;;  %2948 = vmatpush2.msra.mxu0 %v554_v32  ;;  %v3562_v42 = vmax.f32 %v3560_v44, %v3561_v24  ;;  %3485 = vst [vmem:[%s5325_s3 + $0x130] sm:$0xff] %v2369_v5  ;;  %v2371_v23 = vadd.f32 %v2370_v34, %v2282_v22  ;;  %v490_v55 = vld [vmem:[#allocation2 + $0xd60] sm:$0xff]  ;;  %v3556_v53 = vrot.slane %v3555_v38, 2  ;;  %v459_v58 = vld [vmem:[#allocation2 + $0xc68] sm:$0xff] }
 0x238   :  { %3037 = vmatpush2.msra.mxu1 %v1066_v49  ;;  %v2286_v59 = vadd.f32 %v2285_v20, %v2197_v15  ;;  %2949 = vmatprep.subr.mxu0 %v539_v28  ;;  %v1002_v30 = vld [vmem:[#allocation2 + $0x1d60] sm:$0xff]  ;;  %v971_v48 = vld [vmem:[#allocation2 + $0x1c68] sm:$0xff] }
 0x239   :  { %3038 = vmatprep.subr.mxu1 %v1051_v3  ;;  %v2287_v6 = vpop.f32.mrf.mxu0  ;;  %2950 = vmatpush2.msra.mxu0 %v538_v9  ;;  %3486 = vst [vmem:[%s5325_s3 + $0x138] sm:$0xff] %v2371_v23  ;;  %v3563_v57 = vrot.slane %v3562_v42, 2  ;;  %v474_v47 = vld [vmem:[#allocation2 + $0xce0] sm:$0xff]  ;;  %v443_v28 = vld [vmem:[#allocation2 + $0xbe8] sm:$0xff]  ;;  %v3557_v15 = vmax.f32 %v3555_v38, %v3556_v53 }
 0x23a   :  { %3039 = vmatpush2.msra.mxu1 %v1050_v63  ;;  %v2288_v43 = vadd.f32 %v2287_v6, %v2199_v60  ;;  %2951 = vmatprep.subr.mxu0 %v523_v37  ;;  %v2374_v13 = vpop.f32.mrf.mxu1  ;;  %v986_v62 = vld [vmem:[#allocation2 + $0x1ce0] sm:$0xff]  ;;  %v955_v3 = vld [vmem:[#allocation2 + $0x1be8] sm:$0xff] }
 0x23b   :  { %3040 = vmatprep.subr.mxu1 %v1035_v40  ;;  %2952 = vmatpush2.msra.mxu0 %v522_v61  ;;  %v2375_v26 = vadd.f32 %v2374_v13, %v2286_v59  ;;  %v3564_v44 = vmax.f32 %v3562_v42, %v3563_v57  ;;  %v458_v49 = vld [vmem:[#allocation2 + $0xc60] sm:$0xff]  ;;  %v427_v63 = vld [vmem:[#allocation2 + $0xb68] sm:$0xff]  ;;  %v3558_v61 = vrot.slane %v3557_v15, 1 }
 0x23c   :  { %3041 = vmatpush2.msra.mxu1 %v1034_v25  ;;  %2953 = vmatprep.subr.mxu0 %v507_v45  ;;  %v2376_v10 = vpop.f32.mrf.mxu1  ;;  %v970_v16 = vld [vmem:[#allocation2 + $0x1c60] sm:$0xff]  ;;  %v939_v60 = vld [vmem:[#allocation2 + $0x1b68] sm:$0xff] }
 0x23d   :  { %3042 = vmatprep.subr.mxu1 %v1019_v33  ;;  %2954 = vmatpush2.msra.mxu0 %v506_v27  ;;  %3501 = vst [vmem:[%s5325_s3 + $0x1b0] sm:$0xff] %v2375_v26  ;;  %v3665_v29 = vmax.f32 %v2369_v5, %v2375_v26  ;;  %v2377_v50 = vadd.f32 %v2376_v10, %v2288_v43  ;;  %v442_v5 = vld [vmem:[#allocation2 + $0xbe0] sm:$0xff]  ;;  %v3565_v20 = vrot.slane %v3564_v44, 1  ;;  %v411_v59 = vld [vmem:[#allocation2 + $0xae8] sm:$0xff] }
 0x23e   :  { %3043 = vmatpush2.msra.mxu1 %v1018_v36  ;;  %2955 = vmatprep.subr.mxu0 %v491_v31  ;;  %v954_v9 = vld [vmem:[#allocation2 + $0x1be0] sm:$0xff]  ;;  %v395_v38 = vld [vmem:[#allocation2 + $0xa68] sm:$0xff]  ;;  %v3559_v57 = vmax.f32 %v3557_v15, %v3558_v61 }
 0x23f   :  { %3044 = vmatprep.subr.mxu1 %v1003_v54  ;;  %2956 = vmatpush2.msra.mxu0 %v490_v55  ;;  %v3666_v22 = vrot.slane %v3665_v29, 4  ;;  %3502 = vst [vmem:[%s5325_s3 + $0x1b8] sm:$0xff] %v2377_v50  ;;  %v3672_v32 = vmax.f32 %v2371_v23, %v2377_v50  ;;  %v426_v40 = vld [vmem:[#allocation2 + $0xb60] sm:$0xff]  ;;  %v923_v23 = vld [vmem:[#allocation2 + $0x1ae8] sm:$0xff]  ;;  %v3566_v27 = vmax.f32 %v3564_v44, %v3565_v20  ;;  %v317_v20 = vld [vmem:[#allocation2 + $0x7f8] sm:$0xff] }
 0x240   :  { %3045 = vmatpush2.msra.mxu1 %v1002_v30  ;;  %2957 = vmatprep.subr.mxu0 %v475_v41  ;;  %v938_v42 = vld [vmem:[#allocation2 + $0x1b60] sm:$0xff]  ;;  %v907_v43 = vld [vmem:[#allocation2 + $0x1a68] sm:$0xff] }
 0x241   :  { %3046 = vmatprep.subr.mxu1 %v987_v7  ;;  %2958 = vmatpush2.msra.mxu0 %v474_v47  ;;  %v3667_v18 = vmax.f32 %v3665_v29, %v3666_v22  ;;  %v3673_v24 = vrot.slane %v3672_v32, 4  ;;  %v410_v45 = vld [vmem:[#allocation2 + $0xae0] sm:$0xff]  ;;  %v379_v26 = vld [vmem:[#allocation2 + $0x9e8] sm:$0xff]  ;;  %v3785_v7 = vcombine.low %v3559_v57, %v3566_v27 }
 0x242   :  { %3047 = vmatpush2.msra.mxu1 %v986_v62  ;;  %2959 = vmatprep.subr.mxu0 %v459_v58  ;;  %v922_v33 = vld [vmem:[#allocation2 + $0x1ae0] sm:$0xff]  ;;  %v891_v55 = vld [vmem:[#allocation2 + $0x19e8] sm:$0xff] }
 0x243   :  { %3048 = vmatprep.subr.mxu1 %v971_v48  ;;  %2960 = vmatpush2.msra.mxu0 %v458_v49  ;;  %v3668_v34 = vrot.slane %v3667_v18, 2  ;;  %v3674_v37 = vmax.f32 %v3672_v32, %v3673_v24  ;;  %v394_v31 = vld [vmem:[#allocation2 + $0xa60] sm:$0xff]  ;;  %v363_v53 = vld [vmem:[#allocation2 + $0x968] sm:$0xff] }
 0x244   :  { %3049 = vmatpush2.msra.mxu1 %v970_v16  ;;  %2961 = vmatprep.subr.mxu0 %v443_v28  ;;  %v906_v54 = vld [vmem:[#allocation2 + $0x1a60] sm:$0xff]  ;;  %v875_v29 = vld [vmem:[#allocation2 + $0x1968] sm:$0xff]  ;;  %v3860_v16 = vrot.slane %v3852_v21, %v4604_v56  ;;  %v3799_v28 = vrot.slane %v3785_v7, %v4604_v56  ;;  %v5000_v7 = vld [vmem:[%s5322_s0 + $0x58] sm:$0xff] }
 0x245   :  { %3050 = vmatprep.subr.mxu1 %v955_v3  ;;  %2962 = vmatpush2.msra.mxu0 %v442_v5  ;;  %v3669_v25 = vmax.f32 %v3667_v18, %v3668_v34  ;;  %v3675_v6 = vrot.slane %v3674_v37, 2  ;;  %v378_v10 = vld [vmem:[#allocation2 + $0x9e0] sm:$0xff]  ;;  %v347_v48 = vld [vmem:[#allocation2 + $0x8e8] sm:$0xff]  ;;  %v3792_v5 = vrot.slane %v3784_v17, %v4604_v56  ;;  %v316_v17 = vld [vmem:[#allocation2 + $0x7f0] sm:$0xff] }
 0x246   :  { %3051 = vmatpush2.msra.mxu1 %v954_v9  ;;  %2963 = vmatprep.subr.mxu0 %v427_v63  ;;  %v890_v41 = vld [vmem:[#allocation2 + $0x19e0] sm:$0xff]  ;;  %v859_v44 = vld [vmem:[#allocation2 + $0x18e8] sm:$0xff] }
 0x247   :  { %3052 = vmatprep.subr.mxu1 %v939_v60  ;;  %2964 = vmatpush2.msra.mxu0 %v426_v40  ;;  %v3670_v36 = vrot.slane %v3669_v25, 1  ;;  %v3676_v13 = vmax.f32 %v3674_v37, %v3675_v6  ;;  %v362_v62 = vld [vmem:[#allocation2 + $0x960] sm:$0xff]  ;;  %v331_v3 = vld [vmem:[#allocation2 + $0x868] sm:$0xff]  ;;  %v3800_v21 = vcombine.low %v3792_v5, %v3799_v28  ;;  %v4964_v40 = vld [vmem:[%s5322_s0 + $0x10] sm:$0xff] }
 0x248   :  { %3053 = vmatpush2.msra.mxu1 %v938_v42  ;;  %2965 = vmatprep.subr.mxu0 %v411_v59  ;;  %v874_v58 = vld [vmem:[#allocation2 + $0x1960] sm:$0xff]  ;;  %v843_v15 = vld [vmem:[#allocation2 + $0x1868] sm:$0xff]  ;;  %v301_v59 = vld [vmem:[#allocation2 + $0x778] sm:$0xff] }
 0x249   :  { %3054 = vmatprep.subr.mxu1 %v923_v23  ;;  %2966 = vmatpush2.msra.mxu0 %v410_v45  ;;  %v3677_v30 = vrot.slane %v3676_v13, 1  ;;  %v3671_v50 = vmax.f32 %v3669_v25, %v3670_v36  ;;  %v346_v32 = vld [vmem:[#allocation2 + $0x8e0] sm:$0xff]  ;;  %v4945_v9 = vld [vmem:[%s5322_s0 + $0x8] sm:$0xff]  ;;  %v300_v6 = vld [vmem:[#allocation2 + $0x770] sm:$0xff] }
 0x24a   :  { %3055 = vmatpush2.msra.mxu1 %v922_v33  ;;  %2967 = vmatprep.subr.mxu0 %v395_v38  ;;  %v858_v49 = vld [vmem:[#allocation2 + $0x18e0] sm:$0xff]  ;;  %v1211_v60 = vld [vmem:[#allocation2 + $0x23e8] sm:$0xff]  ;;  %v285_v38 = vld [vmem:[#allocation2 + $0x6f8] sm:$0xff] }
 0x24b   :  { %3056 = vmatprep.subr.mxu1 %v907_v43  ;;  %2968 = vmatpush2.msra.mxu0 %v394_v31  ;;  %v3678_v47 = vmax.f32 %v3676_v13, %v3677_v30  ;;  %v330_v24 = vld [vmem:[#allocation2 + $0x860] sm:$0xff]  ;;  %v1195_v42 = vld [vmem:[#allocation2 + $0x2368] sm:$0xff]  ;;  %v4976_v43 = vld [vmem:[%s5322_s0 + $0x30] sm:$0xff] }
 0x24c   :  { %3057 = vmatpush2.msra.mxu1 %v906_v54  ;;  %2969 = vmatprep.subr.mxu0 %v379_v26  ;;  %v4958_v37 = vld [vmem:[%s5322_s0] sm:$0xff]  ;;  %v1179_v33 = vld [vmem:[#allocation2 + $0x22e8] sm:$0xff]  ;;  %v284_v13 = vld [vmem:[#allocation2 + $0x6f0] sm:$0xff] }
 0x24d   :  { %3058 = vmatprep.subr.mxu1 %v891_v55  ;;  %2970 = vmatpush2.msra.mxu0 %v378_v10  ;;  %v3853_v22 = vcombine.low %v3671_v50, %v3678_v47  ;;  %v1194_v61 = vld [vmem:[#allocation2 + $0x2360] sm:$0xff]  ;;  %v4982_v36 = vld [vmem:[%s5322_s0 + $0x28] sm:$0xff]  ;;  %v269_v54 = vld [vmem:[#allocation2 + $0x678] sm:$0xff] }
 0x24e   :  { %3059 = vmatpush2.msra.mxu1 %v890_v41  ;;  %2971 = vmatprep.subr.mxu0 %v363_v53  ;;  %v1178_v27 = vld [vmem:[#allocation2 + $0x22e0] sm:$0xff]  ;;  %v1163_v31 = vld [vmem:[#allocation2 + $0x2268] sm:$0xff]  ;;  %v268_v55 = vld [vmem:[#allocation2 + $0x670] sm:$0xff] }
 0x24f   :  { %3060 = vmatprep.subr.mxu1 %v875_v29  ;;  %2972 = vmatpush2.msra.mxu0 %v362_v62  ;;  %v3867_v18 = vrot.slane %v3853_v22, %v4604_v56  ;;  %v4988_v57 = vld [vmem:[%s5322_s0 + $0x40] sm:$0xff]  ;;  %v4994_v30 = vld [vmem:[%s5322_s0 + $0x38] sm:$0xff]  ;;  %v1147_v10 = vld [vmem:[#allocation2 + $0x21e8] sm:$0xff] }
 0x250   :  { %3061 = vmatpush2.msra.mxu1 %v874_v58  ;;  %2973 = vmatprep.subr.mxu0 %v347_v48  ;;  %v1162_v26 = vld [vmem:[#allocation2 + $0x2260] sm:$0xff]  ;;  %v253_v41 = vld [vmem:[#allocation2 + $0x5f8] sm:$0xff]  ;;  %v5006_v29 = vld [vmem:[%s5322_s0 + $0x50] sm:$0xff] }
 0x251   :  { %3062 = vmatprep.subr.mxu1 %v859_v44  ;;  %2974 = vmatpush2.msra.mxu0 %v346_v32  ;;  %v3868_v8 = vcombine.low %v3860_v16, %v3867_v18  ;;  %v1146_v53 = vld [vmem:[#allocation2 + $0x21e0] sm:$0xff]  ;;  %v252_v50 = vld [vmem:[#allocation2 + $0x5f0] sm:$0xff]  ;;  %v1131_v47 = vld [vmem:[#allocation2 + $0x2168] sm:$0xff] }
 0x252   :  { %3063 = vmatpush2.msra.mxu1 %v858_v49  ;;  %2975 = vmatprep.subr.mxu0 %v331_v3  ;;  %v237_v62 = vld [vmem:[#allocation2 + $0x578] sm:$0xff]  ;;  %v5012_v58 = vld [vmem:[%s5322_s0 + $0x68] sm:$0xff]  ;;  %v1130_v48 = vld [vmem:[#allocation2 + $0x2160] sm:$0xff] }
 0x253   :  { %3064 = vmatprep.subr.mxu1 %v843_v15  ;;  %2976 = vmatpush2.msra.mxu0 %v330_v24  ;;  %v3918_v63 = vrot.slane %v3868_v8, 7  ;;  %v236_v44 = vld [vmem:[#allocation2 + $0x570] sm:$0xff]  ;;  %v5018_v22 = vld [vmem:[%s5322_s0 + $0x60] sm:$0xff]  ;;  %v1115_v32 = vld [vmem:[#allocation2 + $0x20e8] sm:$0xff] }
 0x254   :  { %2977 = vmatprep.mubr.f32.mxu0 %v4945_v9  ;;  %3065 = vmatpush2.msra.mxu1 %v842_v1  ;;  %v221_v49 = vld [vmem:[#allocation2 + $0x4f8] sm:$0xff]  ;;  %v5024_v16 = vld [vmem:[%s5322_s0 + $0x80] sm:$0xff]  ;;  %v220_v15 = vld [vmem:[#allocation2 + $0x4f0] sm:$0xff] }
 0x255   :  { %3066 = vmatprep.mubr.f32.mxu1 %v4951_v14  ;;  %v3919_v34 = vsel %vm3908_vm1, %v3918_v63, %v3800_v21  ;;  %2978 = vmatmul.mubr.f32.vlgmr.msra.gmra.mxu0 %v4958_v37  ;;  %v1114_v28 = vld [vmem:[#allocation2 + $0x20e0] sm:$0xff]  ;;  %v5030_v3 = vld [vmem:[%s5322_s0 + $0x78] sm:$0xff]  ;;  %v1099_v18 = vld [vmem:[#allocation2 + $0x2068] sm:$0xff] }
 0x256   :  { %3067 = vmatmul.mubr.f32.vlgmr.msra.gmra.mxu1 %v4964_v40  ;;  %v3920_v23 = vsel %vm3910_vm2, %v3918_v63, %v3919_v34  ;;  %3107 = vmatprep.subr.mxu0 %v1211_v60  ;;  %v205_v24 = vld [vmem:[#allocation2 + $0x478] sm:$0xff]  ;;  %v5036_v5 = vld [vmem:[%s5322_s0 + $0x90] sm:$0xff]  ;;  %v1098_v1 = vld [vmem:[#allocation2 + $0x2060] sm:$0xff] }
 0x257   :  { %3180 = vmatprep.subr.mxu1 %v317_v20  ;;  %v3921_v25 = vsel %vm3912_vm3, %v3918_v63, %v3920_v23  ;;  %3108 = vmatpush1.msra.mxu0 %v1210_v12  ;;  %v204_v8 = vld [vmem:[#allocation2 + $0x470] sm:$0xff]  ;;  %v5042_v21 = vld [vmem:[%s5322_s0 + $0x88] sm:$0xff]  ;;  %v829_v60 = vld [vmem:[#allocation2 + $0x17f8] sm:$0xff] }
 0x258   :  { %3181 = vmatpush1.msra.mxu1 %v316_v17  ;;  %v3922_v45 = vsel %vm3914_vm4, %v3918_v63, %v3921_v25  ;;  %3109 = vmatprep.subr.mxu0 %v1195_v42  ;;  %v189_v63 = vld [vmem:[#allocation2 + $0x3f8] sm:$0xff]  ;;  %v188_v20 = vld [vmem:[#allocation2 + $0x3f0] sm:$0xff]  ;;  %v5049_v17 = vld [vmem:[%s5322_s0 + $0x20] sm:$0xff] }
 0x259   :  { %3182 = vmatprep.subr.mxu1 %v301_v59  ;;  %3942 = vst [vmem:[%s5326_s4 + $0x8] sm:$0xff] %v3922_v45  ;;  %2983 = vmatprep.mubr.f32.mxu0 %v4976_v43  ;;  %v828_v12 = vld [vmem:[#allocation2 + $0x17f0] sm:$0xff]  ;;  %v173_v34 = vld [vmem:[#allocation2 + $0x378] sm:$0xff] }
 0x25a   :  { %3110 = vmatpush1.msra.mxu0 %v1194_v61  ;;  %3183 = vmatpush1.msra.mxu1 %v300_v6  ;;  %v813_v42 = vld [vmem:[#allocation2 + $0x1778] sm:$0xff]  ;;  %v172_v59 = vld [vmem:[#allocation2 + $0x370] sm:$0xff] }
 0x25b   :  { %2984 = vmatmul.mubr.f32.gmra.mxu0 %v4982_v36  ;;  %3111 = vmatprep.subr.mxu0 %v1179_v33  ;;  %v812_v61 = vld [vmem:[#allocation2 + $0x1770] sm:$0xff]  ;;  %v157_v25 = vld [vmem:[#allocation2 + $0x2f8] sm:$0xff] }
 0x25c   :  { %3184 = vmatprep.subr.mxu1 %v285_v38  ;;  %3072 = vmatprep.mubr.f32.mxu1 %v4988_v57  ;;  %v797_v6 = vld [vmem:[#allocation2 + $0x16f8] sm:$0xff]  ;;  %v156_v33 = vld [vmem:[#allocation2 + $0x2f0] sm:$0xff] }
 0x25d   :  { %3112 = vmatpush1.msra.mxu0 %v1178_v27  ;;  %3185 = vmatpush1.msra.mxu1 %v284_v13  ;;  %v796_v38 = vld [vmem:[#allocation2 + $0x16f0] sm:$0xff]  ;;  %v141_v27 = vld [vmem:[#allocation2 + $0x278] sm:$0xff] }
 0x25e   :  { %3113 = vmatprep.subr.mxu0 %v1163_v31  ;;  %3073 = vmatmul.mubr.f32.gmra.mxu1 %v4994_v30  ;;  %v781_v13 = vld [vmem:[#allocation2 + $0x1678] sm:$0xff]  ;;  %v5061_v31 = vld [vmem:[%s5322_s0 + $0x48] sm:$0xff] }
 0x25f   :  { %3186 = vmatprep.subr.mxu1 %v269_v54  ;;  %2989 = vmatprep.mubr.f32.mxu0 %v5000_v7  ;;  %v140_v54 = vld [vmem:[#allocation2 + $0x270] sm:$0xff] }
 0x260   :  { %3114 = vmatpush1.msra.mxu0 %v1162_v26  ;;  %3187 = vmatpush1.msra.mxu1 %v268_v55  ;;  %v780_v55 = vld [vmem:[#allocation2 + $0x1670] sm:$0xff] }
 0x261   :  { %2990 = vmatmul.mubr.f32.gmra.mxu0 %v5006_v29  ;;  %3115 = vmatprep.subr.mxu0 %v1147_v10  ;;  %v125_v10 = vld [vmem:[#allocation2 + $0x1f8] sm:$0xff] }
 0x262   :  { %3188 = vmatprep.subr.mxu1 %v253_v41  ;;  %3078 = vmatprep.mubr.f32.mxu1 %v5012_v58  ;;  %v765_v41 = vld [vmem:[#allocation2 + $0x15f8] sm:$0xff] }
 0x263   :  { %3116 = vmatpush1.msra.mxu0 %v1146_v53  ;;  %3189 = vmatpush1.msra.mxu1 %v252_v50  ;;  %v124_v50 = vld [vmem:[#allocation2 + $0x1f0] sm:$0xff] }
 0x264   :  { %3117 = vmatprep.subr.mxu0 %v1131_v47  ;;  %3079 = vmatmul.mubr.f32.gmra.mxu1 %v5018_v22  ;;  %v764_v47 = vld [vmem:[#allocation2 + $0x15f0] sm:$0xff] }
 0x265   :  { %3190 = vmatprep.subr.mxu1 %v237_v62  ;;  %2995 = vmatprep.mubr.f32.mxu0 %v5024_v16  ;;  %v109_v62 = vld [vmem:[#allocation2 + $0x178] sm:$0xff] }
 0x266   :  { %3118 = vmatpush1.msra.mxu0 %v1130_v48  ;;  %3191 = vmatpush1.msra.mxu1 %v236_v44  ;;  %v749_v48 = vld [vmem:[#allocation2 + $0x1578] sm:$0xff] }
 0x267   :  { %2996 = vmatmul.mubr.f32.gmra.mxu0 %v5030_v3  ;;  %3119 = vmatprep.subr.mxu0 %v1115_v32  ;;  %v5075_v32 = vld [vmem:[%s5322_s0 + $0x70] sm:$0xff] }
 0x268   :  { %3192 = vmatprep.subr.mxu1 %v221_v49  ;;  %3084 = vmatprep.mubr.f32.mxu1 %v5036_v5  ;;  %v108_v49 = vld [vmem:[#allocation2 + $0x170] sm:$0xff] }
 0x269   :  { %3120 = vmatpush1.msra.mxu0 %v1114_v28  ;;  %3193 = vmatpush1.msra.mxu1 %v220_v15  ;;  %v748_v28 = vld [vmem:[#allocation2 + $0x1570] sm:$0xff]  ;;  %v93_v15 = vld [vmem:[#allocation2 + $0xf8] sm:$0xff] }
 0x26a   :  { %3121 = vmatprep.subr.mxu0 %v1099_v18  ;;  %3085 = vmatmul.mubr.f32.gmra.mxu1 %v5042_v21  ;;  %v5079_v18 = vld [vmem:[#allocation4 + $0x8] sm:$0xff] }
 0x26b   :  { %3194 = vmatprep.subr.mxu1 %v205_v24  ;;  %3122 = vmatpush1.msra.mxu0 %v1098_v1  ;;  %v733_v1 = vld [vmem:[#allocation2 + $0x14f8] sm:$0xff] }
 0x26c   :  { %3155 = vmatprep.mubr.f32.mxu0 %v4103_v51  ;;  %3195 = vmatpush1.msra.mxu1 %v204_v8  ;;  %v92_v8 = vld [vmem:[#allocation2 + $0xf0] sm:$0xff] }
 0x26d   :  { %3979 = vmatmul.mubr.msk.f32.vlgmr.msra.gmra.mxu0 %vm1298_vm0, %v5049_v17  ;;  %3196 = vmatprep.subr.mxu1 %v189_v63  ;;  %v5053_v23 = vpop.f32.mrf.mxu0  ;;  %v732_v63 = vld [vmem:[#allocation2 + $0x14f0] sm:$0xff] }
 0x26e   :  { %3269 = vmatprep.subr.mxu0 %v829_v60  ;;  %3197 = vmatpush1.msra.mxu1 %v188_v20  ;;  %v5070_v44 = vpop.f32.mrf.mxu1 }
 0x26f   :  { %3270 = vmatpush1.msra.mxu0 %v828_v12  ;;  %3198 = vmatprep.subr.mxu1 %v173_v34  ;;  %v5055_v45 = vpop.f32.mrf.mxu0  ;;  %v77_v12 = vld [vmem:[#allocation2 + $0x78] sm:$0xff] }
 0x270   :  { %3271 = vmatprep.subr.mxu0 %v813_v42  ;;  %3161 = vmatprep.mubr.f32.mxu0 %v4103_v51  ;;  %v2536_v60 = vpop.f32.mrf.mxu1  ;;  %v717_v34 = vld [vmem:[#allocation2 + $0x1478] sm:$0xff]  ;;  %v5089_v42 = vrot.slane %v5079_v18, %v1220_v0  ;;  %v5101_v0 = vrot.slane %v5079_v18, %v1224_v11 }
 0x271   :  { %3199 = vmatpush1.msra.mxu1 %v172_v59  ;;  %3272 = vmatpush1.msra.mxu0 %v812_v61  ;;  %v5094_v59 = vld [vmem:[%s5322_s0 + $0x98] sm:$0xff]  ;;  %v76_v61 = vld [vmem:[#allocation2 + $0x70] sm:$0xff] }
 0x272   :  { %3200 = vmatprep.subr.mxu1 %v157_v25  ;;  %3980 = vmatmul.mubr.msk.f32.gmra.mxu0 %vm1298_vm0, %v5061_v31  ;;  %v716_v25 = vld [vmem:[#allocation2 + $0x1470] sm:$0xff] }
 0x273   :  { %3273 = vmatprep.subr.mxu0 %v797_v6  ;;  %v5065_v26 = vpop.f32.mrf.mxu0  ;;  %3201 = vmatpush1.msra.mxu1 %v156_v33  ;;  %v573_v6 = vld [vmem:[#allocation2 + $0xff8] sm:$0xff] }
 0x274   :  { %3274 = vmatpush1.msra.mxu0 %v796_v38  ;;  %3202 = vmatprep.subr.mxu1 %v141_v27  ;;  %v701_v33 = vld [vmem:[#allocation2 + $0x13f8] sm:$0xff]  ;;  %v572_v38 = vld [vmem:[#allocation2 + $0xff0] sm:$0xff] }
 0x275   :  { %3275 = vmatprep.subr.mxu0 %v781_v13  ;;  %v5067_v53 = vpop.f32.mrf.mxu0  ;;  %3167 = vmatprep.mubr.f32.mxu0 %v4103_v51  ;;  %v700_v27 = vld [vmem:[#allocation2 + $0x13f0] sm:$0xff] }
 0x276   :  { %3203 = vmatpush1.msra.mxu1 %v140_v54  ;;  %3276 = vmatpush1.msra.mxu0 %v780_v55  ;;  %v2540_v13 = vpop.f32.mrf.mxu1  ;;  %v557_v55 = vld [vmem:[#allocation2 + $0xf78] sm:$0xff] }
 0x277   :  { %3204 = vmatprep.subr.mxu1 %v125_v10  ;;  %3981 = vmatmul.mubr.msk.f32.gmra.mxu0 %vm1298_vm0, %v5075_v32  ;;  %v685_v10 = vld [vmem:[#allocation2 + $0x1378] sm:$0xff] }
 0x278   :  { %3277 = vmatprep.subr.mxu0 %v765_v41  ;;  %3205 = vmatpush1.msra.mxu1 %v124_v50  ;;  %v2446_v41 = vadd.f32 %v5053_v23, %v5089_v42  ;;  %v556_v50 = vld [vmem:[#allocation2 + $0xf70] sm:$0xff]  ;;  %v525_v23 = vld [vmem:[#allocation2 + $0xe78] sm:$0xff] }
 0x279   :  { %3278 = vmatpush1.msra.mxu0 %v764_v47  ;;  %v5081_v24 = vpop.f32.mrf.mxu0  ;;  %3206 = vmatprep.subr.mxu1 %v109_v62  ;;  %v684_v47 = vld [vmem:[#allocation2 + $0x1370] sm:$0xff]  ;;  %v541_v62 = vld [vmem:[#allocation2 + $0xef8] sm:$0xff] }
 0x27a   :  { %3279 = vmatprep.subr.mxu0 %v749_v48  ;;  %3173 = vmatprep.mubr.f32.mxu0 %v4103_v51  ;;  %v669_v48 = vld [vmem:[#allocation2 + $0x12f8] sm:$0xff] }
 0x27b   :  { %3207 = vmatpush1.msra.mxu1 %v108_v49  ;;  %v5084_v20 = vpop.f32.mrf.mxu0  ;;  %3280 = vmatpush1.msra.mxu0 %v748_v28  ;;  %v2448_v49 = vadd.f32 %v5055_v45, %v5101_v0  ;;  %v540_v28 = vld [vmem:[#allocation2 + $0xef0] sm:$0xff]  ;;  %v637_v45 = vld [vmem:[#allocation2 + $0x11f8] sm:$0xff] }
 0x27c   :  { %3208 = vmatprep.subr.mxu1 %v93_v15  ;;  %3982 = vmatmul.mubr.msk.f32.gmra.mxu0 %vm1298_vm0, %v5094_v59  ;;  %v668_v15 = vld [vmem:[#allocation2 + $0x12f0] sm:$0xff] }
 0x27d   :  { %3281 = vmatprep.subr.mxu0 %v733_v1  ;;  %3209 = vmatpush1.msra.mxu1 %v92_v8  ;;  %v2542_v1 = vpop.f32.mrf.mxu1  ;;  %v653_v8 = vld [vmem:[#allocation2 + $0x1278] sm:$0xff] }
 0x27e   :  { %3282 = vmatpush1.msra.mxu0 %v732_v63  ;;  %3210 = vmatprep.subr.mxu1 %v77_v12  ;;  %v2535_v63 = vadd.f32 %v5070_v44, %v2446_v41  ;;  %v524_v12 = vld [vmem:[#allocation2 + $0xe70] sm:$0xff]  ;;  %v493_v41 = vld [vmem:[#allocation2 + $0xd78] sm:$0xff] }
 0x27f   :  { %3283 = vmatprep.subr.mxu0 %v717_v34  ;;  %v5103_v54 = vpop.f32.mrf.mxu0  ;;  %3211 = vmatpush1.msra.mxu1 %v76_v61  ;;  %v652_v34 = vld [vmem:[#allocation2 + $0x1270] sm:$0xff] }
 0x280   :  { %3284 = vmatpush1.msra.mxu0 %v716_v25  ;;  %3212 = vmatprep.subr.mxu1 %v573_v6  ;;  %v509_v25 = vld [vmem:[#allocation2 + $0xdf8] sm:$0xff]  ;;  %v2537_v6 = vadd.f32 %v2536_v60, %v2448_v49 }
 0x281   :  { %3285 = vmatprep.subr.mxu0 %v701_v33  ;;  %v5107_v11 = vpop.f32.mrf.mxu0  ;;  %3213 = vmatpush2.msra.mxu1 %v572_v38  ;;  %v2452_v33 = vadd.f32 %v5065_v26, %v5089_v42  ;;  %v492_v26 = vld [vmem:[#allocation2 + $0xd70] sm:$0xff]  ;;  %v605_v49 = vld [vmem:[#allocation2 + $0x10f8] sm:$0xff] }
 0x282   :  { %3286 = vmatpush1.msra.mxu0 %v700_v27  ;;  %3214 = vmatprep.subr.mxu1 %v557_v55  ;;  %v508_v27 = vld [vmem:[#allocation2 + $0xdf0] sm:$0xff] }
 0x283   :  { %3287 = vmatprep.subr.mxu0 %v685_v10  ;;  %3215 = vmatpush2.msra.mxu1 %v556_v50  ;;  %v636_v55 = vld [vmem:[#allocation2 + $0x11f0] sm:$0xff]  ;;  %v2546_v10 = vpop.f32.mrf.mxu1  ;;  %v621_v50 = vld [vmem:[#allocation2 + $0x1178] sm:$0xff] }
 0x284   :  { %3288 = vmatpush1.msra.mxu0 %v684_v47  ;;  %3216 = vmatprep.subr.mxu1 %v541_v62  ;;  %v2454_v47 = vadd.f32 %v5067_v53, %v5101_v0  ;;  %v620_v62 = vld [vmem:[#allocation2 + $0x1170] sm:$0xff] }
 0x285   :  { %3289 = vmatprep.subr.mxu0 %v669_v48  ;;  %v2623_v61 = vpop.f32.mrf.mxu0  ;;  %3217 = vmatpush2.msra.mxu1 %v540_v28  ;;  %v477_v48 = vld [vmem:[#allocation2 + $0xcf8] sm:$0xff]  ;;  %v2541_v28 = vadd.f32 %v2540_v13, %v2452_v33  ;;  %v476_v53 = vld [vmem:[#allocation2 + $0xcf0] sm:$0xff] }
 0x286   :  { %3290 = vmatpush1.msra.mxu0 %v668_v15  ;;  %v2624_v38 = vadd.f32 %v2623_v61, %v2535_v63  ;;  %3218 = vmatprep.subr.mxu1 %v525_v23  ;;  %v604_v15 = vld [vmem:[#allocation2 + $0x10f0] sm:$0xff]  ;;  %v2458_v23 = vadd.f32 %v5081_v24, %v5089_v42  ;;  %v2543_v61 = vadd.f32 %v2542_v1, %v2454_v47  ;;  %v1085_v24 = vld [vmem:[#allocation2 + $0x1ff8] sm:$0xff] }
 0x287   :  { %3291 = vmatprep.subr.mxu0 %v653_v8  ;;  %v2625_v44 = vpop.f32.mrf.mxu0  ;;  %3219 = vmatpush2.msra.mxu1 %v524_v12  ;;  %v2548_v8 = vpop.f32.mrf.mxu1  ;;  %v461_v12 = vld [vmem:[#allocation2 + $0xc78] sm:$0xff]  ;;  %v460_v13 = vld [vmem:[#allocation2 + $0xc70] sm:$0xff] }
 0x288   :  { %3292 = vmatpush1.msra.mxu0 %v652_v34  ;;  %3455 = vst [vmem:[%s5325_s3 + $0x40] sm:$0xff] %v2624_v38  ;;  %v2626_v60 = vadd.f32 %v2625_v44, %v2537_v6  ;;  %3220 = vmatprep.subr.mxu1 %v509_v25  ;;  %v589_v34 = vld [vmem:[#allocation2 + $0x1078] sm:$0xff]  ;;  %v2460_v6 = vadd.f32 %v5084_v20, %v5101_v0  ;;  %v444_v1 = vld [vmem:[#allocation2 + $0xbf0] sm:$0xff] }
 0x289   :  { %3293 = vmatprep.subr.mxu0 %v637_v45  ;;  %3221 = vmatpush2.msra.mxu1 %v508_v27  ;;  %v588_v45 = vld [vmem:[#allocation2 + $0x1070] sm:$0xff]  ;;  %v445_v27 = vld [vmem:[#allocation2 + $0xbf8] sm:$0xff]  ;;  %v2552_v47 = vpop.f32.mrf.mxu1 }
 0x28a   :  { %3294 = vmatpush1.msra.mxu0 %v636_v55  ;;  %3456 = vst [vmem:[%s5325_s3 + $0x48] sm:$0xff] %v2626_v60  ;;  %3222 = vmatprep.subr.mxu1 %v493_v41  ;;  %v2629_v63 = vpop.f32.mrf.mxu0  ;;  %v1084_v41 = vld [vmem:[#allocation2 + $0x1ff0] sm:$0xff]  ;;  %v429_v20 = vld [vmem:[#allocation2 + $0xb78] sm:$0xff] }
 0x28b   :  { %3295 = vmatprep.subr.mxu0 %v621_v50  ;;  %3223 = vmatpush2.msra.mxu1 %v492_v26  ;;  %v2630_v25 = vadd.f32 %v2629_v63, %v2541_v28  ;;  %v2547_v50 = vadd.f32 %v2546_v10, %v2458_v23  ;;  %v1069_v26 = vld [vmem:[#allocation2 + $0x1f78] sm:$0xff]  ;;  %v428_v28 = vld [vmem:[#allocation2 + $0xb70] sm:$0xff]  ;;  %v2549_v10 = vadd.f32 %v2548_v8, %v2460_v6 }
 0x28c   :  { %3296 = vmatpush1.msra.mxu0 %v620_v62  ;;  %3224 = vmatprep.subr.mxu1 %v477_v48  ;;  %v2631_v33 = vpop.f32.mrf.mxu0  ;;  %v2464_v62 = vadd.f32 %v5103_v54, %v5089_v42  ;;  %v413_v23 = vld [vmem:[#allocation2 + $0xaf8] sm:$0xff]  ;;  %v2466_v42 = vadd.f32 %v5107_v11, %v5101_v0  ;;  %v396_v11 = vld [vmem:[#allocation2 + $0xa70] sm:$0xff] }
 0x28d   :  { %3297 = vmatprep.subr.mxu0 %v605_v49  ;;  %3225 = vmatpush2.msra.mxu1 %v476_v53  ;;  %3471 = vst [vmem:[%s5325_s3 + $0xc0] sm:$0xff] %v2630_v25  ;;  %v3567_v55 = vmax.f32 %v2624_v38, %v2630_v25  ;;  %v2632_v44 = vadd.f32 %v2631_v33, %v2543_v61  ;;  %v1068_v53 = vld [vmem:[#allocation2 + $0x1f70] sm:$0xff]  ;;  %v1053_v63 = vld [vmem:[#allocation2 + $0x1ef8] sm:$0xff]  ;;  %v2554_v25 = vpop.f32.mrf.mxu1 }
 0x28e   :  { %3298 = vmatpush1.msra.mxu0 %v604_v15  ;;  %3226 = vmatprep.subr.mxu1 %v461_v12  ;;  %v1052_v61 = vld [vmem:[#allocation2 + $0x1ef0] sm:$0xff]  ;;  %v2553_v6 = vadd.f32 %v2552_v47, %v2464_v62 }
 0x28f   :  { %3299 = vmatprep.subr.mxu0 %v589_v34  ;;  %3227 = vmatpush2.msra.mxu1 %v460_v13  ;;  %v3568_v48 = vrot.slane %v3567_v55, 4  ;;  %3472 = vst [vmem:[%s5325_s3 + $0xc8] sm:$0xff] %v2632_v44  ;;  %v3574_v38 = vmax.f32 %v2626_v60, %v2632_v44  ;;  %v2635_v49 = vpop.f32.mrf.mxu0  ;;  %v412_v60 = vld [vmem:[#allocation2 + $0xaf0] sm:$0xff]  ;;  %v397_v13 = vld [vmem:[#allocation2 + $0xa78] sm:$0xff] }
 0x290   :  { %3300 = vmatpush1.msra.mxu0 %v588_v45  ;;  %3228 = vmatprep.subr.mxu1 %v445_v27  ;;  %v2636_v15 = vadd.f32 %v2635_v49, %v2547_v50  ;;  %v1037_v45 = vld [vmem:[#allocation2 + $0x1e78] sm:$0xff]  ;;  %v1036_v27 = vld [vmem:[#allocation2 + $0x1e70] sm:$0xff] }
 0x291   :  { %3301 = vmatprep.subr.mxu0 %v1085_v24  ;;  %3229 = vmatpush2.msra.mxu1 %v444_v1  ;;  %v3569_v54 = vmax.f32 %v3567_v55, %v3568_v48  ;;  %v3575_v12 = vrot.slane %v3574_v38, 4  ;;  %v2637_v34 = vpop.f32.mrf.mxu0  ;;  %v381_v55 = vld [vmem:[#allocation2 + $0x9f8] sm:$0xff]  ;;  %v2555_v1 = vadd.f32 %v2554_v25, %v2466_v42  ;;  %v380_v47 = vld [vmem:[#allocation2 + $0x9f0] sm:$0xff] }
 0x292   :  { %3302 = vmatpush2.msra.mxu0 %v1084_v41  ;;  %3230 = vmatprep.subr.mxu1 %v429_v20  ;;  %3487 = vst [vmem:[%s5325_s3 + $0x140] sm:$0xff] %v2636_v15  ;;  %v2638_v8 = vadd.f32 %v2637_v34, %v2549_v10  ;;  %v1021_v44 = vld [vmem:[#allocation2 + $0x1df8] sm:$0xff] }
 0x293   :  { %3303 = vmatprep.subr.mxu0 %v1069_v26  ;;  %3231 = vmatpush2.msra.mxu1 %v428_v28  ;;  %v3570_v33 = vrot.slane %v3569_v54, 2  ;;  %v3576_v0 = vmax.f32 %v3574_v38, %v3575_v12  ;;  %v1020_v26 = vld [vmem:[#allocation2 + $0x1df0] sm:$0xff]  ;;  %v365_v48 = vld [vmem:[#allocation2 + $0x978] sm:$0xff] }
 0x294   :  { %3304 = vmatpush2.msra.mxu0 %v1068_v53  ;;  %3232 = vmatprep.subr.mxu1 %v413_v23  ;;  %3488 = vst [vmem:[%s5325_s3 + $0x148] sm:$0xff] %v2638_v8  ;;  %v2641_v24 = vpop.f32.mrf.mxu0  ;;  %v1005_v38 = vld [vmem:[#allocation2 + $0x1d78] sm:$0xff]  ;;  %v364_v23 = vld [vmem:[#allocation2 + $0x970] sm:$0xff] }
 0x295   :  { %3305 = vmatprep.subr.mxu0 %v1053_v63  ;;  %3233 = vmatpush2.msra.mxu1 %v412_v60  ;;  %v3571_v41 = vmax.f32 %v3569_v54, %v3570_v33  ;;  %v3577_v50 = vrot.slane %v3576_v0, 2  ;;  %v2642_v20 = vadd.f32 %v2641_v24, %v2553_v6  ;;  %v1004_v63 = vld [vmem:[#allocation2 + $0x1d70] sm:$0xff]  ;;  %v349_v42 = vld [vmem:[#allocation2 + $0x8f8] sm:$0xff] }
 0x296   :  { %3306 = vmatpush2.msra.mxu0 %v1052_v61  ;;  %3234 = vmatprep.subr.mxu1 %v397_v13  ;;  %v2643_v62 = vpop.f32.mrf.mxu0  ;;  %v989_v54 = vld [vmem:[#allocation2 + $0x1cf8] sm:$0xff]  ;;  %v348_v61 = vld [vmem:[#allocation2 + $0x8f0] sm:$0xff] }
 0x297   :  { %3307 = vmatprep.subr.mxu0 %v1037_v45  ;;  %3235 = vmatpush2.msra.mxu1 %v396_v11  ;;  %v3572_v49 = vrot.slane %v3571_v41, 1  ;;  %v3578_v28 = vmax.f32 %v3576_v0, %v3577_v50  ;;  %3503 = vst [vmem:[%s5325_s3 + $0x1c0] sm:$0xff] %v2642_v20  ;;  %v3679_v53 = vmax.f32 %v2636_v15, %v2642_v20  ;;  %v988_v15 = vld [vmem:[#allocation2 + $0x1cf0] sm:$0xff]  ;;  %v333_v25 = vld [vmem:[#allocation2 + $0x878] sm:$0xff] }
 0x298   :  { %3308 = vmatpush2.msra.mxu0 %v1036_v27  ;;  %v2644_v10 = vadd.f32 %v2643_v62, %v2555_v1  ;;  %3236 = vmatprep.subr.mxu1 %v381_v55  ;;  %v973_v13 = vld [vmem:[#allocation2 + $0x1c78] sm:$0xff]  ;;  %v332_v11 = vld [vmem:[#allocation2 + $0x870] sm:$0xff] }
 0x299   :  { %3309 = vmatprep.subr.mxu0 %v1021_v44  ;;  %3237 = vmatpush2.msra.mxu1 %v380_v47  ;;  %v3579_v12 = vrot.slane %v3578_v28, 1  ;;  %v3680_v34 = vrot.slane %v3679_v53, 4  ;;  %v5148_v45 = vmax.f32 %v3571_v41, %v3572_v49  ;;  %v957_v44 = vld [vmem:[#allocation2 + $0x1bf8] sm:$0xff]  ;;  %v956_v41 = vld [vmem:[#allocation2 + $0x1bf0] sm:$0xff] }
 0x29a   :  { %3310 = vmatpush2.msra.mxu0 %v1020_v26  ;;  %3504 = vst [vmem:[%s5325_s3 + $0x1c8] sm:$0xff] %v2644_v10  ;;  %v3686_v60 = vmax.f32 %v2638_v8, %v2644_v10  ;;  %3238 = vmatprep.subr.mxu1 %v365_v48  ;;  %v972_v8 = vld [vmem:[#allocation2 + $0x1c70] sm:$0xff]  ;;  %v1213_v1 = vld [vmem:[#allocation2 + $0x23f8] sm:$0xff] }
 0x29b   :  { %3311 = vmatprep.subr.mxu0 %v1005_v38  ;;  %3239 = vmatpush2.msra.mxu1 %v364_v23  ;;  %v5150_v6 = vmax.f32 %v3578_v28, %v3579_v12  ;;  %v3681_v33 = vmax.f32 %v3679_v53, %v3680_v34  ;;  %v1212_v50 = vld [vmem:[#allocation2 + $0x23f0] sm:$0xff]  ;;  %v941_v26 = vld [vmem:[#allocation2 + $0x1b78] sm:$0xff] }
 0x29c   :  { %3312 = vmatpush2.msra.mxu0 %v1004_v63  ;;  %v3687_v0 = vrot.slane %v3686_v60, 4  ;;  %3240 = vmatprep.subr.mxu1 %v349_v42  ;;  %v1197_v62 = vld [vmem:[#allocation2 + $0x2378] sm:$0xff]  ;;  %v940_v48 = vld [vmem:[#allocation2 + $0x1b70] sm:$0xff] }
 0x29d   :  { %3313 = vmatprep.subr.mxu0 %v989_v54  ;;  %3241 = vmatpush2.msra.mxu1 %v348_v61  ;;  %v3801_v27 = vcombine.low %v5148_v45, %v5150_v6  ;;  %v3682_v24 = vrot.slane %v3681_v33, 2  ;;  %v1196_v28 = vld [vmem:[#allocation2 + $0x2370] sm:$0xff]  ;;  %v925_v53 = vld [vmem:[#allocation2 + $0x1af8] sm:$0xff] }
 0x29e   :  { %3314 = vmatpush2.msra.mxu0 %v988_v15  ;;  %v3688_v55 = vmax.f32 %v3686_v60, %v3687_v0  ;;  %3242 = vmatprep.subr.mxu1 %v333_v25  ;;  %v924_v23 = vld [vmem:[#allocation2 + $0x1af0] sm:$0xff]  ;;  %v909_v63 = vld [vmem:[#allocation2 + $0x1a78] sm:$0xff] }
 0x29f   :  { %3315 = vmatprep.subr.mxu0 %v973_v13  ;;  %3243 = vmatpush2.msra.mxu1 %v332_v11  ;;  %v3683_v20 = vmax.f32 %v3681_v33, %v3682_v24  ;;  %v1165_v42 = vld [vmem:[#allocation2 + $0x2278] sm:$0xff]  ;;  %v908_v34 = vld [vmem:[#allocation2 + $0x1a70] sm:$0xff] }
 0x2a0   :  { %3244 = vmatprep.mubr.f32.mxu1 %v4945_v9  ;;  %v3689_v47 = vrot.slane %v3688_v55, 2  ;;  %3316 = vmatpush2.msra.mxu0 %v972_v8  ;;  %v1181_v9 = vld [vmem:[#allocation2 + $0x22f8] sm:$0xff]  ;;  %v1164_v60 = vld [vmem:[#allocation2 + $0x2270] sm:$0xff] }
 0x2a1   :  { %3245 = vmatmul.mubr.f32.vlgmr.msra.gmra.mxu1 %v4958_v37  ;;  %3317 = vmatprep.subr.mxu0 %v957_v44  ;;  %v3684_v38 = vrot.slane %v3683_v20, 1  ;;  %v1180_v37 = vld [vmem:[#allocation2 + $0x22f0] sm:$0xff]  ;;  %v893_v61 = vld [vmem:[#allocation2 + $0x19f8] sm:$0xff] }
 0x2a2   :  { %3374 = vmatprep.subr.mxu1 %v1213_v1  ;;  %v3690_v49 = vmax.f32 %v3688_v55, %v3689_v47  ;;  %3318 = vmatpush2.msra.mxu0 %v956_v41  ;;  %v1149_v15 = vld [vmem:[#allocation2 + $0x21f8] sm:$0xff]  ;;  %v892_v25 = vld [vmem:[#allocation2 + $0x19f0] sm:$0xff] }
 0x2a3   :  { %3375 = vmatpush1.msra.mxu1 %v1212_v50  ;;  %3319 = vmatprep.subr.mxu0 %v941_v26  ;;  %v5157_v54 = vmax.f32 %v3683_v20, %v3684_v38  ;;  %v1148_v13 = vld [vmem:[#allocation2 + $0x21f0] sm:$0xff]  ;;  %v1133_v33 = vld [vmem:[#allocation2 + $0x2178] sm:$0xff] }
 0x2a4   :  { %3376 = vmatprep.subr.mxu1 %v1197_v62  ;;  %v3691_v10 = vrot.slane %v3690_v49, 1  ;;  %3250 = vmatprep.mubr.f32.mxu1 %v4976_v43  ;;  %v876_v0 = vld [vmem:[#allocation2 + $0x1970] sm:$0xff]  ;;  %v861_v8 = vld [vmem:[#allocation2 + $0x18f8] sm:$0xff] }
 0x2a5   :  { %3320 = vmatpush2.msra.mxu0 %v940_v48  ;;  %3377 = vmatpush1.msra.mxu1 %v1196_v28  ;;  %v1132_v11 = vld [vmem:[#allocation2 + $0x2170] sm:$0xff]  ;;  %v1117_v24 = vld [vmem:[#allocation2 + $0x20f8] sm:$0xff] }
 0x2a6   :  { %3321 = vmatprep.subr.mxu0 %v925_v53  ;;  %v5159_v12 = vmax.f32 %v3690_v49, %v3691_v10  ;;  %3251 = vmatmul.mubr.f32.gmra.mxu1 %v4982_v36  ;;  %v877_v36 = vld [vmem:[#allocation2 + $0x1978] sm:$0xff]  ;;  %v1116_v55 = vld [vmem:[#allocation2 + $0x20f0] sm:$0xff] }
 0x2a7   :  { %3378 = vmatprep.subr.mxu1 %v1181_v9  ;;  %3322 = vmatpush2.msra.mxu0 %v924_v23  ;;  %v845_v44 = vld [vmem:[#allocation2 + $0x1878] sm:$0xff]  ;;  %v1100_v41 = vld [vmem:[#allocation2 + $0x2070] sm:$0xff] }
 0x2a8   :  { %3379 = vmatpush1.msra.mxu1 %v1180_v37  ;;  %v3869_v43 = vcombine.low %v5157_v54, %v5159_v12  ;;  %3323 = vmatprep.subr.mxu0 %v909_v63  ;;  %v1101_v1 = vld [vmem:[#allocation2 + $0x2078] sm:$0xff] }
 0x2a9   :  { %3380 = vmatprep.subr.mxu1 %v1165_v42  ;;  %3256 = vmatprep.mubr.f32.mxu1 %v5000_v7  ;;  %v860_v7 = vld [vmem:[#allocation2 + $0x18f0] sm:$0xff] }
 0x2aa   :  { %3324 = vmatpush2.msra.mxu0 %v908_v34  ;;  %3381 = vmatpush1.msra.mxu1 %v1164_v60 }
 0x2ab   :  { %3325 = vmatprep.subr.mxu0 %v893_v61  ;;  %3257 = vmatmul.mubr.f32.gmra.mxu1 %v5006_v29  ;;  %v844_v29 = vld [vmem:[#allocation2 + $0x1870] sm:$0xff] }
 0x2ac   :  { %3382 = vmatprep.subr.mxu1 %v1149_v15  ;;  %3326 = vmatpush2.msra.mxu0 %v892_v25 }
 0x2ad   :  { %3383 = vmatpush1.msra.mxu1 %v1148_v13  ;;  %3327 = vmatprep.subr.mxu0 %v877_v36 }
 0x2ae   :  { %3384 = vmatprep.subr.mxu1 %v1133_v33  ;;  %3262 = vmatprep.mubr.f32.mxu1 %v5024_v16 }
 0x2af   :  { %3328 = vmatpush2.msra.mxu0 %v876_v0  ;;  %3385 = vmatpush1.msra.mxu1 %v1132_v11 }
 0x2b0   :  { %3329 = vmatprep.subr.mxu0 %v861_v8  ;;  %3263 = vmatmul.mubr.f32.gmra.mxu1 %v5030_v3 }
 0x2b1   :  { %3386 = vmatprep.subr.mxu1 %v1117_v24  ;;  %3330 = vmatpush2.msra.mxu0 %v860_v7 }
 0x2b2   :  { %3387 = vmatpush1.msra.mxu1 %v1116_v55  ;;  %3331 = vmatprep.subr.mxu0 %v845_v44 }
 0x2b3   :  { %3388 = vmatprep.subr.mxu1 %v1101_v1  ;;  %3332 = vmatpush2.msra.mxu0 %v844_v29 }
 0x2b4   :  { %3333 = vmatprep.mubr.f32.mxu0 %v4951_v14  ;;  %3389 = vmatpush1.msra.mxu1 %v1100_v41 }
 0x2b5   :  { %3422 = vmatprep.mubr.f32.mxu1 %v4103_v51  ;;  %3334 = vmatmul.mubr.f32.vlgmr.msra.gmra.mxu0 %v4964_v40 }
 0x2b6   :  { %3983 = vmatmul.mubr.msk.f32.vlgmr.msra.gmra.mxu1 %vm1298_vm0, %v5049_v17  ;;  %3339 = vmatprep.mubr.f32.mxu0 %v4988_v57 }
 0x2b7   :  { %3428 = vmatprep.mubr.f32.mxu1 %v4103_v51 }
 0x2b9   :  { %v2712_v16 = vpop.f32.mrf.mxu1  ;;  %3340 = vmatmul.mubr.f32.gmra.mxu0 %v4994_v30 }
 0x2ba   :  { %3984 = vmatmul.mubr.msk.f32.gmra.mxu1 %vm1298_vm0, %v5061_v31  ;;  %3345 = vmatprep.mubr.f32.mxu0 %v5012_v58 }
 0x2bb   :  { %3434 = vmatprep.mubr.f32.mxu1 %v4103_v51  ;;  %v2714_v14 = vpop.f32.mrf.mxu1 }
 0x2bd   :  { %3346 = vmatmul.mubr.f32.gmra.mxu0 %v5018_v22  ;;  %v1261_v22 = vrot.slane %v5079_v18, %v1228_v19 }
 0x2be   :  { %3985 = vmatmul.mubr.msk.f32.gmra.mxu1 %vm1298_vm0, %v5075_v32  ;;  %3351 = vmatprep.mubr.f32.mxu0 %v5036_v5  ;;  %v2718_v40 = vpop.f32.mrf.mxu1  ;;  %v1265_v5 = vrot.slane %v5079_v18, %v1232_v39 }
 0x2bf   :  { %3440 = vmatprep.mubr.f32.mxu1 %v4103_v51  ;;  %v2713_v51 = vadd.f32 %v2712_v16, %v1261_v22  ;;  %v2719_v62 = vadd.f32 %v2718_v40, %v1261_v22 }
 0x2c0   :  { %v2720_v57 = vpop.f32.mrf.mxu1  ;;  %v2715_v50 = vadd.f32 %v2714_v14, %v1265_v5 }
 0x2c1   :  { %3352 = vmatmul.mubr.f32.gmra.mxu0 %v5042_v21  ;;  %v2721_v38 = vadd.f32 %v2720_v57, %v1265_v5 }
 0x2c2   :  { %3986 = vmatmul.mubr.msk.f32.gmra.mxu1 %vm1298_vm0, %v5094_v59 }
 0x2c3   :  { %v2724_v30 = vpop.f32.mrf.mxu1 }
 0x2c4   :  { %v2725_v9 = vadd.f32 %v2724_v30, %v1261_v22 }
 0x2c5   :  { %v2726_v58 = vpop.f32.mrf.mxu1 }
 0x2c6   :  { %v2727_v63 = vadd.f32 %v2726_v58, %v1265_v5 }
 0x2c8   :  { %v2730_v3 = vpop.f32.mrf.mxu1 }
 0x2c9   :  { %v2731_v36 = vadd.f32 %v2730_v3, %v1261_v22 }
 0x2ca   :  { %v2732_v17 = vpop.f32.mrf.mxu1 }
 0x2cb   :  { %v2733_v7 = vadd.f32 %v2732_v17, %v1265_v5 }
 0x2cd   :  { %v2801_v31 = vpop.f32.mrf.mxu0 }
 0x2ce   :  { %v2890_v32 = vpop.f32.mrf.mxu1  ;;  %v2802_v21 = vadd.f32 %v2801_v31, %v2713_v51 }
 0x2cf   :  { %v2803_v20 = vpop.f32.mrf.mxu0 }
 0x2d0   :  { %v2892_v47 = vpop.f32.mrf.mxu1  ;;  %v2891_v59 = vadd.f32 %v2890_v32, %v2802_v21  ;;  %v2804_v26 = vadd.f32 %v2803_v20, %v2715_v50 }
 0x2d2   :  { %3457 = vst [vmem:[%s5325_s3 + $0x50] sm:$0xff] %v2891_v59  ;;  %v2893_v19 = vadd.f32 %v2892_v47, %v2804_v26 }
 0x2d3   :  { %v2807_v48 = vpop.f32.mrf.mxu0 }
 0x2d4   :  { %v2808_v49 = vadd.f32 %v2807_v48, %v2719_v62  ;;  %3458 = vst [vmem:[%s5325_s3 + $0x58] sm:$0xff] %v2893_v19 }
 0x2d5   :  { %v2809_v39 = vpop.f32.mrf.mxu0 }
 0x2d6   :  { %v2810_v28 = vadd.f32 %v2809_v39, %v2721_v38  ;;  %v2896_v53 = vpop.f32.mrf.mxu1 }
 0x2d7   :  { %v2897_v10 = vadd.f32 %v2896_v53, %v2808_v49 }
 0x2d8   :  { %v2898_v37 = vpop.f32.mrf.mxu1 }
 0x2d9   :  { %v2813_v23 = vpop.f32.mrf.mxu0  ;;  %3473 = vst [vmem:[%s5325_s3 + $0xd0] sm:$0xff] %v2897_v10  ;;  %v3581_v42 = vmax.f32 %v2891_v59, %v2897_v10  ;;  %v2899_v60 = vadd.f32 %v2898_v37, %v2810_v28 }
 0x2da   :  { %v2814_v34 = vadd.f32 %v2813_v23, %v2725_v9  ;;  %v3877_v23 = vrot.slane %v3869_v43, %v4604_v56 }
 0x2db   :  { %v2815_v61 = vpop.f32.mrf.mxu0  ;;  %3474 = vst [vmem:[%s5325_s3 + $0xd8] sm:$0xff] %v2899_v60  ;;  %v3588_v15 = vmax.f32 %v2893_v19, %v2899_v60  ;;  %v3582_v33 = vrot.slane %v3581_v42, 4 }
 0x2dc   :  { %v2816_v25 = vadd.f32 %v2815_v61, %v2727_v63  ;;  %v2902_v13 = vpop.f32.mrf.mxu1 }
 0x2dd   :  { %v3589_v0 = vrot.slane %v3588_v15, 4  ;;  %v2903_v11 = vadd.f32 %v2902_v13, %v2814_v34  ;;  %v3583_v41 = vmax.f32 %v3581_v42, %v3582_v33  ;;  %v3809_v42 = vrot.slane %v3801_v27, %v4604_v56 }
 0x2de   :  { %v2904_v24 = vpop.f32.mrf.mxu1 }
 0x2df   :  { %v2819_v8 = vpop.f32.mrf.mxu0  ;;  %v3590_v55 = vmax.f32 %v3588_v15, %v3589_v0  ;;  %3489 = vst [vmem:[%s5325_s3 + $0x150] sm:$0xff] %v2903_v11  ;;  %v2905_v1 = vadd.f32 %v2904_v24, %v2816_v25  ;;  %v3584_v58 = vrot.slane %v3583_v41, 2 }
 0x2e0   :  { %v2820_v44 = vadd.f32 %v2819_v8, %v2731_v36  ;;  %v1273_v8 = vrot.slane %v5079_v18, %v1240_v2 }
 0x2e1   :  { %v2821_v29 = vpop.f32.mrf.mxu0  ;;  %3490 = vst [vmem:[%s5325_s3 + $0x158] sm:$0xff] %v2905_v1  ;;  %v3591_v40 = vrot.slane %v3590_v55, 2  ;;  %v3585_v31 = vmax.f32 %v3583_v41, %v3584_v58 }
 0x2e2   :  { %v2822_v16 = vadd.f32 %v2821_v29, %v2733_v7  ;;  %v2908_v14 = vpop.f32.mrf.mxu1 }
 0x2e3   :  { %v2909_v57 = vadd.f32 %v2908_v14, %v2820_v44  ;;  %v3592_v5 = vmax.f32 %v3590_v55, %v3591_v40  ;;  %v3586_v59 = vrot.slane %v3585_v31, 1 }
 0x2e4   :  { %v2910_v30 = vpop.f32.mrf.mxu1 }
 0x2e5   :  { %3505 = vst [vmem:[%s5325_s3 + $0x1d0] sm:$0xff] %v2909_v57  ;;  %v3693_v22 = vmax.f32 %v2903_v11, %v2909_v57  ;;  %v2911_v3 = vadd.f32 %v2910_v30, %v2822_v16  ;;  %v3593_v21 = vrot.slane %v3592_v5, 1  ;;  %v3587_v49 = vmax.f32 %v3585_v31, %v3586_v59 }
 0x2e6   :  { %v1269_v11 = vrot.slane %v5079_v18, %v1236_v4 }
 0x2e7   :  { %v3694_v17 = vrot.slane %v3693_v22, 4  ;;  %3506 = vst [vmem:[%s5325_s3 + $0x1d8] sm:$0xff] %v2911_v3  ;;  %v3700_v51 = vmax.f32 %v2905_v1, %v2911_v3  ;;  %v3594_v19 = vmax.f32 %v3592_v5, %v3593_v21 }
 0x2e9   :  { %v3695_v32 = vmax.f32 %v3693_v22, %v3694_v17  ;;  %v3701_v50 = vrot.slane %v3700_v51, 4  ;;  %v3802_v28 = vcombine.low %v3587_v49, %v3594_v19 }
 0x2eb   :  { %v3696_v20 = vrot.slane %v3695_v32, 2  ;;  %v3702_v47 = vmax.f32 %v3700_v51, %v3701_v50  ;;  %v3816_v37 = vrot.slane %v3802_v28, %v4604_v56 }
 0x2ed   :  { %v3697_v26 = vmax.f32 %v3695_v32, %v3696_v20  ;;  %v3703_v62 = vrot.slane %v3702_v47, 2  ;;  %v3817_v60 = vcombine.low %v3809_v42, %v3816_v37 }
 0x2ef   :  { %v3698_v48 = vrot.slane %v3697_v26, 1  ;;  %v3704_v38 = vmax.f32 %v3702_v47, %v3703_v62 }
 0x2f1   :  { %v3705_v39 = vrot.slane %v3704_v38, 1  ;;  %v3699_v53 = vmax.f32 %v3697_v26, %v3698_v48 }
 0x2f3   :  { %v3706_v9 = vmax.f32 %v3704_v38, %v3705_v39 }
 0x2f5   :  { %v3870_v10 = vcombine.low %v3699_v53, %v3706_v9 }
 0x2f7   :  { %v3884_v63 = vrot.slane %v3870_v10, %v4604_v56 }
 0x2f9   :  { %v3885_v34 = vcombine.low %v3877_v23, %v3884_v63 }
 0x2fb   :  { %v3925_v61 = vrot.slane %v3885_v34, 7 }
 0x2fd   :  { %v3926_v15 = vsel %vm3908_vm1, %v3925_v61, %v3817_v60 }
 0x2fe   :  { %v3927_v25 = vsel %vm3910_vm2, %v3925_v61, %v3926_v15 }
 0x2ff   :  { %v3928_v13 = vsel %vm3912_vm3, %v3925_v61, %v3927_v25 }
 0x300   :  { %v3929_v54 = vsel %vm3914_vm4, %v3925_v61, %v3928_v13 }
 0x301   :  { %3943 = vst [vmem:[%s5326_s4 + $0x10] sm:$0xff] %v3929_v54 }
 0x315   :  { %v2979_v12 = vpop.f32.mrf.mxu0 }
 0x316   :  { %v3068_v6 = vpop.f32.mrf.mxu1  ;;  %v2980_v55 = vadd.f32 %v2979_v12, %v1269_v11 }
 0x317   :  { %v2981_v43 = vpop.f32.mrf.mxu0 }
 0x318   :  { %v3070_v33 = vpop.f32.mrf.mxu1  ;;  %v2982_v1 = vadd.f32 %v2981_v43, %v1273_v8  ;;  %v3069_v41 = vadd.f32 %v3068_v6, %v2980_v55 }
 0x31a   :  { %v3071_v14 = vadd.f32 %v3070_v33, %v2982_v1 }
 0x31b   :  { %v2985_v36 = vpop.f32.mrf.mxu0 }
 0x31c   :  { %v2986_v40 = vadd.f32 %v2985_v36, %v1269_v11 }
 0x31d   :  { %v2987_v45 = vpop.f32.mrf.mxu0 }
 0x31e   :  { %v3074_v24 = vpop.f32.mrf.mxu1  ;;  %v2988_v22 = vadd.f32 %v2987_v45, %v1273_v8 }
 0x31f   :  { %v3075_v2 = vadd.f32 %v3074_v24, %v2986_v40 }
 0x320   :  { %v3076_v29 = vpop.f32.mrf.mxu1 }
 0x321   :  { %v2991_v27 = vpop.f32.mrf.mxu0  ;;  %v3077_v17 = vadd.f32 %v3076_v29, %v2988_v22 }
 0x322   :  { %v2992_v18 = vadd.f32 %v2991_v27, %v1269_v11 }
 0x323   :  { %v2993_v0 = vpop.f32.mrf.mxu0 }
 0x324   :  { %v3080_v30 = vpop.f32.mrf.mxu1  ;;  %v2994_v31 = vadd.f32 %v2993_v0, %v1273_v8 }
 0x325   :  { %v3081_v20 = vadd.f32 %v3080_v30, %v2992_v18  ;;  %v4054_v18 = vld [vmem:[#allocation4 + $0x8] sm:$0xff] }
 0x326   :  { %v3082_v3 = vpop.f32.mrf.mxu1 }
 0x327   :  { %v2997_v7 = vpop.f32.mrf.mxu0  ;;  %v3083_v48 = vadd.f32 %v3082_v3, %v2994_v31  ;;  %v1277_v3 = vrot.slane %v4054_v18, %v1244_v46 }
 0x328   :  { %v2998_v59 = vadd.f32 %v2997_v7, %v1269_v11 }
 0x329   :  { %v2999_v44 = vpop.f32.mrf.mxu0 }
 0x32a   :  { %v3086_v47 = vpop.f32.mrf.mxu1  ;;  %v3000_v49 = vadd.f32 %v2999_v44, %v1273_v8 }
 0x32b   :  { %v3087_v23 = vadd.f32 %v3086_v47, %v2998_v59 }
 0x32c   :  { %v3088_v9 = vpop.f32.mrf.mxu1 }
 0x32d   :  { %v3157_v16 = vpop.f32.mrf.mxu0  ;;  %v3089_v34 = vadd.f32 %v3088_v9, %v3000_v49 }
 0x32e   :  { %v3158_v57 = vadd.f32 %v3157_v16, %v3069_v41 }
 0x32f   :  { %v3159_v58 = vpop.f32.mrf.mxu0 }
 0x330   :  { %3459 = vst [vmem:[%s5325_s3 + $0x60] sm:$0xff] %v3158_v57  ;;  %v3160_v4 = vadd.f32 %v3159_v58, %v3071_v14 }
 0x332   :  { %3460 = vst [vmem:[%s5325_s3 + $0x68] sm:$0xff] %v3160_v4  ;;  %v3163_v5 = vpop.f32.mrf.mxu0 }
 0x333   :  { %v3164_v51 = vadd.f32 %v3163_v5, %v3075_v2 }
 0x334   :  { %v3165_v32 = vpop.f32.mrf.mxu0 }
 0x335   :  { %3475 = vst [vmem:[%s5325_s3 + $0xe0] sm:$0xff] %v3164_v51  ;;  %v3595_v50 = vmax.f32 %v3158_v57, %v3164_v51  ;;  %v3166_v21 = vadd.f32 %v3165_v32, %v3077_v17  ;;  %v1281_v17 = vrot.slane %v4054_v18, %v1248_v35 }
 0x337   :  { %v3596_v26 = vrot.slane %v3595_v50, 4  ;;  %3476 = vst [vmem:[%s5325_s3 + $0xe8] sm:$0xff] %v3166_v21  ;;  %v3602_v62 = vmax.f32 %v3160_v4, %v3166_v21  ;;  %v3169_v19 = vpop.f32.mrf.mxu0 }
 0x338   :  { %v3170_v38 = vadd.f32 %v3169_v19, %v3081_v20 }
 0x339   :  { %v3597_v39 = vmax.f32 %v3595_v50, %v3596_v26  ;;  %v3603_v28 = vrot.slane %v3602_v62, 4  ;;  %v3171_v53 = vpop.f32.mrf.mxu0 }
 0x33a   :  { %3491 = vst [vmem:[%s5325_s3 + $0x160] sm:$0xff] %v3170_v38  ;;  %v3172_v10 = vadd.f32 %v3171_v53, %v3083_v48 }
 0x33b   :  { %v3598_v37 = vrot.slane %v3597_v39, 2  ;;  %v3604_v63 = vmax.f32 %v3602_v62, %v3603_v28 }
 0x33c   :  { %3492 = vst [vmem:[%s5325_s3 + $0x168] sm:$0xff] %v3172_v10  ;;  %v3175_v42 = vpop.f32.mrf.mxu0 }
 0x33d   :  { %v3599_v60 = vmax.f32 %v3597_v39, %v3598_v37  ;;  %v3605_v61 = vrot.slane %v3604_v63, 2  ;;  %v3176_v15 = vadd.f32 %v3175_v42, %v3087_v23 }
 0x33e   :  { %v3177_v25 = vpop.f32.mrf.mxu0 }
 0x33f   :  { %v3600_v13 = vrot.slane %v3599_v60, 1  ;;  %v3606_v54 = vmax.f32 %v3604_v63, %v3605_v61  ;;  %3507 = vst [vmem:[%s5325_s3 + $0x1e0] sm:$0xff] %v3176_v15  ;;  %v3707_v12 = vmax.f32 %v3170_v38, %v3176_v15  ;;  %v3178_v43 = vadd.f32 %v3177_v25, %v3089_v34 }
 0x341   :  { %v3607_v36 = vrot.slane %v3606_v54, 1  ;;  %v3708_v45 = vrot.slane %v3707_v12, 4  ;;  %3508 = vst [vmem:[%s5325_s3 + $0x1e8] sm:$0xff] %v3178_v43  ;;  %v3714_v6 = vmax.f32 %v3172_v10, %v3178_v43  ;;  %v5265_v27 = vmax.f32 %v3599_v60, %v3600_v13 }
 0x343   :  { %v5267_v33 = vmax.f32 %v3606_v54, %v3607_v36  ;;  %v3709_v0 = vmax.f32 %v3707_v12, %v3708_v45  ;;  %v3715_v11 = vrot.slane %v3714_v6, 4 }
 0x345   :  { %v3818_v8 = vcombine.low %v5265_v27, %v5267_v33  ;;  %v3710_v24 = vrot.slane %v3709_v0, 2  ;;  %v3716_v7 = vmax.f32 %v3714_v6, %v3715_v11 }
 0x347   :  { %v3711_v55 = vmax.f32 %v3709_v0, %v3710_v24  ;;  %v3717_v44 = vrot.slane %v3716_v7, 2 }
 0x349   :  { %v3712_v1 = vrot.slane %v3711_v55, 1  ;;  %v3718_v29 = vmax.f32 %v3716_v7, %v3717_v44 }
 0x34b   :  { %v3719_v41 = vrot.slane %v3718_v29, 1  ;;  %v5271_v16 = vmax.f32 %v3711_v55, %v3712_v1 }
 0x34d   :  { %v5273_v14 = vmax.f32 %v3718_v29, %v3719_v41 }
 0x34f   :  { %v3886_v40 = vcombine.low %v5271_v16, %v5273_v14 }
 0x361   :  { %v3246_v57 = vpop.f32.mrf.mxu1 }
 0x362   :  { %v3247_v31 = vadd.f32 %v3246_v57, %v1277_v3 }
 0x363   :  { %v3248_v30 = vpop.f32.mrf.mxu1 }
 0x364   :  { %v3249_v21 = vadd.f32 %v3248_v30, %v1281_v17 }
 0x366   :  { %v3252_v58 = vpop.f32.mrf.mxu1 }
 0x367   :  { %v3253_v26 = vadd.f32 %v3252_v58, %v1277_v3 }
 0x368   :  { %v3254_v22 = vpop.f32.mrf.mxu1 }
 0x369   :  { %v3255_v49 = vadd.f32 %v3254_v22, %v1281_v17 }
 0x36b   :  { %v3258_v4 = vpop.f32.mrf.mxu1 }
 0x36c   :  { %v3259_v28 = vadd.f32 %v3258_v4, %v1277_v3 }
 0x36d   :  { %v3260_v2 = vpop.f32.mrf.mxu1 }
 0x36e   :  { %v3261_v37 = vadd.f32 %v3260_v2, %v1281_v17 }
 0x370   :  { %v3264_v5 = vpop.f32.mrf.mxu1 }
 0x371   :  { %v3265_v60 = vadd.f32 %v3264_v5, %v1277_v3 }
 0x372   :  { %v3266_v51 = vpop.f32.mrf.mxu1 }
 0x373   :  { %v3267_v43 = vadd.f32 %v3266_v51, %v1281_v17 }
 0x375   :  { %v3335_v32 = vpop.f32.mrf.mxu0 }
 0x376   :  { %v3424_v50 = vpop.f32.mrf.mxu1  ;;  %v3336_v20 = vadd.f32 %v3335_v32, %v3247_v31 }
 0x377   :  { %v3337_v47 = vpop.f32.mrf.mxu0 }
 0x378   :  { %v3426_v59 = vpop.f32.mrf.mxu1  ;;  %v3425_v62 = vadd.f32 %v3424_v50, %v3336_v20  ;;  %v3338_v19 = vadd.f32 %v3337_v47, %v3249_v21 }
 0x379   :  { %v3341_v48 = vpop.f32.mrf.mxu0 }
 0x37a   :  { %v3430_v38 = vpop.f32.mrf.mxu1  ;;  %3461 = vst [vmem:[%s5325_s3 + $0x70] sm:$0xff] %v3425_v62  ;;  %v3427_v52 = vadd.f32 %v3426_v59, %v3338_v19  ;;  %v3342_v46 = vadd.f32 %v3341_v48, %v3253_v26 }
 0x37b   :  { %v3343_v35 = vpop.f32.mrf.mxu0 }
 0x37c   :  { %v3432_v39 = vpop.f32.mrf.mxu1  ;;  %3462 = vst [vmem:[%s5325_s3 + $0x78] sm:$0xff] %v3427_v52  ;;  %v3431_v53 = vadd.f32 %v3430_v38, %v3342_v46  ;;  %v3344_v9 = vadd.f32 %v3343_v35, %v3255_v49 }
 0x37d   :  { %v3347_v10 = vpop.f32.mrf.mxu0 }
 0x37e   :  { %v3436_v23 = vpop.f32.mrf.mxu1  ;;  %3477 = vst [vmem:[%s5325_s3 + $0xf0] sm:$0xff] %v3431_v53  ;;  %v3609_v63 = vmax.f32 %v3425_v62, %v3431_v53  ;;  %v3433_v42 = vadd.f32 %v3432_v39, %v3344_v9  ;;  %v3348_v34 = vadd.f32 %v3347_v10, %v3259_v28  ;;  %v3826_v39 = vrot.slane %v3818_v8, %v4604_v56 }
 0x37f   :  { %v3349_v61 = vpop.f32.mrf.mxu0 }
 0x380   :  { %v3438_v15 = vpop.f32.mrf.mxu1  ;;  %v3610_v25 = vrot.slane %v3609_v63, 4  ;;  %3478 = vst [vmem:[%s5325_s3 + $0xf8] sm:$0xff] %v3433_v42  ;;  %v3616_v13 = vmax.f32 %v3427_v52, %v3433_v42  ;;  %v3437_v54 = vadd.f32 %v3436_v23, %v3348_v34  ;;  %v3350_v12 = vadd.f32 %v3349_v61, %v3261_v37 }
 0x381   :  { %v3353_v36 = vpop.f32.mrf.mxu0  ;;  %v3894_v52 = vrot.slane %v3886_v40, %v4604_v56 }
 0x382   :  { %v3442_v45 = vpop.f32.mrf.mxu1  ;;  %v3611_v6 = vmax.f32 %v3609_v63, %v3610_v25  ;;  %v3617_v0 = vrot.slane %v3616_v13, 4  ;;  %3493 = vst [vmem:[%s5325_s3 + $0x170] sm:$0xff] %v3437_v54  ;;  %v3439_v11 = vadd.f32 %v3438_v15, %v3350_v12  ;;  %v3354_v24 = vadd.f32 %v3353_v36, %v3265_v60 }
 0x383   :  { %v3355_v7 = vpop.f32.mrf.mxu0 }
 0x384   :  { %v3618_v55 = vmax.f32 %v3616_v13, %v3617_v0  ;;  %3494 = vst [vmem:[%s5325_s3 + $0x178] sm:$0xff] %v3439_v11  ;;  %v3443_v44 = vadd.f32 %v3442_v45, %v3354_v24  ;;  %v3356_v1 = vadd.f32 %v3355_v7, %v3267_v43  ;;  %v3444_v29 = vpop.f32.mrf.mxu1  ;;  %v3612_v41 = vrot.slane %v3611_v6, 2 }
 0x386   :  { %v3619_v57 = vrot.slane %v3618_v55, 2  ;;  %3509 = vst [vmem:[%s5325_s3 + $0x1f0] sm:$0xff] %v3443_v44  ;;  %v3721_v30 = vmax.f32 %v3437_v54, %v3443_v44  ;;  %v3445_v58 = vadd.f32 %v3444_v29, %v3356_v1  ;;  %v3613_v18 = vmax.f32 %v3611_v6, %v3612_v41 }
 0x388   :  { %v3620_v22 = vmax.f32 %v3618_v55, %v3619_v57  ;;  %v3722_v4 = vrot.slane %v3721_v30, 4  ;;  %3510 = vst [vmem:[%s5325_s3 + $0x1f8] sm:$0xff] %v3445_v58  ;;  %v3728_v2 = vmax.f32 %v3439_v11, %v3445_v58  ;;  %v3614_v32 = vrot.slane %v3613_v18, 1 }
 0x38a   :  { %v3723_v3 = vmax.f32 %v3721_v30, %v3722_v4  ;;  %v3729_v5 = vrot.slane %v3728_v2, 4  ;;  %v3621_v17 = vrot.slane %v3620_v22, 1  ;;  %v3615_v26 = vmax.f32 %v3613_v18, %v3614_v32 }
 0x38c   :  { %v3724_v51 = vrot.slane %v3723_v3, 2  ;;  %v3730_v31 = vmax.f32 %v3728_v2, %v3729_v5  ;;  %v3622_v20 = vmax.f32 %v3620_v22, %v3621_v17 }
 0x38e   :  { %v3725_v50 = vmax.f32 %v3723_v3, %v3724_v51  ;;  %v3731_v21 = vrot.slane %v3730_v31, 2  ;;  %v3819_v19 = vcombine.low %v3615_v26, %v3622_v20 }
 0x390   :  { %v3726_v47 = vrot.slane %v3725_v50, 1  ;;  %v3732_v59 = vmax.f32 %v3730_v31, %v3731_v21  ;;  %v3833_v46 = vrot.slane %v3819_v19, %v4604_v56 }
 0x392   :  { %v3733_v62 = vrot.slane %v3732_v59, 1  ;;  %v3727_v48 = vmax.f32 %v3725_v50, %v3726_v47  ;;  %v3834_v53 = vcombine.low %v3826_v39, %v3833_v46 }
 0x394   :  { %v3734_v38 = vmax.f32 %v3732_v59, %v3733_v62 }
 0x396   :  { %v3887_v49 = vcombine.low %v3727_v48, %v3734_v38 }
 0x398   :  { %v3901_v35 = vrot.slane %v3887_v49, %v4604_v56 }
 0x39a   :  { %v3902_v28 = vcombine.low %v3894_v52, %v3901_v35 }
 0x39c   :  { %v3932_v9 = vrot.slane %v3902_v28, 7 }
 0x39e   :  { %v3933_v10 = vsel %vm3908_vm1, %v3932_v9, %v3834_v53 }
 0x39f   :  { %v3934_v23 = vsel %vm3910_vm2, %v3932_v9, %v3933_v10 }
 0x3a0   :  { %v3935_v37 = vsel %vm3912_vm3, %v3932_v9, %v3934_v23 }
 0x3a1   :  { %v3936_v16 = vsel %vm3914_vm4, %v3932_v9, %v3935_v37 }
 0x3a2   :  { %3944 = vst [vmem:[%s5326_s4 + $0x18] sm:$0xff] %v3936_v16 }
 0x3a3   :  { %3953 = vsyncpa [#allocation3], 1 }
 0x3a4   :  { %3954 = vsyncpa [#allocation5], 1 }

// kernel: sparse_autoencoder9_forward.3
= control target key start
LH: loop header
LB: loop body
LE: loop exit
PB: predicated region body
PF: predicated region fallthrough
CT: control target
= control target key end

     0   :  { %s8822_s2 = inlined_call_operand.vmem [shape: f32[2048,640], index: 2, kind: input, shape index: {}]   ;;  %s8823_s1 = inlined_call_operand.vmem [shape: f32[1,2048], index: 1, kind: input, shape index: {}]   ;;  %s8824_s0 = inlined_call_operand.vmem [shape: f32[32,2048], index: 0, kind: input, shape index: {}]   ;;  %s8825_s3 = inlined_call_operand.vmem [shape: f32[32,640], index: 3, kind: output, shape index: {}]  }
   0x1   :  { %v302_v0 = vld [vmem:[%s8822_s2 + $0x260] sm:$0xff]  ;;  %v301_v2 = vld [vmem:[%s8822_s2 + $0x258] sm:$0xff]  ;;  %v296_v6 = vld [vmem:[%s8822_s2 + $0x230] sm:$0xff] }
   0x2   :  { %v462_v1 = vld [vmem:[%s8822_s2 + $0x760] sm:$0xff]  ;;  %1506 = vmatprep.subr.mxu0 %v302_v0  ;;  %v461_v3 = vld [vmem:[%s8822_s2 + $0x758] sm:$0xff]  ;;  %v456_v7 = vld [vmem:[%s8822_s2 + $0x730] sm:$0xff] }
   0x3   :  { %1595 = vmatprep.subr.mxu1 %v462_v1  ;;  %v297_v4 = vld [vmem:[%s8822_s2 + $0x238] sm:$0xff]  ;;  %1507 = vmatpush1.msra.mxu0 %v301_v2  ;;  %v292_v8 = vld [vmem:[%s8822_s2 + $0x210] sm:$0xff]  ;;  %v291_v10 = vld [vmem:[%s8822_s2 + $0x208] sm:$0xff] }
   0x4   :  { %v457_v5 = vld [vmem:[%s8822_s2 + $0x738] sm:$0xff]  ;;  %1596 = vmatpush1.msra.mxu1 %v461_v3  ;;  %1508 = vmatprep.subr.mxu0 %v297_v4  ;;  %v452_v9 = vld [vmem:[%s8822_s2 + $0x710] sm:$0xff]  ;;  %v451_v11 = vld [vmem:[%s8822_s2 + $0x708] sm:$0xff] }
   0x5   :  { %1597 = vmatprep.subr.mxu1 %v457_v5  ;;  %1509 = vmatpush1.msra.mxu0 %v296_v6  ;;  %v287_v12 = vld [vmem:[%s8822_s2 + $0x1e8] sm:$0xff]  ;;  %v286_v14 = vld [vmem:[%s8822_s2 + $0x1e0] sm:$0xff]  ;;  %v281_v18 = vld [vmem:[%s8822_s2 + $0x1b8] sm:$0xff] }
   0x6   :  { %1598 = vmatpush1.msra.mxu1 %v456_v7  ;;  %v447_v13 = vld [vmem:[%s8822_s2 + $0x6e8] sm:$0xff]  ;;  %1510 = vmatprep.subr.mxu0 %v292_v8  ;;  %v446_v15 = vld [vmem:[%s8822_s2 + $0x6e0] sm:$0xff]  ;;  %v441_v19 = vld [vmem:[%s8822_s2 + $0x6b8] sm:$0xff] }
   0x7   :  { %1599 = vmatprep.subr.mxu1 %v452_v9  ;;  %1511 = vmatpush1.msra.mxu0 %v291_v10  ;;  %v282_v16 = vld [vmem:[%s8822_s2 + $0x1c0] sm:$0xff]  ;;  %v277_v20 = vld [vmem:[%s8822_s2 + $0x198] sm:$0xff]  ;;  %v276_v22 = vld [vmem:[%s8822_s2 + $0x190] sm:$0xff] }
   0x8   :  { %1600 = vmatpush1.msra.mxu1 %v451_v11  ;;  %v442_v17 = vld [vmem:[%s8822_s2 + $0x6c0] sm:$0xff]  ;;  %1512 = vmatprep.subr.mxu0 %v287_v12  ;;  %v437_v21 = vld [vmem:[%s8822_s2 + $0x698] sm:$0xff]  ;;  %v436_v23 = vld [vmem:[%s8822_s2 + $0x690] sm:$0xff] }
   0x9   :  { %1601 = vmatprep.subr.mxu1 %v447_v13  ;;  %1513 = vmatpush1.msra.mxu0 %v286_v14  ;;  %v272_v24 = vld [vmem:[%s8822_s2 + $0x170] sm:$0xff]  ;;  %v271_v26 = vld [vmem:[%s8822_s2 + $0x168] sm:$0xff]  ;;  %v266_v30 = vld [vmem:[%s8822_s2 + $0x140] sm:$0xff] }
   0xa   :  { %1602 = vmatpush1.msra.mxu1 %v446_v15  ;;  %1514 = vmatprep.subr.mxu0 %v282_v16  ;;  %v432_v25 = vld [vmem:[%s8822_s2 + $0x670] sm:$0xff]  ;;  %v431_v27 = vld [vmem:[%s8822_s2 + $0x668] sm:$0xff]  ;;  %v426_v31 = vld [vmem:[%s8822_s2 + $0x640] sm:$0xff] }
   0xb   :  { %1603 = vmatprep.subr.mxu1 %v442_v17  ;;  %1515 = vmatpush1.msra.mxu0 %v281_v18  ;;  %v267_v28 = vld [vmem:[%s8822_s2 + $0x148] sm:$0xff]  ;;  %v262_v32 = vld [vmem:[%s8822_s2 + $0x120] sm:$0xff]  ;;  %v261_v34 = vld [vmem:[%s8822_s2 + $0x118] sm:$0xff] }
   0xc   :  { %1604 = vmatpush1.msra.mxu1 %v441_v19  ;;  %1516 = vmatprep.subr.mxu0 %v277_v20  ;;  %v427_v29 = vld [vmem:[%s8822_s2 + $0x648] sm:$0xff]  ;;  %v422_v33 = vld [vmem:[%s8822_s2 + $0x620] sm:$0xff]  ;;  %v421_v35 = vld [vmem:[%s8822_s2 + $0x618] sm:$0xff] }
   0xd   :  { %1605 = vmatprep.subr.mxu1 %v437_v21  ;;  %1517 = vmatpush1.msra.mxu0 %v276_v22  ;;  %v257_v36 = vld [vmem:[%s8822_s2 + $0xf8] sm:$0xff]  ;;  %v256_v38 = vld [vmem:[%s8822_s2 + $0xf0] sm:$0xff]  ;;  %v251_v42 = vld [vmem:[%s8822_s2 + $0xc8] sm:$0xff] }
   0xe   :  { %1606 = vmatpush1.msra.mxu1 %v436_v23  ;;  %1518 = vmatprep.subr.mxu0 %v272_v24  ;;  %v417_v37 = vld [vmem:[%s8822_s2 + $0x5f8] sm:$0xff]  ;;  %v416_v39 = vld [vmem:[%s8822_s2 + $0x5f0] sm:$0xff]  ;;  %v411_v43 = vld [vmem:[%s8822_s2 + $0x5c8] sm:$0xff] }
   0xf   :  { %1607 = vmatprep.subr.mxu1 %v432_v25  ;;  %1519 = vmatpush1.msra.mxu0 %v271_v26  ;;  %v252_v40 = vld [vmem:[%s8822_s2 + $0xd0] sm:$0xff]  ;;  %v247_v44 = vld [vmem:[%s8822_s2 + $0xa8] sm:$0xff]  ;;  %v246_v46 = vld [vmem:[%s8822_s2 + $0xa0] sm:$0xff] }
  0x10   :  { %1608 = vmatpush1.msra.mxu1 %v431_v27  ;;  %1520 = vmatprep.subr.mxu0 %v267_v28  ;;  %v412_v41 = vld [vmem:[%s8822_s2 + $0x5d0] sm:$0xff]  ;;  %v407_v45 = vld [vmem:[%s8822_s2 + $0x5a8] sm:$0xff]  ;;  %v406_v47 = vld [vmem:[%s8822_s2 + $0x5a0] sm:$0xff] }
  0x11   :  { %1609 = vmatprep.subr.mxu1 %v427_v29  ;;  %1521 = vmatpush1.msra.mxu0 %v266_v30  ;;  %v242_v48 = vld [vmem:[%s8822_s2 + $0x80] sm:$0xff]  ;;  %v241_v50 = vld [vmem:[%s8822_s2 + $0x78] sm:$0xff]  ;;  %v236_v54 = vld [vmem:[%s8822_s2 + $0x50] sm:$0xff]  ;;  %v82_v30 = vlaneseq }
  0x12   :  { %1610 = vmatpush1.msra.mxu1 %v426_v31  ;;  %1522 = vmatprep.subr.mxu0 %v262_v32  ;;  %v402_v49 = vld [vmem:[%s8822_s2 + $0x580] sm:$0xff]  ;;  %v401_v51 = vld [vmem:[%s8822_s2 + $0x578] sm:$0xff]  ;;  %v396_v55 = vld [vmem:[%s8822_s2 + $0x550] sm:$0xff] }
  0x13   :  { %1611 = vmatprep.subr.mxu1 %v422_v33  ;;  %1523 = vmatpush1.msra.mxu0 %v261_v34  ;;  %v237_v52 = vld [vmem:[%s8822_s2 + $0x58] sm:$0xff]  ;;  %v232_v56 = vld [vmem:[%s8822_s2 + $0x30] sm:$0xff]  ;;  %v231_v58 = vld [vmem:[%s8822_s2 + $0x28] sm:$0xff] }
  0x14   :  { %1612 = vmatpush1.msra.mxu1 %v421_v35  ;;  %1524 = vmatprep.subr.mxu0 %v257_v36  ;;  %v397_v53 = vld [vmem:[%s8822_s2 + $0x558] sm:$0xff]  ;;  %v392_v57 = vld [vmem:[%s8822_s2 + $0x530] sm:$0xff]  ;;  %v391_v59 = vld [vmem:[%s8822_s2 + $0x528] sm:$0xff] }
  0x15   :  { %1613 = vmatprep.subr.mxu1 %v417_v37  ;;  %1525 = vmatpush1.msra.mxu0 %v256_v38  ;;  %v227_v60 = vld [vmem:[%s8822_s2 + $0x8] sm:$0xff]  ;;  %v226_v62 = vld [vmem:[%s8822_s2] sm:$0xff]  ;;  %v381_v2 = vld [vmem:[%s8822_s2 + $0x4d8] sm:$0xff] }
  0x16   :  { %1614 = vmatpush1.msra.mxu1 %v416_v39  ;;  %1526 = vmatprep.subr.mxu0 %v252_v40  ;;  %v387_v61 = vld [vmem:[%s8822_s2 + $0x508] sm:$0xff]  ;;  %v386_v63 = vld [vmem:[%s8822_s2 + $0x500] sm:$0xff]  ;;  %v541_v3 = vld [vmem:[%s8822_s2 + $0x9d8] sm:$0xff]  ;;  %v4312_v39 = vshrl.u32 %v82_v30, 7 }
  0x17   :  { %1615 = vmatprep.subr.mxu1 %v412_v41  ;;  %1527 = vmatpush1.msra.mxu0 %v251_v42  ;;  %v382_v0 = vld [vmem:[%s8822_s2 + $0x4e0] sm:$0xff]  ;;  %v377_v4 = vld [vmem:[%s8822_s2 + $0x4b8] sm:$0xff]  ;;  %v376_v6 = vld [vmem:[%s8822_s2 + $0x4b0] sm:$0xff] }
  0x18   :  { %1616 = vmatpush1.msra.mxu1 %v411_v43  ;;  %1528 = vmatprep.subr.mxu0 %v247_v44  ;;  %v542_v1 = vld [vmem:[%s8822_s2 + $0x9e0] sm:$0xff]  ;;  %v537_v5 = vld [vmem:[%s8822_s2 + $0x9b8] sm:$0xff]  ;;  %v536_v7 = vld [vmem:[%s8822_s2 + $0x9b0] sm:$0xff] }
  0x19   :  { %1617 = vmatprep.subr.mxu1 %v407_v45  ;;  %1529 = vmatpush1.msra.mxu0 %v246_v46  ;;  %v372_v8 = vld [vmem:[%s8822_s2 + $0x490] sm:$0xff]  ;;  %v371_v10 = vld [vmem:[%s8822_s2 + $0x488] sm:$0xff]  ;;  %v366_v14 = vld [vmem:[%s8822_s2 + $0x460] sm:$0xff] }
  0x1a   :  { %1618 = vmatpush1.msra.mxu1 %v406_v47  ;;  %1530 = vmatprep.subr.mxu0 %v242_v48  ;;  %v532_v9 = vld [vmem:[%s8822_s2 + $0x990] sm:$0xff]  ;;  %v531_v11 = vld [vmem:[%s8822_s2 + $0x988] sm:$0xff]  ;;  %v526_v15 = vld [vmem:[%s8822_s2 + $0x960] sm:$0xff]  ;;  %v88_v48 = vsub.s32 1, %v4312_v39 }
  0x1b   :  { %1619 = vmatprep.subr.mxu1 %v402_v49  ;;  %1531 = vmatpush1.msra.mxu0 %v241_v50  ;;  %v367_v12 = vld [vmem:[%s8822_s2 + $0x468] sm:$0xff]  ;;  %v362_v16 = vld [vmem:[%s8822_s2 + $0x440] sm:$0xff]  ;;  %v361_v18 = vld [vmem:[%s8822_s2 + $0x438] sm:$0xff] }
  0x1c   :  { %1620 = vmatpush1.msra.mxu1 %v401_v51  ;;  %1532 = vmatprep.subr.mxu0 %v237_v52  ;;  %v527_v13 = vld [vmem:[%s8822_s2 + $0x968] sm:$0xff]  ;;  %v522_v17 = vld [vmem:[%s8822_s2 + $0x940] sm:$0xff]  ;;  %v521_v19 = vld [vmem:[%s8822_s2 + $0x938] sm:$0xff]  ;;  %v96_v52 = vsub.s32 3, %v4312_v39 }
  0x1d   :  { %1621 = vmatprep.subr.mxu1 %v397_v53  ;;  %1533 = vmatpush1.msra.mxu0 %v236_v54  ;;  %v357_v20 = vld [vmem:[%s8822_s2 + $0x418] sm:$0xff]  ;;  %v356_v22 = vld [vmem:[%s8822_s2 + $0x410] sm:$0xff]  ;;  %v351_v26 = vld [vmem:[%s8822_s2 + $0x3e8] sm:$0xff] }
  0x1e   :  { %1622 = vmatpush1.msra.mxu1 %v396_v55  ;;  %1534 = vmatprep.subr.mxu0 %v232_v56  ;;  %v517_v21 = vld [vmem:[%s8822_s2 + $0x918] sm:$0xff]  ;;  %v516_v23 = vld [vmem:[%s8822_s2 + $0x910] sm:$0xff]  ;;  %v511_v27 = vld [vmem:[%s8822_s2 + $0x8e8] sm:$0xff]  ;;  %v84_v55 = vsub.s32 0, %v4312_v39  ;;  %v92_v56 = vsub.s32 2, %v4312_v39 }
  0x1f   :  { %1623 = vmatprep.subr.mxu1 %v392_v57  ;;  %1535 = vmatpush1.msra.mxu0 %v231_v58  ;;  %v352_v24 = vld [vmem:[%s8822_s2 + $0x3f0] sm:$0xff]  ;;  %v347_v28 = vld [vmem:[%s8822_s2 + $0x3c8] sm:$0xff]  ;;  %v346_v31 = vld [vmem:[%s8822_s2 + $0x3c0] sm:$0xff] }
  0x20   :  { %1624 = vmatpush1.msra.mxu1 %v391_v59  ;;  %1536 = vmatprep.subr.mxu0 %v227_v60  ;;  %v512_v25 = vld [vmem:[%s8822_s2 + $0x8f0] sm:$0xff]  ;;  %v507_v29 = vld [vmem:[%s8822_s2 + $0x8c8] sm:$0xff]  ;;  %v506_v32 = vld [vmem:[%s8822_s2 + $0x8c0] sm:$0xff] }
  0x21   :  { %1625 = vmatprep.subr.mxu1 %v387_v61  ;;  %1537 = vmatpush1.msra.mxu0 %v226_v62  ;;  %v342_v33 = vld [vmem:[%s8822_s2 + $0x3a0] sm:$0xff]  ;;  %v341_v35 = vld [vmem:[%s8822_s2 + $0x398] sm:$0xff]  ;;  %v336_v40 = vld [vmem:[%s8822_s2 + $0x370] sm:$0xff] }
  0x22   :  { %1626 = vmatpush1.msra.mxu1 %v386_v63  ;;  %1538 = vmatprep.subr.mxu0 %v382_v0  ;;  %v502_v34 = vld [vmem:[%s8822_s2 + $0x8a0] sm:$0xff]  ;;  %v501_v36 = vld [vmem:[%s8822_s2 + $0x898] sm:$0xff]  ;;  %v496_v41 = vld [vmem:[%s8822_s2 + $0x870] sm:$0xff] }
  0x23   :  { %1627 = vmatprep.subr.mxu1 %v542_v1  ;;  %1539 = vmatpush2.msra.mxu0 %v381_v2  ;;  %v337_v37 = vld [vmem:[%s8822_s2 + $0x378] sm:$0xff]  ;;  %v332_v42 = vld [vmem:[%s8822_s2 + $0x350] sm:$0xff]  ;;  %v331_v44 = vld [vmem:[%s8822_s2 + $0x348] sm:$0xff] }
  0x24   :  { %1628 = vmatpush2.msra.mxu1 %v541_v3  ;;  %1540 = vmatprep.subr.mxu0 %v377_v4  ;;  %v497_v38 = vld [vmem:[%s8822_s2 + $0x878] sm:$0xff]  ;;  %v492_v43 = vld [vmem:[%s8822_s2 + $0x850] sm:$0xff]  ;;  %v491_v45 = vld [vmem:[%s8822_s2 + $0x848] sm:$0xff] }
  0x25   :  { %1629 = vmatprep.subr.mxu1 %v537_v5  ;;  %1541 = vmatpush2.msra.mxu0 %v376_v6  ;;  %v327_v46 = vld [vmem:[%s8822_s2 + $0x328] sm:$0xff]  ;;  %v326_v49 = vld [vmem:[%s8822_s2 + $0x320] sm:$0xff]  ;;  %v321_v57 = vld [vmem:[%s8822_s2 + $0x2f8] sm:$0xff] }
  0x26   :  { %1630 = vmatpush2.msra.mxu1 %v536_v7  ;;  %1542 = vmatprep.subr.mxu0 %v372_v8  ;;  %v487_v47 = vld [vmem:[%s8822_s2 + $0x828] sm:$0xff]  ;;  %v486_v50 = vld [vmem:[%s8822_s2 + $0x820] sm:$0xff]  ;;  %v481_v58 = vld [vmem:[%s8822_s2 + $0x7f8] sm:$0xff] }
  0x27   :  { %1631 = vmatprep.subr.mxu1 %v532_v9  ;;  %1543 = vmatpush2.msra.mxu0 %v371_v10  ;;  %v4348_v51 = vld [vmem:[%s8823_s1] sm:$0xff]  ;;  %v317_v59 = vld [vmem:[%s8822_s2 + $0x2d8] sm:$0xff]  ;;  %v316_v61 = vld [vmem:[%s8822_s2 + $0x2d0] sm:$0xff] }
  0x28   :  { %1632 = vmatpush2.msra.mxu1 %v531_v11  ;;  %1544 = vmatprep.subr.mxu0 %v367_v12  ;;  %v322_v53 = vld [vmem:[%s8822_s2 + $0x300] sm:$0xff]  ;;  %v477_v60 = vld [vmem:[%s8822_s2 + $0x7d8] sm:$0xff]  ;;  %v4377_v62 = vrot.slane %v4348_v51, %v88_v48  ;;  %v476_v63 = vld [vmem:[%s8822_s2 + $0x7d0] sm:$0xff]  ;;  %v4391_v2 = vrot.slane %v4348_v51, %v96_v52  ;;  %v4405_v6 = vrot.slane %v4348_v51, %v84_v55 }
  0x29   :  { %1633 = vmatprep.subr.mxu1 %v527_v13  ;;  %1545 = vmatpush2.msra.mxu0 %v366_v14  ;;  %v482_v54 = vld [vmem:[%s8822_s2 + $0x800] sm:$0xff]  ;;  %v312_v0 = vld [vmem:[%s8822_s2 + $0x2b0] sm:$0xff]  ;;  %v15_v1 = vld [vmem:[%s8824_s0 + $0x8] sm:$0xff]  ;;  %v4410_v7 = vrot.slane %v4348_v51, %v92_v56 }
  0x2a   :  { %1634 = vmatpush2.msra.mxu1 %v526_v15  ;;  %1546 = vmatprep.subr.mxu0 %v362_v16  ;;  %v472_v3 = vld [vmem:[%s8822_s2 + $0x7b0] sm:$0xff]  ;;  %v311_v4 = vld [vmem:[%s8822_s2 + $0x2a8] sm:$0xff]  ;;  %v17_v5 = vld [vmem:[%s8824_s0 + $0x18] sm:$0xff]  ;;  %v4428_v13 = vmul.f32 %v4377_v62, %v15_v1 }
  0x2b   :  { %1635 = vmatprep.subr.mxu1 %v522_v17  ;;  %1547 = vmatpush2.msra.mxu0 %v361_v18  ;;  %v471_v8 = vld [vmem:[%s8822_s2 + $0x7a8] sm:$0xff]  ;;  %v14_v9 = vld [vmem:[%s8824_s0] sm:$0xff]  ;;  %v16_v10 = vld [vmem:[%s8824_s0 + $0x10] sm:$0xff]  ;;  %v4434_v15 = vmul.f32 %v4391_v2, %v17_v5 }
  0x2c   :  { %1636 = vmatpush2.msra.mxu1 %v521_v19  ;;  %1548 = vmatprep.subr.mxu0 %v357_v20  ;;  %v307_v11 = vld [vmem:[%s8822_s2 + $0x288] sm:$0xff]  ;;  %8899 = vst [vmem:[#allocation2_spill] sm:$0xff] %v4428_v13  ;;  %v306_v14 = vld [vmem:[%s8822_s2 + $0x280] sm:$0xff]  ;;  %v4440_v17 = vmul.f32 %v4405_v6, %v14_v9  ;;  %v4443_v18 = vmul.f32 %v4410_v7, %v16_v10  ;;  %v736_v1 = vld [vmem:[%s8822_s2 + $0xff0] sm:$0xff] }
  0x2d   :  { %1637 = vmatprep.subr.mxu1 %v517_v21  ;;  %1549 = vmatpush2.msra.mxu0 %v356_v22  ;;  %v467_v12 = vld [vmem:[%s8822_s2 + $0x788] sm:$0xff]  ;;  %8900 = vst [vmem:[#allocation3_spill] sm:$0xff] %v4434_v15  ;;  %v466_v16 = vld [vmem:[%s8822_s2 + $0x780] sm:$0xff]  ;;  %v621_v21 = vld [vmem:[%s8822_s2 + $0xc58] sm:$0xff] }
  0x2e   :  { %1638 = vmatpush2.msra.mxu1 %v516_v23  ;;  %1550 = vmatprep.subr.mxu0 %v352_v24  ;;  %8901 = vst [vmem:[#allocation4_spill] sm:$0xff] %v4440_v17  ;;  %8902 = vst [vmem:[#allocation5_spill] sm:$0xff] %v4443_v18  ;;  %v622_v19 = vld [vmem:[%s8822_s2 + $0xc60] sm:$0xff]  ;;  %v781_v22 = vld [vmem:[%s8822_s2 + $0x1158] sm:$0xff] }
  0x2f   :  { %1639 = vmatprep.subr.mxu1 %v512_v25  ;;  %1551 = vmatpush2.msra.mxu0 %v351_v26  ;;  %v782_v20 = vld [vmem:[%s8822_s2 + $0x1160] sm:$0xff]  ;;  %v617_v23 = vld [vmem:[%s8822_s2 + $0xc38] sm:$0xff]  ;;  %v616_v25 = vld [vmem:[%s8822_s2 + $0xc30] sm:$0xff] }
  0x30   :  { %1640 = vmatpush2.msra.mxu1 %v511_v27  ;;  %1552 = vmatprep.subr.mxu0 %v347_v28  ;;  %v777_v24 = vld [vmem:[%s8822_s2 + $0x1138] sm:$0xff]  ;;  %v776_v26 = vld [vmem:[%s8822_s2 + $0x1130] sm:$0xff]  ;;  %v771_v30 = vld [vmem:[%s8822_s2 + $0x1108] sm:$0xff] }
  0x31   :  { %1641 = vmatprep.subr.mxu1 %v507_v29  ;;  %1553 = vmatpush2.msra.mxu0 %v346_v31  ;;  %v612_v27 = vld [vmem:[%s8822_s2 + $0xc10] sm:$0xff]  ;;  %v611_v29 = vld [vmem:[%s8822_s2 + $0xc08] sm:$0xff] }
  0x32   :  { %1642 = vmatpush2.msra.mxu1 %v506_v32  ;;  %1554 = vmatprep.subr.mxu0 %v342_v33  ;;  %v772_v28 = vld [vmem:[%s8822_s2 + $0x1110] sm:$0xff]  ;;  %v607_v31 = vld [vmem:[%s8822_s2 + $0xbe8] sm:$0xff]  ;;  %v606_v33 = vld [vmem:[%s8822_s2 + $0xbe0] sm:$0xff] }
  0x33   :  { %1643 = vmatprep.subr.mxu1 %v502_v34  ;;  %1555 = vmatpush2.msra.mxu0 %v341_v35  ;;  %v767_v32 = vld [vmem:[%s8822_s2 + $0x10e8] sm:$0xff]  ;;  %v766_v34 = vld [vmem:[%s8822_s2 + $0x10e0] sm:$0xff] }
  0x34   :  { %1644 = vmatpush2.msra.mxu1 %v501_v36  ;;  %1556 = vmatprep.subr.mxu0 %v337_v37  ;;  %v602_v35 = vld [vmem:[%s8822_s2 + $0xbc0] sm:$0xff]  ;;  %v601_v37 = vld [vmem:[%s8822_s2 + $0xbb8] sm:$0xff]  ;;  %v571_v5 = vld [vmem:[%s8822_s2 + $0xac8] sm:$0xff] }
  0x35   :  { %1645 = vmatprep.subr.mxu1 %v497_v38  ;;  %1557 = vmatpush2.msra.mxu0 %v336_v40  ;;  %v762_v36 = vld [vmem:[%s8822_s2 + $0x10c0] sm:$0xff]  ;;  %v761_v38 = vld [vmem:[%s8822_s2 + $0x10b8] sm:$0xff]  ;;  %v567_v9 = vld [vmem:[%s8822_s2 + $0xaa8] sm:$0xff] }
  0x36   :  { %1646 = vmatpush2.msra.mxu1 %v496_v41  ;;  %1558 = vmatprep.subr.mxu0 %v332_v42  ;;  %v597_v40 = vld [vmem:[%s8822_s2 + $0xb98] sm:$0xff]  ;;  %v596_v42 = vld [vmem:[%s8822_s2 + $0xb90] sm:$0xff]  ;;  %v727_v10 = vld [vmem:[%s8822_s2 + $0xfa8] sm:$0xff] }
  0x37   :  { %1647 = vmatprep.subr.mxu1 %v492_v43  ;;  %1559 = vmatpush2.msra.mxu0 %v331_v44  ;;  %v757_v41 = vld [vmem:[%s8822_s2 + $0x1098] sm:$0xff]  ;;  %v756_v43 = vld [vmem:[%s8822_s2 + $0x1090] sm:$0xff] }
  0x38   :  { %1648 = vmatpush2.msra.mxu1 %v491_v45  ;;  %1560 = vmatprep.subr.mxu0 %v327_v46  ;;  %v592_v44 = vld [vmem:[%s8822_s2 + $0xb70] sm:$0xff]  ;;  %v591_v46 = vld [vmem:[%s8822_s2 + $0xb68] sm:$0xff] }
  0x39   :  { %1649 = vmatprep.subr.mxu1 %v487_v47  ;;  %1561 = vmatpush2.msra.mxu0 %v326_v49  ;;  %v752_v45 = vld [vmem:[%s8822_s2 + $0x1070] sm:$0xff]  ;;  %v751_v47 = vld [vmem:[%s8822_s2 + $0x1068] sm:$0xff] }
  0x3a   :  { %1650 = vmatpush2.msra.mxu1 %v486_v50  ;;  %1562 = vmatprep.subr.mxu0 %v322_v53  ;;  %v587_v49 = vld [vmem:[%s8822_s2 + $0xb48] sm:$0xff]  ;;  %v586_v53 = vld [vmem:[%s8822_s2 + $0xb40] sm:$0xff] }
  0x3b   :  { %1651 = vmatprep.subr.mxu1 %v482_v54  ;;  %1563 = vmatpush2.msra.mxu0 %v321_v57  ;;  %v747_v50 = vld [vmem:[%s8822_s2 + $0x1048] sm:$0xff]  ;;  %v746_v54 = vld [vmem:[%s8822_s2 + $0x1040] sm:$0xff] }
  0x3c   :  { %1652 = vmatpush2.msra.mxu1 %v481_v58  ;;  %1564 = vmatprep.subr.mxu0 %v317_v59  ;;  %v582_v57 = vld [vmem:[%s8822_s2 + $0xb20] sm:$0xff]  ;;  %v581_v59 = vld [vmem:[%s8822_s2 + $0xb18] sm:$0xff] }
  0x3d   :  { %1653 = vmatprep.subr.mxu1 %v477_v60  ;;  %1565 = vmatpush2.msra.mxu0 %v316_v61  ;;  %v742_v58 = vld [vmem:[%s8822_s2 + $0x1020] sm:$0xff]  ;;  %v741_v60 = vld [vmem:[%s8822_s2 + $0x1018] sm:$0xff] }
  0x3e   :  { %1654 = vmatpush2.msra.mxu1 %v476_v63  ;;  %1566 = vmatprep.subr.mxu0 %v312_v0  ;;  %v577_v61 = vld [vmem:[%s8822_s2 + $0xaf8] sm:$0xff]  ;;  %v576_v0 = vld [vmem:[%s8822_s2 + $0xaf0] sm:$0xff] }
  0x3f   :  { %1655 = vmatprep.subr.mxu1 %v472_v3  ;;  %1567 = vmatpush2.msra.mxu0 %v311_v4  ;;  %v737_v63 = vld [vmem:[%s8822_s2 + $0xff8] sm:$0xff]  ;;  %v572_v3 = vld [vmem:[%s8822_s2 + $0xad0] sm:$0xff] }
  0x40   :  { %1656 = vmatpush2.msra.mxu1 %v471_v8  ;;  %1568 = vmatprep.subr.mxu0 %v307_v11  ;;  %v732_v4 = vld [vmem:[%s8822_s2 + $0xfd0] sm:$0xff]  ;;  %v731_v8 = vld [vmem:[%s8822_s2 + $0xfc8] sm:$0xff]  ;;  %v566_v11 = vld [vmem:[%s8822_s2 + $0xaa0] sm:$0xff] }
  0x41   :  { %1657 = vmatprep.subr.mxu1 %v467_v12  ;;  %1569 = vmatpush2.msra.mxu0 %v306_v14  ;;  %v726_v12 = vld [vmem:[%s8822_s2 + $0xfa0] sm:$0xff] }
  0x42   :  { %1570 = vmatprep.mubr.f32.mxu0 %v4428_v13  ;;  %1658 = vmatpush2.msra.mxu1 %v466_v16  ;;  %v562_v14 = vld [vmem:[%s8822_s2 + $0xa80] sm:$0xff] }
  0x43   :  { %1659 = vmatprep.mubr.f32.mxu1 %v4434_v15  ;;  %1571 = vmatmul.mubr.f32.vlgmr.msra.gmra.mxu0 %v4440_v17  ;;  %v722_v16 = vld [vmem:[%s8822_s2 + $0xf80] sm:$0xff] }
  0x44   :  { %1660 = vmatmul.mubr.f32.vlgmr.msra.gmra.mxu1 %v4443_v18  ;;  %1684 = vmatprep.subr.mxu0 %v622_v19  ;;  %v561_v19 = vld [vmem:[%s8822_s2 + $0xa78] sm:$0xff] }
  0x45   :  { %1773 = vmatprep.subr.mxu1 %v782_v20  ;;  %1685 = vmatpush1.msra.mxu0 %v621_v21  ;;  %v721_v20 = vld [vmem:[%s8822_s2 + $0xf78] sm:$0xff] }
  0x46   :  { %1774 = vmatpush1.msra.mxu1 %v781_v22  ;;  %1686 = vmatprep.subr.mxu0 %v617_v23  ;;  %v557_v21 = vld [vmem:[%s8822_s2 + $0xa58] sm:$0xff]  ;;  %v556_v23 = vld [vmem:[%s8822_s2 + $0xa50] sm:$0xff] }
  0x47   :  { %1775 = vmatprep.subr.mxu1 %v777_v24  ;;  %1687 = vmatpush1.msra.mxu0 %v616_v25  ;;  %v717_v22 = vld [vmem:[%s8822_s2 + $0xf58] sm:$0xff]  ;;  %v716_v24 = vld [vmem:[%s8822_s2 + $0xf50] sm:$0xff] }
  0x48   :  { %1776 = vmatpush1.msra.mxu1 %v776_v26  ;;  %1688 = vmatprep.subr.mxu0 %v612_v27  ;;  %v552_v25 = vld [vmem:[%s8822_s2 + $0xa30] sm:$0xff]  ;;  %v551_v27 = vld [vmem:[%s8822_s2 + $0xa28] sm:$0xff] }
  0x49   :  { %1777 = vmatprep.subr.mxu1 %v772_v28  ;;  %1689 = vmatpush1.msra.mxu0 %v611_v29  ;;  %v712_v26 = vld [vmem:[%s8822_s2 + $0xf30] sm:$0xff]  ;;  %v711_v28 = vld [vmem:[%s8822_s2 + $0xf28] sm:$0xff] }
  0x4a   :  { %1778 = vmatpush1.msra.mxu1 %v771_v30  ;;  %1690 = vmatprep.subr.mxu0 %v607_v31  ;;  %v547_v29 = vld [vmem:[%s8822_s2 + $0xa08] sm:$0xff]  ;;  %v546_v31 = vld [vmem:[%s8822_s2 + $0xa00] sm:$0xff] }
  0x4b   :  { %1779 = vmatprep.subr.mxu1 %v767_v32  ;;  %1691 = vmatpush1.msra.mxu0 %v606_v33  ;;  %v707_v30 = vld [vmem:[%s8822_s2 + $0xf08] sm:$0xff]  ;;  %v706_v32 = vld [vmem:[%s8822_s2 + $0xf00] sm:$0xff] }
  0x4c   :  { %1780 = vmatpush1.msra.mxu1 %v766_v34  ;;  %1692 = vmatprep.subr.mxu0 %v602_v35  ;;  %v702_v33 = vld [vmem:[%s8822_s2 + $0xee0] sm:$0xff]  ;;  %v701_v35 = vld [vmem:[%s8822_s2 + $0xed8] sm:$0xff] }
  0x4d   :  { %1781 = vmatprep.subr.mxu1 %v762_v36  ;;  %1693 = vmatpush1.msra.mxu0 %v601_v37  ;;  %v862_v34 = vld [vmem:[%s8822_s2 + $0x13e0] sm:$0xff]  ;;  %v861_v36 = vld [vmem:[%s8822_s2 + $0x13d8] sm:$0xff] }
  0x4e   :  { %1782 = vmatpush1.msra.mxu1 %v761_v38  ;;  %1694 = vmatprep.subr.mxu0 %v597_v40  ;;  %v697_v37 = vld [vmem:[%s8822_s2 + $0xeb8] sm:$0xff]  ;;  %v696_v40 = vld [vmem:[%s8822_s2 + $0xeb0] sm:$0xff] }
  0x4f   :  { %1783 = vmatprep.subr.mxu1 %v757_v41  ;;  %1695 = vmatpush1.msra.mxu0 %v596_v42  ;;  %v857_v38 = vld [vmem:[%s8822_s2 + $0x13b8] sm:$0xff]  ;;  %v856_v41 = vld [vmem:[%s8822_s2 + $0x13b0] sm:$0xff] }
  0x50   :  { %1784 = vmatpush1.msra.mxu1 %v756_v43  ;;  %1696 = vmatprep.subr.mxu0 %v592_v44  ;;  %v692_v42 = vld [vmem:[%s8822_s2 + $0xe90] sm:$0xff]  ;;  %v691_v44 = vld [vmem:[%s8822_s2 + $0xe88] sm:$0xff] }
  0x51   :  { %1785 = vmatprep.subr.mxu1 %v752_v45  ;;  %1697 = vmatpush1.msra.mxu0 %v591_v46  ;;  %v852_v43 = vld [vmem:[%s8822_s2 + $0x1390] sm:$0xff]  ;;  %v851_v45 = vld [vmem:[%s8822_s2 + $0x1388] sm:$0xff] }
  0x52   :  { %1786 = vmatpush1.msra.mxu1 %v751_v47  ;;  %1698 = vmatprep.subr.mxu0 %v587_v49  ;;  %v687_v46 = vld [vmem:[%s8822_s2 + $0xe68] sm:$0xff]  ;;  %v686_v49 = vld [vmem:[%s8822_s2 + $0xe60] sm:$0xff] }
  0x53   :  { %1787 = vmatprep.subr.mxu1 %v747_v50  ;;  %1699 = vmatpush1.msra.mxu0 %v586_v53  ;;  %v847_v47 = vld [vmem:[%s8822_s2 + $0x1368] sm:$0xff]  ;;  %v846_v50 = vld [vmem:[%s8822_s2 + $0x1360] sm:$0xff] }
  0x54   :  { %1788 = vmatpush1.msra.mxu1 %v746_v54  ;;  %1700 = vmatprep.subr.mxu0 %v582_v57  ;;  %v682_v53 = vld [vmem:[%s8822_s2 + $0xe40] sm:$0xff]  ;;  %v681_v57 = vld [vmem:[%s8822_s2 + $0xe38] sm:$0xff] }
  0x55   :  { %1789 = vmatprep.subr.mxu1 %v742_v58  ;;  %1701 = vmatpush1.msra.mxu0 %v581_v59  ;;  %v842_v54 = vld [vmem:[%s8822_s2 + $0x1340] sm:$0xff]  ;;  %v841_v58 = vld [vmem:[%s8822_s2 + $0x1338] sm:$0xff] }
  0x56   :  { %1790 = vmatpush1.msra.mxu1 %v741_v60  ;;  %1702 = vmatprep.subr.mxu0 %v577_v61  ;;  %v677_v59 = vld [vmem:[%s8822_s2 + $0xe18] sm:$0xff]  ;;  %v676_v61 = vld [vmem:[%s8822_s2 + $0xe10] sm:$0xff] }
  0x57   :  { %1791 = vmatprep.subr.mxu1 %v737_v63  ;;  %1703 = vmatpush1.msra.mxu0 %v576_v0  ;;  %v837_v60 = vld [vmem:[%s8822_s2 + $0x1318] sm:$0xff]  ;;  %v836_v63 = vld [vmem:[%s8822_s2 + $0x1310] sm:$0xff] }
  0x58   :  { %1792 = vmatpush1.msra.mxu1 %v736_v1  ;;  %1704 = vmatprep.subr.mxu0 %v572_v3  ;;  %v672_v0 = vld [vmem:[%s8822_s2 + $0xdf0] sm:$0xff]  ;;  %v671_v3 = vld [vmem:[%s8822_s2 + $0xde8] sm:$0xff] }
  0x59   :  { %1793 = vmatprep.subr.mxu1 %v732_v4  ;;  %1705 = vmatpush1.msra.mxu0 %v571_v5  ;;  %v832_v1 = vld [vmem:[%s8822_s2 + $0x12f0] sm:$0xff]  ;;  %v831_v4 = vld [vmem:[%s8822_s2 + $0x12e8] sm:$0xff] }
  0x5a   :  { %1794 = vmatpush1.msra.mxu1 %v731_v8  ;;  %1706 = vmatprep.subr.mxu0 %v567_v9  ;;  %v667_v5 = vld [vmem:[%s8822_s2 + $0xdc8] sm:$0xff] }
  0x5b   :  { %1795 = vmatprep.subr.mxu1 %v727_v10  ;;  %1707 = vmatpush1.msra.mxu0 %v566_v11  ;;  %v827_v8 = vld [vmem:[%s8822_s2 + $0x12c8] sm:$0xff]  ;;  %v33_v10 = vld [vmem:[%s8824_s0 + $0x98] sm:$0xff]  ;;  %v666_v11 = vld [vmem:[%s8822_s2 + $0xdc0] sm:$0xff] }
  0x5c   :  { %1796 = vmatpush1.msra.mxu1 %v726_v12  ;;  %1708 = vmatprep.subr.mxu0 %v562_v14  ;;  %v31_v9 = vld [vmem:[%s8824_s0 + $0x88] sm:$0xff]  ;;  %v826_v12 = vld [vmem:[%s8822_s2 + $0x12c0] sm:$0xff] }
  0x5d   :  { %1797 = vmatprep.subr.mxu1 %v722_v16  ;;  %1709 = vmatpush1.msra.mxu0 %v561_v19  ;;  %v662_v14 = vld [vmem:[%s8822_s2 + $0xda0] sm:$0xff] }
  0x5e   :  { %1798 = vmatpush1.msra.mxu1 %v721_v20  ;;  %1710 = vmatprep.subr.mxu0 %v557_v21  ;;  %v822_v16 = vld [vmem:[%s8822_s2 + $0x12a0] sm:$0xff]  ;;  %v32_v20 = vld [vmem:[%s8824_s0 + $0x90] sm:$0xff]  ;;  %v661_v21 = vld [vmem:[%s8822_s2 + $0xd98] sm:$0xff] }
  0x5f   :  { %1799 = vmatprep.subr.mxu1 %v717_v22  ;;  %1711 = vmatpush1.msra.mxu0 %v556_v23  ;;  %v30_v19 = vld [vmem:[%s8824_s0 + $0x80] sm:$0xff]  ;;  %v821_v22 = vld [vmem:[%s8822_s2 + $0x1298] sm:$0xff]  ;;  %v4762_v23 = vmul.f32 %v4377_v62, %v31_v9 }
  0x60   :  { %1800 = vmatpush1.msra.mxu1 %v716_v24  ;;  %1712 = vmatprep.subr.mxu0 %v552_v25  ;;  %v4765_v24 = vmul.f32 %v4391_v2, %v33_v10  ;;  %v657_v25 = vld [vmem:[%s8822_s2 + $0xd78] sm:$0xff]  ;;  %v19_v10 = vld [vmem:[%s8824_s0 + $0x28] sm:$0xff] }
  0x61   :  { %1801 = vmatprep.subr.mxu1 %v712_v26  ;;  %1713 = vmatpush1.msra.mxu0 %v551_v27  ;;  %8903 = vst [vmem:[#allocation6_spill] sm:$0xff] %v4762_v23  ;;  %v817_v26 = vld [vmem:[%s8822_s2 + $0x1278] sm:$0xff]  ;;  %v4774_v27 = vmul.f32 %v4405_v6, %v30_v19 }
  0x62   :  { %1802 = vmatpush1.msra.mxu1 %v711_v28  ;;  %1714 = vmatprep.subr.mxu0 %v547_v29  ;;  %8904 = vst [vmem:[#allocation7_spill] sm:$0xff] %v4765_v24  ;;  %v4777_v28 = vmul.f32 %v4410_v7, %v32_v20  ;;  %v47_v29 = vld [vmem:[%s8824_s0 + $0x108] sm:$0xff] }
  0x63   :  { %1803 = vmatprep.subr.mxu1 %v707_v30  ;;  %1715 = vmatpush1.msra.mxu0 %v546_v31  ;;  %8905 = vst [vmem:[#allocation8_spill] sm:$0xff] %v4774_v27  ;;  %v49_v30 = vld [vmem:[%s8824_s0 + $0x118] sm:$0xff]  ;;  %v656_v31 = vld [vmem:[%s8822_s2 + $0xd70] sm:$0xff]  ;;  %v631_v20 = vld [vmem:[%s8822_s2 + $0xca8] sm:$0xff] }
  0x64   :  { %1804 = vmatpush1.msra.mxu1 %v706_v32  ;;  %1716 = vmatprep.subr.mxu0 %v702_v33  ;;  %8906 = vst [vmem:[#allocation9_spill] sm:$0xff] %v4777_v28  ;;  %v816_v32 = vld [vmem:[%s8822_s2 + $0x1270] sm:$0xff] }
  0x65   :  { %1805 = vmatprep.subr.mxu1 %v862_v34  ;;  %1717 = vmatpush2.msra.mxu0 %v701_v35  ;;  %v652_v33 = vld [vmem:[%s8822_s2 + $0xd50] sm:$0xff]  ;;  %v46_v35 = vld [vmem:[%s8824_s0 + $0x100] sm:$0xff] }
  0x66   :  { %1806 = vmatpush2.msra.mxu1 %v861_v36  ;;  %1718 = vmatprep.subr.mxu0 %v697_v37  ;;  %v812_v34 = vld [vmem:[%s8822_s2 + $0x1250] sm:$0xff]  ;;  %v651_v37 = vld [vmem:[%s8822_s2 + $0xd48] sm:$0xff] }
  0x67   :  { %1807 = vmatprep.subr.mxu1 %v857_v38  ;;  %1719 = vmatpush2.msra.mxu0 %v696_v40  ;;  %v48_v36 = vld [vmem:[%s8824_s0 + $0x110] sm:$0xff]  ;;  %v811_v38 = vld [vmem:[%s8822_s2 + $0x1248] sm:$0xff]  ;;  %v4814_v40 = vmul.f32 %v4377_v62, %v47_v29 }
  0x68   :  { %1808 = vmatpush2.msra.mxu1 %v856_v41  ;;  %1720 = vmatprep.subr.mxu0 %v692_v42  ;;  %v4817_v41 = vmul.f32 %v4391_v2, %v49_v30  ;;  %v647_v42 = vld [vmem:[%s8822_s2 + $0xd28] sm:$0xff] }
  0x69   :  { %1809 = vmatprep.subr.mxu1 %v852_v43  ;;  %1721 = vmatpush2.msra.mxu0 %v691_v44  ;;  %8907 = vst [vmem:[#allocation10_spill] sm:$0xff] %v4814_v40  ;;  %v807_v43 = vld [vmem:[%s8822_s2 + $0x1228] sm:$0xff]  ;;  %v4826_v44 = vmul.f32 %v4405_v6, %v46_v35  ;;  %v942_v35 = vld [vmem:[%s8822_s2 + $0x1660] sm:$0xff] }
  0x6a   :  { %1810 = vmatpush2.msra.mxu1 %v851_v45  ;;  %1722 = vmatprep.subr.mxu0 %v687_v46  ;;  %8908 = vst [vmem:[#allocation11_spill] sm:$0xff] %v4817_v41  ;;  %v4829_v45 = vmul.f32 %v4410_v7, %v48_v36  ;;  %v63_v46 = vld [vmem:[%s8824_s0 + $0x188] sm:$0xff] }
  0x6b   :  { %1811 = vmatprep.subr.mxu1 %v847_v47  ;;  %1723 = vmatpush2.msra.mxu0 %v686_v49  ;;  %8909 = vst [vmem:[#allocation12_spill] sm:$0xff] %v4826_v44  ;;  %v65_v47 = vld [vmem:[%s8824_s0 + $0x198] sm:$0xff]  ;;  %v646_v49 = vld [vmem:[%s8822_s2 + $0xd20] sm:$0xff]  ;;  %v787_v29 = vld [vmem:[%s8822_s2 + $0x1188] sm:$0xff] }
  0x6c   :  { %1812 = vmatpush2.msra.mxu1 %v846_v50  ;;  %1724 = vmatprep.subr.mxu0 %v682_v53  ;;  %8910 = vst [vmem:[#allocation13_spill] sm:$0xff] %v4829_v45  ;;  %v806_v50 = vld [vmem:[%s8822_s2 + $0x1220] sm:$0xff] }
  0x6d   :  { %1813 = vmatprep.subr.mxu1 %v842_v54  ;;  %1725 = vmatpush2.msra.mxu0 %v681_v57  ;;  %v642_v53 = vld [vmem:[%s8822_s2 + $0xd00] sm:$0xff] }
  0x6e   :  { %1814 = vmatpush2.msra.mxu1 %v841_v58  ;;  %1726 = vmatprep.subr.mxu0 %v677_v59  ;;  %v802_v54 = vld [vmem:[%s8822_s2 + $0x1200] sm:$0xff]  ;;  %v64_v58 = vld [vmem:[%s8824_s0 + $0x190] sm:$0xff]  ;;  %v104_v59 = vsub.s32 5, %v4312_v39 }
  0x6f   :  { %1815 = vmatprep.subr.mxu1 %v837_v60  ;;  %1727 = vmatpush2.msra.mxu0 %v676_v61  ;;  %v62_v57 = vld [vmem:[%s8824_s0 + $0x180] sm:$0xff]  ;;  %v641_v60 = vld [vmem:[%s8822_s2 + $0xcf8] sm:$0xff] }
  0x70   :  { %1816 = vmatpush2.msra.mxu1 %v836_v63  ;;  %1728 = vmatprep.subr.mxu0 %v672_v0  ;;  %v801_v61 = vld [vmem:[%s8822_s2 + $0x11f8] sm:$0xff]  ;;  %v4867_v63 = vmul.f32 %v4377_v62, %v63_v46  ;;  %v4870_v0 = vmul.f32 %v4391_v2, %v65_v47  ;;  %v4884_v2 = vmul.f32 %v4410_v7, %v64_v58  ;;  %v796_v7 = vld [vmem:[%s8822_s2 + $0x11d0] sm:$0xff] }
  0x71   :  { %1817 = vmatprep.subr.mxu1 %v832_v1  ;;  %1729 = vmatpush2.msra.mxu0 %v671_v3  ;;  %v100_v1 = vsub.s32 4, %v4312_v39  ;;  %v112_v3 = vsub.s32 7, %v4312_v39  ;;  %v797_v62 = vld [vmem:[%s8822_s2 + $0x11d8] sm:$0xff]  ;;  %v4890_v9 = vrot.slane %v4348_v51, %v104_v59  ;;  %v1096_v58 = vld [vmem:[%s8822_s2 + $0x1b30] sm:$0xff] }
  0x72   :  { %1818 = vmatpush2.msra.mxu1 %v831_v4  ;;  %1730 = vmatprep.subr.mxu0 %v667_v5  ;;  %8911 = vst [vmem:[#allocation14_spill] sm:$0xff] %v4867_v63  ;;  %8912 = vst [vmem:[#allocation15_spill] sm:$0xff] %v4870_v0  ;;  %v637_v4 = vld [vmem:[%s8822_s2 + $0xcd8] sm:$0xff]  ;;  %v4881_v5 = vmul.f32 %v4405_v6, %v62_v57  ;;  %v636_v6 = vld [vmem:[%s8822_s2 + $0xcd0] sm:$0xff] }
  0x73   :  { %1819 = vmatprep.subr.mxu1 %v827_v8  ;;  %1731 = vmatpush2.msra.mxu0 %v666_v11  ;;  %8914 = vst [vmem:[#allocation17_spill] sm:$0xff] %v4884_v2  ;;  %v8826_v8 = vsub.s32 6, %v4312_v39  ;;  %v4906_v11 = vrot.slane %v4348_v51, %v100_v1  ;;  %v4920_v19 = vrot.slane %v4348_v51, %v112_v3  ;;  %v1101_v46 = vld [vmem:[%s8822_s2 + $0x1b58] sm:$0xff] }
  0x74   :  { %1820 = vmatpush2.msra.mxu1 %v826_v12  ;;  %1732 = vmatprep.subr.mxu0 %v662_v14  ;;  %8913 = vst [vmem:[#allocation16_spill] sm:$0xff] %v4881_v5  ;;  %v632_v12 = vld [vmem:[%s8822_s2 + $0xcb0] sm:$0xff]  ;;  %v4945_v30 = vmul.f32 %v4890_v9, %v19_v10  ;;  %v937_v47 = vld [vmem:[%s8822_s2 + $0x1638] sm:$0xff]  ;;  %v50_v10 = vld [vmem:[%s8824_s0 + $0x120] sm:$0xff] }
  0x75   :  { %1821 = vmatprep.subr.mxu1 %v822_v16  ;;  %1733 = vmatpush2.msra.mxu0 %v661_v21  ;;  %v792_v14 = vld [vmem:[%s8822_s2 + $0x11b0] sm:$0xff]  ;;  %v18_v16 = vld [vmem:[%s8824_s0 + $0x20] sm:$0xff]  ;;  %v791_v21 = vld [vmem:[%s8822_s2 + $0x11a8] sm:$0xff] }
  0x76   :  { %1822 = vmatpush2.msra.mxu1 %v821_v22  ;;  %1576 = vmatprep.mubr.f32.mxu0 %v4762_v23  ;;  %v21_v22 = vld [vmem:[%s8824_s0 + $0x38] sm:$0xff]  ;;  %8915 = vst [vmem:[#allocation18_spill] sm:$0xff] %v4945_v30 }
  0x77   :  { %1665 = vmatprep.mubr.f32.mxu1 %v4765_v24  ;;  %1734 = vmatprep.subr.mxu0 %v657_v25  ;;  %v4936_v25 = vrot.slane %v4348_v51, %v8826_v8  ;;  %v626_v51 = vld [vmem:[%s8822_s2 + $0xc80] sm:$0xff]  ;;  %v73_v8 = vld [vmem:[%s8824_s0 + $0x1d8] sm:$0xff] }
  0x78   :  { %1823 = vmatprep.subr.mxu1 %v817_v26  ;;  %1577 = vmatmul.mubr.f32.gmra.mxu0 %v4774_v27  ;;  %v627_v26 = vld [vmem:[%s8822_s2 + $0xc88] sm:$0xff] }
  0x79   :  { %1666 = vmatmul.mubr.f32.gmra.mxu1 %v4777_v28  ;;  %1735 = vmatpush2.msra.mxu0 %v656_v31  ;;  %v20_v31 = vld [vmem:[%s8824_s0 + $0x30] sm:$0xff] }
  0x7a   :  { %1824 = vmatpush2.msra.mxu1 %v816_v32  ;;  %1736 = vmatprep.subr.mxu0 %v652_v33  ;;  %v4954_v32 = vmul.f32 %v4906_v11, %v18_v16  ;;  %v786_v33 = vld [vmem:[%s8822_s2 + $0x1180] sm:$0xff]  ;;  %v4966_v36 = vmul.f32 %v4936_v25, %v20_v31  ;;  %v927_v16 = vld [vmem:[%s8822_s2 + $0x15e8] sm:$0xff] }
  0x7b   :  { %1825 = vmatprep.subr.mxu1 %v812_v34  ;;  %1737 = vmatpush2.msra.mxu0 %v651_v37  ;;  %v4960_v34 = vmul.f32 %v4920_v19, %v21_v22  ;;  %v35_v37 = vld [vmem:[%s8824_s0 + $0xa8] sm:$0xff]  ;;  %v53_v22 = vld [vmem:[%s8824_s0 + $0x138] sm:$0xff]  ;;  %v1086_v31 = vld [vmem:[%s8822_s2 + $0x1ae0] sm:$0xff] }
  0x7c   :  { %1826 = vmatpush2.msra.mxu1 %v811_v38  ;;  %1582 = vmatprep.mubr.f32.mxu0 %v4814_v40  ;;  %8916 = vst [vmem:[#allocation19_spill] sm:$0xff] %v4954_v32  ;;  %8918 = vst [vmem:[#allocation21_spill] sm:$0xff] %v4966_v36  ;;  %v1102_v38 = vld [vmem:[%s8822_s2 + $0x1b60] sm:$0xff] }
  0x7d   :  { %1671 = vmatprep.mubr.f32.mxu1 %v4817_v41  ;;  %1738 = vmatprep.subr.mxu0 %v647_v42  ;;  %8917 = vst [vmem:[#allocation20_spill] sm:$0xff] %v4960_v34  ;;  %v34_v42 = vld [vmem:[%s8824_s0 + $0xa0] sm:$0xff] }
  0x7e   :  { %1827 = vmatprep.subr.mxu1 %v807_v43  ;;  %1583 = vmatmul.mubr.f32.gmra.mxu0 %v4826_v44  ;;  %v941_v43 = vld [vmem:[%s8822_s2 + $0x1658] sm:$0xff]  ;;  %v5003_v57 = vmul.f32 %v4906_v11, %v34_v42 }
  0x7f   :  { %1672 = vmatmul.mubr.f32.gmra.mxu1 %v4829_v45  ;;  %1739 = vmatpush2.msra.mxu0 %v646_v49  ;;  %v1097_v49 = vld [vmem:[%s8822_s2 + $0x1b38] sm:$0xff] }
  0x80   :  { %1828 = vmatpush2.msra.mxu1 %v806_v50  ;;  %1740 = vmatprep.subr.mxu0 %v642_v53  ;;  %v4993_v50 = vmul.f32 %v4890_v9, %v35_v37  ;;  %v37_v53 = vld [vmem:[%s8824_s0 + $0xb8] sm:$0xff]  ;;  %8920 = vst [vmem:[#allocation23_spill] sm:$0xff] %v5003_v57  ;;  %v5070_v37 = vmul.f32 %v4920_v19, %v53_v22  ;;  %v906_v22 = vld [vmem:[%s8822_s2 + $0x1540] sm:$0xff] }
  0x81   :  { %1829 = vmatprep.subr.mxu1 %v802_v54  ;;  %1741 = vmatpush2.msra.mxu0 %v641_v60  ;;  %v936_v54 = vld [vmem:[%s8822_s2 + $0x1630] sm:$0xff]  ;;  %v921_v42 = vld [vmem:[%s8822_s2 + $0x15b8] sm:$0xff] }
  0x82   :  { %1830 = vmatpush2.msra.mxu1 %v801_v61  ;;  %1588 = vmatprep.mubr.f32.mxu0 %v4867_v63  ;;  %8919 = vst [vmem:[#allocation22_spill] sm:$0xff] %v4993_v50  ;;  %v36_v60 = vld [vmem:[%s8824_s0 + $0xb0] sm:$0xff]  ;;  %8925 = vst [vmem:[#allocation28_spill] sm:$0xff] %v5070_v37 }
  0x83   :  { %1677 = vmatprep.mubr.f32.mxu1 %v4870_v0  ;;  %1742 = vmatprep.subr.mxu0 %v637_v4  ;;  %v932_v61 = vld [vmem:[%s8822_s2 + $0x1610] sm:$0xff] }
  0x84   :  { %1831 = vmatprep.subr.mxu1 %v797_v62  ;;  %1589 = vmatmul.mubr.f32.gmra.mxu0 %v4881_v5  ;;  %v1092_v4 = vld [vmem:[%s8822_s2 + $0x1b10] sm:$0xff]  ;;  %v5018_v62 = vmul.f32 %v4920_v19, %v37_v53  ;;  %v1077_v53 = vld [vmem:[%s8822_s2 + $0x1a98] sm:$0xff] }
  0x85   :  { %1678 = vmatmul.mubr.f32.gmra.mxu1 %v4884_v2  ;;  %1743 = vmatpush2.msra.mxu0 %v636_v6  ;;  %v51_v6 = vld [vmem:[%s8824_s0 + $0x128] sm:$0xff] }
  0x86   :  { %1832 = vmatpush2.msra.mxu1 %v796_v7  ;;  %1744 = vmatprep.subr.mxu0 %v632_v12  ;;  %8921 = vst [vmem:[#allocation24_spill] sm:$0xff] %v5018_v62  ;;  %v931_v7 = vld [vmem:[%s8822_s2 + $0x1608] sm:$0xff] }
  0x87   :  { %1833 = vmatprep.subr.mxu1 %v792_v14  ;;  %1745 = vmatpush2.msra.mxu0 %v631_v20  ;;  %v1091_v12 = vld [vmem:[%s8822_s2 + $0x1b08] sm:$0xff]  ;;  %v5035_v14 = vmul.f32 %v4936_v25, %v36_v60  ;;  %v916_v60 = vld [vmem:[%s8822_s2 + $0x1590] sm:$0xff] }
  0x88   :  { %1834 = vmatpush2.msra.mxu1 %v791_v21  ;;  %1746 = vmatprep.subr.mxu0 %v627_v26  ;;  %v1087_v20 = vld [vmem:[%s8822_s2 + $0x1ae8] sm:$0xff]  ;;  %v5044_v21 = vmul.f32 %v4890_v9, %v51_v6  ;;  %v926_v26 = vld [vmem:[%s8822_s2 + $0x15e0] sm:$0xff]  ;;  %v912_v6 = vld [vmem:[%s8822_s2 + $0x1570] sm:$0xff] }
  0x89   :  { %1835 = vmatprep.subr.mxu1 %v787_v29  ;;  %1747 = vmatpush2.msra.mxu0 %v626_v51  ;;  %8922 = vst [vmem:[#allocation25_spill] sm:$0xff] %v5035_v14  ;;  %v5054_v29 = vmul.f32 %v4906_v11, %v50_v10  ;;  %v52_v51 = vld [vmem:[%s8824_s0 + $0x130] sm:$0xff]  ;;  %v911_v10 = vld [vmem:[%s8822_s2 + $0x1568] sm:$0xff] }
  0x8a   :  { %1748 = vmatprep.mubr.f32.mxu0 %v4945_v30  ;;  %1836 = vmatpush2.msra.mxu1 %v786_v33  ;;  %8923 = vst [vmem:[#allocation26_spill] sm:$0xff] %v5044_v21  ;;  %v922_v33 = vld [vmem:[%s8822_s2 + $0x15c0] sm:$0xff] }
  0x8b   :  { %1749 = vmatmul.mubr.f32.vlgmr.msra.gmra.mxu0 %v4954_v32  ;;  %1837 = vmatprep.mubr.f32.mxu1 %v4960_v34  ;;  %8924 = vst [vmem:[#allocation27_spill] sm:$0xff] %v5054_v29 }
  0x8c   :  { %1862 = vmatprep.subr.mxu0 %v942_v35  ;;  %1951 = vmatprep.subr.mxu1 %v1102_v38  ;;  %v1082_v35 = vld [vmem:[%s8822_s2 + $0x1ac0] sm:$0xff]  ;;  %v67_v38 = vld [vmem:[%s8824_s0 + $0x1a8] sm:$0xff] }
  0x8d   :  { %1838 = vmatmul.mubr.f32.vlgmr.msra.gmra.mxu1 %v4966_v36  ;;  %1863 = vmatpush1.msra.mxu0 %v941_v43  ;;  %v66_v43 = vld [vmem:[%s8824_s0 + $0x1a0] sm:$0xff] }
  0x8e   :  { %1952 = vmatpush1.msra.mxu1 %v1101_v46  ;;  %1864 = vmatprep.subr.mxu0 %v937_v47  ;;  %v1081_v46 = vld [vmem:[%s8822_s2 + $0x1ab8] sm:$0xff]  ;;  %v5087_v47 = vmul.f32 %v4936_v25, %v52_v51 }
  0x8f   :  { %1953 = vmatprep.subr.mxu1 %v1097_v49  ;;  %1754 = vmatprep.mubr.f32.mxu0 %v4993_v50  ;;  %v917_v49 = vld [vmem:[%s8822_s2 + $0x1598] sm:$0xff] }
  0x90   :  { %1865 = vmatpush1.msra.mxu0 %v936_v54  ;;  %1954 = vmatpush1.msra.mxu1 %v1096_v58  ;;  %8926 = vst [vmem:[#allocation29_spill] sm:$0xff] %v5087_v47  ;;  %v5096_v54 = vmul.f32 %v4890_v9, %v67_v38  ;;  %v69_v58 = vld [vmem:[%s8824_s0 + $0x1b8] sm:$0xff]  ;;  %v1076_v9 = vld [vmem:[%s8822_s2 + $0x1a90] sm:$0xff] }
  0x91   :  { %1755 = vmatmul.mubr.f32.gmra.mxu0 %v5003_v57  ;;  %1866 = vmatprep.subr.mxu0 %v932_v61  ;;  %v5106_v61 = vmul.f32 %v4906_v11, %v66_v43  ;;  %v1072_v11 = vld [vmem:[%s8822_s2 + $0x1a70] sm:$0xff]  ;;  %v901_v51 = vld [vmem:[%s8822_s2 + $0x1518] sm:$0xff] }
  0x92   :  { %1955 = vmatprep.subr.mxu1 %v1092_v4  ;;  %1843 = vmatprep.mubr.f32.mxu1 %v5018_v62  ;;  %8927 = vst [vmem:[#allocation30_spill] sm:$0xff] %v5096_v54  ;;  %v68_v4 = vld [vmem:[%s8824_s0 + $0x1b0] sm:$0xff]  ;;  %v1057_v38 = vld [vmem:[%s8822_s2 + $0x19f8] sm:$0xff] }
  0x93   :  { %1867 = vmatpush1.msra.mxu0 %v931_v7  ;;  %1956 = vmatpush1.msra.mxu1 %v1091_v12  ;;  %8928 = vst [vmem:[#allocation31_spill] sm:$0xff] %v5106_v61  ;;  %v5122_v7 = vmul.f32 %v4920_v19, %v69_v58  ;;  %v1071_v12 = vld [vmem:[%s8822_s2 + $0x1a68] sm:$0xff]  ;;  %v1056_v43 = vld [vmem:[%s8822_s2 + $0x19f0] sm:$0xff] }
  0x94   :  { %1868 = vmatprep.subr.mxu0 %v927_v16  ;;  %1844 = vmatmul.mubr.f32.gmra.mxu1 %v5035_v14  ;;  %v5133_v16 = vmul.f32 %v4936_v25, %v68_v4  ;;  %v907_v19 = vld [vmem:[%s8822_s2 + $0x1548] sm:$0xff]  ;;  %v1066_v25 = vld [vmem:[%s8822_s2 + $0x1a40] sm:$0xff] }
  0x95   :  { %1957 = vmatprep.subr.mxu1 %v1087_v20  ;;  %1760 = vmatprep.mubr.f32.mxu0 %v5044_v21  ;;  %8929 = vst [vmem:[#allocation32_spill] sm:$0xff] %v5122_v7  ;;  %v1067_v20 = vld [vmem:[%s8822_s2 + $0x1a48] sm:$0xff]  ;;  %v886_v4 = vld [vmem:[%s8822_s2 + $0x14a0] sm:$0xff] }
  0x96   :  { %1869 = vmatpush1.msra.mxu0 %v926_v26  ;;  %1958 = vmatpush1.msra.mxu1 %v1086_v31  ;;  %8930 = vst [vmem:[#allocation33_spill] sm:$0xff] %v5133_v16  ;;  %v902_v26 = vld [vmem:[%s8822_s2 + $0x1520] sm:$0xff]  ;;  %v1051_v58 = vld [vmem:[%s8822_s2 + $0x19c8] sm:$0xff] }
  0x97   :  { %1761 = vmatmul.mubr.f32.gmra.mxu0 %v5054_v29  ;;  %1870 = vmatprep.subr.mxu0 %v922_v33  ;;  %v1062_v31 = vld [vmem:[%s8822_s2 + $0x1a20] sm:$0xff]  ;;  %v1061_v33 = vld [vmem:[%s8822_s2 + $0x1a18] sm:$0xff] }
  0x98   :  { %1959 = vmatprep.subr.mxu1 %v1082_v35  ;;  %1849 = vmatprep.mubr.f32.mxu1 %v5070_v37  ;;  %v897_v35 = vld [vmem:[%s8822_s2 + $0x14f8] sm:$0xff] }
  0x99   :  { %1871 = vmatpush1.msra.mxu0 %v921_v42  ;;  %1960 = vmatpush1.msra.mxu1 %v1081_v46  ;;  %v896_v42 = vld [vmem:[%s8822_s2 + $0x14f0] sm:$0xff] }
  0x9a   :  { %1872 = vmatprep.subr.mxu0 %v917_v49  ;;  %1850 = vmatmul.mubr.f32.gmra.mxu1 %v5087_v47  ;;  %v892_v46 = vld [vmem:[%s8822_s2 + $0x14d0] sm:$0xff] }
  0x9b   :  { %1961 = vmatprep.subr.mxu1 %v1077_v53  ;;  %1766 = vmatprep.mubr.f32.mxu0 %v5096_v54  ;;  %v1052_v49 = vld [vmem:[%s8822_s2 + $0x19d0] sm:$0xff]  ;;  %v891_v53 = vld [vmem:[%s8822_s2 + $0x14c8] sm:$0xff] }
  0x9c   :  { %1873 = vmatpush1.msra.mxu0 %v916_v60  ;;  %1962 = vmatpush1.msra.mxu1 %v1076_v9  ;;  %v887_v60 = vld [vmem:[%s8822_s2 + $0x14a8] sm:$0xff] }
  0x9d   :  { %1767 = vmatmul.mubr.f32.gmra.mxu0 %v5106_v61  ;;  %1874 = vmatprep.subr.mxu0 %v912_v6  ;;  %v1047_v9 = vld [vmem:[%s8822_s2 + $0x19a8] sm:$0xff]  ;;  %v1046_v6 = vld [vmem:[%s8822_s2 + $0x19a0] sm:$0xff] }
  0x9e   :  { %1963 = vmatprep.subr.mxu1 %v1072_v11  ;;  %1855 = vmatprep.mubr.f32.mxu1 %v5122_v7  ;;  %v882_v11 = vld [vmem:[%s8822_s2 + $0x1480] sm:$0xff] }
  0x9f   :  { %1875 = vmatpush1.msra.mxu0 %v911_v10  ;;  %1964 = vmatpush1.msra.mxu1 %v1071_v12  ;;  %v1042_v10 = vld [vmem:[%s8822_s2 + $0x1980] sm:$0xff]  ;;  %v881_v12 = vld [vmem:[%s8822_s2 + $0x1478] sm:$0xff] }
  0xa0   :  { %1876 = vmatprep.subr.mxu0 %v907_v19  ;;  %1856 = vmatmul.mubr.f32.gmra.mxu1 %v5133_v16  ;;  %v1041_v19 = vld [vmem:[%s8822_s2 + $0x1978] sm:$0xff] }
  0xa1   :  { %1965 = vmatprep.subr.mxu1 %v1067_v20  ;;  %1877 = vmatpush1.msra.mxu0 %v906_v22  ;;  %v877_v20 = vld [vmem:[%s8822_s2 + $0x1458] sm:$0xff] }
  0xa2   :  { %1966 = vmatpush1.msra.mxu1 %v1066_v25  ;;  %1878 = vmatprep.subr.mxu0 %v902_v26  ;;  %v1037_v22 = vld [vmem:[%s8822_s2 + $0x1958] sm:$0xff]  ;;  %v876_v25 = vld [vmem:[%s8822_s2 + $0x1450] sm:$0xff] }
  0xa3   :  { %1967 = vmatprep.subr.mxu1 %v1062_v31  ;;  %1879 = vmatpush1.msra.mxu0 %v901_v51  ;;  %v1036_v26 = vld [vmem:[%s8822_s2 + $0x1950] sm:$0xff] }
  0xa4   :  { %1968 = vmatpush1.msra.mxu1 %v1061_v33  ;;  %1880 = vmatprep.subr.mxu0 %v897_v35  ;;  %v872_v31 = vld [vmem:[%s8822_s2 + $0x1430] sm:$0xff]  ;;  %v871_v33 = vld [vmem:[%s8822_s2 + $0x1428] sm:$0xff] }
  0xa5   :  { %1969 = vmatprep.subr.mxu1 %v1057_v38  ;;  %1881 = vmatpush1.msra.mxu0 %v896_v42  ;;  %v1032_v51 = vld [vmem:[%s8822_s2 + $0x1930] sm:$0xff]  ;;  %v1031_v35 = vld [vmem:[%s8822_s2 + $0x1928] sm:$0xff] }
  0xa6   :  { %1970 = vmatpush1.msra.mxu1 %v1056_v43  ;;  %1882 = vmatprep.subr.mxu0 %v892_v46  ;;  %v867_v38 = vld [vmem:[%s8822_s2 + $0x1408] sm:$0xff]  ;;  %v866_v43 = vld [vmem:[%s8822_s2 + $0x1400] sm:$0xff] }
  0xa7   :  { %1971 = vmatprep.subr.mxu1 %v1052_v49  ;;  %1883 = vmatpush1.msra.mxu0 %v891_v53  ;;  %v1027_v42 = vld [vmem:[%s8822_s2 + $0x1908] sm:$0xff]  ;;  %v1026_v46 = vld [vmem:[%s8822_s2 + $0x1900] sm:$0xff] }
  0xa8   :  { %1972 = vmatpush1.msra.mxu1 %v1051_v58  ;;  %1884 = vmatprep.subr.mxu0 %v887_v60  ;;  %v1022_v49 = vld [vmem:[%s8822_s2 + $0x18e0] sm:$0xff]  ;;  %v1021_v58 = vld [vmem:[%s8822_s2 + $0x18d8] sm:$0xff] }
  0xa9   :  { %1973 = vmatprep.subr.mxu1 %v1047_v9  ;;  %1885 = vmatpush1.msra.mxu0 %v886_v4  ;;  %v1182_v53 = vld [vmem:[%s8822_s2 + $0x1de0] sm:$0xff]  ;;  %v1181_v60 = vld [vmem:[%s8822_s2 + $0x1dd8] sm:$0xff] }
  0xaa   :  { %1974 = vmatpush1.msra.mxu1 %v1046_v6  ;;  %1886 = vmatprep.subr.mxu0 %v882_v11  ;;  %v1017_v9 = vld [vmem:[%s8822_s2 + $0x18b8] sm:$0xff]  ;;  %v1016_v6 = vld [vmem:[%s8822_s2 + $0x18b0] sm:$0xff] }
  0xab   :  { %1975 = vmatprep.subr.mxu1 %v1042_v10  ;;  %1887 = vmatpush1.msra.mxu0 %v881_v12  ;;  %v1177_v4 = vld [vmem:[%s8822_s2 + $0x1db8] sm:$0xff]  ;;  %v1176_v11 = vld [vmem:[%s8822_s2 + $0x1db0] sm:$0xff] }
  0xac   :  { %1976 = vmatpush1.msra.mxu1 %v1041_v19  ;;  %1888 = vmatprep.subr.mxu0 %v877_v20  ;;  %v1012_v10 = vld [vmem:[%s8822_s2 + $0x1890] sm:$0xff]  ;;  %v1011_v19 = vld [vmem:[%s8822_s2 + $0x1888] sm:$0xff] }
  0xad   :  { %1977 = vmatprep.subr.mxu1 %v1037_v22  ;;  %1889 = vmatpush1.msra.mxu0 %v876_v25  ;;  %v1172_v12 = vld [vmem:[%s8822_s2 + $0x1d90] sm:$0xff]  ;;  %v1171_v20 = vld [vmem:[%s8822_s2 + $0x1d88] sm:$0xff] }
  0xae   :  { %1978 = vmatpush1.msra.mxu1 %v1036_v26  ;;  %1890 = vmatprep.subr.mxu0 %v872_v31  ;;  %v1007_v22 = vld [vmem:[%s8822_s2 + $0x1868] sm:$0xff]  ;;  %v1006_v26 = vld [vmem:[%s8822_s2 + $0x1860] sm:$0xff] }
  0xaf   :  { %1979 = vmatprep.subr.mxu1 %v1032_v51  ;;  %1891 = vmatpush1.msra.mxu0 %v871_v33  ;;  %v1167_v25 = vld [vmem:[%s8822_s2 + $0x1d68] sm:$0xff]  ;;  %v1166_v31 = vld [vmem:[%s8822_s2 + $0x1d60] sm:$0xff] }
  0xb0   :  { %1980 = vmatpush1.msra.mxu1 %v1031_v35  ;;  %1892 = vmatprep.subr.mxu0 %v867_v38  ;;  %v1002_v51 = vld [vmem:[%s8822_s2 + $0x1840] sm:$0xff]  ;;  %v1001_v35 = vld [vmem:[%s8822_s2 + $0x1838] sm:$0xff] }
  0xb1   :  { %1981 = vmatprep.subr.mxu1 %v1027_v42  ;;  %1893 = vmatpush1.msra.mxu0 %v866_v43  ;;  %v1162_v33 = vld [vmem:[%s8822_s2 + $0x1d40] sm:$0xff]  ;;  %v1161_v38 = vld [vmem:[%s8822_s2 + $0x1d38] sm:$0xff] }
  0xb2   :  { %1982 = vmatpush1.msra.mxu1 %v1026_v46  ;;  %1894 = vmatprep.subr.mxu0 %v1022_v49  ;;  %v997_v42 = vld [vmem:[%s8822_s2 + $0x1818] sm:$0xff]  ;;  %v996_v46 = vld [vmem:[%s8822_s2 + $0x1810] sm:$0xff] }
  0xb3   :  { %1983 = vmatprep.subr.mxu1 %v1182_v53  ;;  %1895 = vmatpush2.msra.mxu0 %v1021_v58  ;;  %v1157_v43 = vld [vmem:[%s8822_s2 + $0x1d18] sm:$0xff]  ;;  %v1156_v49 = vld [vmem:[%s8822_s2 + $0x1d10] sm:$0xff] }
  0xb4   :  { %1984 = vmatpush2.msra.mxu1 %v1181_v60  ;;  %1896 = vmatprep.subr.mxu0 %v1017_v9  ;;  %v992_v53 = vld [vmem:[%s8822_s2 + $0x17f0] sm:$0xff]  ;;  %v991_v60 = vld [vmem:[%s8822_s2 + $0x17e8] sm:$0xff] }
  0xb5   :  { %1985 = vmatprep.subr.mxu1 %v1177_v4  ;;  %1897 = vmatpush2.msra.mxu0 %v1016_v6  ;;  %v1152_v58 = vld [vmem:[%s8822_s2 + $0x1cf0] sm:$0xff]  ;;  %v1151_v9 = vld [vmem:[%s8822_s2 + $0x1ce8] sm:$0xff] }
  0xb6   :  { %1986 = vmatpush2.msra.mxu1 %v1176_v11  ;;  %1898 = vmatprep.subr.mxu0 %v1012_v10  ;;  %v987_v4 = vld [vmem:[%s8822_s2 + $0x17c8] sm:$0xff]  ;;  %v986_v11 = vld [vmem:[%s8822_s2 + $0x17c0] sm:$0xff] }
  0xb7   :  { %1987 = vmatprep.subr.mxu1 %v1172_v12  ;;  %1899 = vmatpush2.msra.mxu0 %v1011_v19  ;;  %v1147_v6 = vld [vmem:[%s8822_s2 + $0x1cc8] sm:$0xff]  ;;  %v1146_v10 = vld [vmem:[%s8822_s2 + $0x1cc0] sm:$0xff] }
  0xb8   :  { %1988 = vmatpush2.msra.mxu1 %v1171_v20  ;;  %1900 = vmatprep.subr.mxu0 %v1007_v22  ;;  %v982_v12 = vld [vmem:[%s8822_s2 + $0x17a0] sm:$0xff]  ;;  %v981_v20 = vld [vmem:[%s8822_s2 + $0x1798] sm:$0xff] }
  0xb9   :  { %1989 = vmatprep.subr.mxu1 %v1167_v25  ;;  %1901 = vmatpush2.msra.mxu0 %v1006_v26  ;;  %v1142_v19 = vld [vmem:[%s8822_s2 + $0x1ca0] sm:$0xff]  ;;  %v1141_v22 = vld [vmem:[%s8822_s2 + $0x1c98] sm:$0xff] }
  0xba   :  { %1990 = vmatpush2.msra.mxu1 %v1166_v31  ;;  %1902 = vmatprep.subr.mxu0 %v1002_v51  ;;  %v977_v25 = vld [vmem:[%s8822_s2 + $0x1778] sm:$0xff]  ;;  %v976_v31 = vld [vmem:[%s8822_s2 + $0x1770] sm:$0xff] }
  0xbb   :  { %1991 = vmatprep.subr.mxu1 %v1162_v33  ;;  %1903 = vmatpush2.msra.mxu0 %v1001_v35  ;;  %v1137_v26 = vld [vmem:[%s8822_s2 + $0x1c78] sm:$0xff]  ;;  %v1136_v51 = vld [vmem:[%s8822_s2 + $0x1c70] sm:$0xff] }
  0xbc   :  { %1992 = vmatpush2.msra.mxu1 %v1161_v38  ;;  %1904 = vmatprep.subr.mxu0 %v997_v42  ;;  %v972_v33 = vld [vmem:[%s8822_s2 + $0x1750] sm:$0xff]  ;;  %v971_v38 = vld [vmem:[%s8822_s2 + $0x1748] sm:$0xff] }
  0xbd   :  { %1993 = vmatprep.subr.mxu1 %v1157_v43  ;;  %1905 = vmatpush2.msra.mxu0 %v996_v46  ;;  %v1132_v35 = vld [vmem:[%s8822_s2 + $0x1c50] sm:$0xff]  ;;  %v1131_v42 = vld [vmem:[%s8822_s2 + $0x1c48] sm:$0xff] }
  0xbe   :  { %1994 = vmatpush2.msra.mxu1 %v1156_v49  ;;  %1906 = vmatprep.subr.mxu0 %v992_v53  ;;  %v967_v43 = vld [vmem:[%s8822_s2 + $0x1728] sm:$0xff]  ;;  %v966_v53 = vld [vmem:[%s8822_s2 + $0x1720] sm:$0xff] }
  0xbf   :  { %1995 = vmatprep.subr.mxu1 %v1152_v58  ;;  %1907 = vmatpush2.msra.mxu0 %v991_v60  ;;  %v1127_v46 = vld [vmem:[%s8822_s2 + $0x1c28] sm:$0xff]  ;;  %v1126_v58 = vld [vmem:[%s8822_s2 + $0x1c20] sm:$0xff] }
  0xc0   :  { %1996 = vmatpush2.msra.mxu1 %v1151_v9  ;;  %1908 = vmatprep.subr.mxu0 %v987_v4  ;;  %v5386_v49 = vld [vmem:[%s8823_s1 + $0x8] sm:$0xff]  ;;  %v962_v60 = vld [vmem:[%s8822_s2 + $0x1700] sm:$0xff]  ;;  %v961_v4 = vld [vmem:[%s8822_s2 + $0x16f8] sm:$0xff] }
  0xc1   :  { %1997 = vmatprep.subr.mxu1 %v1147_v6  ;;  %1909 = vmatpush2.msra.mxu0 %v986_v11  ;;  %v1122_v9 = vld [vmem:[%s8822_s2 + $0x1c00] sm:$0xff]  ;;  %v1121_v6 = vld [vmem:[%s8822_s2 + $0x1bf8] sm:$0xff] }
  0xc2   :  { %1998 = vmatpush2.msra.mxu1 %v1146_v10  ;;  %1910 = vmatprep.subr.mxu0 %v982_v12  ;;  %v957_v11 = vld [vmem:[%s8822_s2 + $0x16d8] sm:$0xff]  ;;  %v5415_v12 = vrot.slane %v5386_v49, %v88_v48  ;;  %v23_v48 = vld [vmem:[%s8824_s0 + $0x48] sm:$0xff] }
  0xc3   :  { %1999 = vmatprep.subr.mxu1 %v1142_v19  ;;  %1911 = vmatpush2.msra.mxu0 %v981_v20  ;;  %v1117_v10 = vld [vmem:[%s8822_s2 + $0x1bd8] sm:$0xff]  ;;  %v5420_v19 = vrot.slane %v5386_v49, %v84_v55  ;;  %v956_v20 = vld [vmem:[%s8822_s2 + $0x16d0] sm:$0xff] }
  0xc4   :  { %2000 = vmatpush2.msra.mxu1 %v1141_v22  ;;  %1912 = vmatprep.subr.mxu0 %v977_v25  ;;  %v1116_v22 = vld [vmem:[%s8822_s2 + $0x1bd0] sm:$0xff] }
  0xc5   :  { %2001 = vmatprep.subr.mxu1 %v1137_v26  ;;  %1913 = vmatpush2.msra.mxu0 %v976_v31  ;;  %v952_v55 = vld [vmem:[%s8822_s2 + $0x16b0] sm:$0xff]  ;;  %v22_v26 = vld [vmem:[%s8824_s0 + $0x40] sm:$0xff]  ;;  %v5443_v31 = vrot.slane %v5386_v49, %v96_v52  ;;  %v25_v52 = vld [vmem:[%s8824_s0 + $0x58] sm:$0xff] }
  0xc6   :  { %2002 = vmatpush2.msra.mxu1 %v1136_v51  ;;  %1914 = vmatprep.subr.mxu0 %v972_v33  ;;  %v1112_v25 = vld [vmem:[%s8822_s2 + $0x1bb0] sm:$0xff]  ;;  %v5448_v51 = vrot.slane %v5386_v49, %v92_v56  ;;  %v951_v33 = vld [vmem:[%s8822_s2 + $0x16a8] sm:$0xff] }
  0xc7   :  { %2003 = vmatprep.subr.mxu1 %v1132_v35  ;;  %1915 = vmatpush2.msra.mxu0 %v971_v38  ;;  %v1111_v35 = vld [vmem:[%s8822_s2 + $0x1ba8] sm:$0xff] }
  0xc8   :  { %2004 = vmatpush2.msra.mxu1 %v1131_v42  ;;  %1916 = vmatprep.subr.mxu0 %v967_v43  ;;  %v947_v56 = vld [vmem:[%s8822_s2 + $0x1688] sm:$0xff]  ;;  %v5466_v42 = vmul.f32 %v5415_v12, %v23_v48  ;;  %v24_v43 = vld [vmem:[%s8824_s0 + $0x50] sm:$0xff]  ;;  %v1257_v48 = vld [vmem:[%s8822_s2 + $0x2038] sm:$0xff] }
  0xc9   :  { %2005 = vmatprep.subr.mxu1 %v1127_v46  ;;  %1917 = vmatpush2.msra.mxu0 %v966_v53  ;;  %v1107_v38 = vld [vmem:[%s8822_s2 + $0x1b88] sm:$0xff]  ;;  %v946_v46 = vld [vmem:[%s8822_s2 + $0x1680] sm:$0xff]  ;;  %v5475_v53 = vmul.f32 %v5420_v19, %v22_v26  ;;  %v41_v26 = vld [vmem:[%s8824_s0 + $0xd8] sm:$0xff] }
  0xca   :  { %2006 = vmatpush2.msra.mxu1 %v1126_v58  ;;  %1918 = vmatprep.subr.mxu0 %v962_v60  ;;  %v1106_v58 = vld [vmem:[%s8822_s2 + $0x1b80] sm:$0xff]  ;;  %v5481_v60 = vmul.f32 %v5443_v31, %v25_v52  ;;  %v1416_v52 = vld [vmem:[%s8822_s2 + $0x2530] sm:$0xff] }
  0xcb   :  { %2007 = vmatprep.subr.mxu1 %v1122_v9  ;;  %1919 = vmatpush2.msra.mxu0 %v961_v4  ;;  %v1262_v9 = vld [vmem:[%s8822_s2 + $0x2060] sm:$0xff]  ;;  %v5487_v4 = vmul.f32 %v5448_v51, %v24_v43  ;;  %v1412_v43 = vld [vmem:[%s8822_s2 + $0x2510] sm:$0xff] }
  0xcc   :  { %2008 = vmatpush2.msra.mxu1 %v1121_v6  ;;  %1920 = vmatprep.subr.mxu0 %v957_v11  ;;  %v39_v6 = vld [vmem:[%s8824_s0 + $0xc8] sm:$0xff]  ;;  %v1422_v11 = vld [vmem:[%s8822_s2 + $0x2560] sm:$0xff] }
  0xcd   :  { %2009 = vmatprep.subr.mxu1 %v1117_v10  ;;  %1921 = vmatpush2.msra.mxu0 %v956_v20  ;;  %v38_v10 = vld [vmem:[%s8824_s0 + $0xc0] sm:$0xff]  ;;  %v1261_v20 = vld [vmem:[%s8822_s2 + $0x2058] sm:$0xff] }
  0xce   :  { %2010 = vmatpush2.msra.mxu1 %v1116_v22  ;;  %1922 = vmatprep.subr.mxu0 %v952_v55  ;;  %v1421_v22 = vld [vmem:[%s8822_s2 + $0x2558] sm:$0xff] }
  0xcf   :  { %2011 = vmatprep.subr.mxu1 %v1112_v25  ;;  %1923 = vmatpush2.msra.mxu0 %v951_v33  ;;  %v1417_v55 = vld [vmem:[%s8822_s2 + $0x2538] sm:$0xff]  ;;  %v5514_v25 = vmul.f32 %v5415_v12, %v39_v6  ;;  %v1256_v33 = vld [vmem:[%s8822_s2 + $0x2030] sm:$0xff]  ;;  %v54_v6 = vld [vmem:[%s8824_s0 + $0x140] sm:$0xff] }
  0xd0   :  { %2012 = vmatpush2.msra.mxu1 %v1111_v35  ;;  %1924 = vmatprep.subr.mxu0 %v947_v56  ;;  %v5524_v35 = vmul.f32 %v5420_v19, %v38_v10  ;;  %v40_v56 = vld [vmem:[%s8824_s0 + $0xd0] sm:$0xff] }
  0xd1   :  { %2013 = vmatprep.subr.mxu1 %v1107_v38  ;;  %1925 = vmatpush2.msra.mxu0 %v946_v46  ;;  %v1252_v38 = vld [vmem:[%s8822_s2 + $0x2010] sm:$0xff]  ;;  %v5539_v46 = vmul.f32 %v5443_v31, %v41_v26  ;;  %v5556_v10 = vmul.f32 %v5448_v51, %v40_v56  ;;  %v1246_v26 = vld [vmem:[%s8822_s2 + $0x1fe0] sm:$0xff] }
  0xd2   :  { %1926 = vmatprep.mubr.f32.mxu0 %v5466_v42  ;;  %2014 = vmatpush2.msra.mxu1 %v1106_v58  ;;  %v55_v58 = vld [vmem:[%s8824_s0 + $0x148] sm:$0xff]  ;;  %v56_v56 = vld [vmem:[%s8824_s0 + $0x150] sm:$0xff] }
  0xd3   :  { %1927 = vmatmul.mubr.f32.vlgmr.msra.gmra.mxu0 %v5475_v53  ;;  %2015 = vmatprep.mubr.f32.mxu1 %v5481_v60 }
  0xd4   :  { %2040 = vmatprep.subr.mxu0 %v1262_v9  ;;  %2129 = vmatprep.subr.mxu1 %v1422_v11  ;;  %v1251_v9 = vld [vmem:[%s8822_s2 + $0x2008] sm:$0xff] }
  0xd5   :  { %2016 = vmatmul.mubr.f32.vlgmr.msra.gmra.mxu1 %v5487_v4  ;;  %2041 = vmatpush1.msra.mxu0 %v1261_v20  ;;  %v1411_v11 = vld [vmem:[%s8822_s2 + $0x2508] sm:$0xff] }
  0xd6   :  { %2130 = vmatpush1.msra.mxu1 %v1421_v22  ;;  %2042 = vmatprep.subr.mxu0 %v1257_v48  ;;  %v1247_v20 = vld [vmem:[%s8822_s2 + $0x1fe8] sm:$0xff]  ;;  %v5565_v48 = vmul.f32 %v5415_v12, %v55_v58 }
  0xd7   :  { %2131 = vmatprep.subr.mxu1 %v1417_v55  ;;  %1932 = vmatprep.mubr.f32.mxu0 %v5514_v25  ;;  %v1407_v22 = vld [vmem:[%s8822_s2 + $0x24e8] sm:$0xff]  ;;  %v57_v55 = vld [vmem:[%s8824_s0 + $0x158] sm:$0xff] }
  0xd8   :  { %2043 = vmatpush1.msra.mxu0 %v1256_v33  ;;  %2132 = vmatpush1.msra.mxu1 %v1416_v52  ;;  %v5575_v33 = vmul.f32 %v5420_v19, %v54_v6  ;;  %v1406_v52 = vld [vmem:[%s8822_s2 + $0x24e0] sm:$0xff]  ;;  %v5591_v58 = vmul.f32 %v5443_v31, %v57_v55  ;;  %v1241_v6 = vld [vmem:[%s8822_s2 + $0x1fb8] sm:$0xff] }
  0xd9   :  { %1933 = vmatmul.mubr.f32.gmra.mxu0 %v5524_v35  ;;  %2044 = vmatprep.subr.mxu0 %v1252_v38  ;;  %v1242_v38 = vld [vmem:[%s8822_s2 + $0x1fc0] sm:$0xff]  ;;  %v1237_v55 = vld [vmem:[%s8822_s2 + $0x1f98] sm:$0xff] }
  0xda   :  { %2133 = vmatprep.subr.mxu1 %v1412_v43  ;;  %2021 = vmatprep.mubr.f32.mxu1 %v5539_v46  ;;  %v1402_v43 = vld [vmem:[%s8822_s2 + $0x24c0] sm:$0xff] }
  0xdb   :  { %2045 = vmatpush1.msra.mxu0 %v1251_v9  ;;  %2134 = vmatpush1.msra.mxu1 %v1411_v11  ;;  %v71_v9 = vld [vmem:[%s8824_s0 + $0x1c8] sm:$0xff]  ;;  %v70_v11 = vld [vmem:[%s8824_s0 + $0x1c0] sm:$0xff] }
  0xdc   :  { %2046 = vmatprep.subr.mxu0 %v1247_v20  ;;  %2022 = vmatmul.mubr.f32.gmra.mxu1 %v5556_v10  ;;  %v1401_v20 = vld [vmem:[%s8822_s2 + $0x24b8] sm:$0xff] }
  0xdd   :  { %2135 = vmatprep.subr.mxu1 %v1407_v22  ;;  %1938 = vmatprep.mubr.f32.mxu0 %v5565_v48  ;;  %v5608_v22 = vmul.f32 %v5448_v51, %v56_v56  ;;  %v1236_v56 = vld [vmem:[%s8822_s2 + $0x1f90] sm:$0xff] }
  0xde   :  { %2047 = vmatpush1.msra.mxu0 %v1246_v26  ;;  %2136 = vmatpush1.msra.mxu1 %v1406_v52  ;;  %v1397_v26 = vld [vmem:[%s8822_s2 + $0x2498] sm:$0xff]  ;;  %v5617_v52 = vmul.f32 %v5415_v12, %v71_v9  ;;  %v1396_v12 = vld [vmem:[%s8822_s2 + $0x2490] sm:$0xff] }
  0xdf   :  { %1939 = vmatmul.mubr.f32.gmra.mxu0 %v5575_v33  ;;  %2048 = vmatprep.subr.mxu0 %v1242_v38  ;;  %v5627_v38 = vmul.f32 %v5420_v19, %v70_v11  ;;  %v1232_v9 = vld [vmem:[%s8822_s2 + $0x1f70] sm:$0xff]  ;;  %v1231_v11 = vld [vmem:[%s8822_s2 + $0x1f68] sm:$0xff] }
  0xe0   :  { %2137 = vmatprep.subr.mxu1 %v1402_v43  ;;  %8931 = vst [vmem:[#allocation34_spill] sm:$0xff] %v5617_v52  ;;  %2027 = vmatprep.mubr.f32.mxu1 %v5591_v58  ;;  %v72_v43 = vld [vmem:[%s8824_s0 + $0x1d0] sm:$0xff] }
  0xe1   :  { %2049 = vmatpush1.msra.mxu0 %v1241_v6  ;;  %8932 = vst [vmem:[#allocation35_spill] sm:$0xff] %v5627_v38  ;;  %2138 = vmatpush1.msra.mxu1 %v1401_v20  ;;  %v1392_v19 = vld [vmem:[%s8822_s2 + $0x2470] sm:$0xff]  ;;  %v5643_v6 = vmul.f32 %v5443_v31, %v73_v8  ;;  %v1391_v20 = vld [vmem:[%s8822_s2 + $0x2468] sm:$0xff] }
  0xe2   :  { %2050 = vmatprep.subr.mxu0 %v1237_v55  ;;  %2028 = vmatmul.mubr.f32.gmra.mxu1 %v5608_v22  ;;  %v5654_v55 = vmul.f32 %v5448_v51, %v72_v43  ;;  %v1227_v8 = vld [vmem:[%s8822_s2 + $0x1f48] sm:$0xff]  ;;  %v1386_v51 = vld [vmem:[%s8822_s2 + $0x2440] sm:$0xff]  ;;  %v1221_v43 = vld [vmem:[%s8822_s2 + $0x1f18] sm:$0xff] }
  0xe3   :  { %2139 = vmatprep.subr.mxu1 %v1397_v26  ;;  %8933 = vst [vmem:[#allocation36_spill] sm:$0xff] %v5643_v6  ;;  %1944 = vmatprep.mubr.f32.mxu0 %v5617_v52  ;;  %v1387_v31 = vld [vmem:[%s8822_s2 + $0x2448] sm:$0xff]  ;;  %v1226_v26 = vld [vmem:[%s8822_s2 + $0x1f40] sm:$0xff]  ;;  %v868_v52 = vld [vmem:[%s8822_s2 + $0x1410] sm:$0xff] }
  0xe4   :  { %2051 = vmatpush1.msra.mxu0 %v1236_v56  ;;  %2140 = vmatpush1.msra.mxu1 %v1396_v12  ;;  %8934 = vst [vmem:[#allocation37_spill] sm:$0xff] %v5654_v55  ;;  %v1222_v56 = vld [vmem:[%s8822_s2 + $0x1f20] sm:$0xff] }
  0xe5   :  { %1945 = vmatmul.mubr.f32.gmra.mxu0 %v5627_v38  ;;  %2052 = vmatprep.subr.mxu0 %v1232_v9  ;;  %v1382_v12 = vld [vmem:[%s8822_s2 + $0x2420] sm:$0xff]  ;;  %v1381_v9 = vld [vmem:[%s8822_s2 + $0x2418] sm:$0xff] }
  0xe6   :  { %2141 = vmatprep.subr.mxu1 %v1392_v19  ;;  %2033 = vmatprep.mubr.f32.mxu1 %v5643_v6  ;;  %v1217_v19 = vld [vmem:[%s8822_s2 + $0x1ef8] sm:$0xff]  ;;  %v8935_v6 = vsub.s32 6, %v4312_v39  ;;  %v28_v39 = vld [vmem:[%s8824_s0 + $0x70] sm:$0xff] }
  0xe7   :  { %2053 = vmatpush1.msra.mxu0 %v1231_v11  ;;  %2142 = vmatpush1.msra.mxu1 %v1391_v20  ;;  %v1377_v11 = vld [vmem:[%s8822_s2 + $0x23f8] sm:$0xff]  ;;  %v1216_v20 = vld [vmem:[%s8822_s2 + $0x1ef0] sm:$0xff] }
  0xe8   :  { %2054 = vmatprep.subr.mxu0 %v1227_v8  ;;  %2034 = vmatmul.mubr.f32.gmra.mxu1 %v5654_v55  ;;  %v1376_v8 = vld [vmem:[%s8822_s2 + $0x23f0] sm:$0xff]  ;;  %v5959_v55 = vrot.slane %v5386_v49, %v112_v3  ;;  %v5973_v38 = vrot.slane %v5386_v49, %v8935_v6  ;;  %v1267_v3 = vld [vmem:[%s8822_s2 + $0x2088] sm:$0xff] }
  0xe9   :  { %2143 = vmatprep.subr.mxu1 %v1387_v31  ;;  %2055 = vmatpush1.msra.mxu0 %v1226_v26  ;;  %v1212_v31 = vld [vmem:[%s8822_s2 + $0x1ed0] sm:$0xff] }
  0xea   :  { %2144 = vmatpush1.msra.mxu1 %v1386_v51  ;;  %2056 = vmatprep.subr.mxu0 %v1222_v56  ;;  %v1372_v26 = vld [vmem:[%s8822_s2 + $0x23d0] sm:$0xff]  ;;  %v1211_v51 = vld [vmem:[%s8822_s2 + $0x1ec8] sm:$0xff] }
  0xeb   :  { %2145 = vmatprep.subr.mxu1 %v1382_v12  ;;  %2057 = vmatpush1.msra.mxu0 %v1221_v43  ;;  %v1371_v56 = vld [vmem:[%s8822_s2 + $0x23c8] sm:$0xff] }
  0xec   :  { %2146 = vmatpush1.msra.mxu1 %v1381_v9  ;;  %2058 = vmatprep.subr.mxu0 %v1217_v19  ;;  %v1207_v12 = vld [vmem:[%s8822_s2 + $0x1ea8] sm:$0xff]  ;;  %v1206_v9 = vld [vmem:[%s8822_s2 + $0x1ea0] sm:$0xff] }
  0xed   :  { %2147 = vmatprep.subr.mxu1 %v1377_v11  ;;  %2059 = vmatpush1.msra.mxu0 %v1216_v20  ;;  %v1367_v43 = vld [vmem:[%s8822_s2 + $0x23a8] sm:$0xff]  ;;  %v1366_v19 = vld [vmem:[%s8822_s2 + $0x23a0] sm:$0xff] }
  0xee   :  { %2148 = vmatpush1.msra.mxu1 %v1376_v8  ;;  %2060 = vmatprep.subr.mxu0 %v1212_v31  ;;  %v1202_v11 = vld [vmem:[%s8822_s2 + $0x1e80] sm:$0xff]  ;;  %v1201_v8 = vld [vmem:[%s8822_s2 + $0x1e78] sm:$0xff] }
  0xef   :  { %2149 = vmatprep.subr.mxu1 %v1372_v26  ;;  %2061 = vmatpush1.msra.mxu0 %v1211_v51  ;;  %v1362_v20 = vld [vmem:[%s8822_s2 + $0x2380] sm:$0xff]  ;;  %v1361_v31 = vld [vmem:[%s8822_s2 + $0x2378] sm:$0xff] }
  0xf0   :  { %2150 = vmatpush1.msra.mxu1 %v1371_v56  ;;  %2062 = vmatprep.subr.mxu0 %v1207_v12  ;;  %v1197_v26 = vld [vmem:[%s8822_s2 + $0x1e58] sm:$0xff]  ;;  %v1196_v56 = vld [vmem:[%s8822_s2 + $0x1e50] sm:$0xff] }
  0xf1   :  { %2151 = vmatprep.subr.mxu1 %v1367_v43  ;;  %2063 = vmatpush1.msra.mxu0 %v1206_v9  ;;  %v1357_v51 = vld [vmem:[%s8822_s2 + $0x2358] sm:$0xff]  ;;  %v1356_v12 = vld [vmem:[%s8822_s2 + $0x2350] sm:$0xff] }
  0xf2   :  { %2152 = vmatpush1.msra.mxu1 %v1366_v19  ;;  %2064 = vmatprep.subr.mxu0 %v1202_v11  ;;  %v1192_v43 = vld [vmem:[%s8822_s2 + $0x1e30] sm:$0xff]  ;;  %v1191_v19 = vld [vmem:[%s8822_s2 + $0x1e28] sm:$0xff] }
  0xf3   :  { %2153 = vmatprep.subr.mxu1 %v1362_v20  ;;  %2065 = vmatpush1.msra.mxu0 %v1201_v8  ;;  %v1352_v9 = vld [vmem:[%s8822_s2 + $0x2330] sm:$0xff]  ;;  %v1351_v11 = vld [vmem:[%s8822_s2 + $0x2328] sm:$0xff] }
  0xf4   :  { %2154 = vmatpush1.msra.mxu1 %v1361_v31  ;;  %2066 = vmatprep.subr.mxu0 %v1197_v26  ;;  %v1187_v20 = vld [vmem:[%s8822_s2 + $0x1e08] sm:$0xff]  ;;  %v1186_v31 = vld [vmem:[%s8822_s2 + $0x1e00] sm:$0xff] }
  0xf5   :  { %2155 = vmatprep.subr.mxu1 %v1357_v51  ;;  %2067 = vmatpush1.msra.mxu0 %v1196_v56  ;;  %v1347_v8 = vld [vmem:[%s8822_s2 + $0x2308] sm:$0xff]  ;;  %v1346_v26 = vld [vmem:[%s8822_s2 + $0x2300] sm:$0xff] }
  0xf6   :  { %2156 = vmatpush1.msra.mxu1 %v1356_v12  ;;  %2068 = vmatprep.subr.mxu0 %v1192_v43  ;;  %v1342_v51 = vld [vmem:[%s8822_s2 + $0x22e0] sm:$0xff]  ;;  %v1341_v12 = vld [vmem:[%s8822_s2 + $0x22d8] sm:$0xff] }
  0xf7   :  { %2157 = vmatprep.subr.mxu1 %v1352_v9  ;;  %2069 = vmatpush1.msra.mxu0 %v1191_v19  ;;  %v1502_v56 = vld [vmem:[%s8822_s2 + $0x27e0] sm:$0xff]  ;;  %v1501_v43 = vld [vmem:[%s8822_s2 + $0x27d8] sm:$0xff] }
  0xf8   :  { %2158 = vmatpush1.msra.mxu1 %v1351_v11  ;;  %2070 = vmatprep.subr.mxu0 %v1187_v20  ;;  %v1337_v9 = vld [vmem:[%s8822_s2 + $0x22b8] sm:$0xff]  ;;  %v1336_v11 = vld [vmem:[%s8822_s2 + $0x22b0] sm:$0xff] }
  0xf9   :  { %2159 = vmatprep.subr.mxu1 %v1347_v8  ;;  %2071 = vmatpush1.msra.mxu0 %v1186_v31  ;;  %v1497_v19 = vld [vmem:[%s8822_s2 + $0x27b8] sm:$0xff]  ;;  %v1496_v20 = vld [vmem:[%s8822_s2 + $0x27b0] sm:$0xff] }
  0xfa   :  { %2160 = vmatpush1.msra.mxu1 %v1346_v26  ;;  %2072 = vmatprep.subr.mxu0 %v1342_v51  ;;  %v1332_v8 = vld [vmem:[%s8822_s2 + $0x2290] sm:$0xff]  ;;  %v1331_v26 = vld [vmem:[%s8822_s2 + $0x2288] sm:$0xff] }
  0xfb   :  { %2161 = vmatprep.subr.mxu1 %v1502_v56  ;;  %2073 = vmatpush2.msra.mxu0 %v1341_v12  ;;  %v1492_v31 = vld [vmem:[%s8822_s2 + $0x2790] sm:$0xff]  ;;  %v1491_v51 = vld [vmem:[%s8822_s2 + $0x2788] sm:$0xff] }
  0xfc   :  { %2162 = vmatpush2.msra.mxu1 %v1501_v43  ;;  %2074 = vmatprep.subr.mxu0 %v1337_v9  ;;  %v1327_v56 = vld [vmem:[%s8822_s2 + $0x2268] sm:$0xff]  ;;  %v1326_v43 = vld [vmem:[%s8822_s2 + $0x2260] sm:$0xff] }
  0xfd   :  { %2163 = vmatprep.subr.mxu1 %v1497_v19  ;;  %2075 = vmatpush2.msra.mxu0 %v1336_v11  ;;  %v1487_v12 = vld [vmem:[%s8822_s2 + $0x2768] sm:$0xff]  ;;  %v1486_v9 = vld [vmem:[%s8822_s2 + $0x2760] sm:$0xff] }
  0xfe   :  { %2164 = vmatpush2.msra.mxu1 %v1496_v20  ;;  %2076 = vmatprep.subr.mxu0 %v1332_v8  ;;  %v1322_v19 = vld [vmem:[%s8822_s2 + $0x2240] sm:$0xff]  ;;  %v1321_v20 = vld [vmem:[%s8822_s2 + $0x2238] sm:$0xff] }
  0xff   :  { %2165 = vmatprep.subr.mxu1 %v1492_v31  ;;  %2077 = vmatpush2.msra.mxu0 %v1331_v26  ;;  %v1482_v11 = vld [vmem:[%s8822_s2 + $0x2740] sm:$0xff]  ;;  %v1481_v8 = vld [vmem:[%s8822_s2 + $0x2738] sm:$0xff] }
 0x100   :  { %2166 = vmatpush2.msra.mxu1 %v1491_v51  ;;  %2078 = vmatprep.subr.mxu0 %v1327_v56  ;;  %v1317_v31 = vld [vmem:[%s8822_s2 + $0x2218] sm:$0xff]  ;;  %v1316_v51 = vld [vmem:[%s8822_s2 + $0x2210] sm:$0xff] }
 0x101   :  { %2167 = vmatprep.subr.mxu1 %v1487_v12  ;;  %2079 = vmatpush2.msra.mxu0 %v1326_v43  ;;  %v1477_v26 = vld [vmem:[%s8822_s2 + $0x2718] sm:$0xff]  ;;  %v1476_v56 = vld [vmem:[%s8822_s2 + $0x2710] sm:$0xff] }
 0x102   :  { %2168 = vmatpush2.msra.mxu1 %v1486_v9  ;;  %2080 = vmatprep.subr.mxu0 %v1322_v19  ;;  %v1312_v12 = vld [vmem:[%s8822_s2 + $0x21f0] sm:$0xff]  ;;  %v1311_v9 = vld [vmem:[%s8822_s2 + $0x21e8] sm:$0xff] }
 0x103   :  { %2169 = vmatprep.subr.mxu1 %v1482_v11  ;;  %2081 = vmatpush2.msra.mxu0 %v1321_v20  ;;  %v1472_v43 = vld [vmem:[%s8822_s2 + $0x26f0] sm:$0xff]  ;;  %v1471_v19 = vld [vmem:[%s8822_s2 + $0x26e8] sm:$0xff] }
 0x104   :  { %2170 = vmatpush2.msra.mxu1 %v1481_v8  ;;  %2082 = vmatprep.subr.mxu0 %v1317_v31  ;;  %v1307_v11 = vld [vmem:[%s8822_s2 + $0x21c8] sm:$0xff]  ;;  %v1306_v8 = vld [vmem:[%s8822_s2 + $0x21c0] sm:$0xff] }
 0x105   :  { %2171 = vmatprep.subr.mxu1 %v1477_v26  ;;  %2083 = vmatpush2.msra.mxu0 %v1316_v51  ;;  %v1467_v20 = vld [vmem:[%s8822_s2 + $0x26c8] sm:$0xff]  ;;  %v1466_v31 = vld [vmem:[%s8822_s2 + $0x26c0] sm:$0xff] }
 0x106   :  { %2172 = vmatpush2.msra.mxu1 %v1476_v56  ;;  %2084 = vmatprep.subr.mxu0 %v1312_v12  ;;  %v1302_v26 = vld [vmem:[%s8822_s2 + $0x21a0] sm:$0xff]  ;;  %v1301_v56 = vld [vmem:[%s8822_s2 + $0x2198] sm:$0xff] }
 0x107   :  { %2173 = vmatprep.subr.mxu1 %v1472_v43  ;;  %2085 = vmatpush2.msra.mxu0 %v1311_v9  ;;  %v1462_v51 = vld [vmem:[%s8822_s2 + $0x26a0] sm:$0xff]  ;;  %v1461_v12 = vld [vmem:[%s8822_s2 + $0x2698] sm:$0xff] }
 0x108   :  { %2174 = vmatpush2.msra.mxu1 %v1471_v19  ;;  %2086 = vmatprep.subr.mxu0 %v1307_v11  ;;  %v1297_v43 = vld [vmem:[%s8822_s2 + $0x2178] sm:$0xff]  ;;  %v1296_v19 = vld [vmem:[%s8822_s2 + $0x2170] sm:$0xff] }
 0x109   :  { %2175 = vmatprep.subr.mxu1 %v1467_v20  ;;  %2087 = vmatpush2.msra.mxu0 %v1306_v8  ;;  %v1457_v9 = vld [vmem:[%s8822_s2 + $0x2678] sm:$0xff]  ;;  %v1456_v11 = vld [vmem:[%s8822_s2 + $0x2670] sm:$0xff] }
 0x10a   :  { %2176 = vmatpush2.msra.mxu1 %v1466_v31  ;;  %2088 = vmatprep.subr.mxu0 %v1302_v26  ;;  %v1292_v20 = vld [vmem:[%s8822_s2 + $0x2150] sm:$0xff]  ;;  %v1291_v31 = vld [vmem:[%s8822_s2 + $0x2148] sm:$0xff] }
 0x10b   :  { %2177 = vmatprep.subr.mxu1 %v1462_v51  ;;  %2089 = vmatpush2.msra.mxu0 %v1301_v56  ;;  %v1452_v8 = vld [vmem:[%s8822_s2 + $0x2650] sm:$0xff]  ;;  %v1451_v26 = vld [vmem:[%s8822_s2 + $0x2648] sm:$0xff] }
 0x10c   :  { %2178 = vmatpush2.msra.mxu1 %v1461_v12  ;;  %2090 = vmatprep.subr.mxu0 %v1297_v43  ;;  %v1287_v51 = vld [vmem:[%s8822_s2 + $0x2128] sm:$0xff]  ;;  %v1286_v12 = vld [vmem:[%s8822_s2 + $0x2120] sm:$0xff] }
 0x10d   :  { %2179 = vmatprep.subr.mxu1 %v1457_v9  ;;  %2091 = vmatpush2.msra.mxu0 %v1296_v19  ;;  %v1447_v56 = vld [vmem:[%s8822_s2 + $0x2628] sm:$0xff]  ;;  %v1446_v43 = vld [vmem:[%s8822_s2 + $0x2620] sm:$0xff] }
 0x10e   :  { %2180 = vmatpush2.msra.mxu1 %v1456_v11  ;;  %2092 = vmatprep.subr.mxu0 %v1292_v20  ;;  %v1282_v9 = vld [vmem:[%s8822_s2 + $0x2100] sm:$0xff]  ;;  %v1281_v11 = vld [vmem:[%s8822_s2 + $0x20f8] sm:$0xff] }
 0x10f   :  { %2181 = vmatprep.subr.mxu1 %v1452_v8  ;;  %2093 = vmatpush2.msra.mxu0 %v1291_v31  ;;  %v1442_v19 = vld [vmem:[%s8822_s2 + $0x2600] sm:$0xff]  ;;  %v1441_v20 = vld [vmem:[%s8822_s2 + $0x25f8] sm:$0xff] }
 0x110   :  { %2182 = vmatpush2.msra.mxu1 %v1451_v26  ;;  %2094 = vmatprep.subr.mxu0 %v1287_v51  ;;  %v1277_v8 = vld [vmem:[%s8822_s2 + $0x20d8] sm:$0xff]  ;;  %v5931_v26 = vrot.slane %v5386_v49, %v104_v59  ;;  %v1276_v51 = vld [vmem:[%s8822_s2 + $0x20d0] sm:$0xff] }
 0x111   :  { %2183 = vmatprep.subr.mxu1 %v1447_v56  ;;  %2095 = vmatpush2.msra.mxu0 %v1286_v12  ;;  %v1437_v31 = vld [vmem:[%s8822_s2 + $0x25d8] sm:$0xff]  ;;  %v1436_v56 = vld [vmem:[%s8822_s2 + $0x25d0] sm:$0xff]  ;;  %v27_v12 = vld [vmem:[%s8824_s0 + $0x68] sm:$0xff] }
 0x112   :  { %2184 = vmatpush2.msra.mxu1 %v1446_v43  ;;  %2096 = vmatprep.subr.mxu0 %v1282_v9  ;;  %v5945_v43 = vrot.slane %v5386_v49, %v100_v1  ;;  %v1272_v59 = vld [vmem:[%s8822_s2 + $0x20b0] sm:$0xff]  ;;  %v1271_v1 = vld [vmem:[%s8822_s2 + $0x20a8] sm:$0xff]  ;;  %v1266_v49 = vld [vmem:[%s8822_s2 + $0x2080] sm:$0xff] }
 0x113   :  { %2185 = vmatprep.subr.mxu1 %v1442_v19  ;;  %2097 = vmatpush2.msra.mxu0 %v1281_v11  ;;  %v1432_v9 = vld [vmem:[%s8822_s2 + $0x25b0] sm:$0xff]  ;;  %v26_v19 = vld [vmem:[%s8824_s0 + $0x60] sm:$0xff]  ;;  %v1431_v11 = vld [vmem:[%s8822_s2 + $0x25a8] sm:$0xff] }
 0x114   :  { %2186 = vmatpush2.msra.mxu1 %v1441_v20  ;;  %2098 = vmatprep.subr.mxu0 %v1277_v8  ;;  %v29_v20 = vld [vmem:[%s8824_s0 + $0x78] sm:$0xff]  ;;  %v1427_v8 = vld [vmem:[%s8822_s2 + $0x2588] sm:$0xff]  ;;  %v5991_v6 = vmul.f32 %v5945_v43, %v26_v19  ;;  %v464_v19 = vld [vmem:[%s8822_s2 + $0x770] sm:$0xff] }
 0x115   :  { %2187 = vmatprep.subr.mxu1 %v1437_v31  ;;  %2099 = vmatpush2.msra.mxu0 %v1276_v51  ;;  %v5982_v31 = vmul.f32 %v5931_v26, %v27_v12  ;;  %v1426_v51 = vld [vmem:[%s8822_s2 + $0x2580] sm:$0xff]  ;;  %v304_v12 = vld [vmem:[%s8822_s2 + $0x270] sm:$0xff] }
 0x116   :  { %2188 = vmatpush2.msra.mxu1 %v1436_v56  ;;  %2100 = vmatprep.subr.mxu0 %v1272_v59  ;;  %8937 = vst [vmem:[#allocation39_spill] sm:$0xff] %v5991_v6  ;;  %v5997_v56 = vmul.f32 %v5959_v55, %v29_v20  ;;  %v6003_v59 = vmul.f32 %v5973_v38, %v28_v39  ;;  %v463_v20 = vld [vmem:[%s8822_s2 + $0x768] sm:$0xff] }
 0x117   :  { %8936 = vst [vmem:[#allocation38_spill] sm:$0xff] %v5982_v31  ;;  %2189 = vmatprep.subr.mxu1 %v1432_v9  ;;  %2101 = vmatpush2.msra.mxu0 %v1271_v1  ;;  %v43_v9 = vld [vmem:[%s8824_s0 + $0xe8] sm:$0xff]  ;;  %v42_v1 = vld [vmem:[%s8824_s0 + $0xe0] sm:$0xff] }
 0x118   :  { %2190 = vmatpush2.msra.mxu1 %v1431_v11  ;;  %8938 = vst [vmem:[#allocation40_spill] sm:$0xff] %v5997_v56  ;;  %2102 = vmatprep.subr.mxu0 %v1267_v3  ;;  %8939 = vst [vmem:[#allocation41_spill] sm:$0xff] %v6003_v59  ;;  %v303_v11 = vld [vmem:[%s8822_s2 + $0x268] sm:$0xff]  ;;  %v6030_v39 = vmul.f32 %v5931_v26, %v43_v9  ;;  %v458_v9 = vld [vmem:[%s8822_s2 + $0x740] sm:$0xff] }
 0x119   :  { %2191 = vmatprep.subr.mxu1 %v1427_v8  ;;  %2103 = vmatpush2.msra.mxu0 %v1266_v49  ;;  %v299_v3 = vld [vmem:[%s8822_s2 + $0x248] sm:$0xff]  ;;  %v45_v49 = vld [vmem:[%s8824_s0 + $0xf8] sm:$0xff] }
 0x11a   :  { %2104 = vmatprep.mubr.f32.mxu0 %v5982_v31  ;;  %2192 = vmatpush2.msra.mxu1 %v1426_v51  ;;  %v459_v8 = vld [vmem:[%s8822_s2 + $0x748] sm:$0xff]  ;;  %8940 = vst [vmem:[#allocation42_spill] sm:$0xff] %v6030_v39  ;;  %v298_v51 = vld [vmem:[%s8822_s2 + $0x240] sm:$0xff]  ;;  %v869_v31 = vld [vmem:[%s8822_s2 + $0x1418] sm:$0xff] }
 0x11b   :  { %2105 = vmatmul.mubr.f32.vlgmr.msra.gmra.mxu0 %v5991_v6  ;;  %2193 = vmatprep.mubr.f32.mxu1 %v5997_v56  ;;  %v44_v56 = vld [vmem:[%s8824_s0 + $0xf0] sm:$0xff]  ;;  %v1034_v6 = vld [vmem:[%s8822_s2 + $0x1940] sm:$0xff] }
 0x11c   :  { %2218 = vmatprep.subr.mxu0 %v304_v12  ;;  %2307 = vmatprep.subr.mxu1 %v464_v19  ;;  %v6040_v12 = vmul.f32 %v5945_v43, %v42_v1  ;;  %v294_v19 = vld [vmem:[%s8822_s2 + $0x220] sm:$0xff] }
 0x11d   :  { %2194 = vmatmul.mubr.f32.vlgmr.msra.gmra.mxu1 %v6003_v59  ;;  %2219 = vmatpush1.msra.mxu0 %v303_v11  ;;  %v454_v1 = vld [vmem:[%s8822_s2 + $0x720] sm:$0xff]  ;;  %v6055_v11 = vmul.f32 %v5959_v55, %v45_v49  ;;  %v453_v49 = vld [vmem:[%s8822_s2 + $0x718] sm:$0xff]  ;;  %v6072_v59 = vmul.f32 %v5973_v38, %v44_v56  ;;  %v288_v56 = vld [vmem:[%s8822_s2 + $0x1f0] sm:$0xff] }
 0x11e   :  { %8941 = vst [vmem:[#allocation43_spill] sm:$0xff] %v6040_v12  ;;  %2308 = vmatpush1.msra.mxu1 %v463_v20  ;;  %2220 = vmatprep.subr.mxu0 %v299_v3  ;;  %v59_v20 = vld [vmem:[%s8824_s0 + $0x168] sm:$0xff]  ;;  %v293_v3 = vld [vmem:[%s8822_s2 + $0x218] sm:$0xff] }
 0x11f   :  { %2309 = vmatprep.subr.mxu1 %v459_v8  ;;  %8942 = vst [vmem:[#allocation44_spill] sm:$0xff] %v6055_v11  ;;  %2110 = vmatprep.mubr.f32.mxu0 %v6030_v39  ;;  %v58_v8 = vld [vmem:[%s8824_s0 + $0x160] sm:$0xff]  ;;  %8943 = vst [vmem:[#allocation45_spill] sm:$0xff] %v6072_v59  ;;  %v449_v39 = vld [vmem:[%s8822_s2 + $0x6f8] sm:$0xff] }
 0x120   :  { %2221 = vmatpush1.msra.mxu0 %v298_v51  ;;  %2310 = vmatpush1.msra.mxu1 %v458_v9  ;;  %v289_v51 = vld [vmem:[%s8822_s2 + $0x1f8] sm:$0xff]  ;;  %v6081_v9 = vmul.f32 %v5931_v26, %v59_v20  ;;  %v60_v20 = vld [vmem:[%s8824_s0 + $0x170] sm:$0xff] }
 0x121   :  { %2111 = vmatmul.mubr.f32.gmra.mxu0 %v6040_v12  ;;  %2222 = vmatprep.subr.mxu0 %v294_v19  ;;  %v61_v12 = vld [vmem:[%s8824_s0 + $0x178] sm:$0xff]  ;;  %v6091_v19 = vmul.f32 %v5945_v43, %v58_v8  ;;  %v444_v8 = vld [vmem:[%s8822_s2 + $0x6d0] sm:$0xff] }
 0x122   :  { %2311 = vmatprep.subr.mxu1 %v454_v1  ;;  %8944 = vst [vmem:[#allocation46_spill] sm:$0xff] %v6081_v9  ;;  %2199 = vmatprep.mubr.f32.mxu1 %v6055_v11  ;;  %v448_v1 = vld [vmem:[%s8822_s2 + $0x6f0] sm:$0xff]  ;;  %v6124_v11 = vmul.f32 %v5973_v38, %v60_v20  ;;  %v278_v20 = vld [vmem:[%s8822_s2 + $0x1a0] sm:$0xff] }
 0x123   :  { %2223 = vmatpush1.msra.mxu0 %v293_v3  ;;  %8945 = vst [vmem:[#allocation47_spill] sm:$0xff] %v6091_v19  ;;  %2312 = vmatpush1.msra.mxu1 %v453_v49  ;;  %v284_v3 = vld [vmem:[%s8822_s2 + $0x1d0] sm:$0xff]  ;;  %v6107_v49 = vmul.f32 %v5959_v55, %v61_v12  ;;  %v443_v12 = vld [vmem:[%s8822_s2 + $0x6c8] sm:$0xff] }
 0x124   :  { %2224 = vmatprep.subr.mxu0 %v289_v51  ;;  %2200 = vmatmul.mubr.f32.gmra.mxu1 %v6072_v59  ;;  %v75_v51 = vld [vmem:[%s8824_s0 + $0x1e8] sm:$0xff]  ;;  %v74_v59 = vld [vmem:[%s8824_s0 + $0x1e0] sm:$0xff]  ;;  %8947 = vst [vmem:[#allocation49_spill] sm:$0xff] %v6124_v11 }
 0x125   :  { %2313 = vmatprep.subr.mxu1 %v449_v39  ;;  %8946 = vst [vmem:[#allocation48_spill] sm:$0xff] %v6107_v49  ;;  %2116 = vmatprep.mubr.f32.mxu0 %v6081_v9  ;;  %v283_v39 = vld [vmem:[%s8822_s2 + $0x1c8] sm:$0xff] }
 0x126   :  { %2225 = vmatpush1.msra.mxu0 %v288_v56  ;;  %2314 = vmatpush1.msra.mxu1 %v448_v1  ;;  %v279_v56 = vld [vmem:[%s8822_s2 + $0x1a8] sm:$0xff]  ;;  %v6133_v1 = vmul.f32 %v5931_v26, %v75_v51  ;;  %v438_v26 = vld [vmem:[%s8822_s2 + $0x6a0] sm:$0xff] }
 0x127   :  { %2117 = vmatmul.mubr.f32.gmra.mxu0 %v6091_v19  ;;  %2226 = vmatprep.subr.mxu0 %v284_v3  ;;  %v439_v9 = vld [vmem:[%s8822_s2 + $0x6a8] sm:$0xff]  ;;  %v77_v19 = vld [vmem:[%s8824_s0 + $0x1f8] sm:$0xff]  ;;  %v6143_v3 = vmul.f32 %v5945_v43, %v74_v59  ;;  %v274_v51 = vld [vmem:[%s8822_s2 + $0x180] sm:$0xff] }
 0x128   :  { %2315 = vmatprep.subr.mxu1 %v444_v8  ;;  %8948 = vst [vmem:[#allocation50_spill] sm:$0xff] %v6133_v1  ;;  %2205 = vmatprep.mubr.f32.mxu1 %v6107_v49  ;;  %v76_v8 = vld [vmem:[%s8824_s0 + $0x1f0] sm:$0xff]  ;;  %v434_v43 = vld [vmem:[%s8822_s2 + $0x680] sm:$0xff]  ;;  %v6159_v59 = vmul.f32 %v5959_v55, %v77_v19  ;;  %v269_v55 = vld [vmem:[%s8822_s2 + $0x158] sm:$0xff] }
 0x129   :  { %2227 = vmatpush1.msra.mxu0 %v283_v39  ;;  %8949 = vst [vmem:[#allocation51_spill] sm:$0xff] %v6143_v3  ;;  %2316 = vmatpush1.msra.mxu1 %v443_v12  ;;  %v273_v39 = vld [vmem:[%s8822_s2 + $0x178] sm:$0xff]  ;;  %v6170_v12 = vmul.f32 %v5973_v38, %v76_v8  ;;  %v428_v38 = vld [vmem:[%s8822_s2 + $0x650] sm:$0xff]  ;;  %v263_v8 = vld [vmem:[%s8822_s2 + $0x128] sm:$0xff] }
 0x12a   :  { %2228 = vmatprep.subr.mxu0 %v279_v56  ;;  %2206 = vmatmul.mubr.f32.gmra.mxu1 %v6124_v11  ;;  %8950 = vst [vmem:[#allocation52_spill] sm:$0xff] %v6159_v59  ;;  %v429_v19 = vld [vmem:[%s8822_s2 + $0x658] sm:$0xff]  ;;  %v268_v56 = vld [vmem:[%s8822_s2 + $0x150] sm:$0xff]  ;;  %v663_v11 = vld [vmem:[%s8822_s2 + $0xda8] sm:$0xff] }
 0x12b   :  { %2317 = vmatprep.subr.mxu1 %v439_v9  ;;  %2122 = vmatprep.mubr.f32.mxu0 %v6133_v1  ;;  %v433_v9 = vld [vmem:[%s8822_s2 + $0x678] sm:$0xff]  ;;  %8951 = vst [vmem:[#allocation53_spill] sm:$0xff] %v6170_v12 }
 0x12c   :  { %2229 = vmatpush1.msra.mxu0 %v278_v20  ;;  %2318 = vmatpush1.msra.mxu1 %v438_v26  ;;  %v264_v20 = vld [vmem:[%s8822_s2 + $0x130] sm:$0xff]  ;;  %v829_v1 = vld [vmem:[%s8822_s2 + $0x12d8] sm:$0xff] }
 0x12d   :  { %2123 = vmatmul.mubr.f32.gmra.mxu0 %v6143_v3  ;;  %2230 = vmatprep.subr.mxu0 %v274_v51  ;;  %v424_v26 = vld [vmem:[%s8822_s2 + $0x630] sm:$0xff]  ;;  %v423_v51 = vld [vmem:[%s8822_s2 + $0x628] sm:$0xff]  ;;  %v673_v3 = vld [vmem:[%s8822_s2 + $0xdf8] sm:$0xff] }
 0x12e   :  { %2319 = vmatprep.subr.mxu1 %v434_v43  ;;  %2211 = vmatprep.mubr.f32.mxu1 %v6159_v59  ;;  %v259_v43 = vld [vmem:[%s8822_s2 + $0x108] sm:$0xff] }
 0x12f   :  { %2231 = vmatpush1.msra.mxu0 %v273_v39  ;;  %2320 = vmatpush1.msra.mxu1 %v433_v9  ;;  %v419_v39 = vld [vmem:[%s8822_s2 + $0x608] sm:$0xff]  ;;  %v258_v9 = vld [vmem:[%s8822_s2 + $0x100] sm:$0xff] }
 0x130   :  { %2232 = vmatprep.subr.mxu0 %v269_v55  ;;  %2212 = vmatmul.mubr.f32.gmra.mxu1 %v6170_v12  ;;  %v418_v55 = vld [vmem:[%s8822_s2 + $0x600] sm:$0xff]  ;;  %v683_v12 = vld [vmem:[%s8822_s2 + $0xe48] sm:$0xff] }
 0x131   :  { %2321 = vmatprep.subr.mxu1 %v429_v19  ;;  %2233 = vmatpush1.msra.mxu0 %v268_v56  ;;  %v254_v19 = vld [vmem:[%s8822_s2 + $0xe0] sm:$0xff]  ;;  %v839_v59 = vld [vmem:[%s8822_s2 + $0x1328] sm:$0xff] }
 0x132   :  { %2322 = vmatpush1.msra.mxu1 %v428_v38  ;;  %2234 = vmatprep.subr.mxu0 %v264_v20  ;;  %v414_v56 = vld [vmem:[%s8822_s2 + $0x5e0] sm:$0xff]  ;;  %v253_v38 = vld [vmem:[%s8822_s2 + $0xd8] sm:$0xff] }
 0x133   :  { %2323 = vmatprep.subr.mxu1 %v424_v26  ;;  %2235 = vmatpush1.msra.mxu0 %v263_v8  ;;  %v413_v20 = vld [vmem:[%s8822_s2 + $0x5d8] sm:$0xff] }
 0x134   :  { %2324 = vmatpush1.msra.mxu1 %v423_v51  ;;  %2236 = vmatprep.subr.mxu0 %v259_v43  ;;  %v249_v26 = vld [vmem:[%s8822_s2 + $0xb8] sm:$0xff]  ;;  %v248_v51 = vld [vmem:[%s8822_s2 + $0xb0] sm:$0xff] }
 0x135   :  { %2325 = vmatprep.subr.mxu1 %v419_v39  ;;  %2237 = vmatpush1.msra.mxu0 %v258_v9  ;;  %v409_v8 = vld [vmem:[%s8822_s2 + $0x5b8] sm:$0xff]  ;;  %v408_v43 = vld [vmem:[%s8822_s2 + $0x5b0] sm:$0xff] }
 0x136   :  { %2326 = vmatpush1.msra.mxu1 %v418_v55  ;;  %2238 = vmatprep.subr.mxu0 %v254_v19  ;;  %v244_v39 = vld [vmem:[%s8822_s2 + $0x90] sm:$0xff]  ;;  %v243_v55 = vld [vmem:[%s8822_s2 + $0x88] sm:$0xff] }
 0x137   :  { %2327 = vmatprep.subr.mxu1 %v414_v56  ;;  %2239 = vmatpush1.msra.mxu0 %v253_v38  ;;  %v404_v9 = vld [vmem:[%s8822_s2 + $0x590] sm:$0xff]  ;;  %v403_v19 = vld [vmem:[%s8822_s2 + $0x588] sm:$0xff] }
 0x138   :  { %2328 = vmatpush1.msra.mxu1 %v413_v20  ;;  %2240 = vmatprep.subr.mxu0 %v249_v26  ;;  %v239_v56 = vld [vmem:[%s8822_s2 + $0x68] sm:$0xff]  ;;  %v238_v20 = vld [vmem:[%s8822_s2 + $0x60] sm:$0xff] }
 0x139   :  { %2329 = vmatprep.subr.mxu1 %v409_v8  ;;  %2241 = vmatpush1.msra.mxu0 %v248_v51  ;;  %v399_v38 = vld [vmem:[%s8822_s2 + $0x568] sm:$0xff]  ;;  %v398_v26 = vld [vmem:[%s8822_s2 + $0x560] sm:$0xff] }
 0x13a   :  { %2330 = vmatpush1.msra.mxu1 %v408_v43  ;;  %2242 = vmatprep.subr.mxu0 %v244_v39  ;;  %v234_v8 = vld [vmem:[%s8822_s2 + $0x40] sm:$0xff]  ;;  %v233_v43 = vld [vmem:[%s8822_s2 + $0x38] sm:$0xff] }
 0x13b   :  { %2331 = vmatprep.subr.mxu1 %v404_v9  ;;  %2243 = vmatpush1.msra.mxu0 %v243_v55  ;;  %v394_v51 = vld [vmem:[%s8822_s2 + $0x540] sm:$0xff]  ;;  %v393_v39 = vld [vmem:[%s8822_s2 + $0x538] sm:$0xff] }
 0x13c   :  { %2332 = vmatpush1.msra.mxu1 %v403_v19  ;;  %2244 = vmatprep.subr.mxu0 %v239_v56  ;;  %v229_v9 = vld [vmem:[%s8822_s2 + $0x18] sm:$0xff]  ;;  %v228_v19 = vld [vmem:[%s8822_s2 + $0x10] sm:$0xff] }
 0x13d   :  { %2333 = vmatprep.subr.mxu1 %v399_v38  ;;  %2245 = vmatpush1.msra.mxu0 %v238_v20  ;;  %v389_v55 = vld [vmem:[%s8822_s2 + $0x518] sm:$0xff]  ;;  %v388_v56 = vld [vmem:[%s8822_s2 + $0x510] sm:$0xff] }
 0x13e   :  { %2334 = vmatpush1.msra.mxu1 %v398_v26  ;;  %2246 = vmatprep.subr.mxu0 %v234_v8  ;;  %v384_v38 = vld [vmem:[%s8822_s2 + $0x4f0] sm:$0xff]  ;;  %v383_v26 = vld [vmem:[%s8822_s2 + $0x4e8] sm:$0xff] }
 0x13f   :  { %2335 = vmatprep.subr.mxu1 %v394_v51  ;;  %2247 = vmatpush1.msra.mxu0 %v233_v43  ;;  %v544_v20 = vld [vmem:[%s8822_s2 + $0x9f0] sm:$0xff]  ;;  %v543_v8 = vld [vmem:[%s8822_s2 + $0x9e8] sm:$0xff] }
 0x140   :  { %2336 = vmatpush1.msra.mxu1 %v393_v39  ;;  %2248 = vmatprep.subr.mxu0 %v229_v9  ;;  %v379_v51 = vld [vmem:[%s8822_s2 + $0x4c8] sm:$0xff]  ;;  %v378_v39 = vld [vmem:[%s8822_s2 + $0x4c0] sm:$0xff] }
 0x141   :  { %2337 = vmatprep.subr.mxu1 %v389_v55  ;;  %2249 = vmatpush1.msra.mxu0 %v228_v19  ;;  %v539_v43 = vld [vmem:[%s8822_s2 + $0x9c8] sm:$0xff]  ;;  %v538_v9 = vld [vmem:[%s8822_s2 + $0x9c0] sm:$0xff] }
 0x142   :  { %2338 = vmatpush1.msra.mxu1 %v388_v56  ;;  %2250 = vmatprep.subr.mxu0 %v384_v38  ;;  %v374_v55 = vld [vmem:[%s8822_s2 + $0x4a0] sm:$0xff]  ;;  %v373_v56 = vld [vmem:[%s8822_s2 + $0x498] sm:$0xff] }
 0x143   :  { %2339 = vmatprep.subr.mxu1 %v544_v20  ;;  %2251 = vmatpush2.msra.mxu0 %v383_v26  ;;  %v534_v19 = vld [vmem:[%s8822_s2 + $0x9a0] sm:$0xff]  ;;  %v533_v38 = vld [vmem:[%s8822_s2 + $0x998] sm:$0xff] }
 0x144   :  { %2340 = vmatpush2.msra.mxu1 %v543_v8  ;;  %2252 = vmatprep.subr.mxu0 %v379_v51  ;;  %v369_v20 = vld [vmem:[%s8822_s2 + $0x478] sm:$0xff]  ;;  %v368_v8 = vld [vmem:[%s8822_s2 + $0x470] sm:$0xff] }
 0x145   :  { %2341 = vmatprep.subr.mxu1 %v539_v43  ;;  %2253 = vmatpush2.msra.mxu0 %v378_v39  ;;  %v529_v26 = vld [vmem:[%s8822_s2 + $0x978] sm:$0xff]  ;;  %v528_v51 = vld [vmem:[%s8822_s2 + $0x970] sm:$0xff] }
 0x146   :  { %2342 = vmatpush2.msra.mxu1 %v538_v9  ;;  %2254 = vmatprep.subr.mxu0 %v374_v55  ;;  %v364_v43 = vld [vmem:[%s8822_s2 + $0x450] sm:$0xff]  ;;  %v363_v9 = vld [vmem:[%s8822_s2 + $0x448] sm:$0xff] }
 0x147   :  { %2343 = vmatprep.subr.mxu1 %v534_v19  ;;  %2255 = vmatpush2.msra.mxu0 %v373_v56  ;;  %v524_v39 = vld [vmem:[%s8822_s2 + $0x950] sm:$0xff]  ;;  %v523_v55 = vld [vmem:[%s8822_s2 + $0x948] sm:$0xff] }
 0x148   :  { %2344 = vmatpush2.msra.mxu1 %v533_v38  ;;  %2256 = vmatprep.subr.mxu0 %v369_v20  ;;  %v359_v19 = vld [vmem:[%s8822_s2 + $0x428] sm:$0xff]  ;;  %v358_v38 = vld [vmem:[%s8822_s2 + $0x420] sm:$0xff] }
 0x149   :  { %2345 = vmatprep.subr.mxu1 %v529_v26  ;;  %2257 = vmatpush2.msra.mxu0 %v368_v8  ;;  %v519_v56 = vld [vmem:[%s8822_s2 + $0x928] sm:$0xff]  ;;  %v518_v20 = vld [vmem:[%s8822_s2 + $0x920] sm:$0xff] }
 0x14a   :  { %2346 = vmatpush2.msra.mxu1 %v528_v51  ;;  %2258 = vmatprep.subr.mxu0 %v364_v43  ;;  %v354_v26 = vld [vmem:[%s8822_s2 + $0x400] sm:$0xff]  ;;  %v353_v51 = vld [vmem:[%s8822_s2 + $0x3f8] sm:$0xff] }
 0x14b   :  { %2347 = vmatprep.subr.mxu1 %v524_v39  ;;  %2259 = vmatpush2.msra.mxu0 %v363_v9  ;;  %v514_v8 = vld [vmem:[%s8822_s2 + $0x900] sm:$0xff]  ;;  %v513_v43 = vld [vmem:[%s8822_s2 + $0x8f8] sm:$0xff] }
 0x14c   :  { %2348 = vmatpush2.msra.mxu1 %v523_v55  ;;  %2260 = vmatprep.subr.mxu0 %v359_v19  ;;  %v349_v39 = vld [vmem:[%s8822_s2 + $0x3d8] sm:$0xff]  ;;  %v348_v55 = vld [vmem:[%s8822_s2 + $0x3d0] sm:$0xff] }
 0x14d   :  { %2349 = vmatprep.subr.mxu1 %v519_v56  ;;  %2261 = vmatpush2.msra.mxu0 %v358_v38  ;;  %v509_v9 = vld [vmem:[%s8822_s2 + $0x8d8] sm:$0xff]  ;;  %v508_v19 = vld [vmem:[%s8822_s2 + $0x8d0] sm:$0xff] }
 0x14e   :  { %2350 = vmatpush2.msra.mxu1 %v518_v20  ;;  %2262 = vmatprep.subr.mxu0 %v354_v26  ;;  %v344_v56 = vld [vmem:[%s8822_s2 + $0x3b0] sm:$0xff]  ;;  %v343_v20 = vld [vmem:[%s8822_s2 + $0x3a8] sm:$0xff] }
 0x14f   :  { %2351 = vmatprep.subr.mxu1 %v514_v8  ;;  %2263 = vmatpush2.msra.mxu0 %v353_v51  ;;  %v504_v38 = vld [vmem:[%s8822_s2 + $0x8b0] sm:$0xff]  ;;  %v503_v26 = vld [vmem:[%s8822_s2 + $0x8a8] sm:$0xff] }
 0x150   :  { %2352 = vmatpush2.msra.mxu1 %v513_v43  ;;  %2264 = vmatprep.subr.mxu0 %v349_v39  ;;  %v339_v8 = vld [vmem:[%s8822_s2 + $0x388] sm:$0xff]  ;;  %v338_v43 = vld [vmem:[%s8822_s2 + $0x380] sm:$0xff] }
 0x151   :  { %2353 = vmatprep.subr.mxu1 %v509_v9  ;;  %2265 = vmatpush2.msra.mxu0 %v348_v55  ;;  %v499_v51 = vld [vmem:[%s8822_s2 + $0x888] sm:$0xff]  ;;  %v498_v39 = vld [vmem:[%s8822_s2 + $0x880] sm:$0xff] }
 0x152   :  { %2354 = vmatpush2.msra.mxu1 %v508_v19  ;;  %2266 = vmatprep.subr.mxu0 %v344_v56  ;;  %v334_v9 = vld [vmem:[%s8822_s2 + $0x360] sm:$0xff]  ;;  %v333_v19 = vld [vmem:[%s8822_s2 + $0x358] sm:$0xff] }
 0x153   :  { %2355 = vmatprep.subr.mxu1 %v504_v38  ;;  %2267 = vmatpush2.msra.mxu0 %v343_v20  ;;  %v494_v55 = vld [vmem:[%s8822_s2 + $0x860] sm:$0xff]  ;;  %v493_v56 = vld [vmem:[%s8822_s2 + $0x858] sm:$0xff] }
 0x154   :  { %2356 = vmatpush2.msra.mxu1 %v503_v26  ;;  %2268 = vmatprep.subr.mxu0 %v339_v8  ;;  %v329_v38 = vld [vmem:[%s8822_s2 + $0x338] sm:$0xff]  ;;  %v328_v26 = vld [vmem:[%s8822_s2 + $0x330] sm:$0xff] }
 0x155   :  { %2357 = vmatprep.subr.mxu1 %v499_v51  ;;  %2269 = vmatpush2.msra.mxu0 %v338_v43  ;;  %v489_v20 = vld [vmem:[%s8822_s2 + $0x838] sm:$0xff]  ;;  %v488_v8 = vld [vmem:[%s8822_s2 + $0x830] sm:$0xff] }
 0x156   :  { %2358 = vmatpush2.msra.mxu1 %v498_v39  ;;  %2270 = vmatprep.subr.mxu0 %v334_v9  ;;  %v324_v51 = vld [vmem:[%s8822_s2 + $0x310] sm:$0xff]  ;;  %v323_v39 = vld [vmem:[%s8822_s2 + $0x308] sm:$0xff] }
 0x157   :  { %2359 = vmatprep.subr.mxu1 %v494_v55  ;;  %2271 = vmatpush2.msra.mxu0 %v333_v19  ;;  %v484_v43 = vld [vmem:[%s8822_s2 + $0x810] sm:$0xff]  ;;  %v483_v9 = vld [vmem:[%s8822_s2 + $0x808] sm:$0xff] }
 0x158   :  { %2360 = vmatpush2.msra.mxu1 %v493_v56  ;;  %2272 = vmatprep.subr.mxu0 %v329_v38  ;;  %v319_v55 = vld [vmem:[%s8822_s2 + $0x2e8] sm:$0xff]  ;;  %v318_v56 = vld [vmem:[%s8822_s2 + $0x2e0] sm:$0xff] }
 0x159   :  { %2361 = vmatprep.subr.mxu1 %v489_v20  ;;  %2273 = vmatpush2.msra.mxu0 %v328_v26  ;;  %v479_v19 = vld [vmem:[%s8822_s2 + $0x7e8] sm:$0xff]  ;;  %v478_v38 = vld [vmem:[%s8822_s2 + $0x7e0] sm:$0xff] }
 0x15a   :  { %2362 = vmatpush2.msra.mxu1 %v488_v8  ;;  %2274 = vmatprep.subr.mxu0 %v324_v51  ;;  %v314_v20 = vld [vmem:[%s8822_s2 + $0x2c0] sm:$0xff]  ;;  %v313_v8 = vld [vmem:[%s8822_s2 + $0x2b8] sm:$0xff] }
 0x15b   :  { %2363 = vmatprep.subr.mxu1 %v484_v43  ;;  %2275 = vmatpush2.msra.mxu0 %v323_v39  ;;  %v474_v26 = vld [vmem:[%s8822_s2 + $0x7c0] sm:$0xff]  ;;  %v473_v51 = vld [vmem:[%s8822_s2 + $0x7b8] sm:$0xff] }
 0x15c   :  { %2364 = vmatpush2.msra.mxu1 %v483_v9  ;;  %2276 = vmatprep.subr.mxu0 %v319_v55  ;;  %v309_v43 = vld [vmem:[%s8822_s2 + $0x298] sm:$0xff]  ;;  %v308_v9 = vld [vmem:[%s8822_s2 + $0x290] sm:$0xff] }
 0x15d   :  { %2365 = vmatprep.subr.mxu1 %v479_v19  ;;  %2277 = vmatpush2.msra.mxu0 %v318_v56  ;;  %v469_v39 = vld [vmem:[%s8822_s2 + $0x798] sm:$0xff]  ;;  %v468_v55 = vld [vmem:[%s8822_s2 + $0x790] sm:$0xff] }
 0x15e   :  { %2366 = vmatpush2.msra.mxu1 %v478_v38  ;;  %2278 = vmatprep.subr.mxu0 %v314_v20  ;;  %v624_v19 = vld [vmem:[%s8822_s2 + $0xc70] sm:$0xff]  ;;  %v623_v38 = vld [vmem:[%s8822_s2 + $0xc68] sm:$0xff] }
 0x15f   :  { %2367 = vmatprep.subr.mxu1 %v474_v26  ;;  %2279 = vmatpush2.msra.mxu0 %v313_v8  ;;  %v784_v56 = vld [vmem:[%s8822_s2 + $0x1170] sm:$0xff]  ;;  %v783_v20 = vld [vmem:[%s8822_s2 + $0x1168] sm:$0xff] }
 0x160   :  { %2368 = vmatpush2.msra.mxu1 %v473_v51  ;;  %2280 = vmatprep.subr.mxu0 %v309_v43  ;;  %v619_v26 = vld [vmem:[%s8822_s2 + $0xc48] sm:$0xff]  ;;  %v618_v51 = vld [vmem:[%s8822_s2 + $0xc40] sm:$0xff] }
 0x161   :  { %2369 = vmatprep.subr.mxu1 %v469_v39  ;;  %2281 = vmatpush2.msra.mxu0 %v308_v9  ;;  %v779_v8 = vld [vmem:[%s8822_s2 + $0x1148] sm:$0xff]  ;;  %v778_v43 = vld [vmem:[%s8822_s2 + $0x1140] sm:$0xff] }
 0x162   :  { %2282 = vmatprep.mubr.f32.mxu0 %v4428_v13  ;;  %2370 = vmatpush2.msra.mxu1 %v468_v55  ;;  %v614_v39 = vld [vmem:[%s8822_s2 + $0xc20] sm:$0xff]  ;;  %v613_v55 = vld [vmem:[%s8822_s2 + $0xc18] sm:$0xff]  ;;  %v844_v13 = vld [vmem:[%s8822_s2 + $0x1350] sm:$0xff] }
 0x163   :  { %2371 = vmatprep.mubr.f32.mxu1 %v4434_v15  ;;  %2283 = vmatmul.mubr.f32.vlgmr.msra.gmra.mxu0 %v4440_v17  ;;  %v774_v9 = vld [vmem:[%s8822_s2 + $0x1120] sm:$0xff]  ;;  %v849_v15 = vld [vmem:[%s8822_s2 + $0x1378] sm:$0xff] }
 0x164   :  { %2372 = vmatmul.mubr.f32.vlgmr.msra.gmra.mxu1 %v4443_v18  ;;  %2396 = vmatprep.subr.mxu0 %v624_v19  ;;  %v773_v19 = vld [vmem:[%s8822_s2 + $0x1118] sm:$0xff]  ;;  %v698_v18 = vld [vmem:[%s8822_s2 + $0xec0] sm:$0xff] }
 0x165   :  { %2485 = vmatprep.subr.mxu1 %v784_v56  ;;  %2397 = vmatpush1.msra.mxu0 %v623_v38  ;;  %v609_v56 = vld [vmem:[%s8822_s2 + $0xbf8] sm:$0xff]  ;;  %v854_v17 = vld [vmem:[%s8822_s2 + $0x13a0] sm:$0xff] }
 0x166   :  { %2486 = vmatpush1.msra.mxu1 %v783_v20  ;;  %2398 = vmatprep.subr.mxu0 %v619_v26  ;;  %v769_v38 = vld [vmem:[%s8822_s2 + $0x10f8] sm:$0xff]  ;;  %v608_v20 = vld [vmem:[%s8822_s2 + $0xbf0] sm:$0xff] }
 0x167   :  { %2487 = vmatprep.subr.mxu1 %v779_v8  ;;  %2399 = vmatpush1.msra.mxu0 %v618_v51  ;;  %v768_v26 = vld [vmem:[%s8822_s2 + $0x10f0] sm:$0xff] }
 0x168   :  { %2488 = vmatpush1.msra.mxu1 %v778_v43  ;;  %2400 = vmatprep.subr.mxu0 %v614_v39  ;;  %v604_v8 = vld [vmem:[%s8822_s2 + $0xbd0] sm:$0xff]  ;;  %v603_v43 = vld [vmem:[%s8822_s2 + $0xbc8] sm:$0xff] }
 0x169   :  { %2489 = vmatprep.subr.mxu1 %v774_v9  ;;  %2401 = vmatpush1.msra.mxu0 %v613_v55  ;;  %v764_v51 = vld [vmem:[%s8822_s2 + $0x10d0] sm:$0xff]  ;;  %v763_v39 = vld [vmem:[%s8822_s2 + $0x10c8] sm:$0xff] }
 0x16a   :  { %2490 = vmatpush1.msra.mxu1 %v773_v19  ;;  %2402 = vmatprep.subr.mxu0 %v609_v56  ;;  %v599_v9 = vld [vmem:[%s8822_s2 + $0xba8] sm:$0xff]  ;;  %v598_v19 = vld [vmem:[%s8822_s2 + $0xba0] sm:$0xff] }
 0x16b   :  { %2491 = vmatprep.subr.mxu1 %v769_v38  ;;  %2403 = vmatpush1.msra.mxu0 %v608_v20  ;;  %v759_v55 = vld [vmem:[%s8822_s2 + $0x10a8] sm:$0xff]  ;;  %v758_v56 = vld [vmem:[%s8822_s2 + $0x10a0] sm:$0xff] }
 0x16c   :  { %2492 = vmatpush1.msra.mxu1 %v768_v26  ;;  %2404 = vmatprep.subr.mxu0 %v604_v8  ;;  %v594_v38 = vld [vmem:[%s8822_s2 + $0xb80] sm:$0xff]  ;;  %v593_v26 = vld [vmem:[%s8822_s2 + $0xb78] sm:$0xff] }
 0x16d   :  { %2493 = vmatprep.subr.mxu1 %v764_v51  ;;  %2405 = vmatpush1.msra.mxu0 %v603_v43  ;;  %v754_v20 = vld [vmem:[%s8822_s2 + $0x1080] sm:$0xff]  ;;  %v753_v8 = vld [vmem:[%s8822_s2 + $0x1078] sm:$0xff] }
 0x16e   :  { %2494 = vmatpush1.msra.mxu1 %v763_v39  ;;  %2406 = vmatprep.subr.mxu0 %v599_v9  ;;  %v589_v51 = vld [vmem:[%s8822_s2 + $0xb58] sm:$0xff]  ;;  %v588_v39 = vld [vmem:[%s8822_s2 + $0xb50] sm:$0xff] }
 0x16f   :  { %2495 = vmatprep.subr.mxu1 %v759_v55  ;;  %2407 = vmatpush1.msra.mxu0 %v598_v19  ;;  %v749_v43 = vld [vmem:[%s8822_s2 + $0x1058] sm:$0xff]  ;;  %v748_v9 = vld [vmem:[%s8822_s2 + $0x1050] sm:$0xff] }
 0x170   :  { %2496 = vmatpush1.msra.mxu1 %v758_v56  ;;  %2408 = vmatprep.subr.mxu0 %v594_v38  ;;  %v584_v55 = vld [vmem:[%s8822_s2 + $0xb30] sm:$0xff]  ;;  %v583_v56 = vld [vmem:[%s8822_s2 + $0xb28] sm:$0xff] }
 0x171   :  { %2497 = vmatprep.subr.mxu1 %v754_v20  ;;  %2409 = vmatpush1.msra.mxu0 %v593_v26  ;;  %v744_v19 = vld [vmem:[%s8822_s2 + $0x1030] sm:$0xff]  ;;  %v743_v38 = vld [vmem:[%s8822_s2 + $0x1028] sm:$0xff] }
 0x172   :  { %2498 = vmatpush1.msra.mxu1 %v753_v8  ;;  %2410 = vmatprep.subr.mxu0 %v589_v51  ;;  %v579_v20 = vld [vmem:[%s8822_s2 + $0xb08] sm:$0xff]  ;;  %v578_v8 = vld [vmem:[%s8822_s2 + $0xb00] sm:$0xff] }
 0x173   :  { %2499 = vmatprep.subr.mxu1 %v749_v43  ;;  %2411 = vmatpush1.msra.mxu0 %v588_v39  ;;  %v739_v26 = vld [vmem:[%s8822_s2 + $0x1008] sm:$0xff]  ;;  %v738_v51 = vld [vmem:[%s8822_s2 + $0x1000] sm:$0xff] }
 0x174   :  { %2500 = vmatpush1.msra.mxu1 %v748_v9  ;;  %2412 = vmatprep.subr.mxu0 %v584_v55  ;;  %v574_v43 = vld [vmem:[%s8822_s2 + $0xae0] sm:$0xff]  ;;  %v573_v9 = vld [vmem:[%s8822_s2 + $0xad8] sm:$0xff] }
 0x175   :  { %2501 = vmatprep.subr.mxu1 %v744_v19  ;;  %2413 = vmatpush1.msra.mxu0 %v583_v56  ;;  %v734_v39 = vld [vmem:[%s8822_s2 + $0xfe0] sm:$0xff]  ;;  %v733_v55 = vld [vmem:[%s8822_s2 + $0xfd8] sm:$0xff] }
 0x176   :  { %2502 = vmatpush1.msra.mxu1 %v743_v38  ;;  %2414 = vmatprep.subr.mxu0 %v579_v20  ;;  %v569_v19 = vld [vmem:[%s8822_s2 + $0xab8] sm:$0xff]  ;;  %v568_v38 = vld [vmem:[%s8822_s2 + $0xab0] sm:$0xff] }
 0x177   :  { %2503 = vmatprep.subr.mxu1 %v739_v26  ;;  %2415 = vmatpush1.msra.mxu0 %v578_v8  ;;  %v729_v56 = vld [vmem:[%s8822_s2 + $0xfb8] sm:$0xff]  ;;  %v728_v20 = vld [vmem:[%s8822_s2 + $0xfb0] sm:$0xff] }
 0x178   :  { %2504 = vmatpush1.msra.mxu1 %v738_v51  ;;  %2416 = vmatprep.subr.mxu0 %v574_v43  ;;  %v564_v26 = vld [vmem:[%s8822_s2 + $0xa90] sm:$0xff]  ;;  %v563_v51 = vld [vmem:[%s8822_s2 + $0xa88] sm:$0xff] }
 0x179   :  { %2505 = vmatprep.subr.mxu1 %v734_v39  ;;  %2417 = vmatpush1.msra.mxu0 %v573_v9  ;;  %v724_v8 = vld [vmem:[%s8822_s2 + $0xf90] sm:$0xff]  ;;  %v723_v43 = vld [vmem:[%s8822_s2 + $0xf88] sm:$0xff] }
 0x17a   :  { %2506 = vmatpush1.msra.mxu1 %v733_v55  ;;  %2418 = vmatprep.subr.mxu0 %v569_v19  ;;  %v559_v39 = vld [vmem:[%s8822_s2 + $0xa68] sm:$0xff]  ;;  %v558_v55 = vld [vmem:[%s8822_s2 + $0xa60] sm:$0xff] }
 0x17b   :  { %2507 = vmatprep.subr.mxu1 %v729_v56  ;;  %2419 = vmatpush1.msra.mxu0 %v568_v38  ;;  %v719_v9 = vld [vmem:[%s8822_s2 + $0xf68] sm:$0xff]  ;;  %v718_v19 = vld [vmem:[%s8822_s2 + $0xf60] sm:$0xff] }
 0x17c   :  { %2508 = vmatpush1.msra.mxu1 %v728_v20  ;;  %2420 = vmatprep.subr.mxu0 %v564_v26  ;;  %v554_v56 = vld [vmem:[%s8822_s2 + $0xa40] sm:$0xff]  ;;  %v553_v20 = vld [vmem:[%s8822_s2 + $0xa38] sm:$0xff] }
 0x17d   :  { %2509 = vmatprep.subr.mxu1 %v724_v8  ;;  %2421 = vmatpush1.msra.mxu0 %v563_v51  ;;  %v714_v38 = vld [vmem:[%s8822_s2 + $0xf40] sm:$0xff]  ;;  %v713_v26 = vld [vmem:[%s8822_s2 + $0xf38] sm:$0xff] }
 0x17e   :  { %2510 = vmatpush1.msra.mxu1 %v723_v43  ;;  %2422 = vmatprep.subr.mxu0 %v559_v39  ;;  %v549_v8 = vld [vmem:[%s8822_s2 + $0xa18] sm:$0xff]  ;;  %v6664_v43 = vpop.f32.mrf.mxu0  ;;  %v548_v39 = vld [vmem:[%s8822_s2 + $0xa10] sm:$0xff] }
 0x17f   :  { %2511 = vmatprep.subr.mxu1 %v719_v9  ;;  %2423 = vmatpush1.msra.mxu0 %v558_v55  ;;  %v709_v51 = vld [vmem:[%s8822_s2 + $0xf18] sm:$0xff]  ;;  %v708_v9 = vld [vmem:[%s8822_s2 + $0xf10] sm:$0xff] }
 0x180   :  { %2512 = vmatpush1.msra.mxu1 %v718_v19  ;;  %2424 = vmatprep.subr.mxu0 %v554_v56  ;;  %v704_v55 = vld [vmem:[%s8822_s2 + $0xef0] sm:$0xff]  ;;  %v703_v56 = vld [vmem:[%s8822_s2 + $0xee8] sm:$0xff] }
 0x181   :  { %2513 = vmatprep.subr.mxu1 %v714_v38  ;;  %2425 = vmatpush1.msra.mxu0 %v553_v20  ;;  %v864_v19 = vld [vmem:[%s8822_s2 + $0x13f0] sm:$0xff]  ;;  %v863_v38 = vld [vmem:[%s8822_s2 + $0x13e8] sm:$0xff] }
 0x182   :  { %2514 = vmatpush1.msra.mxu1 %v713_v26  ;;  %2426 = vmatprep.subr.mxu0 %v549_v8  ;;  %v699_v20 = vld [vmem:[%s8822_s2 + $0xec8] sm:$0xff]  ;;  %v6690_v8 = vpop.f32.mrf.mxu1 }
 0x183   :  { %2515 = vmatprep.subr.mxu1 %v709_v51  ;;  %2427 = vmatpush1.msra.mxu0 %v548_v39  ;;  %v859_v26 = vld [vmem:[%s8822_s2 + $0x13c8] sm:$0xff]  ;;  %v6692_v51 = vpop.f32.mrf.mxu0  ;;  %v858_v39 = vld [vmem:[%s8822_s2 + $0x13c0] sm:$0xff] }
 0x184   :  { %2516 = vmatpush1.msra.mxu1 %v708_v9  ;;  %2428 = vmatprep.subr.mxu0 %v704_v55  ;;  %v694_v9 = vld [vmem:[%s8822_s2 + $0xea0] sm:$0xff] }
 0x185   :  { %2517 = vmatprep.subr.mxu1 %v864_v19  ;;  %2429 = vmatpush2.msra.mxu0 %v703_v56  ;;  %v6706_v55 = vpop.f32.mrf.mxu0  ;;  %v693_v19 = vld [vmem:[%s8822_s2 + $0xe98] sm:$0xff] }
 0x186   :  { %2518 = vmatpush2.msra.mxu1 %v863_v38  ;;  %2430 = vmatprep.subr.mxu0 %v699_v20  ;;  %v853_v56 = vld [vmem:[%s8822_s2 + $0x1398] sm:$0xff]  ;;  %v6720_v20 = vpop.f32.mrf.mxu1 }
 0x187   :  { %2519 = vmatprep.subr.mxu1 %v859_v26  ;;  %2431 = vmatpush2.msra.mxu0 %v698_v18  ;;  %v689_v38 = vld [vmem:[%s8822_s2 + $0xe78] sm:$0xff]  ;;  %v688_v26 = vld [vmem:[%s8822_s2 + $0xe70] sm:$0xff] }
 0x188   :  { %2520 = vmatpush2.msra.mxu1 %v858_v39  ;;  %2432 = vmatprep.subr.mxu0 %v694_v9  ;;  %v848_v18 = vld [vmem:[%s8822_s2 + $0x1370] sm:$0xff]  ;;  %v6734_v9 = vpop.f32.mrf.mxu1 }
 0x189   :  { %2521 = vmatprep.subr.mxu1 %v854_v17  ;;  %2433 = vmatpush2.msra.mxu0 %v693_v19  ;;  %v684_v39 = vld [vmem:[%s8822_s2 + $0xe50] sm:$0xff]  ;;  %v6736_v17 = vpop.f32.mrf.mxu0  ;;  %v843_v19 = vld [vmem:[%s8822_s2 + $0x1348] sm:$0xff] }
 0x18a   :  { %2522 = vmatpush2.msra.mxu1 %v853_v56  ;;  %2434 = vmatprep.subr.mxu0 %v689_v38  ;;  %v679_v56 = vld [vmem:[%s8822_s2 + $0xe28] sm:$0xff]  ;;  %v838_v38 = vld [vmem:[%s8822_s2 + $0x1320] sm:$0xff] }
 0x18b   :  { %2523 = vmatprep.subr.mxu1 %v849_v15  ;;  %2435 = vmatpush2.msra.mxu0 %v688_v26  ;;  %v678_v15 = vld [vmem:[%s8822_s2 + $0xe20] sm:$0xff] }
 0x18c   :  { %2524 = vmatpush2.msra.mxu1 %v848_v18  ;;  %2436 = vmatprep.subr.mxu0 %v684_v39  ;;  %v674_v26 = vld [vmem:[%s8822_s2 + $0xe00] sm:$0xff]  ;;  %v6762_v39 = vpop.f32.mrf.mxu1 }
 0x18d   :  { %2525 = vmatprep.subr.mxu1 %v844_v13  ;;  %2437 = vmatpush2.msra.mxu0 %v683_v12  ;;  %v834_v18 = vld [vmem:[%s8822_s2 + $0x1300] sm:$0xff]  ;;  %v6764_v13 = vpop.f32.mrf.mxu0  ;;  %v833_v12 = vld [vmem:[%s8822_s2 + $0x12f8] sm:$0xff] }
 0x18e   :  { %2526 = vmatpush2.msra.mxu1 %v843_v19  ;;  %2438 = vmatprep.subr.mxu0 %v679_v56  ;;  %v669_v19 = vld [vmem:[%s8822_s2 + $0xdd8] sm:$0xff]  ;;  %v828_v56 = vld [vmem:[%s8822_s2 + $0x12d0] sm:$0xff] }
 0x18f   :  { %2527 = vmatprep.subr.mxu1 %v839_v59  ;;  %2439 = vmatpush2.msra.mxu0 %v678_v15  ;;  %v668_v59 = vld [vmem:[%s8822_s2 + $0xdd0] sm:$0xff] }
 0x190   :  { %2528 = vmatpush2.msra.mxu1 %v838_v38  ;;  %2440 = vmatprep.subr.mxu0 %v674_v26  ;;  %v664_v15 = vld [vmem:[%s8822_s2 + $0xdb0] sm:$0xff]  ;;  %v6790_v26 = vpop.f32.mrf.mxu1 }
 0x191   :  { %2529 = vmatprep.subr.mxu1 %v834_v18  ;;  %2441 = vmatpush2.msra.mxu0 %v673_v3  ;;  %v824_v38 = vld [vmem:[%s8822_s2 + $0x12b0] sm:$0xff]  ;;  %v6792_v18 = vpop.f32.mrf.mxu0  ;;  %v823_v3 = vld [vmem:[%s8822_s2 + $0x12a8] sm:$0xff] }
 0x192   :  { %2530 = vmatpush2.msra.mxu1 %v833_v12  ;;  %2442 = vmatprep.subr.mxu0 %v669_v19  ;;  %v659_v12 = vld [vmem:[%s8822_s2 + $0xd88] sm:$0xff]  ;;  %v6806_v19 = vpop.f32.mrf.mxu1 }
 0x193   :  { %2531 = vmatprep.subr.mxu1 %v829_v1  ;;  %2443 = vmatpush2.msra.mxu0 %v668_v59  ;;  %v819_v1 = vld [vmem:[%s8822_s2 + $0x1288] sm:$0xff]  ;;  %v6808_v49 = vpop.f32.mrf.mxu0  ;;  %v658_v59 = vld [vmem:[%s8822_s2 + $0xd80] sm:$0xff] }
 0x194   :  { %2532 = vmatpush2.msra.mxu1 %v828_v56  ;;  %2444 = vmatprep.subr.mxu0 %v664_v15  ;;  %v818_v56 = vld [vmem:[%s8822_s2 + $0x1280] sm:$0xff] }
 0x195   :  { %2533 = vmatprep.subr.mxu1 %v824_v38  ;;  %2445 = vmatpush2.msra.mxu0 %v663_v11  ;;  %v654_v11 = vld [vmem:[%s8822_s2 + $0xd60] sm:$0xff]  ;;  %v653_v38 = vld [vmem:[%s8822_s2 + $0xd58] sm:$0xff] }
 0x196   :  { %2534 = vmatpush2.msra.mxu1 %v823_v3  ;;  %2288 = vmatprep.mubr.f32.mxu0 %v4762_v23  ;;  %v814_v15 = vld [vmem:[%s8822_s2 + $0x1260] sm:$0xff]  ;;  %v813_v3 = vld [vmem:[%s8822_s2 + $0x1258] sm:$0xff]  ;;  %v1039_v23 = vld [vmem:[%s8822_s2 + $0x1968] sm:$0xff] }
 0x197   :  { %2377 = vmatprep.mubr.f32.mxu1 %v4765_v24  ;;  %2446 = vmatprep.subr.mxu0 %v659_v12  ;;  %v6832_v12 = vpop.f32.mrf.mxu1  ;;  %v1044_v24 = vld [vmem:[%s8822_s2 + $0x1990] sm:$0xff] }
 0x198   :  { %2535 = vmatprep.subr.mxu1 %v819_v1  ;;  %2289 = vmatmul.mubr.f32.gmra.mxu0 %v4774_v27  ;;  %v6834_v1 = vpop.f32.mrf.mxu0  ;;  %v809_v27 = vld [vmem:[%s8822_s2 + $0x1238] sm:$0xff] }
 0x199   :  { %2378 = vmatmul.mubr.f32.gmra.mxu1 %v4777_v28  ;;  %2447 = vmatpush2.msra.mxu0 %v658_v59  ;;  %v649_v28 = vld [vmem:[%s8822_s2 + $0xd38] sm:$0xff]  ;;  %v648_v59 = vld [vmem:[%s8822_s2 + $0xd30] sm:$0xff] }
 0x19a   :  { %2536 = vmatpush2.msra.mxu1 %v818_v56  ;;  %2448 = vmatprep.subr.mxu0 %v654_v11  ;;  %v808_v56 = vld [vmem:[%s8822_s2 + $0x1230] sm:$0xff] }
 0x19b   :  { %2537 = vmatprep.subr.mxu1 %v814_v15  ;;  %2449 = vmatpush2.msra.mxu0 %v653_v38  ;;  %v644_v11 = vld [vmem:[%s8822_s2 + $0xd10] sm:$0xff]  ;;  %v6856_v38 = vpop.f32.mrf.mxu1 }
 0x19c   :  { %2538 = vmatpush2.msra.mxu1 %v813_v3  ;;  %2294 = vmatprep.mubr.f32.mxu0 %v4814_v40  ;;  %v804_v15 = vld [vmem:[%s8822_s2 + $0x1210] sm:$0xff]  ;;  %v6858_v3 = vpop.f32.mrf.mxu0 }
 0x19d   :  { %2383 = vmatprep.mubr.f32.mxu1 %v4817_v41  ;;  %2450 = vmatprep.subr.mxu0 %v649_v28  ;;  %v803_v28 = vld [vmem:[%s8822_s2 + $0x1208] sm:$0xff]  ;;  %v6868_v41 = vpop.f32.mrf.mxu1 }
 0x19e   :  { %2539 = vmatprep.subr.mxu1 %v809_v27  ;;  %2295 = vmatmul.mubr.f32.gmra.mxu0 %v4826_v44  ;;  %v643_v27 = vld [vmem:[%s8822_s2 + $0xd08] sm:$0xff]  ;;  %v6876_v40 = vpop.f32.mrf.mxu0 }
 0x19f   :  { %2384 = vmatmul.mubr.f32.gmra.mxu1 %v4829_v45  ;;  %2451 = vmatpush2.msra.mxu0 %v648_v59  ;;  %v639_v44 = vld [vmem:[%s8822_s2 + $0xce8] sm:$0xff]  ;;  %v638_v59 = vld [vmem:[%s8822_s2 + $0xce0] sm:$0xff] }
 0x1a0   :  { %2540 = vmatpush2.msra.mxu1 %v808_v56  ;;  %2452 = vmatprep.subr.mxu0 %v644_v11  ;;  %v799_v45 = vld [vmem:[%s8822_s2 + $0x11e8] sm:$0xff]  ;;  %v798_v56 = vld [vmem:[%s8822_s2 + $0x11e0] sm:$0xff] }
 0x1a1   :  { %2541 = vmatprep.subr.mxu1 %v804_v15  ;;  %2453 = vmatpush2.msra.mxu0 %v643_v27  ;;  %v634_v11 = vld [vmem:[%s8822_s2 + $0xcc0] sm:$0xff]  ;;  %v6892_v27 = vpop.f32.mrf.mxu1 }
 0x1a2   :  { %2542 = vmatpush2.msra.mxu1 %v803_v28  ;;  %2300 = vmatprep.mubr.f32.mxu0 %v4867_v63  ;;  %v794_v15 = vld [vmem:[%s8822_s2 + $0x11c0] sm:$0xff]  ;;  %v633_v28 = vld [vmem:[%s8822_s2 + $0xcb8] sm:$0xff]  ;;  %v944_v63 = vld [vmem:[%s8822_s2 + $0x1670] sm:$0xff] }
 0x1a3   :  { %2389 = vmatprep.mubr.f32.mxu1 %v4870_v0  ;;  %2454 = vmatprep.subr.mxu0 %v639_v44  ;;  %v793_v44 = vld [vmem:[%s8822_s2 + $0x11b8] sm:$0xff]  ;;  %v6908_v0 = vpop.f32.mrf.mxu0 }
 0x1a4   :  { %2543 = vmatprep.subr.mxu1 %v799_v45  ;;  %2301 = vmatmul.mubr.f32.gmra.mxu0 %v4881_v5  ;;  %v629_v45 = vld [vmem:[%s8822_s2 + $0xc98] sm:$0xff] }
 0x1a5   :  { %2390 = vmatmul.mubr.f32.gmra.mxu1 %v4884_v2  ;;  %2455 = vmatpush2.msra.mxu0 %v638_v59  ;;  %v789_v5 = vld [vmem:[%s8822_s2 + $0x1198] sm:$0xff]  ;;  %v628_v2 = vld [vmem:[%s8822_s2 + $0xc90] sm:$0xff] }
 0x1a6   :  { %2544 = vmatpush2.msra.mxu1 %v798_v56  ;;  %2456 = vmatprep.subr.mxu0 %v634_v11  ;;  %v788_v59 = vld [vmem:[%s8822_s2 + $0x1190] sm:$0xff]  ;;  %v6916_v56 = vpop.f32.mrf.mxu1 }
 0x1a7   :  { %2545 = vmatprep.subr.mxu1 %v794_v15  ;;  %2457 = vmatpush2.msra.mxu0 %v633_v28  ;;  %v1104_v11 = vld [vmem:[%s8822_s2 + $0x1b70] sm:$0xff]  ;;  %v6925_v15 = vpop.f32.mrf.mxu0  ;;  %v1103_v28 = vld [vmem:[%s8822_s2 + $0x1b68] sm:$0xff] }
 0x1a8   :  { %2546 = vmatpush2.msra.mxu1 %v793_v44  ;;  %2458 = vmatprep.subr.mxu0 %v629_v45  ;;  %v1099_v44 = vld [vmem:[%s8822_s2 + $0x1b48] sm:$0xff]  ;;  %v6941_v45 = vpop.f32.mrf.mxu1 }
 0x1a9   :  { %2547 = vmatprep.subr.mxu1 %v789_v5  ;;  %2459 = vmatpush2.msra.mxu0 %v628_v2  ;;  %v943_v5 = vld [vmem:[%s8822_s2 + $0x1668] sm:$0xff] }
 0x1aa   :  { %2460 = vmatprep.mubr.f32.mxu0 %v4945_v30  ;;  %2548 = vmatpush2.msra.mxu1 %v788_v59  ;;  %v939_v2 = vld [vmem:[%s8822_s2 + $0x1648] sm:$0xff]  ;;  %v938_v59 = vld [vmem:[%s8822_s2 + $0x1640] sm:$0xff]  ;;  %v1049_v30 = vld [vmem:[%s8822_s2 + $0x19b8] sm:$0xff] }
 0x1ab   :  { %2461 = vmatmul.mubr.f32.vlgmr.msra.gmra.mxu0 %v4954_v32  ;;  %2549 = vmatprep.mubr.f32.mxu1 %v4960_v34  ;;  %v6950_v34 = vpop.f32.mrf.mxu0  ;;  %v1054_v32 = vld [vmem:[%s8822_s2 + $0x19e0] sm:$0xff] }
 0x1ac   :  { %2574 = vmatprep.subr.mxu0 %v944_v63  ;;  %2663 = vmatprep.subr.mxu1 %v1104_v11  ;;  %v1098_v63 = vld [vmem:[%s8822_s2 + $0x1b40] sm:$0xff] }
 0x1ad   :  { %2550 = vmatmul.mubr.f32.vlgmr.msra.gmra.mxu1 %v4966_v36  ;;  %2575 = vmatpush1.msra.mxu0 %v943_v5  ;;  %v934_v11 = vld [vmem:[%s8822_s2 + $0x1620] sm:$0xff]  ;;  %v933_v5 = vld [vmem:[%s8822_s2 + $0x1618] sm:$0xff] }
 0x1ae   :  { %2664 = vmatpush1.msra.mxu1 %v1103_v28  ;;  %2576 = vmatprep.subr.mxu0 %v939_v2  ;;  %v1094_v36 = vld [vmem:[%s8822_s2 + $0x1b20] sm:$0xff]  ;;  %v6962_v28 = vpop.f32.mrf.mxu1  ;;  %v1093_v2 = vld [vmem:[%s8822_s2 + $0x1b18] sm:$0xff] }
 0x1af   :  { %2665 = vmatprep.subr.mxu1 %v1099_v44  ;;  %2466 = vmatprep.mubr.f32.mxu0 %v4993_v50  ;;  %v929_v44 = vld [vmem:[%s8822_s2 + $0x15f8] sm:$0xff]  ;;  %v6974_v50 = vpop.f32.mrf.mxu0 }
 0x1b0   :  { %2577 = vmatpush1.msra.mxu0 %v938_v59  ;;  %2666 = vmatpush1.msra.mxu1 %v1098_v63  ;;  %v1089_v59 = vld [vmem:[%s8822_s2 + $0x1af8] sm:$0xff]  ;;  %v928_v63 = vld [vmem:[%s8822_s2 + $0x15f0] sm:$0xff] }
 0x1b1   :  { %2467 = vmatmul.mubr.f32.gmra.mxu0 %v5003_v57  ;;  %2578 = vmatprep.subr.mxu0 %v934_v11  ;;  %v1088_v11 = vld [vmem:[%s8822_s2 + $0x1af0] sm:$0xff]  ;;  %v1059_v57 = vld [vmem:[%s8822_s2 + $0x1a08] sm:$0xff] }
 0x1b2   :  { %2667 = vmatprep.subr.mxu1 %v1094_v36  ;;  %2555 = vmatprep.mubr.f32.mxu1 %v5018_v62  ;;  %v6983_v36 = vpop.f32.mrf.mxu1  ;;  %v924_v62 = vld [vmem:[%s8822_s2 + $0x15d0] sm:$0xff] }
 0x1b3   :  { %2579 = vmatpush1.msra.mxu0 %v933_v5  ;;  %2668 = vmatpush1.msra.mxu1 %v1093_v2  ;;  %v1084_v5 = vld [vmem:[%s8822_s2 + $0x1ad0] sm:$0xff]  ;;  %v923_v2 = vld [vmem:[%s8822_s2 + $0x15c8] sm:$0xff] }
 0x1b4   :  { %2580 = vmatprep.subr.mxu0 %v929_v44  ;;  %2556 = vmatmul.mubr.f32.gmra.mxu1 %v5035_v14  ;;  %v6996_v44 = vpop.f32.mrf.mxu0  ;;  %v919_v14 = vld [vmem:[%s8822_s2 + $0x15a8] sm:$0xff] }
 0x1b5   :  { %2669 = vmatprep.subr.mxu1 %v1089_v59  ;;  %2472 = vmatprep.mubr.f32.mxu0 %v5044_v21  ;;  %v1083_v59 = vld [vmem:[%s8822_s2 + $0x1ac8] sm:$0xff]  ;;  %v7008_v21 = vpop.f32.mrf.mxu1 }
 0x1b6   :  { %2581 = vmatpush1.msra.mxu0 %v928_v63  ;;  %2670 = vmatpush1.msra.mxu1 %v1088_v11  ;;  %v1079_v63 = vld [vmem:[%s8822_s2 + $0x1aa8] sm:$0xff]  ;;  %v918_v11 = vld [vmem:[%s8822_s2 + $0x15a0] sm:$0xff] }
 0x1b7   :  { %2473 = vmatmul.mubr.f32.gmra.mxu0 %v5054_v29  ;;  %2582 = vmatprep.subr.mxu0 %v924_v62  ;;  %v1078_v62 = vld [vmem:[%s8822_s2 + $0x1aa0] sm:$0xff] }
 0x1b8   :  { %2671 = vmatprep.subr.mxu1 %v1084_v5  ;;  %2561 = vmatprep.mubr.f32.mxu1 %v5070_v37  ;;  %v7017_v5 = vpop.f32.mrf.mxu0  ;;  %v914_v37 = vld [vmem:[%s8822_s2 + $0x1580] sm:$0xff] }
 0x1b9   :  { %2583 = vmatpush1.msra.mxu0 %v923_v2  ;;  %2672 = vmatpush1.msra.mxu1 %v1083_v59  ;;  %v1074_v2 = vld [vmem:[%s8822_s2 + $0x1a80] sm:$0xff]  ;;  %v7030_v59 = vpop.f32.mrf.mxu1 }
 0x1ba   :  { %2584 = vmatprep.subr.mxu0 %v919_v14  ;;  %2562 = vmatmul.mubr.f32.gmra.mxu1 %v5087_v47  ;;  %v913_v14 = vld [vmem:[%s8822_s2 + $0x1578] sm:$0xff]  ;;  %v7032_v29 = vpop.f32.mrf.mxu0 }
 0x1bb   :  { %2673 = vmatprep.subr.mxu1 %v1079_v63  ;;  %2478 = vmatprep.mubr.f32.mxu0 %v5096_v54  ;;  %v1073_v63 = vld [vmem:[%s8822_s2 + $0x1a78] sm:$0xff]  ;;  %v7044_v47 = vpop.f32.mrf.mxu1 }
 0x1bc   :  { %2585 = vmatpush1.msra.mxu0 %v918_v11  ;;  %2674 = vmatpush1.msra.mxu1 %v1078_v62  ;;  %v909_v54 = vld [vmem:[%s8822_s2 + $0x1558] sm:$0xff]  ;;  %v908_v62 = vld [vmem:[%s8822_s2 + $0x1550] sm:$0xff] }
 0x1bd   :  { %2479 = vmatmul.mubr.f32.gmra.mxu0 %v5106_v61  ;;  %2586 = vmatprep.subr.mxu0 %v914_v37  ;;  %v1069_v11 = vld [vmem:[%s8822_s2 + $0x1a58] sm:$0xff]  ;;  %v1068_v61 = vld [vmem:[%s8822_s2 + $0x1a50] sm:$0xff] }
 0x1be   :  { %2675 = vmatprep.subr.mxu1 %v1074_v2  ;;  %2567 = vmatprep.mubr.f32.mxu1 %v5122_v7  ;;  %v904_v37 = vld [vmem:[%s8822_s2 + $0x1530] sm:$0xff]  ;;  %v7059_v7 = vpop.f32.mrf.mxu0 }
 0x1bf   :  { %2587 = vmatpush1.msra.mxu0 %v913_v14  ;;  %2676 = vmatpush1.msra.mxu1 %v1073_v63  ;;  %v1064_v2 = vld [vmem:[%s8822_s2 + $0x1a30] sm:$0xff]  ;;  %v903_v14 = vld [vmem:[%s8822_s2 + $0x1528] sm:$0xff] }
 0x1c0   :  { %2588 = vmatprep.subr.mxu0 %v909_v54  ;;  %2568 = vmatmul.mubr.f32.gmra.mxu1 %v5133_v16  ;;  %v1063_v54 = vld [vmem:[%s8822_s2 + $0x1a28] sm:$0xff]  ;;  %v7074_v16 = vpop.f32.mrf.mxu1 }
 0x1c1   :  { %2677 = vmatprep.subr.mxu1 %v1069_v11  ;;  %2589 = vmatpush1.msra.mxu0 %v908_v62  ;;  %v899_v63 = vld [vmem:[%s8822_s2 + $0x1508] sm:$0xff]  ;;  %v898_v11 = vld [vmem:[%s8822_s2 + $0x1500] sm:$0xff] }
 0x1c2   :  { %2678 = vmatpush1.msra.mxu1 %v1068_v61  ;;  %2590 = vmatprep.subr.mxu0 %v904_v37  ;;  %v1058_v61 = vld [vmem:[%s8822_s2 + $0x1a00] sm:$0xff]  ;;  %v7088_v37 = vpop.f32.mrf.mxu0 }
 0x1c3   :  { %2679 = vmatprep.subr.mxu1 %v1064_v2  ;;  %2591 = vmatpush1.msra.mxu0 %v903_v14  ;;  %v894_v62 = vld [vmem:[%s8822_s2 + $0x14e0] sm:$0xff]  ;;  %v893_v2 = vld [vmem:[%s8822_s2 + $0x14d8] sm:$0xff] }
 0x1c4   :  { %2680 = vmatpush1.msra.mxu1 %v1063_v54  ;;  %2592 = vmatprep.subr.mxu0 %v899_v63  ;;  %v1053_v14 = vld [vmem:[%s8822_s2 + $0x19d8] sm:$0xff]  ;;  %v7102_v63 = vpop.f32.mrf.mxu1 }
 0x1c5   :  { %2681 = vmatprep.subr.mxu1 %v1059_v57  ;;  %2593 = vmatpush1.msra.mxu0 %v898_v11  ;;  %v889_v54 = vld [vmem:[%s8822_s2 + $0x14b8] sm:$0xff]  ;;  %v888_v57 = vld [vmem:[%s8822_s2 + $0x14b0] sm:$0xff] }
 0x1c6   :  { %2682 = vmatpush1.msra.mxu1 %v1058_v61  ;;  %2594 = vmatprep.subr.mxu0 %v894_v62  ;;  %v1048_v11 = vld [vmem:[%s8822_s2 + $0x19b0] sm:$0xff]  ;;  %v7116_v62 = vpop.f32.mrf.mxu0 }
 0x1c7   :  { %2683 = vmatprep.subr.mxu1 %v1054_v32  ;;  %2595 = vmatpush1.msra.mxu0 %v893_v2  ;;  %v884_v61 = vld [vmem:[%s8822_s2 + $0x1490] sm:$0xff]  ;;  %v883_v32 = vld [vmem:[%s8822_s2 + $0x1488] sm:$0xff] }
 0x1c8   :  { %2684 = vmatpush1.msra.mxu1 %v1053_v14  ;;  %2596 = vmatprep.subr.mxu0 %v889_v54  ;;  %v1043_v2 = vld [vmem:[%s8822_s2 + $0x1988] sm:$0xff]  ;;  %v7130_v54 = vpop.f32.mrf.mxu1 }
 0x1c9   :  { %2685 = vmatprep.subr.mxu1 %v1049_v30  ;;  %2597 = vmatpush1.msra.mxu0 %v888_v57  ;;  %v879_v14 = vld [vmem:[%s8822_s2 + $0x1468] sm:$0xff]  ;;  %v878_v30 = vld [vmem:[%s8822_s2 + $0x1460] sm:$0xff] }
 0x1ca   :  { %2686 = vmatpush1.msra.mxu1 %v1048_v11  ;;  %2598 = vmatprep.subr.mxu0 %v884_v61  ;;  %v1038_v57 = vld [vmem:[%s8822_s2 + $0x1960] sm:$0xff]  ;;  %v7144_v61 = vpop.f32.mrf.mxu0 }
 0x1cb   :  { %2687 = vmatprep.subr.mxu1 %v1044_v24  ;;  %2599 = vmatpush1.msra.mxu0 %v883_v32  ;;  %v874_v11 = vld [vmem:[%s8822_s2 + $0x1440] sm:$0xff]  ;;  %v873_v24 = vld [vmem:[%s8822_s2 + $0x1438] sm:$0xff] }
 0x1cc   :  { %2688 = vmatpush1.msra.mxu1 %v1043_v2  ;;  %2600 = vmatprep.subr.mxu0 %v879_v14  ;;  %v1033_v32 = vld [vmem:[%s8822_s2 + $0x1938] sm:$0xff]  ;;  %v1662_v2 = vadd.f32 %v6690_v8, %v6664_v43  ;;  %v7160_v14 = vpop.f32.mrf.mxu1  ;;  %v1028_v43 = vld [vmem:[%s8822_s2 + $0x1910] sm:$0xff]  ;;  %v1664_v8 = vadd.f32 %v6720_v20, %v6692_v51  ;;  %v1023_v51 = vld [vmem:[%s8822_s2 + $0x18e8] sm:$0xff] }
 0x1cd   :  { %2689 = vmatprep.subr.mxu1 %v1039_v23  ;;  %2601 = vmatpush1.msra.mxu0 %v878_v30  ;;  %v1029_v23 = vld [vmem:[%s8822_s2 + $0x1918] sm:$0xff]  ;;  %v1183_v20 = vld [vmem:[%s8822_s2 + $0x1de8] sm:$0xff] }
 0x1ce   :  { %2690 = vmatpush1.msra.mxu1 %v1038_v57  ;;  %2602 = vmatprep.subr.mxu0 %v874_v11  ;;  %v1751_v30 = vadd.f32 %v6858_v3, %v1662_v2  ;;  %v1024_v57 = vld [vmem:[%s8822_s2 + $0x18f0] sm:$0xff]  ;;  %v7177_v11 = vpop.f32.mrf.mxu0  ;;  %v1753_v3 = vadd.f32 %v6876_v40, %v1664_v8  ;;  %v1018_v2 = vld [vmem:[%s8822_s2 + $0x18c0] sm:$0xff] }
 0x1cf   :  { %2691 = vmatprep.subr.mxu1 %v1034_v6  ;;  %2603 = vmatpush1.msra.mxu0 %v873_v24  ;;  %v1184_v6 = vld [vmem:[%s8822_s2 + $0x1df0] sm:$0xff]  ;;  %v1019_v24 = vld [vmem:[%s8822_s2 + $0x18c8] sm:$0xff]  ;;  %v1178_v40 = vld [vmem:[%s8822_s2 + $0x1dc0] sm:$0xff] }
 0x1d0   :  { %2692 = vmatpush1.msra.mxu1 %v1033_v32  ;;  %2604 = vmatprep.subr.mxu0 %v869_v31  ;;  %v1179_v31 = vld [vmem:[%s8822_s2 + $0x1dc8] sm:$0xff]  ;;  %v7192_v32 = vpop.f32.mrf.mxu1  ;;  %v1174_v8 = vld [vmem:[%s8822_s2 + $0x1da0] sm:$0xff] }
 0x1d1   :  { %2693 = vmatprep.subr.mxu1 %v1029_v23  ;;  %2605 = vmatpush1.msra.mxu0 %v868_v52  ;;  %v1668_v52 = vadd.f32 %v6734_v9, %v6706_v55  ;;  %v1840_v23 = vadd.f32 %v6868_v41, %v1751_v30  ;;  %v1013_v41 = vld [vmem:[%s8822_s2 + $0x1898] sm:$0xff]  ;;  %v1842_v9 = vadd.f32 %v6892_v27, %v1753_v3  ;;  %v1164_v3 = vld [vmem:[%s8822_s2 + $0x1d50] sm:$0xff] }
 0x1d2   :  { %2694 = vmatpush1.msra.mxu1 %v1028_v43  ;;  %2606 = vmatprep.subr.mxu0 %v1024_v57  ;;  %v1014_v43 = vld [vmem:[%s8822_s2 + $0x18a0] sm:$0xff]  ;;  %v1670_v57 = vadd.f32 %v6762_v39, %v6736_v17  ;;  %v1173_v55 = vld [vmem:[%s8822_s2 + $0x1d98] sm:$0xff] }
 0x1d3   :  { %2695 = vmatprep.subr.mxu1 %v1184_v6  ;;  %2607 = vmatpush2.msra.mxu0 %v1023_v51  ;;  %v7211_v6 = vpop.f32.mrf.mxu0  ;;  %v1757_v30 = vadd.f32 %v6908_v0, %v1668_v52  ;;  %v1929_v51 = vadd.f32 %v7032_v29, %v1840_v23  ;;  %v1009_v17 = vld [vmem:[%s8822_s2 + $0x1878] sm:$0xff]  ;;  %v1008_v0 = vld [vmem:[%s8822_s2 + $0x1870] sm:$0xff]  ;;  %v1931_v27 = vadd.f32 %v7059_v7, %v1842_v9  ;;  %v1003_v7 = vld [vmem:[%s8822_s2 + $0x1848] sm:$0xff] }
 0x1d4   :  { %2696 = vmatpush2.msra.mxu1 %v1183_v20  ;;  %2608 = vmatprep.subr.mxu0 %v1019_v24  ;;  %v1169_v39 = vld [vmem:[%s8822_s2 + $0x1d78] sm:$0xff]  ;;  %v1759_v20 = vadd.f32 %v6925_v15, %v1670_v57  ;;  %v7229_v24 = vpop.f32.mrf.mxu1  ;;  %v1168_v29 = vld [vmem:[%s8822_s2 + $0x1d70] sm:$0xff] }
 0x1d5   :  { %2697 = vmatprep.subr.mxu1 %v1179_v31  ;;  %2609 = vmatpush2.msra.mxu0 %v1018_v2  ;;  %v1004_v15 = vld [vmem:[%s8822_s2 + $0x1850] sm:$0xff]  ;;  %v1674_v31 = vadd.f32 %v6790_v26, %v6764_v13  ;;  %v7246_v2 = vpop.f32.mrf.mxu0  ;;  %v1846_v52 = vadd.f32 %v6916_v56, %v1757_v30  ;;  %v2018_v23 = vadd.f32 %v7044_v47, %v1929_v51  ;;  %v999_v13 = vld [vmem:[%s8822_s2 + $0x1828] sm:$0xff]  ;;  %v998_v47 = vld [vmem:[%s8822_s2 + $0x1820] sm:$0xff] }
 0x1d6   :  { %2698 = vmatpush2.msra.mxu1 %v1178_v40  ;;  %2610 = vmatprep.subr.mxu0 %v1014_v43  ;;  %v1163_v40 = vld [vmem:[%s8822_s2 + $0x1d48] sm:$0xff]  ;;  %v1676_v43 = vadd.f32 %v6806_v19, %v6792_v18  ;;  %v1848_v57 = vadd.f32 %v6941_v45, %v1759_v20  ;;  %v7266_v56 = vpop.f32.mrf.mxu1  ;;  %v2020_v9 = vadd.f32 %v7074_v16, %v1931_v27  ;;  %v1154_v19 = vld [vmem:[%s8822_s2 + $0x1d00] sm:$0xff]  ;;  %v993_v16 = vld [vmem:[%s8822_s2 + $0x17f8] sm:$0xff] }
 0x1d7   :  { %2699 = vmatprep.subr.mxu1 %v1174_v8  ;;  %2611 = vmatpush2.msra.mxu0 %v1013_v41  ;;  %v1159_v26 = vld [vmem:[%s8822_s2 + $0x1d28] sm:$0xff]  ;;  %v1763_v8 = vadd.f32 %v6950_v34, %v1674_v31  ;;  %v1158_v41 = vld [vmem:[%s8822_s2 + $0x1d20] sm:$0xff]  ;;  %v1935_v18 = vadd.f32 %v7088_v37, %v1846_v52  ;;  %v1153_v37 = vld [vmem:[%s8822_s2 + $0x1cf8] sm:$0xff]  ;;  %v1680_v27 = vadd.f32 %v6832_v12, %v6808_v49 }
 0x1d8   :  { %2700 = vmatpush2.msra.mxu1 %v1173_v55  ;;  %2612 = vmatprep.subr.mxu0 %v1009_v17  ;;  %v994_v34 = vld [vmem:[%s8822_s2 + $0x1800] sm:$0xff]  ;;  %v1765_v30 = vadd.f32 %v6974_v50, %v1676_v43  ;;  %v989_v50 = vld [vmem:[%s8822_s2 + $0x17d8] sm:$0xff]  ;;  %v984_v49 = vld [vmem:[%s8822_s2 + $0x17b0] sm:$0xff] }
 0x1d9   :  { %2701 = vmatprep.subr.mxu1 %v1169_v39  ;;  %2613 = vmatpush2.msra.mxu0 %v1008_v0  ;;  %v1937_v39 = vadd.f32 %v7116_v62, %v1848_v57  ;;  %v1149_v20 = vld [vmem:[%s8822_s2 + $0x1cd8] sm:$0xff]  ;;  %v988_v62 = vld [vmem:[%s8822_s2 + $0x17d0] sm:$0xff]  ;;  %v1852_v31 = vadd.f32 %v6962_v28, %v1763_v8  ;;  %v1682_v28 = vadd.f32 %v6856_v38, %v6834_v1  ;;  %v979_v1 = vld [vmem:[%s8822_s2 + $0x1788] sm:$0xff] }
 0x1da   :  { %2702 = vmatpush2.msra.mxu1 %v1168_v29  ;;  %2614 = vmatprep.subr.mxu0 %v1004_v15  ;;  %v1148_v15 = vld [vmem:[%s8822_s2 + $0x1cd0] sm:$0xff]  ;;  %v1854_v52 = vadd.f32 %v6983_v36, %v1765_v30  ;;  %v1139_v38 = vld [vmem:[%s8822_s2 + $0x1c88] sm:$0xff] }
 0x1db   :  { %2703 = vmatprep.subr.mxu1 %v1164_v3  ;;  %v2106_v55 = vpop.f32.mrf.mxu0  ;;  %2615 = vmatpush2.msra.mxu0 %v1003_v7  ;;  %v2024_v7 = vadd.f32 %v7102_v63, %v1935_v18  ;;  %v1144_v12 = vld [vmem:[%s8822_s2 + $0x1cb0] sm:$0xff]  ;;  %v1769_v63 = vadd.f32 %v6996_v44, %v1680_v27  ;;  %v1941_v43 = vadd.f32 %v7144_v61, %v1852_v31  ;;  %v1138_v61 = vld [vmem:[%s8822_s2 + $0x1c80] sm:$0xff]  ;;  %v973_v18 = vld [vmem:[%s8822_s2 + $0x1758] sm:$0xff] }
 0x1dc   :  { %2704 = vmatpush2.msra.mxu1 %v1163_v40  ;;  %v2107_v45 = vadd.f32 %v2106_v55, %v2018_v23  ;;  %2616 = vmatprep.subr.mxu0 %v999_v13  ;;  %v983_v23 = vld [vmem:[%s8822_s2 + $0x17a8] sm:$0xff]  ;;  %v2026_v8 = vadd.f32 %v7130_v54, %v1937_v39  ;;  %v1771_v44 = vadd.f32 %v7017_v5, %v1682_v28  ;;  %v978_v54 = vld [vmem:[%s8822_s2 + $0x1780] sm:$0xff] }
 0x1dd   :  { %2705 = vmatprep.subr.mxu1 %v1159_v26  ;;  %v2195_v51 = vpop.f32.mrf.mxu1  ;;  %v2108_v17 = vpop.f32.mrf.mxu0  ;;  %2617 = vmatpush2.msra.mxu0 %v998_v47  ;;  %v1143_v13 = vld [vmem:[%s8822_s2 + $0x1ca8] sm:$0xff]  ;;  %v1943_v47 = vadd.f32 %v7177_v11, %v1854_v52  ;;  %v1134_v5 = vld [vmem:[%s8822_s2 + $0x1c60] sm:$0xff]  ;;  %v1133_v11 = vld [vmem:[%s8822_s2 + $0x1c58] sm:$0xff] }
 0x1de   :  { %2706 = vmatpush2.msra.mxu1 %v1158_v41  ;;  %v2196_v0 = vadd.f32 %v2195_v51, %v2107_v45  ;;  %v2109_v29 = vadd.f32 %v2108_v17, %v2020_v9  ;;  %2618 = vmatprep.subr.mxu0 %v994_v34  ;;  %v974_v41 = vld [vmem:[%s8822_s2 + $0x1760] sm:$0xff]  ;;  %v1858_v9 = vadd.f32 %v7008_v21, %v1769_v63  ;;  %v969_v45 = vld [vmem:[%s8822_s2 + $0x1738] sm:$0xff]  ;;  %v1128_v51 = vld [vmem:[%s8822_s2 + $0x1c30] sm:$0xff] }
 0x1df   :  { %2707 = vmatprep.subr.mxu1 %v1154_v19  ;;  %v2197_v3 = vpop.f32.mrf.mxu1  ;;  %2619 = vmatpush2.msra.mxu0 %v993_v16  ;;  %v2030_v19 = vadd.f32 %v7160_v14, %v1941_v43  ;;  %v1129_v21 = vld [vmem:[%s8822_s2 + $0x1c38] sm:$0xff]  ;;  %v1860_v16 = vadd.f32 %v7030_v59, %v1771_v44  ;;  %v968_v14 = vld [vmem:[%s8822_s2 + $0x1730] sm:$0xff]  ;;  %v1114_v28 = vld [vmem:[%s8822_s2 + $0x1bc0] sm:$0xff] }
 0x1e0   :  { %2708 = vmatpush2.msra.mxu1 %v1153_v37  ;;  %3610 = vst [vmem:[%s8825_s3] sm:$0xff] %v2196_v0  ;;  %v2198_v40 = vadd.f32 %v2197_v3, %v2109_v29  ;;  %2620 = vmatprep.subr.mxu0 %v989_v50  ;;  %v1947_v37 = vadd.f32 %v7211_v6, %v1858_v9  ;;  %v964_v59 = vld [vmem:[%s8822_s2 + $0x1710] sm:$0xff]  ;;  %v1123_v29 = vld [vmem:[%s8822_s2 + $0x1c08] sm:$0xff]  ;;  %v953_v52 = vld [vmem:[%s8822_s2 + $0x16b8] sm:$0xff] }
 0x1e1   :  { %2709 = vmatprep.subr.mxu1 %v1149_v20  ;;  %v2112_v26 = vpop.f32.mrf.mxu0  ;;  %2621 = vmatpush2.msra.mxu0 %v988_v62  ;;  %v2032_v50 = vadd.f32 %v7192_v32, %v1943_v47  ;;  %v1124_v6 = vld [vmem:[%s8822_s2 + $0x1c10] sm:$0xff]  ;;  %v963_v32 = vld [vmem:[%s8822_s2 + $0x1708] sm:$0xff]  ;;  %v1949_v62 = vadd.f32 %v7246_v2, %v1860_v16  ;;  %v958_v2 = vld [vmem:[%s8822_s2 + $0x16e0] sm:$0xff] }
 0x1e2   :  { %2710 = vmatpush2.msra.mxu1 %v1148_v15  ;;  %3611 = vst [vmem:[%s8825_s3 + $0x8] sm:$0xff] %v2198_v40  ;;  %v2113_v36 = vadd.f32 %v2112_v26, %v2024_v7  ;;  %2622 = vmatprep.subr.mxu0 %v984_v49  ;;  %v959_v15 = vld [vmem:[%s8822_s2 + $0x16e8] sm:$0xff]  ;;  %v1118_v7 = vld [vmem:[%s8822_s2 + $0x1be0] sm:$0xff]  ;;  %v949_v43 = vld [vmem:[%s8822_s2 + $0x1698] sm:$0xff] }
 0x1e3   :  { %2711 = vmatprep.subr.mxu1 %v1144_v12  ;;  %v2114_v57 = vpop.f32.mrf.mxu0  ;;  %2623 = vmatpush2.msra.mxu0 %v983_v23  ;;  %v1119_v3 = vld [vmem:[%s8822_s2 + $0x1be8] sm:$0xff]  ;;  %v2036_v12 = vadd.f32 %v7229_v24, %v1947_v37  ;;  %v954_v40 = vld [vmem:[%s8822_s2 + $0x16c0] sm:$0xff]  ;;  %v1113_v24 = vld [vmem:[%s8822_s2 + $0x1bb8] sm:$0xff]  ;;  %v2038_v26 = vadd.f32 %v7266_v56, %v1949_v62 }
 0x1e4   :  { %2712 = vmatpush2.msra.mxu1 %v1143_v13  ;;  %v2115_v55 = vadd.f32 %v2114_v57, %v2026_v8  ;;  %2624 = vmatprep.subr.mxu0 %v979_v1  ;;  %v2201_v34 = vpop.f32.mrf.mxu1  ;;  %v1109_v8 = vld [vmem:[%s8822_s2 + $0x1b98] sm:$0xff]  ;;  %v948_v56 = vld [vmem:[%s8822_s2 + $0x1690] sm:$0xff]  ;;  %v1234_v62 = vld [vmem:[%s8822_s2 + $0x1f80] sm:$0xff] }
 0x1e5   :  { %2713 = vmatprep.subr.mxu1 %v1139_v38  ;;  %2625 = vmatpush2.msra.mxu0 %v978_v54  ;;  %v2202_v30 = vadd.f32 %v2201_v34, %v2113_v36  ;;  %v1108_v44 = vld [vmem:[%s8822_s2 + $0x1b90] sm:$0xff]  ;;  %v1253_v16 = vld [vmem:[%s8822_s2 + $0x2018] sm:$0xff] }
 0x1e6   :  { %2714 = vmatpush2.msra.mxu1 %v1138_v61  ;;  %2626 = vmatprep.subr.mxu0 %v974_v41  ;;  %v2203_v39 = vpop.f32.mrf.mxu1  ;;  %v1264_v61 = vld [vmem:[%s8822_s2 + $0x2070] sm:$0xff]  ;;  %v1413_v37 = vld [vmem:[%s8822_s2 + $0x2518] sm:$0xff] }
 0x1e7   :  { %2715 = vmatprep.subr.mxu1 %v1134_v5  ;;  %v2118_v17 = vpop.f32.mrf.mxu0  ;;  %2627 = vmatpush2.msra.mxu0 %v973_v18  ;;  %3615 = vst [vmem:[%s8825_s3 + $0x28] sm:$0xff] %v2202_v30  ;;  %v2204_v0 = vadd.f32 %v2203_v39, %v2115_v55  ;;  %v1424_v47 = vld [vmem:[%s8822_s2 + $0x2570] sm:$0xff]  ;;  %v1263_v5 = vld [vmem:[%s8822_s2 + $0x2068] sm:$0xff]  ;;  %v1414_v30 = vld [vmem:[%s8822_s2 + $0x2520] sm:$0xff] }
 0x1e8   :  { %2716 = vmatpush2.msra.mxu1 %v1133_v11  ;;  %v2119_v20 = vadd.f32 %v2118_v17, %v2030_v19  ;;  %2628 = vmatprep.subr.mxu0 %v969_v45  ;;  %v1423_v55 = vld [vmem:[%s8822_s2 + $0x2568] sm:$0xff]  ;;  %v1258_v19 = vld [vmem:[%s8822_s2 + $0x2040] sm:$0xff]  ;;  %v1248_v17 = vld [vmem:[%s8822_s2 + $0x1ff0] sm:$0xff] }
 0x1e9   :  { %2717 = vmatprep.subr.mxu1 %v1129_v21  ;;  %v2120_v27 = vpop.f32.mrf.mxu0  ;;  %2629 = vmatpush2.msra.mxu0 %v968_v14  ;;  %3616 = vst [vmem:[%s8825_s3 + $0x30] sm:$0xff] %v2204_v0  ;;  %v1259_v18 = vld [vmem:[%s8822_s2 + $0x2048] sm:$0xff]  ;;  %v1418_v45 = vld [vmem:[%s8822_s2 + $0x2540] sm:$0xff]  ;;  %v1249_v14 = vld [vmem:[%s8822_s2 + $0x1ff8] sm:$0xff] }
 0x1ea   :  { %2718 = vmatpush2.msra.mxu1 %v1128_v51  ;;  %v2121_v31 = vadd.f32 %v2120_v27, %v2032_v50  ;;  %2630 = vmatprep.subr.mxu0 %v964_v59  ;;  %v2207_v49 = vpop.f32.mrf.mxu1  ;;  %v1419_v11 = vld [vmem:[%s8822_s2 + $0x2548] sm:$0xff]  ;;  %v1254_v21 = vld [vmem:[%s8822_s2 + $0x2020] sm:$0xff]  ;;  %v1409_v51 = vld [vmem:[%s8822_s2 + $0x24f8] sm:$0xff] }
 0x1eb   :  { %2719 = vmatprep.subr.mxu1 %v1124_v6  ;;  %2631 = vmatpush2.msra.mxu0 %v963_v32  ;;  %v2208_v63 = vadd.f32 %v2207_v49, %v2119_v20  ;;  %v1408_v39 = vld [vmem:[%s8822_s2 + $0x24f0] sm:$0xff]  ;;  %v1243_v6 = vld [vmem:[%s8822_s2 + $0x1fc8] sm:$0xff]  ;;  %v1398_v27 = vld [vmem:[%s8822_s2 + $0x24a0] sm:$0xff] }
 0x1ec   :  { %2720 = vmatpush2.msra.mxu1 %v1123_v29  ;;  %2632 = vmatprep.subr.mxu0 %v959_v15  ;;  %v2209_v13 = vpop.f32.mrf.mxu1  ;;  %v1244_v50 = vld [vmem:[%s8822_s2 + $0x1fd0] sm:$0xff]  ;;  %v1403_v20 = vld [vmem:[%s8822_s2 + $0x24c8] sm:$0xff]  ;;  %v1238_v29 = vld [vmem:[%s8822_s2 + $0x1fa0] sm:$0xff] }
 0x1ed   :  { %2721 = vmatprep.subr.mxu1 %v1119_v3  ;;  %v2124_v23 = vpop.f32.mrf.mxu0  ;;  %2633 = vmatpush2.msra.mxu0 %v958_v2  ;;  %3620 = vst [vmem:[%s8825_s3 + $0x50] sm:$0xff] %v2208_v63  ;;  %v2210_v38 = vadd.f32 %v2209_v13, %v2121_v31  ;;  %v1404_v59 = vld [vmem:[%s8822_s2 + $0x24d0] sm:$0xff]  ;;  %v1239_v0 = vld [vmem:[%s8822_s2 + $0x1fa8] sm:$0xff]  ;;  %v1394_v15 = vld [vmem:[%s8822_s2 + $0x2480] sm:$0xff] }
 0x1ee   :  { %2722 = vmatpush2.msra.mxu1 %v1118_v7  ;;  %v2125_v1 = vadd.f32 %v2124_v23, %v2036_v12  ;;  %2634 = vmatprep.subr.mxu0 %v954_v40  ;;  %v1399_v32 = vld [vmem:[%s8822_s2 + $0x24a8] sm:$0xff]  ;;  %v8952_v3 = vld [vmem:[#allocation34_spill] sm:$0xff]  ;;  %v1233_v31 = vld [vmem:[%s8822_s2 + $0x1f78] sm:$0xff] }
 0x1ef   :  { %2723 = vmatprep.subr.mxu1 %v1114_v28  ;;  %v2126_v36 = vpop.f32.mrf.mxu0  ;;  %2635 = vmatpush2.msra.mxu0 %v953_v52  ;;  %3621 = vst [vmem:[%s8825_s3 + $0x58] sm:$0xff] %v2210_v38  ;;  %v8953_v2 = vld [vmem:[#allocation35_spill] sm:$0xff]  ;;  %v1393_v7 = vld [vmem:[%s8822_s2 + $0x2478] sm:$0xff]  ;;  %v8954_v40 = vld [vmem:[#allocation36_spill] sm:$0xff] }
 0x1f0   :  { %2724 = vmatpush2.msra.mxu1 %v1113_v24  ;;  %v2127_v54 = vadd.f32 %v2126_v36, %v2038_v26  ;;  %2636 = vmatprep.subr.mxu0 %v949_v43  ;;  %v2213_v57 = vpop.f32.mrf.mxu1  ;;  %v1229_v49 = vld [vmem:[%s8822_s2 + $0x1f58] sm:$0xff]  ;;  %v1228_v28 = vld [vmem:[%s8822_s2 + $0x1f50] sm:$0xff]  ;;  %v1223_v13 = vld [vmem:[%s8822_s2 + $0x1f28] sm:$0xff] }
 0x1f1   :  { %2725 = vmatprep.subr.mxu1 %v1109_v8  ;;  %2637 = vmatpush2.msra.mxu0 %v948_v56  ;;  %v2214_v41 = vadd.f32 %v2213_v57, %v2125_v1  ;;  %v1389_v12 = vld [vmem:[%s8822_s2 + $0x2458] sm:$0xff]  ;;  %v1388_v63 = vld [vmem:[%s8822_s2 + $0x2450] sm:$0xff]  ;;  %v1383_v26 = vld [vmem:[%s8822_s2 + $0x2428] sm:$0xff] }
 0x1f2   :  { %2638 = vmatprep.mubr.f32.mxu0 %v5466_v42  ;;  %2726 = vmatpush2.msra.mxu1 %v1108_v44  ;;  %v2215_v9 = vpop.f32.mrf.mxu1  ;;  %v1224_v52 = vld [vmem:[%s8822_s2 + $0x1f30] sm:$0xff]  ;;  %v8955_v23 = vld [vmem:[#allocation37_spill] sm:$0xff]  ;;  %v1219_v43 = vld [vmem:[%s8822_s2 + $0x1f08] sm:$0xff] }
 0x1f3   :  { %2639 = vmatmul.mubr.f32.vlgmr.msra.gmra.mxu0 %v5475_v53  ;;  %2727 = vmatprep.mubr.f32.mxu1 %v5481_v60  ;;  %3625 = vst [vmem:[%s8825_s3 + $0x78] sm:$0xff] %v2214_v41  ;;  %v2216_v34 = vadd.f32 %v2215_v9, %v2127_v54  ;;  %v1384_v24 = vld [vmem:[%s8822_s2 + $0x2430] sm:$0xff]  ;;  %v1379_v8 = vld [vmem:[%s8822_s2 + $0x2408] sm:$0xff]  ;;  %v1218_v1 = vld [vmem:[%s8822_s2 + $0x1f00] sm:$0xff] }
 0x1f4   :  { %2752 = vmatprep.subr.mxu0 %v1264_v61  ;;  %2841 = vmatprep.subr.mxu1 %v1424_v47  ;;  %v1378_v38 = vld [vmem:[%s8822_s2 + $0x2400] sm:$0xff]  ;;  %v1213_v44 = vld [vmem:[%s8822_s2 + $0x1ed8] sm:$0xff]  ;;  %v1208_v47 = vld [vmem:[%s8822_s2 + $0x1eb0] sm:$0xff] }
 0x1f5   :  { %2728 = vmatmul.mubr.f32.vlgmr.msra.gmra.mxu1 %v5487_v4  ;;  %2753 = vmatpush1.msra.mxu0 %v1263_v5  ;;  %3626 = vst [vmem:[%s8825_s3 + $0x80] sm:$0xff] %v2216_v34  ;;  %v1214_v56 = vld [vmem:[%s8822_s2 + $0x1ee0] sm:$0xff]  ;;  %v1373_v54 = vld [vmem:[%s8822_s2 + $0x23d8] sm:$0xff]  ;;  %v1368_v41 = vld [vmem:[%s8822_s2 + $0x23b0] sm:$0xff] }
 0x1f6   :  { %2842 = vmatpush1.msra.mxu1 %v1423_v55  ;;  %2754 = vmatprep.subr.mxu0 %v1259_v18  ;;  %v1374_v36 = vld [vmem:[%s8822_s2 + $0x23e0] sm:$0xff]  ;;  %v1209_v61 = vld [vmem:[%s8822_s2 + $0x1eb8] sm:$0xff]  ;;  %v1204_v5 = vld [vmem:[%s8822_s2 + $0x1e90] sm:$0xff] }
 0x1f7   :  { %2843 = vmatprep.subr.mxu1 %v1419_v11  ;;  %2644 = vmatprep.mubr.f32.mxu0 %v5514_v25  ;;  %v1369_v57 = vld [vmem:[%s8822_s2 + $0x23b8] sm:$0xff]  ;;  %v1364_v55 = vld [vmem:[%s8822_s2 + $0x2390] sm:$0xff]  ;;  %v1203_v9 = vld [vmem:[%s8822_s2 + $0x1e88] sm:$0xff] }
 0x1f8   :  { %2755 = vmatpush1.msra.mxu0 %v1258_v19  ;;  %2844 = vmatpush1.msra.mxu1 %v1418_v45  ;;  %v1363_v18 = vld [vmem:[%s8822_s2 + $0x2388] sm:$0xff]  ;;  %v1198_v19 = vld [vmem:[%s8822_s2 + $0x1e60] sm:$0xff] }
 0x1f9   :  { %2645 = vmatmul.mubr.f32.gmra.mxu0 %v5524_v35  ;;  %2756 = vmatprep.subr.mxu0 %v1254_v21  ;;  %v1199_v11 = vld [vmem:[%s8822_s2 + $0x1e68] sm:$0xff]  ;;  %v1358_v45 = vld [vmem:[%s8822_s2 + $0x2360] sm:$0xff] }
 0x1fa   :  { %2845 = vmatprep.subr.mxu1 %v1414_v30  ;;  %2733 = vmatprep.mubr.f32.mxu1 %v5539_v46  ;;  %v1359_v34 = vld [vmem:[%s8822_s2 + $0x2368] sm:$0xff]  ;;  %v1194_v21 = vld [vmem:[%s8822_s2 + $0x1e40] sm:$0xff] }
 0x1fb   :  { %2757 = vmatpush1.msra.mxu0 %v1253_v16  ;;  %2846 = vmatpush1.msra.mxu1 %v1413_v37  ;;  %v1354_v30 = vld [vmem:[%s8822_s2 + $0x2340] sm:$0xff]  ;;  %v1193_v16 = vld [vmem:[%s8822_s2 + $0x1e38] sm:$0xff] }
 0x1fc   :  { %2758 = vmatprep.subr.mxu0 %v1249_v14  ;;  %2734 = vmatmul.mubr.f32.gmra.mxu1 %v5556_v10  ;;  %v1353_v37 = vld [vmem:[%s8822_s2 + $0x2338] sm:$0xff] }
 0x1fd   :  { %2847 = vmatprep.subr.mxu1 %v1409_v51  ;;  %2650 = vmatprep.mubr.f32.mxu0 %v5565_v48  ;;  %v1189_v14 = vld [vmem:[%s8822_s2 + $0x1e18] sm:$0xff] }
 0x1fe   :  { %2759 = vmatpush1.msra.mxu0 %v1248_v17  ;;  %2848 = vmatpush1.msra.mxu1 %v1408_v39  ;;  %v1349_v51 = vld [vmem:[%s8822_s2 + $0x2318] sm:$0xff]  ;;  %v1188_v17 = vld [vmem:[%s8822_s2 + $0x1e10] sm:$0xff] }
 0x1ff   :  { %2651 = vmatmul.mubr.f32.gmra.mxu0 %v5575_v33  ;;  %2760 = vmatprep.subr.mxu0 %v1244_v50  ;;  %v1348_v39 = vld [vmem:[%s8822_s2 + $0x2310] sm:$0xff] }
 0x200   :  { %2849 = vmatprep.subr.mxu1 %v1404_v59  ;;  %2739 = vmatprep.mubr.f32.mxu1 %v5591_v58  ;;  %v1344_v50 = vld [vmem:[%s8822_s2 + $0x22f0] sm:$0xff] }
 0x201   :  { %2761 = vmatpush1.msra.mxu0 %v1243_v6  ;;  %2850 = vmatpush1.msra.mxu1 %v1403_v20  ;;  %v1504_v59 = vld [vmem:[%s8822_s2 + $0x27f0] sm:$0xff]  ;;  %v1343_v6 = vld [vmem:[%s8822_s2 + $0x22e8] sm:$0xff] }
 0x202   :  { %2762 = vmatprep.subr.mxu0 %v1239_v0  ;;  %2740 = vmatmul.mubr.f32.gmra.mxu1 %v5608_v22  ;;  %v1503_v20 = vld [vmem:[%s8822_s2 + $0x27e8] sm:$0xff] }
 0x203   :  { %2851 = vmatprep.subr.mxu1 %v1399_v32  ;;  %2656 = vmatprep.mubr.f32.mxu0 %v8952_v3  ;;  %v1339_v0 = vld [vmem:[%s8822_s2 + $0x22c8] sm:$0xff] }
 0x204   :  { %2763 = vmatpush1.msra.mxu0 %v1238_v29  ;;  %2852 = vmatpush1.msra.mxu1 %v1398_v27  ;;  %v1499_v32 = vld [vmem:[%s8822_s2 + $0x27c8] sm:$0xff]  ;;  %v1338_v29 = vld [vmem:[%s8822_s2 + $0x22c0] sm:$0xff] }
 0x205   :  { %2657 = vmatmul.mubr.f32.gmra.mxu0 %v8953_v2  ;;  %2764 = vmatprep.subr.mxu0 %v1234_v62  ;;  %v1498_v27 = vld [vmem:[%s8822_s2 + $0x27c0] sm:$0xff] }
 0x206   :  { %2853 = vmatprep.subr.mxu1 %v1394_v15  ;;  %2745 = vmatprep.mubr.f32.mxu1 %v8954_v40  ;;  %v1334_v62 = vld [vmem:[%s8822_s2 + $0x22a0] sm:$0xff] }
 0x207   :  { %2765 = vmatpush1.msra.mxu0 %v1233_v31  ;;  %2854 = vmatpush1.msra.mxu1 %v1393_v7  ;;  %v1494_v15 = vld [vmem:[%s8822_s2 + $0x27a0] sm:$0xff]  ;;  %v1333_v31 = vld [vmem:[%s8822_s2 + $0x2298] sm:$0xff] }
 0x208   :  { %2766 = vmatprep.subr.mxu0 %v1229_v49  ;;  %2746 = vmatmul.mubr.f32.gmra.mxu1 %v8955_v23  ;;  %v1493_v7 = vld [vmem:[%s8822_s2 + $0x2798] sm:$0xff] }
 0x209   :  { %2855 = vmatprep.subr.mxu1 %v1389_v12  ;;  %2767 = vmatpush1.msra.mxu0 %v1228_v28  ;;  %v1329_v49 = vld [vmem:[%s8822_s2 + $0x2278] sm:$0xff]  ;;  %v1328_v28 = vld [vmem:[%s8822_s2 + $0x2270] sm:$0xff] }
 0x20a   :  { %2856 = vmatpush1.msra.mxu1 %v1388_v63  ;;  %2768 = vmatprep.subr.mxu0 %v1224_v52  ;;  %v1489_v12 = vld [vmem:[%s8822_s2 + $0x2778] sm:$0xff]  ;;  %v1488_v63 = vld [vmem:[%s8822_s2 + $0x2770] sm:$0xff] }
 0x20b   :  { %2857 = vmatprep.subr.mxu1 %v1384_v24  ;;  %2769 = vmatpush1.msra.mxu0 %v1223_v13  ;;  %v1324_v52 = vld [vmem:[%s8822_s2 + $0x2250] sm:$0xff]  ;;  %v1323_v13 = vld [vmem:[%s8822_s2 + $0x2248] sm:$0xff] }
 0x20c   :  { %2858 = vmatpush1.msra.mxu1 %v1383_v26  ;;  %2770 = vmatprep.subr.mxu0 %v1219_v43  ;;  %v1484_v24 = vld [vmem:[%s8822_s2 + $0x2750] sm:$0xff]  ;;  %v1483_v26 = vld [vmem:[%s8822_s2 + $0x2748] sm:$0xff] }
 0x20d   :  { %2859 = vmatprep.subr.mxu1 %v1379_v8  ;;  %2771 = vmatpush1.msra.mxu0 %v1218_v1  ;;  %v1319_v43 = vld [vmem:[%s8822_s2 + $0x2228] sm:$0xff]  ;;  %v1318_v1 = vld [vmem:[%s8822_s2 + $0x2220] sm:$0xff] }
 0x20e   :  { %2860 = vmatpush1.msra.mxu1 %v1378_v38  ;;  %2772 = vmatprep.subr.mxu0 %v1214_v56  ;;  %v1479_v8 = vld [vmem:[%s8822_s2 + $0x2728] sm:$0xff]  ;;  %v1478_v38 = vld [vmem:[%s8822_s2 + $0x2720] sm:$0xff] }
 0x20f   :  { %2861 = vmatprep.subr.mxu1 %v1374_v36  ;;  %2773 = vmatpush1.msra.mxu0 %v1213_v44  ;;  %v1314_v56 = vld [vmem:[%s8822_s2 + $0x2200] sm:$0xff]  ;;  %v1313_v44 = vld [vmem:[%s8822_s2 + $0x21f8] sm:$0xff] }
 0x210   :  { %2862 = vmatpush1.msra.mxu1 %v1373_v54  ;;  %2774 = vmatprep.subr.mxu0 %v1209_v61  ;;  %v1474_v36 = vld [vmem:[%s8822_s2 + $0x2700] sm:$0xff]  ;;  %v1473_v54 = vld [vmem:[%s8822_s2 + $0x26f8] sm:$0xff] }
 0x211   :  { %2863 = vmatprep.subr.mxu1 %v1369_v57  ;;  %2775 = vmatpush1.msra.mxu0 %v1208_v47  ;;  %v1309_v61 = vld [vmem:[%s8822_s2 + $0x21d8] sm:$0xff]  ;;  %v1308_v47 = vld [vmem:[%s8822_s2 + $0x21d0] sm:$0xff] }
 0x212   :  { %2864 = vmatpush1.msra.mxu1 %v1368_v41  ;;  %2776 = vmatprep.subr.mxu0 %v1204_v5  ;;  %v1469_v57 = vld [vmem:[%s8822_s2 + $0x26d8] sm:$0xff]  ;;  %v1468_v41 = vld [vmem:[%s8822_s2 + $0x26d0] sm:$0xff] }
 0x213   :  { %2865 = vmatprep.subr.mxu1 %v1364_v55  ;;  %2777 = vmatpush1.msra.mxu0 %v1203_v9  ;;  %v1304_v5 = vld [vmem:[%s8822_s2 + $0x21b0] sm:$0xff]  ;;  %v1303_v9 = vld [vmem:[%s8822_s2 + $0x21a8] sm:$0xff] }
 0x214   :  { %2866 = vmatpush1.msra.mxu1 %v1363_v18  ;;  %2778 = vmatprep.subr.mxu0 %v1199_v11  ;;  %v1464_v55 = vld [vmem:[%s8822_s2 + $0x26b0] sm:$0xff]  ;;  %v1463_v18 = vld [vmem:[%s8822_s2 + $0x26a8] sm:$0xff] }
 0x215   :  { %2867 = vmatprep.subr.mxu1 %v1359_v34  ;;  %2779 = vmatpush1.msra.mxu0 %v1198_v19  ;;  %v1299_v11 = vld [vmem:[%s8822_s2 + $0x2188] sm:$0xff]  ;;  %v1298_v19 = vld [vmem:[%s8822_s2 + $0x2180] sm:$0xff] }
 0x216   :  { %2868 = vmatpush1.msra.mxu1 %v1358_v45  ;;  %2780 = vmatprep.subr.mxu0 %v1194_v21  ;;  %v1459_v34 = vld [vmem:[%s8822_s2 + $0x2688] sm:$0xff]  ;;  %v1458_v45 = vld [vmem:[%s8822_s2 + $0x2680] sm:$0xff] }
 0x217   :  { %2869 = vmatprep.subr.mxu1 %v1354_v30  ;;  %2781 = vmatpush1.msra.mxu0 %v1193_v16  ;;  %v1294_v21 = vld [vmem:[%s8822_s2 + $0x2160] sm:$0xff]  ;;  %v1293_v16 = vld [vmem:[%s8822_s2 + $0x2158] sm:$0xff] }
 0x218   :  { %2870 = vmatpush1.msra.mxu1 %v1353_v37  ;;  %2782 = vmatprep.subr.mxu0 %v1189_v14  ;;  %v1454_v30 = vld [vmem:[%s8822_s2 + $0x2660] sm:$0xff]  ;;  %v1453_v37 = vld [vmem:[%s8822_s2 + $0x2658] sm:$0xff] }
 0x219   :  { %2871 = vmatprep.subr.mxu1 %v1349_v51  ;;  %2783 = vmatpush1.msra.mxu0 %v1188_v17  ;;  %v1289_v14 = vld [vmem:[%s8822_s2 + $0x2138] sm:$0xff]  ;;  %v1288_v17 = vld [vmem:[%s8822_s2 + $0x2130] sm:$0xff] }
 0x21a   :  { %2872 = vmatpush1.msra.mxu1 %v1348_v39  ;;  %2784 = vmatprep.subr.mxu0 %v1344_v50  ;;  %v1449_v51 = vld [vmem:[%s8822_s2 + $0x2638] sm:$0xff]  ;;  %v1448_v39 = vld [vmem:[%s8822_s2 + $0x2630] sm:$0xff] }
 0x21b   :  { %2873 = vmatprep.subr.mxu1 %v1504_v59  ;;  %2785 = vmatpush2.msra.mxu0 %v1343_v6  ;;  %v1284_v50 = vld [vmem:[%s8822_s2 + $0x2110] sm:$0xff]  ;;  %v1283_v6 = vld [vmem:[%s8822_s2 + $0x2108] sm:$0xff] }
 0x21c   :  { %2874 = vmatpush2.msra.mxu1 %v1503_v20  ;;  %2786 = vmatprep.subr.mxu0 %v1339_v0  ;;  %v1444_v59 = vld [vmem:[%s8822_s2 + $0x2610] sm:$0xff]  ;;  %v1443_v20 = vld [vmem:[%s8822_s2 + $0x2608] sm:$0xff] }
 0x21d   :  { %2875 = vmatprep.subr.mxu1 %v1499_v32  ;;  %2787 = vmatpush2.msra.mxu0 %v1338_v29  ;;  %v1279_v0 = vld [vmem:[%s8822_s2 + $0x20e8] sm:$0xff]  ;;  %v1278_v29 = vld [vmem:[%s8822_s2 + $0x20e0] sm:$0xff] }
 0x21e   :  { %2876 = vmatpush2.msra.mxu1 %v1498_v27  ;;  %2788 = vmatprep.subr.mxu0 %v1334_v62  ;;  %v1439_v32 = vld [vmem:[%s8822_s2 + $0x25e8] sm:$0xff]  ;;  %v1438_v27 = vld [vmem:[%s8822_s2 + $0x25e0] sm:$0xff] }
 0x21f   :  { %2877 = vmatprep.subr.mxu1 %v1494_v15  ;;  %2789 = vmatpush2.msra.mxu0 %v1333_v31  ;;  %v1274_v62 = vld [vmem:[%s8822_s2 + $0x20c0] sm:$0xff]  ;;  %v1273_v31 = vld [vmem:[%s8822_s2 + $0x20b8] sm:$0xff] }
 0x220   :  { %2878 = vmatpush2.msra.mxu1 %v1493_v7  ;;  %2790 = vmatprep.subr.mxu0 %v1329_v49  ;;  %v1434_v15 = vld [vmem:[%s8822_s2 + $0x25c0] sm:$0xff]  ;;  %v1433_v7 = vld [vmem:[%s8822_s2 + $0x25b8] sm:$0xff] }
 0x221   :  { %2879 = vmatprep.subr.mxu1 %v1489_v12  ;;  %2791 = vmatpush2.msra.mxu0 %v1328_v28  ;;  %v1269_v49 = vld [vmem:[%s8822_s2 + $0x2098] sm:$0xff]  ;;  %v1268_v28 = vld [vmem:[%s8822_s2 + $0x2090] sm:$0xff] }
 0x222   :  { %2880 = vmatpush2.msra.mxu1 %v1488_v63  ;;  %2792 = vmatprep.subr.mxu0 %v1324_v52  ;;  %v1429_v12 = vld [vmem:[%s8822_s2 + $0x2598] sm:$0xff]  ;;  %v1428_v63 = vld [vmem:[%s8822_s2 + $0x2590] sm:$0xff] }
 0x223   :  { %2881 = vmatprep.subr.mxu1 %v1484_v24  ;;  %2793 = vmatpush2.msra.mxu0 %v1323_v13  ;;  %v385_v52 = vld [vmem:[%s8822_s2 + $0x4f8] sm:$0xff]  ;;  %v8956_v24 = vld [vmem:[#allocation38_spill] sm:$0xff] }
 0x224   :  { %2882 = vmatpush2.msra.mxu1 %v1483_v26  ;;  %2794 = vmatprep.subr.mxu0 %v1319_v43  ;;  %v545_v13 = vld [vmem:[%s8822_s2 + $0x9f8] sm:$0xff]  ;;  %v8957_v26 = vld [vmem:[#allocation39_spill] sm:$0xff] }
 0x225   :  { %2883 = vmatprep.subr.mxu1 %v1479_v8  ;;  %2795 = vmatpush2.msra.mxu0 %v1318_v1  ;;  %v305_v43 = vld [vmem:[%s8822_s2 + $0x278] sm:$0xff]  ;;  %v8958_v1 = vld [vmem:[#allocation40_spill] sm:$0xff] }
 0x226   :  { %2884 = vmatpush2.msra.mxu1 %v1478_v38  ;;  %2796 = vmatprep.subr.mxu0 %v1314_v56  ;;  %v465_v8 = vld [vmem:[%s8822_s2 + $0x778] sm:$0xff]  ;;  %v380_v38 = vld [vmem:[%s8822_s2 + $0x4d0] sm:$0xff] }
 0x227   :  { %2885 = vmatprep.subr.mxu1 %v1474_v36  ;;  %2797 = vmatpush2.msra.mxu0 %v1313_v44  ;;  %v540_v56 = vld [vmem:[%s8822_s2 + $0x9d0] sm:$0xff]  ;;  %v8959_v36 = vld [vmem:[#allocation41_spill] sm:$0xff] }
 0x228   :  { %2886 = vmatpush2.msra.mxu1 %v1473_v54  ;;  %2798 = vmatprep.subr.mxu0 %v1309_v61  ;;  %v300_v44 = vld [vmem:[%s8822_s2 + $0x250] sm:$0xff]  ;;  %v375_v61 = vld [vmem:[%s8822_s2 + $0x4a8] sm:$0xff] }
 0x229   :  { %2887 = vmatprep.subr.mxu1 %v1469_v57  ;;  %2799 = vmatpush2.msra.mxu0 %v1308_v47  ;;  %v460_v54 = vld [vmem:[%s8822_s2 + $0x750] sm:$0xff]  ;;  %v535_v57 = vld [vmem:[%s8822_s2 + $0x9a8] sm:$0xff]  ;;  %v8960_v47 = vld [vmem:[#allocation42_spill] sm:$0xff] }
 0x22a   :  { %2888 = vmatpush2.msra.mxu1 %v1468_v41  ;;  %2800 = vmatprep.subr.mxu0 %v1304_v5  ;;  %v295_v41 = vld [vmem:[%s8822_s2 + $0x228] sm:$0xff] }
 0x22b   :  { %2889 = vmatprep.subr.mxu1 %v1464_v55  ;;  %2801 = vmatpush2.msra.mxu0 %v1303_v9  ;;  %v8961_v5 = vld [vmem:[#allocation43_spill] sm:$0xff]  ;;  %v370_v9 = vld [vmem:[%s8822_s2 + $0x480] sm:$0xff] }
 0x22c   :  { %2890 = vmatpush2.msra.mxu1 %v1463_v18  ;;  %2802 = vmatprep.subr.mxu0 %v1299_v11  ;;  %v455_v55 = vld [vmem:[%s8822_s2 + $0x728] sm:$0xff]  ;;  %v530_v18 = vld [vmem:[%s8822_s2 + $0x980] sm:$0xff]  ;;  %v8962_v11 = vld [vmem:[#allocation44_spill] sm:$0xff] }
 0x22d   :  { %2891 = vmatprep.subr.mxu1 %v1459_v34  ;;  %2803 = vmatpush2.msra.mxu0 %v1298_v19  ;;  %v290_v34 = vld [vmem:[%s8822_s2 + $0x200] sm:$0xff] }
 0x22e   :  { %2892 = vmatpush2.msra.mxu1 %v1458_v45  ;;  %2804 = vmatprep.subr.mxu0 %v1294_v21  ;;  %v450_v19 = vld [vmem:[%s8822_s2 + $0x700] sm:$0xff]  ;;  %v8963_v45 = vld [vmem:[#allocation45_spill] sm:$0xff] }
 0x22f   :  { %2893 = vmatprep.subr.mxu1 %v1454_v30  ;;  %2805 = vmatpush2.msra.mxu0 %v1293_v16  ;;  %v365_v21 = vld [vmem:[%s8822_s2 + $0x458] sm:$0xff]  ;;  %v8964_v16 = vld [vmem:[#allocation46_spill] sm:$0xff] }
 0x230   :  { %2894 = vmatpush2.msra.mxu1 %v1453_v37  ;;  %2806 = vmatprep.subr.mxu0 %v1289_v14  ;;  %v525_v30 = vld [vmem:[%s8822_s2 + $0x958] sm:$0xff]  ;;  %v8965_v14 = vld [vmem:[#allocation47_spill] sm:$0xff] }
 0x231   :  { %2895 = vmatprep.subr.mxu1 %v1449_v51  ;;  %2807 = vmatpush2.msra.mxu0 %v1288_v17  ;;  %v285_v37 = vld [vmem:[%s8822_s2 + $0x1d8] sm:$0xff]  ;;  %v360_v17 = vld [vmem:[%s8822_s2 + $0x430] sm:$0xff] }
 0x232   :  { %2896 = vmatpush2.msra.mxu1 %v1448_v39  ;;  %2808 = vmatprep.subr.mxu0 %v1284_v50  ;;  %v445_v51 = vld [vmem:[%s8822_s2 + $0x6d8] sm:$0xff]  ;;  %v520_v39 = vld [vmem:[%s8822_s2 + $0x930] sm:$0xff] }
 0x233   :  { %2897 = vmatprep.subr.mxu1 %v1444_v59  ;;  %2809 = vmatpush2.msra.mxu0 %v1283_v6  ;;  %v8966_v50 = vld [vmem:[#allocation48_spill] sm:$0xff] }
 0x234   :  { %2898 = vmatpush2.msra.mxu1 %v1443_v20  ;;  %2810 = vmatprep.subr.mxu0 %v1279_v0  ;;  %v280_v59 = vld [vmem:[%s8822_s2 + $0x1b0] sm:$0xff]  ;;  %v8967_v20 = vld [vmem:[#allocation49_spill] sm:$0xff]  ;;  %v355_v0 = vld [vmem:[%s8822_s2 + $0x408] sm:$0xff] }
 0x235   :  { %2899 = vmatprep.subr.mxu1 %v1439_v32  ;;  %2811 = vmatpush2.msra.mxu0 %v1278_v29  ;;  %v440_v6 = vld [vmem:[%s8822_s2 + $0x6b0] sm:$0xff]  ;;  %v515_v32 = vld [vmem:[%s8822_s2 + $0x908] sm:$0xff]  ;;  %v8968_v29 = vld [vmem:[#allocation50_spill] sm:$0xff] }
 0x236   :  { %2900 = vmatpush2.msra.mxu1 %v1438_v27  ;;  %2812 = vmatprep.subr.mxu0 %v1274_v62  ;;  %v275_v27 = vld [vmem:[%s8822_s2 + $0x188] sm:$0xff] }
 0x237   :  { %2901 = vmatprep.subr.mxu1 %v1434_v15  ;;  %2813 = vmatpush2.msra.mxu0 %v1273_v31  ;;  %v8969_v62 = vld [vmem:[#allocation51_spill] sm:$0xff]  ;;  %v350_v31 = vld [vmem:[%s8822_s2 + $0x3e0] sm:$0xff] }
 0x238   :  { %2902 = vmatpush2.msra.mxu1 %v1433_v7  ;;  %2814 = vmatprep.subr.mxu0 %v1269_v49  ;;  %v435_v15 = vld [vmem:[%s8822_s2 + $0x688] sm:$0xff]  ;;  %v510_v7 = vld [vmem:[%s8822_s2 + $0x8e0] sm:$0xff]  ;;  %v8970_v49 = vld [vmem:[#allocation52_spill] sm:$0xff] }
 0x239   :  { %2903 = vmatprep.subr.mxu1 %v1429_v12  ;;  %2815 = vmatpush2.msra.mxu0 %v1268_v28  ;;  %v270_v12 = vld [vmem:[%s8822_s2 + $0x160] sm:$0xff] }
 0x23a   :  { %2816 = vmatprep.mubr.f32.mxu0 %v8956_v24  ;;  %2904 = vmatpush2.msra.mxu1 %v1428_v63  ;;  %v430_v28 = vld [vmem:[%s8822_s2 + $0x660] sm:$0xff]  ;;  %v345_v63 = vld [vmem:[%s8822_s2 + $0x3b8] sm:$0xff] }
 0x23b   :  { %2817 = vmatmul.mubr.f32.vlgmr.msra.gmra.mxu0 %v8957_v26  ;;  %2905 = vmatprep.mubr.f32.mxu1 %v8958_v1 }
 0x23c   :  { %3634 = vmatprep.subr.mxu0 %v385_v52  ;;  %3678 = vmatprep.subr.mxu1 %v545_v13  ;;  %v505_v52 = vld [vmem:[%s8822_s2 + $0x8b8] sm:$0xff] }
 0x23d   :  { %2906 = vmatmul.mubr.f32.vlgmr.msra.gmra.mxu1 %v8959_v36  ;;  %3635 = vmatpush3.msra.mxu0 %v305_v43  ;;  %v8971_v13 = vld [vmem:[#allocation53_spill] sm:$0xff] }
 0x23e   :  { %3679 = vmatpush3.msra.mxu1 %v465_v8  ;;  %3636 = vmatprep.subr.mxu0 %v380_v38  ;;  %v265_v43 = vld [vmem:[%s8822_s2 + $0x138] sm:$0xff]  ;;  %v340_v38 = vld [vmem:[%s8822_s2 + $0x390] sm:$0xff] }
 0x23f   :  { %3680 = vmatprep.subr.mxu1 %v540_v56  ;;  %2822 = vmatprep.mubr.f32.mxu0 %v8960_v47  ;;  %v425_v8 = vld [vmem:[%s8822_s2 + $0x638] sm:$0xff]  ;;  %v500_v56 = vld [vmem:[%s8822_s2 + $0x890] sm:$0xff] }
 0x240   :  { %3637 = vmatpush3.msra.mxu0 %v300_v44  ;;  %3681 = vmatpush3.msra.mxu1 %v460_v54  ;;  %v260_v44 = vld [vmem:[%s8822_s2 + $0x110] sm:$0xff] }
 0x241   :  { %2823 = vmatmul.mubr.f32.gmra.mxu0 %v8961_v5  ;;  %3638 = vmatprep.subr.mxu0 %v375_v61  ;;  %v420_v54 = vld [vmem:[%s8822_s2 + $0x610] sm:$0xff]  ;;  %v335_v61 = vld [vmem:[%s8822_s2 + $0x368] sm:$0xff] }
 0x242   :  { %3682 = vmatprep.subr.mxu1 %v535_v57  ;;  %2911 = vmatprep.mubr.f32.mxu1 %v8962_v11  ;;  %v495_v57 = vld [vmem:[%s8822_s2 + $0x868] sm:$0xff] }
 0x243   :  { %3639 = vmatpush3.msra.mxu0 %v295_v41  ;;  %3683 = vmatpush3.msra.mxu1 %v455_v55  ;;  %v255_v41 = vld [vmem:[%s8822_s2 + $0xe8] sm:$0xff] }
 0x244   :  { %3640 = vmatprep.subr.mxu0 %v370_v9  ;;  %2912 = vmatmul.mubr.f32.gmra.mxu1 %v8963_v45  ;;  %v415_v55 = vld [vmem:[%s8822_s2 + $0x5e8] sm:$0xff]  ;;  %v330_v9 = vld [vmem:[%s8822_s2 + $0x340] sm:$0xff] }
 0x245   :  { %3684 = vmatprep.subr.mxu1 %v530_v18  ;;  %2828 = vmatprep.mubr.f32.mxu0 %v8964_v16  ;;  %v490_v18 = vld [vmem:[%s8822_s2 + $0x840] sm:$0xff] }
 0x246   :  { %3641 = vmatpush3.msra.mxu0 %v290_v34  ;;  %3685 = vmatpush3.msra.mxu1 %v450_v19  ;;  %v250_v34 = vld [vmem:[%s8822_s2 + $0xc0] sm:$0xff] }
 0x247   :  { %2829 = vmatmul.mubr.f32.gmra.mxu0 %v8965_v14  ;;  %3642 = vmatprep.subr.mxu0 %v365_v21  ;;  %v410_v19 = vld [vmem:[%s8822_s2 + $0x5c0] sm:$0xff]  ;;  %v325_v21 = vld [vmem:[%s8822_s2 + $0x318] sm:$0xff] }
 0x248   :  { %3686 = vmatprep.subr.mxu1 %v525_v30  ;;  %2917 = vmatprep.mubr.f32.mxu1 %v8966_v50  ;;  %v485_v30 = vld [vmem:[%s8822_s2 + $0x818] sm:$0xff] }
 0x249   :  { %3643 = vmatpush3.msra.mxu0 %v285_v37  ;;  %3687 = vmatpush3.msra.mxu1 %v445_v51  ;;  %v245_v37 = vld [vmem:[%s8822_s2 + $0x98] sm:$0xff] }
 0x24a   :  { %3644 = vmatprep.subr.mxu0 %v360_v17  ;;  %2918 = vmatmul.mubr.f32.gmra.mxu1 %v8967_v20  ;;  %v405_v51 = vld [vmem:[%s8822_s2 + $0x598] sm:$0xff]  ;;  %v320_v17 = vld [vmem:[%s8822_s2 + $0x2f0] sm:$0xff] }
 0x24b   :  { %3688 = vmatprep.subr.mxu1 %v520_v39  ;;  %2834 = vmatprep.mubr.f32.mxu0 %v8968_v29  ;;  %v480_v39 = vld [vmem:[%s8822_s2 + $0x7f0] sm:$0xff] }
 0x24c   :  { %3645 = vmatpush3.msra.mxu0 %v280_v59  ;;  %3689 = vmatpush3.msra.mxu1 %v440_v6  ;;  %v240_v59 = vld [vmem:[%s8822_s2 + $0x70] sm:$0xff] }
 0x24d   :  { %2835 = vmatmul.mubr.f32.gmra.mxu0 %v8969_v62  ;;  %3646 = vmatprep.subr.mxu0 %v355_v0  ;;  %v400_v6 = vld [vmem:[%s8822_s2 + $0x570] sm:$0xff]  ;;  %v315_v0 = vld [vmem:[%s8822_s2 + $0x2c8] sm:$0xff] }
 0x24e   :  { %3690 = vmatprep.subr.mxu1 %v515_v32  ;;  %2923 = vmatprep.mubr.f32.mxu1 %v8970_v49  ;;  %v475_v32 = vld [vmem:[%s8822_s2 + $0x7c8] sm:$0xff] }
 0x24f   :  { %3647 = vmatpush3.msra.mxu0 %v275_v27  ;;  %3691 = vmatpush3.msra.mxu1 %v435_v15  ;;  %v235_v27 = vld [vmem:[%s8822_s2 + $0x48] sm:$0xff] }
 0x250   :  { %3648 = vmatprep.subr.mxu0 %v350_v31  ;;  %2924 = vmatmul.mubr.f32.gmra.mxu1 %v8971_v13  ;;  %v395_v15 = vld [vmem:[%s8822_s2 + $0x548] sm:$0xff]  ;;  %v310_v31 = vld [vmem:[%s8822_s2 + $0x2a0] sm:$0xff] }
 0x251   :  { %3692 = vmatprep.subr.mxu1 %v510_v7  ;;  %3649 = vmatpush3.msra.mxu0 %v270_v12  ;;  %v470_v7 = vld [vmem:[%s8822_s2 + $0x7a0] sm:$0xff] }
 0x252   :  { %3693 = vmatpush3.msra.mxu1 %v430_v28  ;;  %3650 = vmatprep.subr.mxu0 %v345_v63  ;;  %v230_v12 = vld [vmem:[%s8822_s2 + $0x20] sm:$0xff] }
 0x253   :  { %3694 = vmatprep.subr.mxu1 %v505_v52  ;;  %3651 = vmatpush3.msra.mxu0 %v265_v43  ;;  %v390_v28 = vld [vmem:[%s8822_s2 + $0x520] sm:$0xff]  ;;  %v705_v52 = vld [vmem:[%s8822_s2 + $0xef8] sm:$0xff] }
 0x254   :  { %3695 = vmatpush3.msra.mxu1 %v425_v8  ;;  %3652 = vmatprep.subr.mxu0 %v340_v38  ;;  %v8972_v63 = vld [vmem:[#allocation2_spill] sm:$0xff]  ;;  %v865_v43 = vld [vmem:[%s8822_s2 + $0x13f8] sm:$0xff]  ;;  %v8973_v8 = vld [vmem:[#allocation3_spill] sm:$0xff] }
 0x255   :  { %3696 = vmatprep.subr.mxu1 %v500_v56  ;;  %3653 = vmatpush3.msra.mxu0 %v260_v44  ;;  %v625_v38 = vld [vmem:[%s8822_s2 + $0xc78] sm:$0xff]  ;;  %v8974_v44 = vld [vmem:[#allocation4_spill] sm:$0xff] }
 0x256   :  { %3697 = vmatpush3.msra.mxu1 %v420_v54  ;;  %3654 = vmatprep.subr.mxu0 %v335_v61  ;;  %v785_v56 = vld [vmem:[%s8822_s2 + $0x1178] sm:$0xff]  ;;  %v700_v61 = vld [vmem:[%s8822_s2 + $0xed0] sm:$0xff] }
 0x257   :  { %3698 = vmatprep.subr.mxu1 %v495_v57  ;;  %3655 = vmatpush3.msra.mxu0 %v255_v41  ;;  %v8975_v54 = vld [vmem:[#allocation5_spill] sm:$0xff]  ;;  %v860_v57 = vld [vmem:[%s8822_s2 + $0x13d0] sm:$0xff] }
 0x258   :  { %3699 = vmatpush3.msra.mxu1 %v415_v55  ;;  %3656 = vmatprep.subr.mxu0 %v330_v9  ;;  %v620_v41 = vld [vmem:[%s8822_s2 + $0xc50] sm:$0xff]  ;;  %v695_v9 = vld [vmem:[%s8822_s2 + $0xea8] sm:$0xff] }
 0x259   :  { %3700 = vmatprep.subr.mxu1 %v490_v18  ;;  %3657 = vmatpush3.msra.mxu0 %v250_v34  ;;  %v780_v55 = vld [vmem:[%s8822_s2 + $0x1150] sm:$0xff]  ;;  %v855_v18 = vld [vmem:[%s8822_s2 + $0x13a8] sm:$0xff] }
 0x25a   :  { %3701 = vmatpush3.msra.mxu1 %v410_v19  ;;  %3658 = vmatprep.subr.mxu0 %v325_v21  ;;  %v615_v34 = vld [vmem:[%s8822_s2 + $0xc28] sm:$0xff]  ;;  %v690_v21 = vld [vmem:[%s8822_s2 + $0xe80] sm:$0xff] }
 0x25b   :  { %3702 = vmatprep.subr.mxu1 %v485_v30  ;;  %3659 = vmatpush3.msra.mxu0 %v245_v37  ;;  %v775_v19 = vld [vmem:[%s8822_s2 + $0x1128] sm:$0xff]  ;;  %v850_v30 = vld [vmem:[%s8822_s2 + $0x1380] sm:$0xff] }
 0x25c   :  { %3703 = vmatpush3.msra.mxu1 %v405_v51  ;;  %3660 = vmatprep.subr.mxu0 %v320_v17  ;;  %v610_v37 = vld [vmem:[%s8822_s2 + $0xc00] sm:$0xff]  ;;  %v685_v17 = vld [vmem:[%s8822_s2 + $0xe58] sm:$0xff] }
 0x25d   :  { %3704 = vmatprep.subr.mxu1 %v480_v39  ;;  %3661 = vmatpush3.msra.mxu0 %v240_v59  ;;  %v770_v51 = vld [vmem:[%s8822_s2 + $0x1100] sm:$0xff]  ;;  %v845_v39 = vld [vmem:[%s8822_s2 + $0x1358] sm:$0xff] }
 0x25e   :  { %3705 = vmatpush3.msra.mxu1 %v400_v6  ;;  %3662 = vmatprep.subr.mxu0 %v315_v0  ;;  %v605_v59 = vld [vmem:[%s8822_s2 + $0xbd8] sm:$0xff]  ;;  %v680_v0 = vld [vmem:[%s8822_s2 + $0xe30] sm:$0xff] }
 0x25f   :  { %3706 = vmatprep.subr.mxu1 %v475_v32  ;;  %3663 = vmatpush3.msra.mxu0 %v235_v27  ;;  %v765_v6 = vld [vmem:[%s8822_s2 + $0x10d8] sm:$0xff]  ;;  %v840_v32 = vld [vmem:[%s8822_s2 + $0x1330] sm:$0xff] }
 0x260   :  { %3707 = vmatpush3.msra.mxu1 %v395_v15  ;;  %3664 = vmatprep.subr.mxu0 %v310_v31  ;;  %v600_v27 = vld [vmem:[%s8822_s2 + $0xbb0] sm:$0xff]  ;;  %v675_v31 = vld [vmem:[%s8822_s2 + $0xe08] sm:$0xff] }
 0x261   :  { %3708 = vmatprep.subr.mxu1 %v470_v7  ;;  %3665 = vmatpush3.msra.mxu0 %v230_v12  ;;  %v760_v15 = vld [vmem:[%s8822_s2 + $0x10b0] sm:$0xff]  ;;  %v835_v7 = vld [vmem:[%s8822_s2 + $0x1308] sm:$0xff] }
 0x262   :  { %2994 = vmatprep.mubr.f32.mxu0 %v8972_v63  ;;  %3709 = vmatpush3.msra.mxu1 %v390_v28  ;;  %v595_v12 = vld [vmem:[%s8822_s2 + $0xb88] sm:$0xff]  ;;  %v670_v63 = vld [vmem:[%s8822_s2 + $0xde0] sm:$0xff] }
 0x263   :  { %3079 = vmatprep.mubr.f32.mxu1 %v8973_v8  ;;  %2995 = vmatmul.mubr.f32.vlgmr.msra.gmra.mxu0 %v8974_v44  ;;  %v755_v28 = vld [vmem:[%s8822_s2 + $0x1088] sm:$0xff]  ;;  %v750_v8 = vld [vmem:[%s8822_s2 + $0x1060] sm:$0xff]  ;;  %v585_v44 = vld [vmem:[%s8822_s2 + $0xb38] sm:$0xff] }
 0x264   :  { %3080 = vmatmul.mubr.f32.vlgmr.msra.gmra.mxu1 %v8975_v54  ;;  %3722 = vmatprep.subr.mxu0 %v705_v52  ;;  %v830_v52 = vld [vmem:[%s8822_s2 + $0x12e0] sm:$0xff]  ;;  %v745_v54 = vld [vmem:[%s8822_s2 + $0x1038] sm:$0xff] }
 0x265   :  { %3766 = vmatprep.subr.mxu1 %v865_v43  ;;  %3723 = vmatpush3.msra.mxu0 %v625_v38  ;;  %v590_v43 = vld [vmem:[%s8822_s2 + $0xb60] sm:$0xff]  ;;  %v665_v38 = vld [vmem:[%s8822_s2 + $0xdb8] sm:$0xff] }
 0x266   :  { %3767 = vmatpush3.msra.mxu1 %v785_v56  ;;  %3724 = vmatprep.subr.mxu0 %v700_v61  ;;  %v825_v56 = vld [vmem:[%s8822_s2 + $0x12b8] sm:$0xff]  ;;  %v660_v61 = vld [vmem:[%s8822_s2 + $0xd90] sm:$0xff] }
 0x267   :  { %3768 = vmatprep.subr.mxu1 %v860_v57  ;;  %3725 = vmatpush3.msra.mxu0 %v620_v41  ;;  %v820_v57 = vld [vmem:[%s8822_s2 + $0x1290] sm:$0xff]  ;;  %v8976_v41 = vld [vmem:[#allocation6_spill] sm:$0xff] }
 0x268   :  { %3769 = vmatpush3.msra.mxu1 %v780_v55  ;;  %3726 = vmatprep.subr.mxu0 %v695_v9  ;;  %v8977_v55 = vld [vmem:[#allocation7_spill] sm:$0xff]  ;;  %v580_v9 = vld [vmem:[%s8822_s2 + $0xb10] sm:$0xff] }
 0x269   :  { %3770 = vmatprep.subr.mxu1 %v855_v18  ;;  %3727 = vmatpush3.msra.mxu0 %v615_v34  ;;  %v740_v18 = vld [vmem:[%s8822_s2 + $0x1010] sm:$0xff]  ;;  %v655_v34 = vld [vmem:[%s8822_s2 + $0xd68] sm:$0xff] }
 0x26a   :  { %3771 = vmatpush3.msra.mxu1 %v775_v19  ;;  %3728 = vmatprep.subr.mxu0 %v690_v21  ;;  %v815_v19 = vld [vmem:[%s8822_s2 + $0x1268] sm:$0xff]  ;;  %v8978_v21 = vld [vmem:[#allocation8_spill] sm:$0xff] }
 0x26b   :  { %3772 = vmatprep.subr.mxu1 %v850_v30  ;;  %3729 = vmatpush3.msra.mxu0 %v610_v37  ;;  %v8979_v30 = vld [vmem:[#allocation9_spill] sm:$0xff]  ;;  %v575_v37 = vld [vmem:[%s8822_s2 + $0xae8] sm:$0xff] }
 0x26c   :  { %3773 = vmatpush3.msra.mxu1 %v770_v51  ;;  %3730 = vmatprep.subr.mxu0 %v685_v17  ;;  %v735_v51 = vld [vmem:[%s8822_s2 + $0xfe8] sm:$0xff]  ;;  %v650_v17 = vld [vmem:[%s8822_s2 + $0xd40] sm:$0xff] }
 0x26d   :  { %3774 = vmatprep.subr.mxu1 %v845_v39  ;;  %3731 = vmatpush3.msra.mxu0 %v605_v59  ;;  %v810_v39 = vld [vmem:[%s8822_s2 + $0x1240] sm:$0xff] }
 0x26e   :  { %3775 = vmatpush3.msra.mxu1 %v765_v6  ;;  %3732 = vmatprep.subr.mxu0 %v680_v0  ;;  %v8980_v59 = vld [vmem:[#allocation10_spill] sm:$0xff]  ;;  %v8981_v6 = vld [vmem:[#allocation11_spill] sm:$0xff] }
 0x26f   :  { %3776 = vmatprep.subr.mxu1 %v840_v32  ;;  %3733 = vmatpush3.msra.mxu0 %v600_v27  ;;  %v570_v0 = vld [vmem:[%s8822_s2 + $0xac0] sm:$0xff]  ;;  %v645_v27 = vld [vmem:[%s8822_s2 + $0xd18] sm:$0xff] }
 0x270   :  { %3777 = vmatpush3.msra.mxu1 %v760_v15  ;;  %3734 = vmatprep.subr.mxu0 %v675_v31  ;;  %v730_v32 = vld [vmem:[%s8822_s2 + $0xfc0] sm:$0xff]  ;;  %v805_v15 = vld [vmem:[%s8822_s2 + $0x1218] sm:$0xff]  ;;  %v8982_v31 = vld [vmem:[#allocation12_spill] sm:$0xff] }
 0x271   :  { %3778 = vmatprep.subr.mxu1 %v835_v7  ;;  %3735 = vmatpush3.msra.mxu0 %v595_v12  ;;  %v8983_v7 = vld [vmem:[#allocation13_spill] sm:$0xff] }
 0x272   :  { %3779 = vmatpush3.msra.mxu1 %v755_v28  ;;  %3736 = vmatprep.subr.mxu0 %v670_v63  ;;  %v565_v12 = vld [vmem:[%s8822_s2 + $0xa98] sm:$0xff]  ;;  %v640_v63 = vld [vmem:[%s8822_s2 + $0xcf0] sm:$0xff] }
 0x273   :  { %3780 = vmatprep.subr.mxu1 %v830_v52  ;;  %3737 = vmatpush3.msra.mxu0 %v590_v43  ;;  %v725_v28 = vld [vmem:[%s8822_s2 + $0xf98] sm:$0xff]  ;;  %v800_v52 = vld [vmem:[%s8822_s2 + $0x11f0] sm:$0xff]  ;;  %v8984_v43 = vld [vmem:[#allocation14_spill] sm:$0xff] }
 0x274   :  { %3781 = vmatpush3.msra.mxu1 %v750_v8  ;;  %3738 = vmatprep.subr.mxu0 %v665_v38  ;;  %v8985_v8 = vld [vmem:[#allocation15_spill] sm:$0xff]  ;;  %v560_v38 = vld [vmem:[%s8822_s2 + $0xa70] sm:$0xff] }
 0x275   :  { %3782 = vmatprep.subr.mxu1 %v825_v56  ;;  %3739 = vmatpush3.msra.mxu0 %v585_v44  ;;  %v720_v56 = vld [vmem:[%s8822_s2 + $0xf70] sm:$0xff]  ;;  %v635_v44 = vld [vmem:[%s8822_s2 + $0xcc8] sm:$0xff] }
 0x276   :  { %3783 = vmatpush3.msra.mxu1 %v745_v54  ;;  %2999 = vmatprep.mubr.f32.mxu0 %v8976_v41  ;;  %v795_v54 = vld [vmem:[%s8822_s2 + $0x11c8] sm:$0xff] }
 0x277   :  { %3084 = vmatprep.mubr.f32.mxu1 %v8977_v55  ;;  %3740 = vmatprep.subr.mxu0 %v660_v61  ;;  %v8986_v61 = vld [vmem:[#allocation16_spill] sm:$0xff]  ;;  %v555_v41 = vld [vmem:[%s8822_s2 + $0xa48] sm:$0xff] }
 0x278   :  { %3784 = vmatprep.subr.mxu1 %v820_v57  ;;  %3000 = vmatmul.mubr.f32.gmra.mxu0 %v8978_v21  ;;  %v8987_v57 = vld [vmem:[#allocation17_spill] sm:$0xff]  ;;  %v715_v55 = vld [vmem:[%s8822_s2 + $0xf48] sm:$0xff] }
 0x279   :  { %3085 = vmatmul.mubr.f32.gmra.mxu1 %v8979_v30  ;;  %3741 = vmatpush3.msra.mxu0 %v580_v9  ;;  %v630_v9 = vld [vmem:[%s8822_s2 + $0xca0] sm:$0xff]  ;;  %v1025_v21 = vld [vmem:[%s8822_s2 + $0x18f8] sm:$0xff] }
 0x27a   :  { %3785 = vmatpush3.msra.mxu1 %v740_v18  ;;  %3742 = vmatprep.subr.mxu0 %v655_v34  ;;  %v790_v18 = vld [vmem:[%s8822_s2 + $0x11a0] sm:$0xff] }
 0x27b   :  { %3786 = vmatprep.subr.mxu1 %v815_v19  ;;  %3743 = vmatpush3.msra.mxu0 %v575_v37  ;;  %v550_v34 = vld [vmem:[%s8822_s2 + $0xa20] sm:$0xff]  ;;  %v1185_v37 = vld [vmem:[%s8822_s2 + $0x1df8] sm:$0xff] }
 0x27c   :  { %3787 = vmatpush3.msra.mxu1 %v735_v51  ;;  %3004 = vmatprep.mubr.f32.mxu0 %v8980_v59  ;;  %v710_v19 = vld [vmem:[%s8822_s2 + $0xf20] sm:$0xff]  ;;  %v8989_v51 = vld [vmem:[#allocation19_spill] sm:$0xff]  ;;  %v8990_v59 = vld [vmem:[#allocation20_spill] sm:$0xff] }
 0x27d   :  { %3089 = vmatprep.mubr.f32.mxu1 %v8981_v6  ;;  %3744 = vmatprep.subr.mxu0 %v650_v17  ;;  %v8988_v30 = vld [vmem:[#allocation18_spill] sm:$0xff]  ;;  %v945_v17 = vld [vmem:[%s8822_s2 + $0x1678] sm:$0xff]  ;;  %v1020_v6 = vld [vmem:[%s8822_s2 + $0x18d0] sm:$0xff] }
 0x27e   :  { %3788 = vmatprep.subr.mxu1 %v810_v39  ;;  %3005 = vmatmul.mubr.f32.gmra.mxu0 %v8982_v31  ;;  %v1105_v39 = vld [vmem:[%s8822_s2 + $0x1b78] sm:$0xff]  ;;  %v1015_v31 = vld [vmem:[%s8822_s2 + $0x18a8] sm:$0xff] }
 0x27f   :  { %3090 = vmatmul.mubr.f32.gmra.mxu1 %v8983_v7  ;;  %3745 = vmatpush3.msra.mxu0 %v570_v0  ;;  %v1180_v0 = vld [vmem:[%s8822_s2 + $0x1dd0] sm:$0xff]  ;;  %v1175_v7 = vld [vmem:[%s8822_s2 + $0x1da8] sm:$0xff] }
 0x280   :  { %3789 = vmatpush3.msra.mxu1 %v730_v32  ;;  %3746 = vmatprep.subr.mxu0 %v645_v27  ;;  %v8991_v32 = vld [vmem:[#allocation21_spill] sm:$0xff]  ;;  %v940_v27 = vld [vmem:[%s8822_s2 + $0x1650] sm:$0xff] }
 0x281   :  { %3790 = vmatprep.subr.mxu1 %v805_v15  ;;  %3747 = vmatpush3.msra.mxu0 %v565_v12  ;;  %v1100_v15 = vld [vmem:[%s8822_s2 + $0x1b50] sm:$0xff]  ;;  %v8992_v12 = vld [vmem:[#allocation22_spill] sm:$0xff] }
 0x282   :  { %3791 = vmatpush3.msra.mxu1 %v725_v28  ;;  %3009 = vmatprep.mubr.f32.mxu0 %v8984_v43  ;;  %v935_v28 = vld [vmem:[%s8822_s2 + $0x1628] sm:$0xff]  ;;  %v1010_v43 = vld [vmem:[%s8822_s2 + $0x1880] sm:$0xff] }
 0x283   :  { %3094 = vmatprep.mubr.f32.mxu1 %v8985_v8  ;;  %3748 = vmatprep.subr.mxu0 %v640_v63  ;;  %v8993_v63 = vld [vmem:[#allocation23_spill] sm:$0xff]  ;;  %v1170_v8 = vld [vmem:[%s8822_s2 + $0x1d80] sm:$0xff] }
 0x284   :  { %3792 = vmatprep.subr.mxu1 %v800_v52  ;;  %3010 = vmatmul.mubr.f32.gmra.mxu0 %v8986_v61  ;;  %v1095_v52 = vld [vmem:[%s8822_s2 + $0x1b28] sm:$0xff]  ;;  %v1005_v61 = vld [vmem:[%s8822_s2 + $0x1858] sm:$0xff] }
 0x285   :  { %3095 = vmatmul.mubr.f32.gmra.mxu1 %v8987_v57  ;;  %3749 = vmatpush3.msra.mxu0 %v560_v38  ;;  %v8994_v38 = vld [vmem:[#allocation24_spill] sm:$0xff]  ;;  %v1165_v57 = vld [vmem:[%s8822_s2 + $0x1d58] sm:$0xff] }
 0x286   :  { %3793 = vmatpush3.msra.mxu1 %v720_v56  ;;  %3750 = vmatprep.subr.mxu0 %v635_v44  ;;  %v930_v56 = vld [vmem:[%s8822_s2 + $0x1600] sm:$0xff] }
 0x287   :  { %3794 = vmatprep.subr.mxu1 %v795_v54  ;;  %3751 = vmatpush3.msra.mxu0 %v555_v41  ;;  %v1090_v44 = vld [vmem:[%s8822_s2 + $0x1b00] sm:$0xff]  ;;  %v8995_v54 = vld [vmem:[#allocation25_spill] sm:$0xff] }
 0x288   :  { %3795 = vmatpush3.msra.mxu1 %v715_v55  ;;  %3752 = vmatprep.subr.mxu0 %v630_v9  ;;  %v8996_v41 = vld [vmem:[#allocation26_spill] sm:$0xff]  ;;  %v925_v55 = vld [vmem:[%s8822_s2 + $0x15d8] sm:$0xff]  ;;  %v8997_v9 = vld [vmem:[#allocation27_spill] sm:$0xff] }
 0x289   :  { %3796 = vmatprep.subr.mxu1 %v790_v18  ;;  %3753 = vmatpush3.msra.mxu0 %v550_v34  ;;  %v1085_v18 = vld [vmem:[%s8822_s2 + $0x1ad8] sm:$0xff]  ;;  %v1000_v34 = vld [vmem:[%s8822_s2 + $0x1830] sm:$0xff] }
 0x28a   :  { %3164 = vmatprep.mubr.f32.mxu0 %v8988_v30  ;;  %3797 = vmatpush3.msra.mxu1 %v710_v19  ;;  %v1160_v19 = vld [vmem:[%s8822_s2 + $0x1d30] sm:$0xff] }
 0x28b   :  { %3165 = vmatmul.mubr.f32.vlgmr.msra.gmra.mxu0 %v8989_v51  ;;  %3249 = vmatprep.mubr.f32.mxu1 %v8990_v59  ;;  %v920_v30 = vld [vmem:[%s8822_s2 + $0x15b0] sm:$0xff]  ;;  %v8999_v51 = vld [vmem:[#allocation29_spill] sm:$0xff]  ;;  %v9000_v59 = vld [vmem:[#allocation30_spill] sm:$0xff] }
 0x28c   :  { %3810 = vmatprep.subr.mxu0 %v1025_v21  ;;  %3854 = vmatprep.subr.mxu1 %v1185_v37  ;;  %v8998_v21 = vld [vmem:[#allocation28_spill] sm:$0xff] }
 0x28d   :  { %3250 = vmatmul.mubr.f32.vlgmr.msra.gmra.mxu1 %v8991_v32  ;;  %3811 = vmatpush3.msra.mxu0 %v945_v17  ;;  %v1080_v37 = vld [vmem:[%s8822_s2 + $0x1ab0] sm:$0xff]  ;;  %v995_v17 = vld [vmem:[%s8822_s2 + $0x1808] sm:$0xff] }
 0x28e   :  { %3855 = vmatpush3.msra.mxu1 %v1105_v39  ;;  %3812 = vmatprep.subr.mxu0 %v1020_v6  ;;  %v1155_v39 = vld [vmem:[%s8822_s2 + $0x1d08] sm:$0xff] }
 0x28f   :  { %3856 = vmatprep.subr.mxu1 %v1180_v0  ;;  %3169 = vmatprep.mubr.f32.mxu0 %v8992_v12  ;;  %v915_v6 = vld [vmem:[%s8822_s2 + $0x1588] sm:$0xff]  ;;  %v1070_v12 = vld [vmem:[%s8822_s2 + $0x1a60] sm:$0xff] }
 0x290   :  { %3813 = vmatpush3.msra.mxu0 %v940_v27  ;;  %3857 = vmatpush3.msra.mxu1 %v1100_v15  ;;  %v9001_v0 = vld [vmem:[#allocation31_spill] sm:$0xff]  ;;  %v990_v27 = vld [vmem:[%s8822_s2 + $0x17e0] sm:$0xff] }
 0x291   :  { %3170 = vmatmul.mubr.f32.gmra.mxu0 %v8993_v63  ;;  %3814 = vmatprep.subr.mxu0 %v1015_v31  ;;  %v1075_v32 = vld [vmem:[%s8822_s2 + $0x1a88] sm:$0xff]  ;;  %v1150_v15 = vld [vmem:[%s8822_s2 + $0x1ce0] sm:$0xff]  ;;  %v9002_v31 = vld [vmem:[#allocation32_spill] sm:$0xff] }
 0x292   :  { %3858 = vmatprep.subr.mxu1 %v1175_v7  ;;  %3254 = vmatprep.mubr.f32.mxu1 %v8994_v38  ;;  %v910_v7 = vld [vmem:[%s8822_s2 + $0x1560] sm:$0xff]  ;;  %v1145_v63 = vld [vmem:[%s8822_s2 + $0x1cb8] sm:$0xff] }
 0x293   :  { %3815 = vmatpush3.msra.mxu0 %v935_v28  ;;  %3859 = vmatpush3.msra.mxu1 %v1095_v52  ;;  %v985_v28 = vld [vmem:[%s8822_s2 + $0x17b8] sm:$0xff]  ;;  %v8375_v52 = vpop.f32.mrf.mxu0 }
 0x294   :  { %3816 = vmatprep.subr.mxu0 %v1010_v43  ;;  %3255 = vmatmul.mubr.f32.gmra.mxu1 %v8995_v54  ;;  %v9003_v43 = vld [vmem:[#allocation33_spill] sm:$0xff]  ;;  %v900_v54 = vld [vmem:[%s8822_s2 + $0x1510] sm:$0xff] }
 0x295   :  { %3860 = vmatprep.subr.mxu1 %v1170_v8  ;;  %3174 = vmatprep.mubr.f32.mxu0 %v8996_v41  ;;  %v905_v8 = vld [vmem:[%s8822_s2 + $0x1538] sm:$0xff]  ;;  %v1135_v41 = vld [vmem:[%s8822_s2 + $0x1c68] sm:$0xff] }
 0x296   :  { %3817 = vmatpush3.msra.mxu0 %v930_v56  ;;  %3861 = vmatpush3.msra.mxu1 %v1090_v44  ;;  %v1065_v38 = vld [vmem:[%s8822_s2 + $0x1a38] sm:$0xff]  ;;  %v980_v56 = vld [vmem:[%s8822_s2 + $0x1790] sm:$0xff] }
 0x297   :  { %3175 = vmatmul.mubr.f32.gmra.mxu0 %v8997_v9  ;;  %3818 = vmatprep.subr.mxu0 %v1005_v61  ;;  %v1140_v44 = vld [vmem:[%s8822_s2 + $0x1c90] sm:$0xff]  ;;  %v8404_v9 = vpop.f32.mrf.mxu0 }
 0x298   :  { %3862 = vmatprep.subr.mxu1 %v1165_v57  ;;  %3259 = vmatprep.mubr.f32.mxu1 %v8998_v21  ;;  %v1060_v61 = vld [vmem:[%s8822_s2 + $0x1a10] sm:$0xff]  ;;  %v975_v57 = vld [vmem:[%s8822_s2 + $0x1768] sm:$0xff]  ;;  %v1130_v21 = vld [vmem:[%s8822_s2 + $0x1c40] sm:$0xff] }
 0x299   :  { %3819 = vmatpush3.msra.mxu0 %v925_v55  ;;  %3863 = vmatpush3.msra.mxu1 %v1085_v18  ;;  %v8402_v55 = vpop.f32.mrf.mxu1  ;;  %v895_v18 = vld [vmem:[%s8822_s2 + $0x14e8] sm:$0xff] }
 0x29a   :  { %3820 = vmatprep.subr.mxu0 %v1000_v34  ;;  %3260 = vmatmul.mubr.f32.gmra.mxu1 %v8999_v51  ;;  %v1055_v34 = vld [vmem:[%s8822_s2 + $0x19e8] sm:$0xff]  ;;  %v1050_v51 = vld [vmem:[%s8822_s2 + $0x19c0] sm:$0xff] }
 0x29b   :  { %3864 = vmatprep.subr.mxu1 %v1160_v19  ;;  %3179 = vmatprep.mubr.f32.mxu0 %v9000_v59  ;;  %v970_v19 = vld [vmem:[%s8822_s2 + $0x1740] sm:$0xff]  ;;  %v8432_v59 = vpop.f32.mrf.mxu1 }
 0x29c   :  { %3821 = vmatpush3.msra.mxu0 %v920_v30  ;;  %3865 = vmatpush3.msra.mxu1 %v1080_v37  ;;  %v8418_v30 = vpop.f32.mrf.mxu0  ;;  %v890_v37 = vld [vmem:[%s8822_s2 + $0x14c0] sm:$0xff] }
 0x29d   :  { %3180 = vmatmul.mubr.f32.gmra.mxu0 %v9001_v0  ;;  %3822 = vmatprep.subr.mxu0 %v995_v17  ;;  %v965_v17 = vld [vmem:[%s8822_s2 + $0x1718] sm:$0xff] }
 0x29e   :  { %3866 = vmatprep.subr.mxu1 %v1155_v39  ;;  %3264 = vmatprep.mubr.f32.mxu1 %v9002_v31  ;;  %v1125_v39 = vld [vmem:[%s8822_s2 + $0x1c18] sm:$0xff]  ;;  %v8448_v31 = vpop.f32.mrf.mxu0 }
 0x29f   :  { %3823 = vmatpush3.msra.mxu0 %v915_v6  ;;  %3867 = vmatpush3.msra.mxu1 %v1075_v32  ;;  %v885_v6 = vld [vmem:[%s8822_s2 + $0x1498] sm:$0xff]  ;;  %v960_v32 = vld [vmem:[%s8822_s2 + $0x16f0] sm:$0xff] }
 0x2a0   :  { %3824 = vmatprep.subr.mxu0 %v990_v27  ;;  %3265 = vmatmul.mubr.f32.gmra.mxu1 %v9003_v43  ;;  %v1045_v0 = vld [vmem:[%s8822_s2 + $0x1998] sm:$0xff]  ;;  %v1120_v27 = vld [vmem:[%s8822_s2 + $0x1bf0] sm:$0xff]  ;;  %v875_v43 = vld [vmem:[%s8822_s2 + $0x1448] sm:$0xff] }
 0x2a1   :  { %3868 = vmatprep.subr.mxu1 %v1150_v15  ;;  %3825 = vmatpush3.msra.mxu0 %v910_v7  ;;  %v8446_v15 = vpop.f32.mrf.mxu1  ;;  %v880_v7 = vld [vmem:[%s8822_s2 + $0x1470] sm:$0xff] }
 0x2a2   :  { %3869 = vmatpush3.msra.mxu1 %v1070_v12  ;;  %3826 = vmatprep.subr.mxu0 %v985_v28  ;;  %v1040_v12 = vld [vmem:[%s8822_s2 + $0x1970] sm:$0xff]  ;;  %v955_v28 = vld [vmem:[%s8822_s2 + $0x16c8] sm:$0xff] }
 0x2a3   :  { %3870 = vmatprep.subr.mxu1 %v1145_v63  ;;  %3827 = vmatpush3.msra.mxu0 %v905_v8  ;;  %v1115_v63 = vld [vmem:[%s8822_s2 + $0x1bc8] sm:$0xff] }
 0x2a4   :  { %3871 = vmatpush3.msra.mxu1 %v1065_v38  ;;  %3828 = vmatprep.subr.mxu0 %v980_v56  ;;  %v1035_v8 = vld [vmem:[%s8822_s2 + $0x1948] sm:$0xff]  ;;  %v950_v38 = vld [vmem:[%s8822_s2 + $0x16a0] sm:$0xff] }
 0x2a5   :  { %3872 = vmatprep.subr.mxu1 %v1140_v44  ;;  %3829 = vmatpush3.msra.mxu0 %v900_v54  ;;  %v1110_v56 = vld [vmem:[%s8822_s2 + $0x1ba0] sm:$0xff]  ;;  %v8474_v44 = vpop.f32.mrf.mxu1  ;;  %v8476_v54 = vpop.f32.mrf.mxu0 }
 0x2a6   :  { %3873 = vmatpush3.msra.mxu1 %v1060_v61  ;;  %3830 = vmatprep.subr.mxu0 %v975_v57  ;;  %v870_v61 = vld [vmem:[%s8822_s2 + $0x1420] sm:$0xff] }
 0x2a7   :  { %3874 = vmatprep.subr.mxu1 %v1135_v41  ;;  %3831 = vmatpush3.msra.mxu0 %v895_v18  ;;  %v1030_v57 = vld [vmem:[%s8822_s2 + $0x1920] sm:$0xff]  ;;  %v1345_v41 = vld [vmem:[%s8822_s2 + $0x22f8] sm:$0xff] }
 0x2a8   :  { %3875 = vmatpush3.msra.mxu1 %v1055_v34  ;;  %3832 = vmatprep.subr.mxu0 %v970_v19  ;;  %v1505_v18 = vld [vmem:[%s8822_s2 + $0x27f8] sm:$0xff]  ;;  %v8491_v34 = vpop.f32.mrf.mxu1  ;;  %v8493_v19 = vpop.f32.mrf.mxu0 }
 0x2a9   :  { %3876 = vmatprep.subr.mxu1 %v1130_v21  ;;  %3833 = vmatpush3.msra.mxu0 %v890_v37  ;;  %v1265_v21 = vld [vmem:[%s8822_s2 + $0x2078] sm:$0xff] }
 0x2aa   :  { %3877 = vmatpush3.msra.mxu1 %v1050_v51  ;;  %3834 = vmatprep.subr.mxu0 %v965_v17  ;;  %v1425_v37 = vld [vmem:[%s8822_s2 + $0x2578] sm:$0xff]  ;;  %v1500_v51 = vld [vmem:[%s8822_s2 + $0x27d0] sm:$0xff]  ;;  %v8516_v17 = vpop.f32.mrf.mxu1 }
 0x2ab   :  { %3878 = vmatprep.subr.mxu1 %v1125_v39  ;;  %3835 = vmatpush3.msra.mxu0 %v885_v6  ;;  %v8518_v39 = vpop.f32.mrf.mxu0  ;;  %v1495_v6 = vld [vmem:[%s8822_s2 + $0x27a8] sm:$0xff] }
 0x2ac   :  { %3879 = vmatpush3.msra.mxu1 %v1045_v0  ;;  %3836 = vmatprep.subr.mxu0 %v960_v32  ;;  %v1255_v0 = vld [vmem:[%s8822_s2 + $0x2028] sm:$0xff] }
 0x2ad   :  { %3880 = vmatprep.subr.mxu1 %v1120_v27  ;;  %3837 = vmatpush3.msra.mxu0 %v880_v7  ;;  %v1415_v32 = vld [vmem:[%s8822_s2 + $0x2528] sm:$0xff]  ;;  %v1330_v27 = vld [vmem:[%s8822_s2 + $0x2280] sm:$0xff]  ;;  %v8540_v7 = vpop.f32.mrf.mxu1 }
 0x2ae   :  { %3881 = vmatpush3.msra.mxu1 %v1040_v12  ;;  %3838 = vmatprep.subr.mxu0 %v955_v28  ;;  %v8542_v12 = vpop.f32.mrf.mxu0  ;;  %v1410_v28 = vld [vmem:[%s8822_s2 + $0x2500] sm:$0xff] }
 0x2af   :  { %3882 = vmatprep.subr.mxu1 %v1115_v63  ;;  %3839 = vmatpush3.msra.mxu0 %v875_v43  ;;  %v1325_v63 = vld [vmem:[%s8822_s2 + $0x2258] sm:$0xff] }
 0x2b0   :  { %3883 = vmatpush3.msra.mxu1 %v1035_v8  ;;  %3840 = vmatprep.subr.mxu0 %v950_v38  ;;  %v1245_v43 = vld [vmem:[%s8822_s2 + $0x1fd8] sm:$0xff]  ;;  %v8562_v8 = vpop.f32.mrf.mxu1  ;;  %v8564_v38 = vpop.f32.mrf.mxu0 }
 0x2b1   :  { %3884 = vmatprep.subr.mxu1 %v1110_v56  ;;  %3841 = vmatpush3.msra.mxu0 %v870_v61  ;;  %v1480_v56 = vld [vmem:[%s8822_s2 + $0x2730] sm:$0xff] }
 0x2b2   :  { %3334 = vmatprep.mubr.f32.mxu0 %v5466_v42  ;;  %3885 = vmatpush3.msra.mxu1 %v1030_v57  ;;  %v1340_v42 = vld [vmem:[%s8822_s2 + $0x22d0] sm:$0xff]  ;;  %v8576_v61 = vpop.f32.mrf.mxu1 }
 0x2b3   :  { %3335 = vmatmul.mubr.f32.vlgmr.msra.gmra.mxu0 %v5475_v53  ;;  %3419 = vmatprep.mubr.f32.mxu1 %v5481_v60  ;;  %v1260_v53 = vld [vmem:[%s8822_s2 + $0x2050] sm:$0xff] }
 0x2b4   :  { %3898 = vmatprep.subr.mxu0 %v1345_v41  ;;  %3942 = vmatprep.subr.mxu1 %v1505_v18  ;;  %v1420_v60 = vld [vmem:[%s8822_s2 + $0x2550] sm:$0xff]  ;;  %v8585_v41 = vpop.f32.mrf.mxu0  ;;  %v1475_v18 = vld [vmem:[%s8822_s2 + $0x2708] sm:$0xff] }
 0x2b5   :  { %3420 = vmatmul.mubr.f32.vlgmr.msra.gmra.mxu1 %v5487_v4  ;;  %3899 = vmatpush3.msra.mxu0 %v1265_v21  ;;  %v1335_v4 = vld [vmem:[%s8822_s2 + $0x22a8] sm:$0xff]  ;;  %v1400_v57 = vld [vmem:[%s8822_s2 + $0x24b0] sm:$0xff] }
 0x2b6   :  { %3943 = vmatpush3.msra.mxu1 %v1425_v37  ;;  %3900 = vmatprep.subr.mxu0 %v1340_v42  ;;  %v1235_v21 = vld [vmem:[%s8822_s2 + $0x1f88] sm:$0xff]  ;;  %v8598_v37 = vpop.f32.mrf.mxu1  ;;  %v1310_v42 = vld [vmem:[%s8822_s2 + $0x21e0] sm:$0xff] }
 0x2b7   :  { %3944 = vmatprep.subr.mxu1 %v1500_v51  ;;  %3339 = vmatprep.mubr.f32.mxu0 %v5514_v25  ;;  %v1490_v25 = vld [vmem:[%s8822_s2 + $0x2780] sm:$0xff]  ;;  %v8610_v51 = vpop.f32.mrf.mxu0 }
 0x2b8   :  { %3901 = vmatpush3.msra.mxu0 %v1260_v53  ;;  %3945 = vmatpush3.msra.mxu1 %v1420_v60  ;;  %v1390_v53 = vld [vmem:[%s8822_s2 + $0x2460] sm:$0xff]  ;;  %v1305_v60 = vld [vmem:[%s8822_s2 + $0x21b8] sm:$0xff] }
 0x2b9   :  { %3340 = vmatmul.mubr.f32.gmra.mxu0 %v5524_v35  ;;  %3902 = vmatprep.subr.mxu0 %v1335_v4  ;;  %v1250_v35 = vld [vmem:[%s8822_s2 + $0x2000] sm:$0xff]  ;;  %v1465_v4 = vld [vmem:[%s8822_s2 + $0x26b8] sm:$0xff] }
 0x2ba   :  { %3946 = vmatprep.subr.mxu1 %v1495_v6  ;;  %3424 = vmatprep.mubr.f32.mxu1 %v5539_v46  ;;  %v1485_v46 = vld [vmem:[%s8822_s2 + $0x2758] sm:$0xff] }
 0x2bb   :  { %3903 = vmatpush3.msra.mxu0 %v1255_v0  ;;  %3947 = vmatpush3.msra.mxu1 %v1415_v32  ;;  %v1225_v6 = vld [vmem:[%s8822_s2 + $0x1f38] sm:$0xff]  ;;  %v1300_v32 = vld [vmem:[%s8822_s2 + $0x2190] sm:$0xff] }
 0x2bc   :  { %3904 = vmatprep.subr.mxu0 %v1330_v27  ;;  %3425 = vmatmul.mubr.f32.gmra.mxu1 %v5556_v10  ;;  %v1405_v10 = vld [vmem:[%s8822_s2 + $0x24d8] sm:$0xff]  ;;  %v1460_v27 = vld [vmem:[%s8822_s2 + $0x2690] sm:$0xff] }
 0x2bd   :  { %3948 = vmatprep.subr.mxu1 %v1490_v25  ;;  %3344 = vmatprep.mubr.f32.mxu0 %v5565_v48  ;;  %v1320_v48 = vld [vmem:[%s8822_s2 + $0x2230] sm:$0xff]  ;;  %v1385_v0 = vld [vmem:[%s8822_s2 + $0x2438] sm:$0xff] }
 0x2be   :  { %3905 = vmatpush3.msra.mxu0 %v1250_v35  ;;  %3949 = vmatpush3.msra.mxu1 %v1410_v28  ;;  %v1220_v25 = vld [vmem:[%s8822_s2 + $0x1f10] sm:$0xff]  ;;  %v1295_v28 = vld [vmem:[%s8822_s2 + $0x2168] sm:$0xff] }
 0x2bf   :  { %3345 = vmatmul.mubr.f32.gmra.mxu0 %v5575_v33  ;;  %3906 = vmatprep.subr.mxu0 %v1325_v63  ;;  %v1240_v33 = vld [vmem:[%s8822_s2 + $0x1fb0] sm:$0xff]  ;;  %v1455_v63 = vld [vmem:[%s8822_s2 + $0x2668] sm:$0xff] }
 0x2c0   :  { %3950 = vmatprep.subr.mxu1 %v1485_v46  ;;  %3429 = vmatprep.mubr.f32.mxu1 %v5591_v58  ;;  %v1315_v58 = vld [vmem:[%s8822_s2 + $0x2208] sm:$0xff]  ;;  %v1380_v35 = vld [vmem:[%s8822_s2 + $0x2410] sm:$0xff] }
 0x2c1   :  { %3907 = vmatpush3.msra.mxu0 %v1245_v43  ;;  %3951 = vmatpush3.msra.mxu1 %v1405_v10  ;;  %v1215_v43 = vld [vmem:[%s8822_s2 + $0x1ee8] sm:$0xff] }
 0x2c2   :  { %3908 = vmatprep.subr.mxu0 %v1320_v48  ;;  %3430 = vmatmul.mubr.f32.gmra.mxu1 %v5608_v22  ;;  %v1395_v22 = vld [vmem:[%s8822_s2 + $0x2488] sm:$0xff]  ;;  %v1290_v48 = vld [vmem:[%s8822_s2 + $0x2140] sm:$0xff] }
 0x2c3   :  { %3952 = vmatprep.subr.mxu1 %v1480_v56  ;;  %3349 = vmatprep.mubr.f32.mxu0 %v8952_v3  ;;  %v1470_v3 = vld [vmem:[%s8822_s2 + $0x26e0] sm:$0xff]  ;;  %v1375_v10 = vld [vmem:[%s8822_s2 + $0x23e8] sm:$0xff] }
 0x2c4   :  { %3909 = vmatpush3.msra.mxu0 %v1240_v33  ;;  %3953 = vmatpush3.msra.mxu1 %v1400_v57  ;;  %v1450_v56 = vld [vmem:[%s8822_s2 + $0x2640] sm:$0xff] }
 0x2c5   :  { %3350 = vmatmul.mubr.f32.gmra.mxu0 %v8953_v2  ;;  %3910 = vmatprep.subr.mxu0 %v1315_v58  ;;  %v1230_v2 = vld [vmem:[%s8822_s2 + $0x1f60] sm:$0xff] }
 0x2c6   :  { %3954 = vmatprep.subr.mxu1 %v1475_v18  ;;  %3434 = vmatprep.mubr.f32.mxu1 %v8954_v40  ;;  %v8625_v40 = vpop.f32.mrf.mxu1  ;;  %v1210_v57 = vld [vmem:[%s8822_s2 + $0x1ec0] sm:$0xff]  ;;  %v1285_v18 = vld [vmem:[%s8822_s2 + $0x2118] sm:$0xff] }
 0x2c7   :  { %3911 = vmatpush3.msra.mxu0 %v1235_v21  ;;  %3955 = vmatpush3.msra.mxu1 %v1395_v22  ;;  %v1370_v58 = vld [vmem:[%s8822_s2 + $0x23c0] sm:$0xff]  ;;  %v1445_v21 = vld [vmem:[%s8822_s2 + $0x2618] sm:$0xff] }
 0x2c8   :  { %3912 = vmatprep.subr.mxu0 %v1310_v42  ;;  %3435 = vmatmul.mubr.f32.gmra.mxu1 %v8955_v23  ;;  %v8640_v23 = vpop.f32.mrf.mxu0  ;;  %v8654_v46 = vpop.f32.mrf.mxu1  ;;  %v1205_v42 = vld [vmem:[%s8822_s2 + $0x1e98] sm:$0xff] }
 0x2c9   :  { %3956 = vmatprep.subr.mxu1 %v1470_v3  ;;  %3913 = vmatpush3.msra.mxu0 %v1230_v2  ;;  %v1365_v3 = vld [vmem:[%s8822_s2 + $0x2398] sm:$0xff]  ;;  %v1280_v2 = vld [vmem:[%s8822_s2 + $0x20f0] sm:$0xff] }
 0x2ca   :  { %3957 = vmatpush3.msra.mxu1 %v1390_v53  ;;  %3914 = vmatprep.subr.mxu0 %v1305_v60  ;;  %v8668_v33 = vpop.f32.mrf.mxu0  ;;  %v8682_v22 = vpop.f32.mrf.mxu1  ;;  %v1440_v53 = vld [vmem:[%s8822_s2 + $0x25f0] sm:$0xff] }
 0x2cb   :  { %3958 = vmatprep.subr.mxu1 %v1465_v4  ;;  %3915 = vmatpush3.msra.mxu0 %v1225_v6  ;;  %v1200_v4 = vld [vmem:[%s8822_s2 + $0x1e70] sm:$0xff] }
 0x2cc   :  { %3959 = vmatpush3.msra.mxu1 %v1385_v0  ;;  %3916 = vmatprep.subr.mxu0 %v1300_v32  ;;  %v8696_v60 = vpop.f32.mrf.mxu0  ;;  %v1360_v6 = vld [vmem:[%s8822_s2 + $0x2370] sm:$0xff]  ;;  %v1275_v0 = vld [vmem:[%s8822_s2 + $0x20c8] sm:$0xff] }
 0x2cd   :  { %3960 = vmatprep.subr.mxu1 %v1460_v27  ;;  %3917 = vmatpush3.msra.mxu0 %v1220_v25  ;;  %v1435_v32 = vld [vmem:[%s8822_s2 + $0x25c8] sm:$0xff]  ;;  %v8710_v27 = vpop.f32.mrf.mxu1 }
 0x2ce   :  { %3961 = vmatpush3.msra.mxu1 %v1380_v35  ;;  %3918 = vmatprep.subr.mxu0 %v1295_v28  ;;  %v1195_v25 = vld [vmem:[%s8822_s2 + $0x1e48] sm:$0xff]  ;;  %v1270_v28 = vld [vmem:[%s8822_s2 + $0x20a0] sm:$0xff] }
 0x2cf   :  { %3962 = vmatprep.subr.mxu1 %v1455_v63  ;;  %3919 = vmatpush3.msra.mxu0 %v1215_v43  ;;  %v1355_v35 = vld [vmem:[%s8822_s2 + $0x2348] sm:$0xff]  ;;  %v1430_v63 = vld [vmem:[%s8822_s2 + $0x25a0] sm:$0xff]  ;;  %v8724_v43 = vpop.f32.mrf.mxu0 }
 0x2d0   :  { %3963 = vmatpush3.msra.mxu1 %v1375_v10  ;;  %3920 = vmatprep.subr.mxu0 %v1290_v48  ;;  %v1190_v10 = vld [vmem:[%s8822_s2 + $0x1e20] sm:$0xff] }
 0x2d1   :  { %3964 = vmatprep.subr.mxu1 %v1450_v56  ;;  %3921 = vmatpush3.msra.mxu0 %v1210_v57  ;;  %v1350_v48 = vld [vmem:[%s8822_s2 + $0x2320] sm:$0xff]  ;;  %v8732_v56 = vpop.f32.mrf.mxu1  ;;  %v8735_v57 = vpop.f32.mrf.mxu0 }
 0x2d2   :  { %3965 = vmatpush3.msra.mxu1 %v1370_v58  ;;  %3922 = vmatprep.subr.mxu0 %v1285_v18 }
 0x2d3   :  { %3966 = vmatprep.subr.mxu1 %v1445_v21  ;;  %3923 = vmatpush3.msra.mxu0 %v1205_v42  ;;  %v8740_v58 = vpop.f32.mrf.mxu1  ;;  %v2640_v18 = vpop.f32.mrf.mxu0 }
 0x2d4   :  { %3967 = vmatpush3.msra.mxu1 %v1365_v3  ;;  %3924 = vmatprep.subr.mxu0 %v1280_v2  ;;  %v2382_v3 = vadd.f32 %v8474_v44, %v8448_v31 }
 0x2d5   :  { %3968 = vmatprep.subr.mxu1 %v1440_v53  ;;  %3925 = vmatpush3.msra.mxu0 %v1200_v4  ;;  %v2729_v21 = vpop.f32.mrf.mxu1 }
 0x2d6   :  { %3969 = vmatpush3.msra.mxu1 %v1360_v6  ;;  %3926 = vmatprep.subr.mxu0 %v1275_v0 }
 0x2d7   :  { %3970 = vmatprep.subr.mxu1 %v1435_v32  ;;  %3927 = vmatpush3.msra.mxu0 %v1195_v25 }
 0x2d8   :  { %3971 = vmatpush3.msra.mxu1 %v1355_v35  ;;  %3928 = vmatprep.subr.mxu0 %v1270_v28  ;;  %v2392_v35 = vadd.f32 %v8540_v7, %v8518_v39  ;;  %v2394_v28 = vadd.f32 %v8562_v8, %v8542_v12 }
 0x2d9   :  { %3972 = vmatprep.subr.mxu1 %v1430_v63  ;;  %3929 = vmatpush3.msra.mxu0 %v1190_v10 }
 0x2da   :  { %3504 = vmatprep.mubr.f32.mxu0 %v8956_v24  ;;  %3973 = vmatpush3.msra.mxu1 %v1350_v48  ;;  %v2642_v24 = vpop.f32.mrf.mxu0  ;;  %v2483_v7 = vadd.f32 %v8735_v57, %v2394_v28 }
 0x2db   :  { %3589 = vmatprep.mubr.f32.mxu1 %v8958_v1  ;;  %3505 = vmatmul.mubr.f32.vlgmr.msra.gmra.mxu0 %v8957_v26  ;;  %v2731_v26 = vpop.f32.mrf.mxu1 }
 0x2dc   :  { %3590 = vmatmul.mubr.f32.vlgmr.msra.gmra.mxu1 %v8959_v36  ;;  %3509 = vmatprep.mubr.f32.mxu0 %v8960_v47  ;;  %v2646_v1 = vpop.f32.mrf.mxu0 }
 0x2dd   :  { %3594 = vmatprep.mubr.f32.mxu1 %v8962_v11  ;;  %v2735_v36 = vpop.f32.mrf.mxu1 }
 0x2de   :  { %v2648_v47 = vpop.f32.mrf.mxu0 }
 0x2df   :  { %3510 = vmatmul.mubr.f32.gmra.mxu0 %v8961_v5  ;;  %v2737_v5 = vpop.f32.mrf.mxu1 }
 0x2e0   :  { %3595 = vmatmul.mubr.f32.gmra.mxu1 %v8963_v45  ;;  %3514 = vmatprep.mubr.f32.mxu0 %v8964_v16  ;;  %v2652_v11 = vpop.f32.mrf.mxu0  ;;  %v2374_v45 = vadd.f32 %v8402_v55, %v8375_v52 }
 0x2e1   :  { %3599 = vmatprep.mubr.f32.mxu1 %v8966_v50  ;;  %v2741_v16 = vpop.f32.mrf.mxu1 }
 0x2e2   :  { %v2463_v50 = vadd.f32 %v8564_v38, %v2374_v45  ;;  %v2471_v38 = vadd.f32 %v8640_v23, %v2382_v3 }
 0x2e3   :  { %3515 = vmatmul.mubr.f32.gmra.mxu0 %v8965_v14  ;;  %v2376_v14 = vadd.f32 %v8432_v59, %v8404_v9 }
 0x2e4   :  { %3600 = vmatmul.mubr.f32.gmra.mxu1 %v8967_v20  ;;  %3519 = vmatprep.mubr.f32.mxu0 %v8968_v29  ;;  %v2654_v20 = vpop.f32.mrf.mxu0 }
 0x2e5   :  { %3604 = vmatprep.mubr.f32.mxu1 %v8970_v49  ;;  %v2465_v29 = vadd.f32 %v8585_v41, %v2376_v14  ;;  %v2743_v49 = vpop.f32.mrf.mxu1  ;;  %v2386_v41 = vadd.f32 %v8491_v34, %v8476_v54 }
 0x2e6   :  { %v2658_v42 = vpop.f32.mrf.mxu0 }
 0x2e7   :  { %3520 = vmatmul.mubr.f32.gmra.mxu0 %v8969_v62  ;;  %v2380_v62 = vadd.f32 %v8446_v15, %v8418_v30  ;;  %v2554_v52 = vadd.f32 %v8598_v37, %v2465_v29  ;;  %v2747_v59 = vpop.f32.mrf.mxu1  ;;  %v2475_v31 = vadd.f32 %v8668_v33, %v2386_v41 }
 0x2e8   :  { %3605 = vmatmul.mubr.f32.gmra.mxu1 %v8971_v13  ;;  %v2552_v13 = vadd.f32 %v8576_v61, %v2463_v50  ;;  %v2660_v53 = vpop.f32.mrf.mxu0  ;;  %v2388_v61 = vadd.f32 %v8516_v17, %v8493_v19 }
 0x2e9   :  { %v2469_v55 = vadd.f32 %v8610_v51, %v2380_v62  ;;  %v2643_v2 = vadd.f32 %v2642_v24, %v2554_v52  ;;  %v2749_v44 = vpop.f32.mrf.mxu1  ;;  %v2560_v51 = vadd.f32 %v8654_v46, %v2471_v38  ;;  %v2564_v17 = vadd.f32 %v8682_v22, %v2475_v31 }
 0x2ea   :  { %v2641_v9 = vadd.f32 %v2640_v18, %v2552_v13  ;;  %v2477_v54 = vadd.f32 %v8696_v60, %v2388_v61  ;;  %v2481_v60 = vadd.f32 %v8724_v43, %v2392_v35 }
 0x2eb   :  { %v2558_v30 = vadd.f32 %v8625_v40, %v2469_v55  ;;  %v2732_v4 = vadd.f32 %v2731_v26, %v2643_v2  ;;  %v2649_v34 = vadd.f32 %v2648_v47, %v2560_v51  ;;  %v2653_v48 = vadd.f32 %v2652_v11, %v2564_v17 }
 0x2ec   :  { %v2730_v15 = vadd.f32 %v2729_v21, %v2641_v9  ;;  %v2566_v10 = vadd.f32 %v8710_v27, %v2477_v54  ;;  %v2570_v12 = vadd.f32 %v8732_v56, %v2481_v60 }
 0x2ed   :  { %v2647_v6 = vadd.f32 %v2646_v1, %v2558_v30  ;;  %v2738_v18 = vadd.f32 %v2737_v5, %v2649_v34  ;;  %v2742_v8 = vadd.f32 %v2741_v16, %v2653_v48  ;;  %v2572_v1 = vadd.f32 %v8740_v58, %v2483_v7 }
 0x2ee   :  { %v2655_v21 = vadd.f32 %v2654_v20, %v2566_v10  ;;  %v2659_v47 = vadd.f32 %v2658_v42, %v2570_v12 }
 0x2ef   :  { %v2736_v33 = vadd.f32 %v2735_v36, %v2647_v6  ;;  %v2661_v14 = vadd.f32 %v2660_v53, %v2572_v1 }
 0x2f0   :  { %v2744_v5 = vadd.f32 %v2743_v49, %v2655_v21  ;;  %v2748_v50 = vadd.f32 %v2747_v59, %v2659_v47 }
 0x2f1   :  { %v2750_v62 = vadd.f32 %v2749_v44, %v2661_v14 }
 0x2fb   :  { %v2818_v37 = vpop.f32.mrf.mxu0 }
 0x2fc   :  { %v2819_v23 = vadd.f32 %v2818_v37, %v2730_v15 }
 0x2fd   :  { %v2907_v0 = vpop.f32.mrf.mxu1  ;;  %v2820_v32 = vpop.f32.mrf.mxu0 }
 0x2fe   :  { %v2908_v25 = vadd.f32 %v2907_v0, %v2819_v23  ;;  %v2821_v40 = vadd.f32 %v2820_v32, %v2732_v4 }
 0x2ff   :  { %v2909_v19 = vpop.f32.mrf.mxu1 }
 0x300   :  { %3612 = vst [vmem:[%s8825_s3 + $0x10] sm:$0xff] %v2908_v25  ;;  %v2910_v46 = vadd.f32 %v2909_v19, %v2821_v40 }
 0x301   :  { %v2824_v63 = vpop.f32.mrf.mxu0 }
 0x302   :  { %3613 = vst [vmem:[%s8825_s3 + $0x18] sm:$0xff] %v2910_v46  ;;  %v2825_v39 = vadd.f32 %v2824_v63, %v2736_v33 }
 0x303   :  { %v2826_v22 = vpop.f32.mrf.mxu0 }
 0x304   :  { %v2827_v24 = vadd.f32 %v2826_v22, %v2738_v18  ;;  %v2913_v26 = vpop.f32.mrf.mxu1 }
 0x305   :  { %v2914_v43 = vadd.f32 %v2913_v26, %v2825_v39 }
 0x306   :  { %v2915_v36 = vpop.f32.mrf.mxu1 }
 0x307   :  { %v2830_v27 = vpop.f32.mrf.mxu0  ;;  %3617 = vst [vmem:[%s8825_s3 + $0x38] sm:$0xff] %v2914_v43  ;;  %v2916_v57 = vadd.f32 %v2915_v36, %v2827_v24 }
 0x308   :  { %v2831_v11 = vadd.f32 %v2830_v27, %v2742_v8 }
 0x309   :  { %v2832_v45 = vpop.f32.mrf.mxu0  ;;  %3618 = vst [vmem:[%s8825_s3 + $0x40] sm:$0xff] %v2916_v57 }
 0x30a   :  { %v2833_v56 = vadd.f32 %v2832_v45, %v2744_v5  ;;  %v2919_v16 = vpop.f32.mrf.mxu1 }
 0x30b   :  { %v2920_v58 = vadd.f32 %v2919_v16, %v2831_v11 }
 0x30c   :  { %v2921_v29 = vpop.f32.mrf.mxu1 }
 0x30d   :  { %v2836_v20 = vpop.f32.mrf.mxu0  ;;  %3622 = vst [vmem:[%s8825_s3 + $0x60] sm:$0xff] %v2920_v58  ;;  %v2922_v13 = vadd.f32 %v2921_v29, %v2833_v56 }
 0x30e   :  { %v2837_v49 = vadd.f32 %v2836_v20, %v2748_v50 }
 0x30f   :  { %v2838_v42 = vpop.f32.mrf.mxu0  ;;  %3623 = vst [vmem:[%s8825_s3 + $0x68] sm:$0xff] %v2922_v13 }
 0x310   :  { %v2839_v3 = vadd.f32 %v2838_v42, %v2750_v62  ;;  %v2925_v52 = vpop.f32.mrf.mxu1 }
 0x311   :  { %v2926_v55 = vadd.f32 %v2925_v52, %v2837_v49 }
 0x312   :  { %v2927_v9 = vpop.f32.mrf.mxu1 }
 0x313   :  { %3627 = vst [vmem:[%s8825_s3 + $0x88] sm:$0xff] %v2926_v55  ;;  %v2928_v59 = vadd.f32 %v2927_v9, %v2839_v3 }
 0x315   :  { %3628 = vst [vmem:[%s8825_s3 + $0x90] sm:$0xff] %v2928_v59 }
 0x323   :  { %v3666_v38 = vpop.f32.mrf.mxu0 }
 0x324   :  { %v3710_v2 = vpop.f32.mrf.mxu1 }
 0x325   :  { %v3667_v41 = vpop.f32.mrf.mxu0 }
 0x326   :  { %v3711_v53 = vpop.f32.mrf.mxu1  ;;  %v3668_v36 = vadd.f32 %v3667_v41, %v3666_v38 }
 0x327   :  { %v3712_v47 = vadd.f32 %v3711_v53, %v3710_v2 }
 0x329   :  { %v3082_v45 = vadd.f32 %v3712_v47, %v3668_v36 }
 0x338   :  { %v3669_v30 = vpop.f32.mrf.mxu0 }
 0x339   :  { %v3713_v15 = vpop.f32.mrf.mxu1 }
 0x33a   :  { %v3670_v61 = vpop.f32.mrf.mxu0 }
 0x33b   :  { %v3714_v31 = vpop.f32.mrf.mxu1  ;;  %v3671_v14 = vadd.f32 %v3670_v61, %v3669_v30 }
 0x33c   :  { %v3715_v56 = vadd.f32 %v3714_v31, %v3713_v15 }
 0x33e   :  { %v3672_v44 = vpop.f32.mrf.mxu0  ;;  %v3087_v13 = vadd.f32 %v3715_v56, %v3671_v14 }
 0x33f   :  { %v3716_v37 = vpop.f32.mrf.mxu1 }
 0x340   :  { %v3673_v51 = vpop.f32.mrf.mxu0 }
 0x341   :  { %v3717_v4 = vpop.f32.mrf.mxu1  ;;  %v3674_v20 = vadd.f32 %v3673_v51, %v3672_v44 }
 0x342   :  { %v3718_v29 = vadd.f32 %v3717_v4, %v3716_v37 }
 0x344   :  { %v3675_v6 = vpop.f32.mrf.mxu0  ;;  %v3092_v59 = vadd.f32 %v3718_v29, %v3674_v20 }
 0x345   :  { %v3719_v23 = vpop.f32.mrf.mxu1 }
 0x346   :  { %v3676_v0 = vpop.f32.mrf.mxu0 }
 0x347   :  { %v3720_v32 = vpop.f32.mrf.mxu1  ;;  %v3677_v38 = vadd.f32 %v3676_v0, %v3675_v6 }
 0x348   :  { %v3721_v2 = vadd.f32 %v3720_v32, %v3719_v23 }
 0x34b   :  { %v3754_v54 = vpop.f32.mrf.mxu0 }
 0x34d   :  { %v3798_v34 = vpop.f32.mrf.mxu1  ;;  %v3755_v25 = vpop.f32.mrf.mxu0 }
 0x34e   :  { %v3756_v5 = vadd.f32 %v3755_v25, %v3754_v54 }
 0x34f   :  { %v3799_v40 = vpop.f32.mrf.mxu1 }
 0x350   :  { %v3167_v16 = vadd.f32 %v3756_v5, %v3082_v45  ;;  %v3800_v50 = vadd.f32 %v3799_v40, %v3798_v34  ;;  %v3097_v34 = vadd.f32 %v3721_v2, %v3677_v38 }
 0x351   :  { %v3757_v35 = vpop.f32.mrf.mxu0 }
 0x352   :  { %v3252_v52 = vadd.f32 %v3800_v50, %v3167_v16 }
 0x353   :  { %v3758_v17 = vpop.f32.mrf.mxu0 }
 0x354   :  { %v3801_v19 = vpop.f32.mrf.mxu1  ;;  %v3759_v58 = vadd.f32 %v3758_v17, %v3757_v35 }
 0x356   :  { %v3802_v33 = vpop.f32.mrf.mxu1  ;;  %v3172_v55 = vadd.f32 %v3759_v58, %v3087_v13 }
 0x357   :  { %v3760_v46 = vpop.f32.mrf.mxu0  ;;  %v3803_v9 = vadd.f32 %v3802_v33, %v3801_v19 }
 0x359   :  { %v3761_v60 = vpop.f32.mrf.mxu0  ;;  %v3257_v51 = vadd.f32 %v3803_v9, %v3172_v55 }
 0x35a   :  { %v3804_v28 = vpop.f32.mrf.mxu1  ;;  %v3762_v3 = vadd.f32 %v3761_v60, %v3760_v46 }
 0x35c   :  { %v3805_v63 = vpop.f32.mrf.mxu1  ;;  %v3177_v31 = vadd.f32 %v3762_v3, %v3092_v59 }
 0x35d   :  { %v3763_v10 = vpop.f32.mrf.mxu0  ;;  %v3806_v54 = vadd.f32 %v3805_v63, %v3804_v28 }
 0x35f   :  { %v3764_v18 = vpop.f32.mrf.mxu0  ;;  %v3262_v23 = vadd.f32 %v3806_v54, %v3177_v31 }
 0x360   :  { %v3807_v48 = vpop.f32.mrf.mxu1  ;;  %v3765_v4 = vadd.f32 %v3764_v18, %v3763_v10 }
 0x362   :  { %v3808_v39 = vpop.f32.mrf.mxu1  ;;  %v3182_v46 = vadd.f32 %v3765_v4, %v3097_v34 }
 0x363   :  { %v3809_v60 = vadd.f32 %v3808_v39, %v3807_v48 }
 0x365   :  { %v3267_v47 = vadd.f32 %v3809_v60, %v3182_v46 }
 0x373   :  { %v3842_v7 = vpop.f32.mrf.mxu0 }
 0x375   :  { %v3886_v22 = vpop.f32.mrf.mxu1  ;;  %v3843_v21 = vpop.f32.mrf.mxu0 }
 0x376   :  { %v3844_v42 = vadd.f32 %v3843_v21, %v3842_v7 }
 0x377   :  { %v3887_v24 = vpop.f32.mrf.mxu1 }
 0x378   :  { %v3337_v30 = vadd.f32 %v3844_v42, %v3252_v52  ;;  %v3888_v15 = vadd.f32 %v3887_v24, %v3886_v22 }
 0x379   :  { %v3845_v26 = vpop.f32.mrf.mxu0 }
 0x37a   :  { %v3422_v17 = vadd.f32 %v3888_v15, %v3337_v30 }
 0x37b   :  { %v3846_v8 = vpop.f32.mrf.mxu0 }
 0x37c   :  { %v3889_v12 = vpop.f32.mrf.mxu1  ;;  %v3847_v61 = vadd.f32 %v3846_v8, %v3845_v26 }
 0x37e   :  { %v3890_v43 = vpop.f32.mrf.mxu1  ;;  %v3342_v19 = vadd.f32 %v3847_v61, %v3257_v51 }
 0x37f   :  { %v3848_v1 = vpop.f32.mrf.mxu0  ;;  %v3891_v33 = vadd.f32 %v3890_v43, %v3889_v12 }
 0x381   :  { %v3849_v11 = vpop.f32.mrf.mxu0  ;;  %v3427_v10 = vadd.f32 %v3891_v33, %v3342_v19 }
 0x382   :  { %v3892_v27 = vpop.f32.mrf.mxu1  ;;  %v3850_v25 = vadd.f32 %v3849_v11, %v3848_v1 }
 0x384   :  { %v3893_v57 = vpop.f32.mrf.mxu1  ;;  %v3347_v28 = vadd.f32 %v3850_v25, %v3262_v23 }
 0x385   :  { %v3851_v62 = vpop.f32.mrf.mxu0  ;;  %v3894_v63 = vadd.f32 %v3893_v57, %v3892_v27 }
 0x387   :  { %v3852_v41 = vpop.f32.mrf.mxu0  ;;  %v3432_v48 = vadd.f32 %v3894_v63, %v3347_v28 }
 0x388   :  { %v3895_v49 = vpop.f32.mrf.mxu1  ;;  %v3853_v18 = vadd.f32 %v3852_v41, %v3851_v62 }
 0x38a   :  { %v3896_v53 = vpop.f32.mrf.mxu1  ;;  %v3352_v11 = vadd.f32 %v3853_v18, %v3267_v47 }
 0x38b   :  { %v3897_v27 = vadd.f32 %v3896_v53, %v3895_v49 }
 0x38d   :  { %v3437_v29 = vadd.f32 %v3897_v27, %v3352_v11 }
 0x39b   :  { %v3930_v44 = vpop.f32.mrf.mxu0 }
 0x39c   :  { %v3974_v37 = vpop.f32.mrf.mxu1 }
 0x39d   :  { %v3931_v40 = vpop.f32.mrf.mxu0 }
 0x39e   :  { %v3975_v35 = vpop.f32.mrf.mxu1  ;;  %v3932_v6 = vadd.f32 %v3931_v40, %v3930_v44 }
 0x39f   :  { %v3933_v0 = vpop.f32.mrf.mxu0  ;;  %v3976_v22 = vadd.f32 %v3975_v35, %v3974_v37 }
 0x3a0   :  { %v3977_v32 = vpop.f32.mrf.mxu1  ;;  %v3507_v7 = vadd.f32 %v3932_v6, %v3422_v17 }
 0x3a1   :  { %v3934_v21 = vpop.f32.mrf.mxu0 }
 0x3a2   :  { %v3978_v24 = vpop.f32.mrf.mxu1  ;;  %v3592_v26 = vadd.f32 %v3976_v22, %v3507_v7  ;;  %v3935_v8 = vadd.f32 %v3934_v21, %v3933_v0 }
 0x3a3   :  { %v3936_v1 = vpop.f32.mrf.mxu0  ;;  %v3979_v43 = vadd.f32 %v3978_v24, %v3977_v32 }
 0x3a4   :  { %v3980_v36 = vpop.f32.mrf.mxu1  ;;  %3614 = vst [vmem:[%s8825_s3 + $0x20] sm:$0xff] %v3592_v26  ;;  %v3512_v12 = vadd.f32 %v3935_v8, %v3427_v10 }
 0x3a5   :  { %v3937_v39 = vpop.f32.mrf.mxu0 }
 0x3a6   :  { %v3981_v5 = vpop.f32.mrf.mxu1  ;;  %v3597_v57 = vadd.f32 %v3979_v43, %v3512_v12  ;;  %v3938_v45 = vadd.f32 %v3937_v39, %v3936_v1 }
 0x3a7   :  { %v3939_v14 = vpop.f32.mrf.mxu0  ;;  %v3982_v50 = vadd.f32 %v3981_v5, %v3980_v36 }
 0x3a8   :  { %v3983_v56 = vpop.f32.mrf.mxu1  ;;  %3619 = vst [vmem:[%s8825_s3 + $0x48] sm:$0xff] %v3597_v57  ;;  %v3517_v16 = vadd.f32 %v3938_v45, %v3432_v48 }
 0x3a9   :  { %v3940_v58 = vpop.f32.mrf.mxu0 }
 0x3aa   :  { %v3984_v20 = vpop.f32.mrf.mxu1  ;;  %v3602_v62 = vadd.f32 %v3982_v50, %v3517_v16  ;;  %v3941_v13 = vadd.f32 %v3940_v58, %v3939_v14 }
 0x3ab   :  { %v3985_v42 = vadd.f32 %v3984_v20, %v3983_v56 }
 0x3ac   :  { %3624 = vst [vmem:[%s8825_s3 + $0x70] sm:$0xff] %v3602_v62  ;;  %v3522_v49 = vadd.f32 %v3941_v13, %v3437_v29 }
 0x3ae   :  { %v3607_v3 = vadd.f32 %v3985_v42, %v3522_v49 }
 0x3b0   :  { %3629 = vst [vmem:[%s8825_s3 + $0x98] sm:$0xff] %v3607_v3 }

</bundles_post_ra>
